<compile_context>
chip_gen: v7x
topology: tpu7x:2x2x1
jax: 0.10.0
libtpu: 0.0.40
codegen_flags: <defaults>
</compile_context>

<pallas_src>
import functools

import numpy as np
import jax
import jax.numpy as jnp
from jax import lax
from jax.experimental import pallas as pl
from jax.experimental.pallas import tpu as pltpu

EPS = 1e-5
CM = 16            # channel_mult
FC_OUT = 512       # fc_output_dim

_COMPILER_PARAMS = pltpu.CompilerParams(
    dimension_semantics=("parallel",),
    vmem_limit_bytes=32 * 1024 * 1024,
)


# ----------------------------- Pallas kernels --------------------------------
def _fused_matmul_kernel(x_ref, w_ref, scale_ref, bias_ref, o_ref, *, act):
    """o = act((x @ w) * scale + bias); w stored bf16, math in f32."""
    w = w_ref[...].astype(jnp.float32)
    y = jnp.dot(x_ref[...], w, preferred_element_type=jnp.float32)
    y = y * scale_ref[...] + bias_ref[...]
    if act == "relu":
        y = jnp.maximum(y, 0.0)
    elif act == "sigmoid":
        y = jax.nn.sigmoid(y)
    o_ref[...] = y.astype(o_ref.dtype)


def _fused_fc_deconv1_kernel(x_ref, w0_ref, s0_ref, b0_ref,
                             w1_ref, s1_ref, b1_ref, o_ref):
    """Fused fc + deconv1:  o = relu((relu((x@w0)*s0+b0) @ w1)*s1+b1)."""
    w0 = w0_ref[...].astype(jnp.float32)
    h = jnp.dot(x_ref[...], w0, preferred_element_type=jnp.float32)
    h = jnp.maximum(h * s0_ref[...] + b0_ref[...], 0.0)
    w1 = w1_ref[...].astype(jnp.float32)
    y = jnp.dot(h, w1, preferred_element_type=jnp.float32)
    y = jnp.maximum(y * s1_ref[...] + b1_ref[...], 0.0)
    o_ref[...] = y.astype(o_ref.dtype)


# ------------------------------ call wrappers ---------------------------------
def _pick_num_tiles(m, kc):
    # ~1.5 MB activation tiles; even tile counts so v7x's 2 TCs split evenly.
    for t in (8, 4, 2):
        if m % t == 0 and (m // t) % 8 == 0 and (m // t) * kc * 4 >= (1 << 20):
            return t
    return 1


def fused_matmul_affine_act(x, w, scale, bias, act):
    m, kc = x.shape
    co = w.shape[1]
    t = _pick_num_tiles(m, kc)
    tm = m // t
    return pl.pallas_call(
        functools.partial(_fused_matmul_kernel, act=act),
        out_shape=jax.ShapeDtypeStruct((m, co), jnp.float32),
        grid_spec=pltpu.PrefetchScalarGridSpec(
            num_scalar_prefetch=0,
            grid=(t,),
            in_specs=[
                pl.BlockSpec((tm, kc), lambda i: (i, 0)),   # activation row tile
                pl.BlockSpec((kc, co), lambda i: (0, 0)),   # compact bf16 weight
                pl.BlockSpec((1, co), lambda i: (0, 0)),    # folded BN scale
                pl.BlockSpec((1, co), lambda i: (0, 0)),    # folded BN bias
            ],
            out_specs=pl.BlockSpec((tm, co), lambda i: (i, 0)),
        ),
        compiler_params=_COMPILER_PARAMS,
    )(x, w, scale.reshape(1, co), bias.reshape(1, co))


def fused_fc_deconv1(x, w0, s0, b0, w1, s1, b1):
    m, e = x.shape
    f0 = w0.shape[1]
    f1 = w1.shape[1]
    return pl.pallas_call(
        _fused_fc_deconv1_kernel,
        out_shape=jax.ShapeDtypeStruct((m, f1), jnp.float32),
        grid_spec=pltpu.PrefetchScalarGridSpec(
            num_scalar_prefetch=0,
            grid=(1,),
            in_specs=[
                pl.BlockSpec((m, e), lambda i: (0, 0)),
                pl.BlockSpec((e, f0), lambda i: (0, 0)),
                pl.BlockSpec((1, f0), lambda i: (0, 0)),
                pl.BlockSpec((1, f0), lambda i: (0, 0)),
                pl.BlockSpec((f0, f1), lambda i: (0, 0)),
                pl.BlockSpec((1, f1), lambda i: (0, 0)),
                pl.BlockSpec((1, f1), lambda i: (0, 0)),
            ],
            out_specs=pl.BlockSpec((m, f1), lambda i: (0, 0)),
        ),
        compiler_params=_COMPILER_PARAMS,
    )(x, w0, s0.reshape(1, f0), b0.reshape(1, f0),
      w1, s1.reshape(1, f1), b1.reshape(1, f1))


# ------------------------------ im2col glue -----------------------------------
def _im2col_deconv(h, k, stride, pad):
    """h: [N, Hi, Wi, Ci] NHWC -> patches [N*Ho*Wo, K*K*Ci] for the equivalent
    stride-1 conv of the dilated+padded input (== ConvTranspose2d)."""
    n, hi, wi, ci = h.shape
    pp = k - 1 - pad
    ho = (hi - 1) * stride + k - 2 * pad
    cfg = (pp, pp, stride - 1)                       # (low, high, interior)
    xp = lax.pad(h, jnp.array(0.0, h.dtype), ((0, 0, 0), cfg, cfg, (0, 0, 0)))
    cols = [xp[:, kh:kh + ho, kw:kw + ho, :] for kh in range(k) for kw in range(k)]
    patches = jnp.concatenate(cols, axis=-1)         # [N, Ho, Ho, K*K*Ci]
    return patches.reshape(n * ho * ho, k * k * ci), ho


# --------------------------- parameter setup (glue) ---------------------------
def _bf16_round(a):
    return np.asarray(jnp.asarray(a, dtype=jnp.bfloat16).astype(jnp.float32))


def _deconv_weight_matrix(w):
    """[Ci,Co,K,K] ConvTranspose2d weight -> compact [K*K*Ci, Co] matrix
    matching the (kh, kw, ci) patch ordering of _im2col_deconv (kernel flipped)."""
    k = w.shape[2]
    wf = np.flip(w, axis=(2, 3))
    return np.ascontiguousarray(
        np.transpose(wf, (2, 3, 0, 1)).reshape(k * k * w.shape[0], w.shape[1]))


def build_params(key, embedding_size):
    """Deterministic 'PyTorch-layout' parameters (weights rounded to bf16 grid)."""
    keys = iter(jax.random.split(key, 32))

    def nrm(shape, s=0.1):
        return np.asarray(s * jax.random.normal(next(keys), shape, dtype=jnp.float32))

    def bn(c):
        gamma = np.asarray(1.0 + 0.1 * jax.random.normal(next(keys), (c,), dtype=jnp.float32))
        beta = nrm((c,))
        mean = nrm((c,))
        var = np.asarray(1.0 + 0.5 * jax.random.uniform(next(keys), (c,), dtype=jnp.float32))
        return gamma, beta, mean, var

    p = {}
    p["fc_w"] = _bf16_round(nrm((FC_OUT, embedding_size)))   # torch Linear [out, in]
    p["fc_b"] = nrm((FC_OUT,))
    p["bn_fc"] = bn(FC_OUT)

    # (Ci, Co, K, stride, pad):  1x1->4x4, 4x4->7x7, 7x7->14x14, 14x14->28x28
    p["convs"] = [
        (FC_OUT, CM * 4, 4, 1, 0),
        (CM * 4, CM * 2, 3, 2, 1),
        (CM * 2, CM * 1, 4, 2, 1),
        (CM * 1, 1, 4, 2, 1),
    ]
    p["deconv_w"] = [_bf16_round(nrm((ci, co, k, k))) for (ci, co, k, _, _) in p["convs"]]
    p["bn_deconv"] = [bn(co) for (_, co, _, _, _) in p["convs"][:3]]
    return p


def build_kernel_params(p):
    """Fold BN (eval mode) into per-column scale/bias; compact bf16 weights."""
    kp = {}
    g, b, m, v = p["bn_fc"]
    s_fc = g / np.sqrt(v + EPS)
    kp["w_fc"] = jnp.asarray(np.ascontiguousarray(p["fc_w"].T), dtype=jnp.bfloat16)
    kp["s_fc"] = jnp.asarray(s_fc, dtype=jnp.float32)
    kp["b_fc"] = jnp.asarray((p["fc_b"] - m) * s_fc + b, dtype=jnp.float32)

    # deconv1 (1x1 input): plain matmul, output columns ordered (oh, ow, co)
    ci, co, k, _, _ = p["convs"][0]
    wm1 = np.transpose(p["deconv_w"][0], (0, 2, 3, 1)).reshape(ci, k * k * co)
    g, b, m, v = p["bn_deconv"][0]
    s1 = g / np.sqrt(v + EPS)
    kp["w_d1"] = jnp.asarray(np.ascontiguousarray(wm1), dtype=jnp.bfloat16)
    kp["s_d1"] = jnp.asarray(np.tile(s1, k * k), dtype=jnp.float32)
    kp["b_d1"] = jnp.asarray(np.tile(b - m * s1, k * k), dtype=jnp.float32)

    # deconv2 / deconv3: im2col matmul + folded BN + ReLU
    for idx in (1, 2):
        _, co, _, _, _ = p["convs"][idx]
        wm = _deconv_weight_matrix(p["deconv_w"][idx])
        g, b, m, v = p["bn_deconv"][idx]
        s = g / np.sqrt(v + EPS)
        kp[f"w_d{idx + 1}"] = jnp.asarray(wm, dtype=jnp.bfloat16)
        kp[f"s_d{idx + 1}"] = jnp.asarray(s, dtype=jnp.float32)
        kp[f"b_d{idx + 1}"] = jnp.asarray(b - m * s, dtype=jnp.float32)

    # deconv4: no BN, sigmoid.  Pad Co=1 -> 8 lanes (zero cols sliced off later).
    _, co, k, _, _ = p["convs"][3]
    wm4 = np.pad(_deconv_weight_matrix(p["deconv_w"][3]), ((0, 0), (0, 8 - co)))
    kp["w_d4"] = jnp.asarray(wm4, dtype=jnp.bfloat16)
    kp["s_d4"] = jnp.ones((8,), jnp.float32)
    kp["b_d4"] = jnp.zeros((8,), jnp.float32)
    return kp


# --------------------------------- forward ------------------------------------
def cnn_decoder_forward(x, kp):
    n = x.shape[0]
    # fc (+BN1d+ReLU) fused with deconv1 (+BN2d+ReLU): [N, E] -> [N, 4*4*64]
    h = fused_fc_deconv1(x, kp["w_fc"], kp["s_fc"], kp["b_fc"],
                         kp["w_d1"], kp["s_d1"], kp["b_d1"])
    h = h.reshape(n, 4, 4, CM * 4)                                   # NHWC

    # deconv2: 4x4 -> 7x7
    patches, ho = _im2col_deconv(h, k=3, stride=2, pad=1)
    h = fused_matmul_affine_act(patches, kp["w_d2"], kp["s_d2"], kp["b_d2"], "relu")
    h = h.reshape(n, ho, ho, CM * 2)

    # deconv3: 7x7 -> 14x14
    patches, ho = _im2col_deconv(h, k=4, stride=2, pad=1)
    h = fused_matmul_affine_act(patches, kp["w_d3"], kp["s_d3"], kp["b_d3"], "relu")
    h = h.reshape(n, ho, ho, CM)

    # deconv4: 14x14 -> 28x28 + sigmoid
    patches, ho = _im2col_deconv(h, k=4, stride=2, pad=1)
    h = fused_matmul_affine_act(patches, kp["w_d4"], kp["s_d4"], kp["b_d4"], "sigmoid")
    return h[:, :1].reshape(n, ho * ho)                              # == view(-1, 784)


# --------------------------- PyTorch-faithful reference -----------------------
def reference_forward(x, p):
    hp = lax.Precision.HIGHEST
    g, b, m, v = (jnp.asarray(a) for a in p["bn_fc"])
    h = jnp.dot(x, jnp.asarray(p["fc_w"]).T, precision=hp) + jnp.asarray(p["fc_b"])
    h = (h - m) / jnp.sqrt(v + EPS) * g + b
    h = jnp.maximum(h, 0.0)
    h = h.reshape(-1, FC_OUT, 1, 1)
    for i, (_, _, k, st, pd) in enumerate(p["convs"]):
        w = jnp.asarray(p["deconv_w"][i])                            # [Ci,Co,K,K]
        wconv = jnp.flip(w, (2, 3)).transpose(1, 0, 2, 3)            # [Co,Ci,K,K]
        h = lax.conv_general_dilated(
            h, wconv, window_strides=(1, 1),
            padding=[(k - 1 - pd, k - 1 - pd)] * 2,
            lhs_dilation=(st, st),
            dimension_numbers=("NCHW", "OIHW", "NCHW"),
            precision=hp)
        if i < 3:
            g, b, m, v = (jnp.asarray(a) for a in p["bn_deconv"][i])
            h = (h - m[None, :, None, None]) / jnp.sqrt(v + EPS)[None, :, None, None] \
                * g[None, :, None, None] + b[None, :, None, None]
            h = jnp.maximum(h, 0.0)
        else:
            h = jax.nn.sigmoid(h)
    return h.reshape(-1, 28 * 28)


# ----------------------------------- main --------------------------------------
if __name__ == "__main__":
    batch, embedding_size = 2, 32
    key = jax.random.PRNGKey(0)
    k_x, k_p = jax.random.split(key)

    x = jax.random.normal(k_x, (batch, embedding_size), dtype=jnp.float32)
    p = build_params(k_p, embedding_size)
    kp = build_kernel_params(p)

    # Pad batch to a multiple of 8 rows (sublane alignment); slice back after.
    n_pad = ((batch + 7) // 8) * 8
    x_pad = jnp.zeros((n_pad, embedding_size), jnp.float32).at[:batch].set(x)

    forward = jax.jit(cnn_decoder_forward)
    out = jax.block_until_ready(forward(x_pad, kp))[:batch]
    assert out.shape == (batch, 28 * 28), out.shape

    ref = jax.block_until_ready(reference_forward(x, p))
    diff = np.max(np.abs(np.asarray(out) - np.asarray(ref)))
    assert np.allclose(np.asarray(out), np.asarray(ref), atol=5e-3, rtol=5e-3), diff

    print("KERNEL_OK")
</pallas_src>

<mosaic_0001>
module attributes {stable_mosaic.version = 11 : i64} {
  func.func @_fused_fc_deconv1_kernel(%arg0: i32, %arg1: memref<8x32xf32, #tpu.memory_space<vmem>>, %arg2: memref<32x512xbf16, #tpu.memory_space<vmem>>, %arg3: memref<1x512xf32, #tpu.memory_space<vmem>>, %arg4: memref<1x512xf32, #tpu.memory_space<vmem>>, %arg5: memref<512x1024xbf16, #tpu.memory_space<vmem>>, %arg6: memref<1x1024xf32, #tpu.memory_space<vmem>>, %arg7: memref<1x1024xf32, #tpu.memory_space<vmem>>, %arg8: memref<8x1024xf32, #tpu.memory_space<vmem>>) attributes {dimension_semantics = [#tpu.dimension_semantics<parallel>], iteration_bounds = array<i64: 1>, scalar_prefetch = 0 : i64, scratch_operands = 0 : i64, tpu.core_type = #tpu.core_type<tc>, window_params = [{pipeline_mode = #tpu.pipeline_mode<synchronous>, transform_indices = @transform_0, window_bounds = array<i64: 8, 32>}, {pipeline_mode = #tpu.pipeline_mode<synchronous>, transform_indices = @transform_1, window_bounds = array<i64: 32, 512>}, {pipeline_mode = #tpu.pipeline_mode<synchronous>, transform_indices = @transform_2, window_bounds = array<i64: 1, 512>}, {pipeline_mode = #tpu.pipeline_mode<synchronous>, transform_indices = @transform_3, window_bounds = array<i64: 1, 512>}, {pipeline_mode = #tpu.pipeline_mode<synchronous>, transform_indices = @transform_4, window_bounds = array<i64: 512, 1024>}, {pipeline_mode = #tpu.pipeline_mode<synchronous>, transform_indices = @transform_5, window_bounds = array<i64: 1, 1024>}, {pipeline_mode = #tpu.pipeline_mode<synchronous>, transform_indices = @transform_6, window_bounds = array<i64: 1, 1024>}, {pipeline_mode = #tpu.pipeline_mode<synchronous>, transform_indices = @transform_7, window_bounds = array<i64: 8, 1024>}]} {
    %c0 = arith.constant 0 : index
    %c0_0 = arith.constant 0 : index
    %0 = vector.load %arg2[%c0, %c0_0] : memref<32x512xbf16, #tpu.memory_space<vmem>>, vector<32x512xbf16>
    %1 = arith.extf %0 : vector<32x512xbf16> to vector<32x512xf32>
    %c0_1 = arith.constant 0 : index
    %c0_2 = arith.constant 0 : index
    %2 = vector.load %arg1[%c0_1, %c0_2] : memref<8x32xf32, #tpu.memory_space<vmem>>, vector<8x32xf32>
    %cst = arith.constant dense<0.000000e+00> : vector<8x512xf32>
    %3 = tpu.matmul %2, %1, %cst {dimension_numbers = #tpu.dot_dimension_numbers<[1], [0], [0], [1], [0, 0, 1, 1], [], []>} : vector<8x32xf32>, vector<32x512xf32>, vector<8x512xf32> -> vector<8x512xf32>
    %c0_3 = arith.constant 0 : index
    %c0_4 = arith.constant 0 : index
    %4 = vector.load %arg3[%c0_3, %c0_4] : memref<1x512xf32, #tpu.memory_space<vmem>>, vector<1x512xf32>
    %5 = vector.broadcast %4 : vector<1x512xf32> to vector<8x512xf32>
    %6 = arith.mulf %3, %5 : vector<8x512xf32>
    %c0_5 = arith.constant 0 : index
    %c0_6 = arith.constant 0 : index
    %7 = vector.load %arg4[%c0_5, %c0_6] : memref<1x512xf32, #tpu.memory_space<vmem>>, vector<1x512xf32>
    %8 = vector.broadcast %7 : vector<1x512xf32> to vector<8x512xf32>
    %9 = arith.addf %6, %8 : vector<8x512xf32>
    %cst_7 = arith.constant 0.000000e+00 : f32
    %10 = vector.broadcast %cst_7 : f32 to vector<8x512xf32>
    %11 = arith.maximumf %9, %10 : vector<8x512xf32>
    %c0_8 = arith.constant 0 : index
    %c0_9 = arith.constant 0 : index
    %12 = vector.load %arg5[%c0_8, %c0_9] : memref<512x1024xbf16, #tpu.memory_space<vmem>>, vector<512x1024xbf16>
    %13 = arith.extf %12 : vector<512x1024xbf16> to vector<512x1024xf32>
    %cst_10 = arith.constant dense<0.000000e+00> : vector<8x1024xf32>
    %14 = tpu.matmul %11, %13, %cst_10 {dimension_numbers = #tpu.dot_dimension_numbers<[1], [0], [0], [1], [0, 0, 1, 1], [], []>} : vector<8x512xf32>, vector<512x1024xf32>, vector<8x1024xf32> -> vector<8x1024xf32>
    %c0_11 = arith.constant 0 : index
    %c0_12 = arith.constant 0 : index
    %15 = vector.load %arg6[%c0_11, %c0_12] : memref<1x1024xf32, #tpu.memory_space<vmem>>, vector<1x1024xf32>
    %16 = vector.broadcast %15 : vector<1x1024xf32> to vector<8x1024xf32>
    %17 = arith.mulf %14, %16 : vector<8x1024xf32>
    %c0_13 = arith.constant 0 : index
    %c0_14 = arith.constant 0 : index
    %18 = vector.load %arg7[%c0_13, %c0_14] : memref<1x1024xf32, #tpu.memory_space<vmem>>, vector<1x1024xf32>
    %19 = vector.broadcast %18 : vector<1x1024xf32> to vector<8x1024xf32>
    %20 = arith.addf %17, %19 : vector<8x1024xf32>
    %cst_15 = arith.constant 0.000000e+00 : f32
    %21 = vector.broadcast %cst_15 : f32 to vector<8x1024xf32>
    %22 = arith.maximumf %20, %21 : vector<8x1024xf32>
    %c0_16 = arith.constant 0 : index
    %c0_17 = arith.constant 0 : index
    %23 = vector.load %arg8[%c0_16, %c0_17] : memref<8x1024xf32, #tpu.memory_space<vmem>>, vector<8x1024xf32>
    tpu.vector_store %arg8[%c0_16, %c0_17], %22 {strides = array<i32>} : memref<8x1024xf32, #tpu.memory_space<vmem>>, vector<8x1024xf32>,
    return
  }
  func.func @transform_0(%arg0: i32) -> (i32, i32) {
    %c0_i32 = arith.constant 0 : i32
    %c0_i32_0 = arith.constant 0 : i32
    %c0_i32_1 = arith.constant 0 : i32
    return %c0_i32, %c0_i32_0 : i32, i32
  }
  func.func @transform_1(%arg0: i32) -> (i32, i32) {
    %c0_i32 = arith.constant 0 : i32
    %c0_i32_0 = arith.constant 0 : i32
    %c0_i32_1 = arith.constant 0 : i32
    return %c0_i32, %c0_i32_0 : i32, i32
  }
  func.func @transform_2(%arg0: i32) -> (i32, i32) {
    %c0_i32 = arith.constant 0 : i32
    %c0_i32_0 = arith.constant 0 : i32
    %c0_i32_1 = arith.constant 0 : i32
    return %c0_i32, %c0_i32_0 : i32, i32
  }
  func.func @transform_3(%arg0: i32) -> (i32, i32) {
    %c0_i32 = arith.constant 0 : i32
    %c0_i32_0 = arith.constant 0 : i32
    %c0_i32_1 = arith.constant 0 : i32
    return %c0_i32, %c0_i32_0 : i32, i32
  }
  func.func @transform_4(%arg0: i32) -> (i32, i32) {
    %c0_i32 = arith.constant 0 : i32
    %c0_i32_0 = arith.constant 0 : i32
    %c0_i32_1 = arith.constant 0 : i32
    return %c0_i32, %c0_i32_0 : i32, i32
  }
  func.func @transform_5(%arg0: i32) -> (i32, i32) {
    %c0_i32 = arith.constant 0 : i32
    %c0_i32_0 = arith.constant 0 : i32
    %c0_i32_1 = arith.constant 0 : i32
    return %c0_i32, %c0_i32_0 : i32, i32
  }
  func.func @transform_6(%arg0: i32) -> (i32, i32) {
    %c0_i32 = arith.constant 0 : i32
    %c0_i32_0 = arith.constant 0 : i32
    %c0_i32_1 = arith.constant 0 : i32
    return %c0_i32, %c0_i32_0 : i32, i32
  }
  func.func @transform_7(%arg0: i32) -> (i32, i32) {
    %c0_i32 = arith.constant 0 : i32
    %c0_i32_0 = arith.constant 0 : i32
    %c0_i32_1 = arith.constant 0 : i32
    return %c0_i32, %c0_i32_0 : i32, i32
  }
}

module attributes {stable_mosaic.version = 11 : i64} {
  func.func @_fused_matmul_kernel(%arg0: i32, %arg1: memref<392x576xf32, #tpu.memory_space<vmem>>, %arg2: memref<576x32xbf16, #tpu.memory_space<vmem>>, %arg3: memref<1x32xf32, #tpu.memory_space<vmem>>, %arg4: memref<1x32xf32, #tpu.memory_space<vmem>>, %arg5: memref<392x32xf32, #tpu.memory_space<vmem>>) attributes {dimension_semantics = [#tpu.dimension_semantics<parallel>], iteration_bounds = array<i64: 1>, scalar_prefetch = 0 : i64, scratch_operands = 0 : i64, tpu.core_type = #tpu.core_type<tc>, window_params = [{transform_indices = @transform_0, window_bounds = array<i64: 392, 576>}, {pipeline_mode = #tpu.pipeline_mode<synchronous>, transform_indices = @transform_1, window_bounds = array<i64: 576, 32>}, {pipeline_mode = #tpu.pipeline_mode<synchronous>, transform_indices = @transform_2, window_bounds = array<i64: 1, 32>}, {pipeline_mode = #tpu.pipeline_mode<synchronous>, transform_indices = @transform_3, window_bounds = array<i64: 1, 32>}, {transform_indices = @transform_4, window_bounds = array<i64: 392, 32>}]} {
    %c0 = arith.constant 0 : index
    %c0_0 = arith.constant 0 : index
    %0 = vector.load %arg2[%c0, %c0_0] : memref<576x32xbf16, #tpu.memory_space<vmem>>, vector<576x32xbf16>
    %1 = arith.extf %0 : vector<576x32xbf16> to vector<576x32xf32>
    %c0_1 = arith.constant 0 : index
    %c0_2 = arith.constant 0 : index
    %2 = vector.load %arg1[%c0_1, %c0_2] : memref<392x576xf32, #tpu.memory_space<vmem>>, vector<392x576xf32>
    %cst = arith.constant dense<0.000000e+00> : vector<392x32xf32>
    %3 = tpu.matmul %2, %1, %cst {dimension_numbers = #tpu.dot_dimension_numbers<[1], [0], [0], [1], [0, 0, 1, 1], [], []>} : vector<392x576xf32>, vector<576x32xf32>, vector<392x32xf32> -> vector<392x32xf32>
    %c0_3 = arith.constant 0 : index
    %c0_4 = arith.constant 0 : index
    %4 = vector.load %arg3[%c0_3, %c0_4] : memref<1x32xf32, #tpu.memory_space<vmem>>, vector<1x32xf32>
    %5 = vector.broadcast %4 : vector<1x32xf32> to vector<392x32xf32>
    %6 = arith.mulf %3, %5 : vector<392x32xf32>
    %c0_5 = arith.constant 0 : index
    %c0_6 = arith.constant 0 : index
    %7 = vector.load %arg4[%c0_5, %c0_6] : memref<1x32xf32, #tpu.memory_space<vmem>>, vector<1x32xf32>
    %8 = vector.broadcast %7 : vector<1x32xf32> to vector<392x32xf32>
    %9 = arith.addf %6, %8 : vector<392x32xf32>
    %cst_7 = arith.constant 0.000000e+00 : f32
    %10 = vector.broadcast %cst_7 : f32 to vector<392x32xf32>
    %11 = arith.maximumf %9, %10 : vector<392x32xf32>
    %c0_8 = arith.constant 0 : index
    %c0_9 = arith.constant 0 : index
    %12 = vector.load %arg5[%c0_8, %c0_9] : memref<392x32xf32, #tpu.memory_space<vmem>>, vector<392x32xf32>
    tpu.vector_store %arg5[%c0_8, %c0_9], %11 {strides = array<i32>} : memref<392x32xf32, #tpu.memory_space<vmem>>, vector<392x32xf32>,
    return
  }
  func.func @transform_0(%arg0: i32) -> (i32, i32) {
    %c0_i32 = arith.constant 0 : i32
    %c0_i32_0 = arith.constant 0 : i32
    return %arg0, %c0_i32 : i32, i32
  }
  func.func @transform_1(%arg0: i32) -> (i32, i32) {
    %c0_i32 = arith.constant 0 : i32
    %c0_i32_0 = arith.constant 0 : i32
    %c0_i32_1 = arith.constant 0 : i32
    return %c0_i32, %c0_i32_0 : i32, i32
  }
  func.func @transform_2(%arg0: i32) -> (i32, i32) {
    %c0_i32 = arith.constant 0 : i32
    %c0_i32_0 = arith.constant 0 : i32
    %c0_i32_1 = arith.constant 0 : i32
    return %c0_i32, %c0_i32_0 : i32, i32
  }
  func.func @transform_3(%arg0: i32) -> (i32, i32) {
    %c0_i32 = arith.constant 0 : i32
    %c0_i32_0 = arith.constant 0 : i32
    %c0_i32_1 = arith.constant 0 : i32
    return %c0_i32, %c0_i32_0 : i32, i32
  }
  func.func @transform_4(%arg0: i32) -> (i32, i32) {
    %c0_i32 = arith.constant 0 : i32
    %c0_i32_0 = arith.constant 0 : i32
    return %arg0, %c0_i32 : i32, i32
  }
}

module attributes {stable_mosaic.version = 11 : i64} {
  func.func @_fused_matmul_kernel(%arg0: i32, %arg1: memref<784x512xf32, #tpu.memory_space<vmem>>, %arg2: memref<512x16xbf16, #tpu.memory_space<vmem>>, %arg3: memref<1x16xf32, #tpu.memory_space<vmem>>, %arg4: memref<1x16xf32, #tpu.memory_space<vmem>>, %arg5: memref<784x16xf32, #tpu.memory_space<vmem>>) attributes {dimension_semantics = [#tpu.dimension_semantics<parallel>], iteration_bounds = array<i64: 2>, scalar_prefetch = 0 : i64, scratch_operands = 0 : i64, tpu.core_type = #tpu.core_type<tc>, window_params = [{transform_indices = @transform_0, window_bounds = array<i64: 784, 512>}, {pipeline_mode = #tpu.pipeline_mode<synchronous>, transform_indices = @transform_1, window_bounds = array<i64: 512, 16>}, {pipeline_mode = #tpu.pipeline_mode<synchronous>, transform_indices = @transform_2, window_bounds = array<i64: 1, 16>}, {pipeline_mode = #tpu.pipeline_mode<synchronous>, transform_indices = @transform_3, window_bounds = array<i64: 1, 16>}, {transform_indices = @transform_4, window_bounds = array<i64: 784, 16>}]} {
    %c0 = arith.constant 0 : index
    %c0_0 = arith.constant 0 : index
    %0 = vector.load %arg2[%c0, %c0_0] : memref<512x16xbf16, #tpu.memory_space<vmem>>, vector<512x16xbf16>
    %1 = arith.extf %0 : vector<512x16xbf16> to vector<512x16xf32>
    %c0_1 = arith.constant 0 : index
    %c0_2 = arith.constant 0 : index
    %2 = vector.load %arg1[%c0_1, %c0_2] : memref<784x512xf32, #tpu.memory_space<vmem>>, vector<784x512xf32>
    %cst = arith.constant dense<0.000000e+00> : vector<784x16xf32>
    %3 = tpu.matmul %2, %1, %cst {dimension_numbers = #tpu.dot_dimension_numbers<[1], [0], [0], [1], [0, 0, 1, 1], [], []>} : vector<784x512xf32>, vector<512x16xf32>, vector<784x16xf32> -> vector<784x16xf32>
    %c0_3 = arith.constant 0 : index
    %c0_4 = arith.constant 0 : index
    %4 = vector.load %arg3[%c0_3, %c0_4] : memref<1x16xf32, #tpu.memory_space<vmem>>, vector<1x16xf32>
    %5 = vector.broadcast %4 : vector<1x16xf32> to vector<784x16xf32>
    %6 = arith.mulf %3, %5 : vector<784x16xf32>
    %c0_5 = arith.constant 0 : index
    %c0_6 = arith.constant 0 : index
    %7 = vector.load %arg4[%c0_5, %c0_6] : memref<1x16xf32, #tpu.memory_space<vmem>>, vector<1x16xf32>
    %8 = vector.broadcast %7 : vector<1x16xf32> to vector<784x16xf32>
    %9 = arith.addf %6, %8 : vector<784x16xf32>
    %cst_7 = arith.constant 0.000000e+00 : f32
    %10 = vector.broadcast %cst_7 : f32 to vector<784x16xf32>
    %11 = arith.maximumf %9, %10 : vector<784x16xf32>
    %c0_8 = arith.constant 0 : index
    %c0_9 = arith.constant 0 : index
    %12 = vector.load %arg5[%c0_8, %c0_9] : memref<784x16xf32, #tpu.memory_space<vmem>>, vector<784x16xf32>
    tpu.vector_store %arg5[%c0_8, %c0_9], %11 {strides = array<i32>} : memref<784x16xf32, #tpu.memory_space<vmem>>, vector<784x16xf32>,
    return
  }
  func.func @transform_0(%arg0: i32) -> (i32, i32) {
    %c0_i32 = arith.constant 0 : i32
    %c0_i32_0 = arith.constant 0 : i32
    return %arg0, %c0_i32 : i32, i32
  }
  func.func @transform_1(%arg0: i32) -> (i32, i32) {
    %c0_i32 = arith.constant 0 : i32
    %c0_i32_0 = arith.constant 0 : i32
    %c0_i32_1 = arith.constant 0 : i32
    return %c0_i32, %c0_i32_0 : i32, i32
  }
  func.func @transform_2(%arg0: i32) -> (i32, i32) {
    %c0_i32 = arith.constant 0 : i32
    %c0_i32_0 = arith.constant 0 : i32
    %c0_i32_1 = arith.constant 0 : i32
    return %c0_i32, %c0_i32_0 : i32, i32
  }
  func.func @transform_3(%arg0: i32) -> (i32, i32) {
    %c0_i32 = arith.constant 0 : i32
    %c0_i32_0 = arith.constant 0 : i32
    %c0_i32_1 = arith.constant 0 : i32
    return %c0_i32, %c0_i32_0 : i32, i32
  }
  func.func @transform_4(%arg0: i32) -> (i32, i32) {
    %c0_i32 = arith.constant 0 : i32
    %c0_i32_0 = arith.constant 0 : i32
    return %arg0, %c0_i32 : i32, i32
  }
}

module attributes {stable_mosaic.version = 11 : i64} {
  func.func @_fused_matmul_kernel(%arg0: i32, %arg1: memref<1568x256xf32, #tpu.memory_space<vmem>>, %arg2: memref<256x8xbf16, #tpu.memory_space<vmem>>, %arg3: memref<1x8xf32, #tpu.memory_space<vmem>>, %arg4: memref<1x8xf32, #tpu.memory_space<vmem>>, %arg5: memref<1568x8xf32, #tpu.memory_space<vmem>>) attributes {dimension_semantics = [#tpu.dimension_semantics<parallel>], iteration_bounds = array<i64: 4>, scalar_prefetch = 0 : i64, scratch_operands = 0 : i64, tpu.core_type = #tpu.core_type<tc>, window_params = [{transform_indices = @transform_0, window_bounds = array<i64: 1568, 256>}, {pipeline_mode = #tpu.pipeline_mode<synchronous>, transform_indices = @transform_1, window_bounds = array<i64: 256, 8>}, {pipeline_mode = #tpu.pipeline_mode<synchronous>, transform_indices = @transform_2, window_bounds = array<i64: 1, 8>}, {pipeline_mode = #tpu.pipeline_mode<synchronous>, transform_indices = @transform_3, window_bounds = array<i64: 1, 8>}, {transform_indices = @transform_4, window_bounds = array<i64: 1568, 8>}]} {
    %c0 = arith.constant 0 : index
    %c0_0 = arith.constant 0 : index
    %0 = vector.load %arg2[%c0, %c0_0] : memref<256x8xbf16, #tpu.memory_space<vmem>>, vector<256x8xbf16>
    %1 = arith.extf %0 : vector<256x8xbf16> to vector<256x8xf32>
    %c0_1 = arith.constant 0 : index
    %c0_2 = arith.constant 0 : index
    %2 = vector.load %arg1[%c0_1, %c0_2] : memref<1568x256xf32, #tpu.memory_space<vmem>>, vector<1568x256xf32>
    %cst = arith.constant dense<0.000000e+00> : vector<1568x8xf32>
    %3 = tpu.matmul %2, %1, %cst {dimension_numbers = #tpu.dot_dimension_numbers<[1], [0], [0], [1], [0, 0, 1, 1], [], []>} : vector<1568x256xf32>, vector<256x8xf32>, vector<1568x8xf32> -> vector<1568x8xf32>
    %c0_3 = arith.constant 0 : index
    %c0_4 = arith.constant 0 : index
    %4 = vector.load %arg3[%c0_3, %c0_4] : memref<1x8xf32, #tpu.memory_space<vmem>>, vector<1x8xf32>
    %5 = vector.broadcast %4 : vector<1x8xf32> to vector<1568x8xf32>
    %6 = arith.mulf %3, %5 : vector<1568x8xf32>
    %c0_5 = arith.constant 0 : index
    %c0_6 = arith.constant 0 : index
    %7 = vector.load %arg4[%c0_5, %c0_6] : memref<1x8xf32, #tpu.memory_space<vmem>>, vector<1x8xf32>
    %8 = vector.broadcast %7 : vector<1x8xf32> to vector<1568x8xf32>
    %9 = arith.addf %6, %8 : vector<1568x8xf32>
    %10 = arith.negf %9 : vector<1568x8xf32>
    %11 = math.exp %10 : vector<1568x8xf32>
    %cst_7 = arith.constant 1.000000e+00 : f32
    %12 = vector.broadcast %cst_7 : f32 to vector<1568x8xf32>
    %13 = arith.addf %12, %11 : vector<1568x8xf32>
    %14 = arith.divf %12, %13 : vector<1568x8xf32>
    %c0_8 = arith.constant 0 : index
    %c0_9 = arith.constant 0 : index
    %15 = vector.load %arg5[%c0_8, %c0_9] : memref<1568x8xf32, #tpu.memory_space<vmem>>, vector<1568x8xf32>
    tpu.vector_store %arg5[%c0_8, %c0_9], %14 {strides = array<i32>} : memref<1568x8xf32, #tpu.memory_space<vmem>>, vector<1568x8xf32>,
    return
  }
  func.func @transform_0(%arg0: i32) -> (i32, i32) {
    %c0_i32 = arith.constant 0 : i32
    %c0_i32_0 = arith.constant 0 : i32
    return %arg0, %c0_i32 : i32, i32
  }
  func.func @transform_1(%arg0: i32) -> (i32, i32) {
    %c0_i32 = arith.constant 0 : i32
    %c0_i32_0 = arith.constant 0 : i32
    %c0_i32_1 = arith.constant 0 : i32
    return %c0_i32, %c0_i32_0 : i32, i32
  }
  func.func @transform_2(%arg0: i32) -> (i32, i32) {
    %c0_i32 = arith.constant 0 : i32
    %c0_i32_0 = arith.constant 0 : i32
    %c0_i32_1 = arith.constant 0 : i32
    return %c0_i32, %c0_i32_0 : i32, i32
  }
  func.func @transform_3(%arg0: i32) -> (i32, i32) {
    %c0_i32 = arith.constant 0 : i32
    %c0_i32_0 = arith.constant 0 : i32
    %c0_i32_1 = arith.constant 0 : i32
    return %c0_i32, %c0_i32_0 : i32, i32
  }
  func.func @transform_4(%arg0: i32) -> (i32, i32) {
    %c0_i32 = arith.constant 0 : i32
    %c0_i32_0 = arith.constant 0 : i32
    return %arg0, %c0_i32 : i32, i32
  }
}

</mosaic_0001>

<bundles_post_ra>
// kernel: cnn_decoder_forward.4
= control target key start
LH: loop header
LB: loop body
LE: loop exit
PB: predicated region body
PF: predicated region fallthrough
CT: control target
= control target key end

     0   :  { %12 = vsyncpa [#allocation3], 0  ;;  %s3009_s0 = inlined_call_operand.hbm [shape: f32[8,32], index: 0, kind: input, shape index: {}]   ;;  %s3010_s1 = inlined_call_operand.hbm [shape: bf16[32,512], index: 1, kind: input, shape index: {}]   ;;  %s3011_s2 = inlined_call_operand.hbm [shape: f32[1,512], index: 2, kind: input, shape index: {}]   ;;  %s3012_s3 = inlined_call_operand.hbm [shape: f32[1,512], index: 3, kind: input, shape index: {}]   ;;  %s3013_s4 = inlined_call_operand.hbm [shape: bf16[512,1024], index: 4, kind: input, shape index: {}]   ;;  %s3014_s5 = inlined_call_operand.hbm [shape: f32[1,1024], index: 5, kind: input, shape index: {}]   ;;  %s3015_s6 = inlined_call_operand.hbm [shape: f32[1,1024], index: 6, kind: input, shape index: {}]   ;;  %s3016_s7 = inlined_call_operand.vmem [shape: f32[8,1024], index: 7, kind: output, shape index: {}]  }
   0x1   :  { %13 = vsyncpa [#allocation5], 0 }
   0x2   :  { %14 = vsyncpa [#allocation8], 0 }
   0x3   :  { %15 = vsyncpa [#allocation11], 0  ;;  %s2786_s24 = smov [#allocation4]   ;;  %s2624_s28 = scalar_lea.hbm %s3010_s1, 1024 }
   0x4   :  { %s31_s25 = sshll.u32 %s2786_s24, 4  ;;  %p2625_p0 = scmp.ne.s32.totalorder %s3010_s1, %s2624_s28  ;;  %s32_s25 = int_to_ptr.vmem [resolvable:$true] %s31_s25 }
   0x5   :  { %p2628_p1 = scmp.lt.u32.totalorder %s2624_s28, %s3010_s1 }
   0x7   :  { %p2630_p2 = pnand %p2628_p1, %p2625_p0 }
   0x9   :  { %2633 = shalt.err (!%p2630_p2)
}
   0xa   :  { %s2634_s10 = scalar_lea.vmem %s32_s25, 1024  ;;  %p2639_p4 = scmp.lt.s32.totalorder %s32_s25, %s32_s25 }
   0xb   :  { %p2635_p3 = scmp.ne.s32.totalorder %s32_s25, %s2634_s10  ;;  %p2640_p5 = scmp.lt.s32.totalorder %s2634_s10, %s2634_s10 }
   0xd   :  { %p2641_p6 = por %p2640_p5, %p2639_p4 }
   0xf   :  { %p2642_p7 = pnand %p2641_p6, %p2635_p3 }
  0x11   :  { %2645 = shalt.err (!%p2642_p7)
}
  0x12   :  { %s2787_s11 = smov 256   ;;  %s2788_s12 = smov 16  }
  0x13   :  { %37 = dma.hbm_to_vmem [thread:$0]  %s3010_s1, 1024, %s32_s25, [#allocation5], %s2787_s11, %s2787_s11, %s2788_s12  }
  0x14   :  { %s2789_s15 = smov [#allocation7]   ;;  %s2790_s17 = smov [#allocation10]  }
  0x15   :  { %s54_s16 = sshll.u32 %s2789_s15, 4  ;;  %s76_s18 = sshll.u32 %s2790_s17, 4  ;;  %s55_s16 = int_to_ptr.vmem [resolvable:$true] %s54_s16  ;;  %s77_s18 = int_to_ptr.vmem [resolvable:$true] %s76_s18 }
  0x16   :  { %s2646_s21 = scalar_lea.hbm %s3012_s3, 64 }
  0x17   :  { %p2647_p8 = scmp.ne.s32.totalorder %s3012_s3, %s2646_s21  ;;  %p2650_p9 = scmp.lt.u32.totalorder %s2646_s21, %s3012_s3 }
  0x19   :  { %p2652_p10 = pnand %p2650_p9, %p2647_p8 }
  0x1b   :  { %2655 = shalt.err (!%p2652_p10)
}
  0x1c   :  { %s2656_s1 = scalar_lea.vmem %s55_s16, 64  ;;  %p2661_p12 = scmp.lt.s32.totalorder %s55_s16, %s55_s16 }
  0x1d   :  { %p2657_p11 = scmp.ne.s32.totalorder %s55_s16, %s2656_s1  ;;  %p2662_p13 = scmp.lt.s32.totalorder %s2656_s1, %s2656_s1 }
  0x1f   :  { %p2663_p0 = por %p2662_p13, %p2661_p12 }
  0x21   :  { %p2664_p1 = pnand %p2663_p0, %p2657_p11 }
  0x23   :  { %2667 = shalt.err (!%p2664_p1)
}
  0x24   :  { %57 = dma.hbm_to_vmem [thread:$0]  %s3012_s3, 64, %s55_s16, [#allocation8]  }
  0x25   :  { %s2668_s30 = scalar_lea.hbm %s3014_s5, 128 }
  0x26   :  { %p2669_p2 = scmp.ne.s32.totalorder %s3014_s5, %s2668_s30  ;;  %p2672_p3 = scmp.lt.u32.totalorder %s2668_s30, %s3014_s5 }
  0x28   :  { %p2674_p4 = pnand %p2672_p3, %p2669_p2 }
  0x2a   :  { %2677 = shalt.err (!%p2674_p4)
}
  0x2b   :  { %s2678_s12 = scalar_lea.vmem %s77_s18, 128  ;;  %p2683_p6 = scmp.lt.s32.totalorder %s77_s18, %s77_s18 }
  0x2c   :  { %p2679_p5 = scmp.ne.s32.totalorder %s77_s18, %s2678_s12  ;;  %p2684_p7 = scmp.lt.s32.totalorder %s2678_s12, %s2678_s12 }
  0x2e   :  { %p2685_p8 = por %p2684_p7, %p2683_p6 }
  0x30   :  { %p2686_p9 = pnand %p2685_p8, %p2679_p5 }
  0x32   :  { %2689 = shalt.err (!%p2686_p9)
}
  0x33   :  { %79 = dma.hbm_to_vmem [thread:$0]  %s3014_s5, 128, %s77_s18, [#allocation11]  }
  0x34   :  { %s2791_s14 = smov [#allocation2]   ;;  %s2792_s16 = smov [#allocation6]  }
  0x35   :  { %s22_s15 = sshll.u32 %s2791_s14, 4  ;;  %s44_s17 = sshll.u32 %s2792_s16, 4  ;;  %s23_s15 = int_to_ptr.vmem [resolvable:$true] %s22_s15  ;;  %s45_s17 = int_to_ptr.vmem [resolvable:$true] %s44_s17 }
  0x36   :  { %s2690_s21 = scalar_lea.hbm %s3009_s0, 128 }
  0x37   :  { %p2691_p10 = scmp.ne.s32.totalorder %s3009_s0, %s2690_s21  ;;  %p2694_p11 = scmp.lt.u32.totalorder %s2690_s21, %s3009_s0 }
  0x39   :  { %p2696_p12 = pnand %p2694_p11, %p2691_p10 }
  0x3b   :  { %2699 = shalt.err (!%p2696_p12)
}
  0x3c   :  { %s2700_s5 = scalar_lea.vmem %s23_s15, 128  ;;  %p2705_p0 = scmp.lt.s32.totalorder %s23_s15, %s23_s15 }
  0x3d   :  { %p2701_p13 = scmp.ne.s32.totalorder %s23_s15, %s2700_s5  ;;  %p2706_p1 = scmp.lt.s32.totalorder %s2700_s5, %s2700_s5 }
  0x3f   :  { %p2707_p2 = por %p2706_p1, %p2705_p0 }
  0x41   :  { %p2708_p3 = pnand %p2707_p2, %p2701_p13 }
  0x43   :  { %2711 = shalt.err (!%p2708_p3)
}
  0x44   :  { %25 = dma.hbm_to_vmem [thread:$0]  %s3009_s0, 128, %s23_s15, [#allocation3]  }
  0x45   :  { %s2712_s28 = scalar_lea.hbm %s3011_s2, 64 }
  0x46   :  { %p2713_p4 = scmp.ne.s32.totalorder %s3011_s2, %s2712_s28  ;;  %p2716_p5 = scmp.lt.u32.totalorder %s2712_s28, %s3011_s2 }
  0x48   :  { %p2718_p6 = pnand %p2716_p5, %p2713_p4 }
  0x4a   :  { %2721 = shalt.err (!%p2718_p6)
}
  0x4b   :  { %s2722_s10 = scalar_lea.vmem %s45_s17, 64  ;;  %p2727_p8 = scmp.lt.s32.totalorder %s45_s17, %s45_s17 }
  0x4c   :  { %p2723_p7 = scmp.ne.s32.totalorder %s45_s17, %s2722_s10  ;;  %p2728_p9 = scmp.lt.s32.totalorder %s2722_s10, %s2722_s10 }
  0x4e   :  { %p2729_p10 = por %p2728_p9, %p2727_p8 }
  0x50   :  { %p2730_p11 = pnand %p2729_p10, %p2723_p7 }
  0x52   :  { %2733 = shalt.err (!%p2730_p11)
}
  0x53   :  { %47 = dma.hbm_to_vmem [thread:$0]  %s3011_s2, 64, %s45_s17, [#allocation5]  }
  0x54   :  { %s2793_s12 = smov [#allocation9]   ;;  %s2734_s15 = scalar_lea.hbm %s3013_s4, 32768 }
  0x55   :  { %s63_s3 = sshll.u32 %s2793_s12, 4  ;;  %p2735_p12 = scmp.ne.s32.totalorder %s3013_s4, %s2734_s15  ;;  %s64_s3 = int_to_ptr.vmem [resolvable:$true] %s63_s3 }
  0x56   :  { %p2738_p13 = scmp.lt.u32.totalorder %s2734_s15, %s3013_s4 }
  0x58   :  { %p2740_p0 = pnand %p2738_p13, %p2735_p12 }
  0x5a   :  { %2743 = shalt.err (!%p2740_p0)
}
  0x5b   :  { %s2744_s22 = scalar_lea.vmem %s64_s3, 32768  ;;  %p2749_p2 = scmp.lt.s32.totalorder %s64_s3, %s64_s3 }
  0x5c   :  { %p2745_p1 = scmp.ne.s32.totalorder %s64_s3, %s2744_s22  ;;  %p2750_p3 = scmp.lt.s32.totalorder %s2744_s22, %s2744_s22 }
  0x5e   :  { %p2751_p4 = por %p2750_p3, %p2749_p2 }
  0x60   :  { %p2752_p5 = pnand %p2751_p4, %p2745_p1 }
  0x62   :  { %2755 = shalt.err (!%p2752_p5)
}
  0x63   :  { %s2794_s2 = smov 512   ;;  %s2795_s17 = smov 32  }
  0x64   :  { %69 = dma.hbm_to_vmem [thread:$0]  %s3013_s4, 32768, %s64_s3, [#allocation8], %s2794_s2, %s2794_s2, %s2795_s17  }
  0x65   :  { %s2796_s26 = smov [#allocation12]   ;;  %s2756_s25 = scalar_lea.hbm %s3015_s6, 128 }
  0x66   :  { %s86_s5 = sshll.u32 %s2796_s26, 4  ;;  %p2757_p6 = scmp.ne.s32.totalorder %s3015_s6, %s2756_s25  ;;  %s87_s5 = int_to_ptr.vmem [resolvable:$true] %s86_s5 }
  0x67   :  { %p2760_p7 = scmp.lt.u32.totalorder %s2756_s25, %s3015_s6 }
  0x69   :  { %p2762_p8 = pnand %p2760_p7, %p2757_p6 }
  0x6b   :  { %2765 = shalt.err (!%p2762_p8)
}
  0x6c   :  { %s2766_s8 = scalar_lea.vmem %s87_s5, 128  ;;  %p2771_p10 = scmp.lt.s32.totalorder %s87_s5, %s87_s5 }
  0x6d   :  { %p2767_p9 = scmp.ne.s32.totalorder %s87_s5, %s2766_s8  ;;  %p2772_p11 = scmp.lt.s32.totalorder %s2766_s8, %s2766_s8 }
  0x6f   :  { %p2773_p12 = por %p2772_p11, %p2771_p10 }
  0x71   :  { %p2774_p13 = pnand %p2773_p12, %p2767_p9 }
  0x73   :  { %2777 = shalt.err (!%p2774_p13)
}
  0x74   :  { %89 = dma.hbm_to_vmem [thread:$0]  %s3015_s6, 128, %s87_s5, [#allocation11]  }
  0x75   :  { %2778 = dma.done.wait [#allocation3], 128  }
  0x76   :  { %2779 = vsyncadd [#allocation3], 4294967168 }
  0x77   :  { %2780 = dma.done.wait [#allocation5], 1088  }
  0x78   :  { %2781 = vsyncadd [#allocation5], 4294966208 }
  0x79   :  { %2782 = dma.done.wait [#allocation8], 32832  }
  0x7a   :  { %2783 = vsyncadd [#allocation8], 4294934464 }
  0x7b   :  { %2784 = dma.done.wait [#allocation11], 256  }
  0x7c   :  { %2785 = vsyncadd [#allocation11], 4294967040  ;;  %v2797_v0 = vmov 0.0   ;;  %v2612_v1 = vld [vmem:[#allocation4 + $0x4] ss:$16 sps:$4 sm:$0xff]   ;;  %v338_v9 = vld [vmem:[#allocation9] sm:$0xff] }
  0x7d   :  { %204 = vmatprep.mubr.f32.mxu0 %v2797_v0  ;;  %275 = vmatprep.mubr.f32.mxu1 %v2797_v0  ;;  %v2614_v2 = vld [vmem:[#allocation4] ss:$16 sps:$4 sm:$0xff]   ;;  %v2615_v3 = vld [vmem:[#allocation4 + $0x24] ss:$16 sps:$4 sm:$0xff]   ;;  %v2618_v5 = vld [vmem:[#allocation4 + $0xc] ss:$16 sps:$4 sm:$0xff]  }
  0x7e   :  { %1801 = vmatprep.subr.bf16.mxu0 %v2612_v1  ;;  %v2617_v4 = vld [vmem:[#allocation4 + $0x20] ss:$16 sps:$4 sm:$0xff]   ;;  %v2620_v6 = vld [vmem:[#allocation4 + $0x8] ss:$16 sps:$4 sm:$0xff]   ;;  %1809 = vmatprep.subr.bf16.mxu1 %v2618_v5  ;;  %v2621_v7 = vld [vmem:[#allocation4 + $0x2c] ss:$16 sps:$4 sm:$0xff]  }
  0x7f   :  { %1803 = vmatpush1.bf16.msra.mxu0 %v2614_v2  ;;  %v2623_v8 = vld [vmem:[#allocation4 + $0x28] ss:$16 sps:$4 sm:$0xff]   ;;  %1811 = vmatpush1.bf16.msra.mxu1 %v2620_v6  ;;  %v339_v11 = vld [vmem:[#allocation9 + $0x8] sm:$0xff]  ;;  %vm136_vm0 = vcmask 261120  }
  0x80   :  { %1805 = vmatprep.subr.bf16.mxu0 %v2615_v3  ;;  %v342_v10 = vld [vmem:[#allocation9 + $0x20] sm:$0xff]  ;;  %v343_v12 = vld [vmem:[#allocation9 + $0x28] sm:$0xff]  ;;  %v135_v13 = vld [vmem:[#allocation2] sm:$0xff]  ;;  %1813 = vmatprep.subr.bf16.mxu1 %v2621_v7 }
  0x81   :  { %v2344_v14 = vcombine.high %v338_v9, %v342_v10  ;;  %v2345_v15 = vcombine.low %v338_v9, %v342_v10  ;;  %v2408_v16 = vcombine.high %v339_v11, %v343_v12  ;;  %v346_v17 = vld [vmem:[#allocation9 + $0x40] sm:$0xff]  ;;  %v347_v20 = vld [vmem:[#allocation9 + $0x48] sm:$0xff]  ;;  %v2409_v24 = vcombine.low %v339_v11, %v343_v12 }
  0x82   :  { %v350_v18 = vld [vmem:[#allocation9 + $0x60] sm:$0xff]  ;;  %v351_v21 = vld [vmem:[#allocation9 + $0x68] sm:$0xff] }
  0x83   :  { %1807 = vmatpush1.bf16.msra.mxu0 %v2617_v4  ;;  %v2346_v19 = vcombine.high %v346_v17, %v350_v18  ;;  %v354_v22 = vld [vmem:[#allocation9 + $0x80] sm:$0xff]  ;;  %1815 = vmatpush1.bf16.msra.mxu1 %v2623_v8  ;;  %v2347_v25 = vcombine.low %v346_v17, %v350_v18  ;;  %v2410_v26 = vcombine.high %v347_v20, %v351_v21  ;;  %v355_v28 = vld [vmem:[#allocation9 + $0x88] sm:$0xff] }
  0x84   :  { %1817 = vmatprep.subr.bf16.mxu0 %v2344_v14  ;;  %v358_v23 = vld [vmem:[#allocation9 + $0xa0] sm:$0xff]  ;;  %1945 = vmatprep.subr.bf16.mxu1 %v2408_v16  ;;  %v359_v29 = vld [vmem:[#allocation9 + $0xa8] sm:$0xff]  ;;  %v2411_v32 = vcombine.low %v347_v20, %v351_v21 }
  0x85   :  { %v2348_v27 = vcombine.high %v354_v22, %v358_v23  ;;  %v362_v30 = vld [vmem:[#allocation9 + $0xc0] sm:$0xff]  ;;  %v2349_v33 = vcombine.low %v354_v22, %v358_v23  ;;  %v2412_v34 = vcombine.high %v355_v28, %v359_v29  ;;  %v363_v36 = vld [vmem:[#allocation9 + $0xc8] sm:$0xff]  ;;  %v2413_v40 = vcombine.low %v355_v28, %v359_v29 }
  0x86   :  { %1798 = vmatmul.mubr.msk.f32.vlgmr.msra.gmra.mrb[0].mxu0 %vm136_vm0, %v135_v13  ;;  %1799 = vmatmul.mubr.msk.f32.vlgmr.msra.gmra.mrb[0].mxu1 %vm136_vm0, %v135_v13  ;;  %v366_v31 = vld [vmem:[#allocation9 + $0xe0] sm:$0xff]  ;;  %v367_v37 = vld [vmem:[#allocation9 + $0xe8] sm:$0xff] }
  0x87   :  { %1819 = vmatpush1.bf16.msra.mxu0 %v2345_v15  ;;  %1947 = vmatpush1.bf16.msra.mxu1 %v2409_v24  ;;  %v2350_v35 = vcombine.high %v362_v30, %v366_v31  ;;  %v370_v38 = vld [vmem:[#allocation9 + $0x100] sm:$0xff]  ;;  %v2351_v41 = vcombine.low %v362_v30, %v366_v31  ;;  %v2414_v42 = vcombine.high %v363_v36, %v367_v37  ;;  %v371_v44 = vld [vmem:[#allocation9 + $0x108] sm:$0xff] }
  0x88   :  { %1821 = vmatprep.subr.bf16.mxu0 %v2346_v19  ;;  %1949 = vmatprep.subr.bf16.mxu1 %v2410_v26  ;;  %v374_v39 = vld [vmem:[#allocation9 + $0x120] sm:$0xff]  ;;  %v375_v45 = vld [vmem:[#allocation9 + $0x128] sm:$0xff]  ;;  %v2415_v48 = vcombine.low %v363_v36, %v367_v37 }
  0x89   :  { %v2352_v43 = vcombine.high %v370_v38, %v374_v39  ;;  %v378_v46 = vld [vmem:[#allocation9 + $0x140] sm:$0xff]  ;;  %v2353_v49 = vcombine.low %v370_v38, %v374_v39  ;;  %v2416_v50 = vcombine.high %v371_v44, %v375_v45  ;;  %v379_v52 = vld [vmem:[#allocation9 + $0x148] sm:$0xff]  ;;  %v2417_v56 = vcombine.low %v371_v44, %v375_v45 }
  0x8a   :  { %v382_v47 = vld [vmem:[#allocation9 + $0x160] sm:$0xff]  ;;  %v383_v53 = vld [vmem:[#allocation9 + $0x168] sm:$0xff] }
  0x8b   :  { %1823 = vmatpush1.bf16.msra.mxu0 %v2347_v25  ;;  %1951 = vmatpush1.bf16.msra.mxu1 %v2411_v32  ;;  %v2354_v51 = vcombine.high %v378_v46, %v382_v47  ;;  %v386_v54 = vld [vmem:[#allocation9 + $0x180] sm:$0xff]  ;;  %v2355_v57 = vcombine.low %v378_v46, %v382_v47  ;;  %v2418_v58 = vcombine.high %v379_v52, %v383_v53  ;;  %v387_v60 = vld [vmem:[#allocation9 + $0x188] sm:$0xff] }
  0x8c   :  { %1825 = vmatprep.subr.bf16.mxu0 %v2348_v27  ;;  %1953 = vmatprep.subr.bf16.mxu1 %v2412_v34  ;;  %v390_v55 = vld [vmem:[#allocation9 + $0x1a0] sm:$0xff]  ;;  %v391_v61 = vld [vmem:[#allocation9 + $0x1a8] sm:$0xff]  ;;  %v2419_v0 = vcombine.low %v379_v52, %v383_v53 }
  0x8d   :  { %v2356_v59 = vcombine.high %v386_v54, %v390_v55  ;;  %v394_v62 = vld [vmem:[#allocation9 + $0x1c0] sm:$0xff]  ;;  %v2357_v1 = vcombine.low %v386_v54, %v390_v55  ;;  %v2420_v2 = vcombine.high %v387_v60, %v391_v61  ;;  %v395_v4 = vld [vmem:[#allocation9 + $0x1c8] sm:$0xff]  ;;  %v2421_v8 = vcombine.low %v387_v60, %v391_v61 }
  0x8e   :  { %v398_v63 = vld [vmem:[#allocation9 + $0x1e0] sm:$0xff]  ;;  %v399_v5 = vld [vmem:[#allocation9 + $0x1e8] sm:$0xff] }
  0x8f   :  { %1827 = vmatpush1.bf16.msra.mxu0 %v2349_v33  ;;  %1955 = vmatpush1.bf16.msra.mxu1 %v2413_v40  ;;  %v2358_v3 = vcombine.high %v394_v62, %v398_v63  ;;  %v402_v6 = vld [vmem:[#allocation9 + $0x200] sm:$0xff]  ;;  %v2359_v9 = vcombine.low %v394_v62, %v398_v63  ;;  %v2422_v10 = vcombine.high %v395_v4, %v399_v5  ;;  %v403_v12 = vld [vmem:[#allocation9 + $0x208] sm:$0xff] }
  0x90   :  { %1829 = vmatprep.subr.bf16.mxu0 %v2350_v35  ;;  %1957 = vmatprep.subr.bf16.mxu1 %v2414_v42  ;;  %v406_v7 = vld [vmem:[#allocation9 + $0x220] sm:$0xff]  ;;  %v407_v13 = vld [vmem:[#allocation9 + $0x228] sm:$0xff]  ;;  %v2423_v16 = vcombine.low %v395_v4, %v399_v5 }
  0x91   :  { %v2360_v11 = vcombine.high %v402_v6, %v406_v7  ;;  %v410_v14 = vld [vmem:[#allocation9 + $0x240] sm:$0xff]  ;;  %v2361_v17 = vcombine.low %v402_v6, %v406_v7  ;;  %v2424_v18 = vcombine.high %v403_v12, %v407_v13  ;;  %v411_v20 = vld [vmem:[#allocation9 + $0x248] sm:$0xff]  ;;  %v2425_v24 = vcombine.low %v403_v12, %v407_v13 }
  0x92   :  { %v414_v15 = vld [vmem:[#allocation9 + $0x260] sm:$0xff]  ;;  %v415_v21 = vld [vmem:[#allocation9 + $0x268] sm:$0xff] }
  0x93   :  { %1831 = vmatpush1.bf16.msra.mxu0 %v2351_v41  ;;  %1959 = vmatpush1.bf16.msra.mxu1 %v2415_v48  ;;  %v2362_v19 = vcombine.high %v410_v14, %v414_v15  ;;  %v418_v22 = vld [vmem:[#allocation9 + $0x280] sm:$0xff]  ;;  %v2363_v25 = vcombine.low %v410_v14, %v414_v15  ;;  %v2426_v26 = vcombine.high %v411_v20, %v415_v21  ;;  %v419_v28 = vld [vmem:[#allocation9 + $0x288] sm:$0xff] }
  0x94   :  { %1833 = vmatprep.subr.bf16.mxu0 %v2352_v43  ;;  %1961 = vmatprep.subr.bf16.mxu1 %v2416_v50  ;;  %v422_v23 = vld [vmem:[#allocation9 + $0x2a0] sm:$0xff]  ;;  %v423_v29 = vld [vmem:[#allocation9 + $0x2a8] sm:$0xff]  ;;  %v2427_v32 = vcombine.low %v411_v20, %v415_v21  ;;  %v282_v21 = vld [vmem:[#allocation6] sm:$0xf] }
  0x95   :  { %v2364_v27 = vcombine.high %v418_v22, %v422_v23  ;;  %v426_v30 = vld [vmem:[#allocation9 + $0x2c0] sm:$0xff]  ;;  %v2365_v33 = vcombine.low %v418_v22, %v422_v23  ;;  %v2428_v34 = vcombine.high %v419_v28, %v423_v29  ;;  %v427_v36 = vld [vmem:[#allocation9 + $0x2c8] sm:$0xff]  ;;  %v2429_v40 = vcombine.low %v419_v28, %v423_v29  ;;  %v308_v23 = vld [vmem:[#allocation7] sm:$0xf] }
  0x96   :  { %v430_v31 = vld [vmem:[#allocation9 + $0x2e0] sm:$0xff]  ;;  %v431_v37 = vld [vmem:[#allocation9 + $0x2e8] sm:$0xff] }
  0x97   :  { %1835 = vmatpush1.bf16.msra.mxu0 %v2353_v49  ;;  %1963 = vmatpush1.bf16.msra.mxu1 %v2417_v56  ;;  %v2366_v35 = vcombine.high %v426_v30, %v430_v31  ;;  %v434_v38 = vld [vmem:[#allocation9 + $0x300] sm:$0xff]  ;;  %v2367_v41 = vcombine.low %v426_v30, %v430_v31  ;;  %v2430_v42 = vcombine.high %v427_v36, %v431_v37  ;;  %v435_v44 = vld [vmem:[#allocation9 + $0x308] sm:$0xff] }
  0x98   :  { %1837 = vmatprep.subr.bf16.mxu0 %v2354_v51  ;;  %1965 = vmatprep.subr.bf16.mxu1 %v2418_v58  ;;  %v438_v39 = vld [vmem:[#allocation9 + $0x320] sm:$0xff]  ;;  %v439_v45 = vld [vmem:[#allocation9 + $0x328] sm:$0xff]  ;;  %v2431_v48 = vcombine.low %v427_v36, %v431_v37 }
  0x99   :  { %v2368_v43 = vcombine.high %v434_v38, %v438_v39  ;;  %v442_v46 = vld [vmem:[#allocation9 + $0x340] sm:$0xff]  ;;  %v2369_v49 = vcombine.low %v434_v38, %v438_v39  ;;  %v2432_v50 = vcombine.high %v435_v44, %v439_v45  ;;  %v443_v52 = vld [vmem:[#allocation9 + $0x348] sm:$0xff]  ;;  %v2433_v54 = vcombine.low %v435_v44, %v439_v45 }
  0x9a   :  { %v446_v47 = vld [vmem:[#allocation9 + $0x360] sm:$0xff]  ;;  %v447_v53 = vld [vmem:[#allocation9 + $0x368] sm:$0xff] }
  0x9b   :  { %1839 = vmatpush1.bf16.msra.mxu0 %v2355_v57  ;;  %1967 = vmatpush1.bf16.msra.mxu1 %v2419_v0  ;;  %v2370_v51 = vcombine.high %v442_v46, %v446_v47  ;;  %v2371_v55 = vcombine.low %v442_v46, %v446_v47  ;;  %v2434_v56 = vcombine.high %v443_v52, %v447_v53  ;;  %v450_v58 = vld [vmem:[#allocation9 + $0x380] sm:$0xff]  ;;  %v451_v60 = vld [vmem:[#allocation9 + $0x388] sm:$0xff] }
  0x9c   :  { %1841 = vmatprep.subr.bf16.mxu0 %v2356_v59  ;;  %1969 = vmatprep.subr.bf16.mxu1 %v2420_v2  ;;  %v2435_v57 = vcombine.low %v443_v52, %v447_v53  ;;  %v454_v59 = vld [vmem:[#allocation9 + $0x3a0] sm:$0xff]  ;;  %v455_v62 = vld [vmem:[#allocation9 + $0x3a8] sm:$0xff] }
  0x9d   :  { %v2372_v61 = vcombine.high %v450_v58, %v454_v59  ;;  %v2373_v63 = vcombine.low %v450_v58, %v454_v59  ;;  %v2436_v0 = vcombine.high %v451_v60, %v455_v62  ;;  %v458_v2 = vld [vmem:[#allocation9 + $0x3c0] sm:$0xff]  ;;  %v459_v4 = vld [vmem:[#allocation9 + $0x3c8] sm:$0xff] }
  0x9e   :  { %v463_v6 = vld [vmem:[#allocation9 + $0x3e8] sm:$0xff]  ;;  %v474_v38 = vld [vmem:[#allocation9 + $0x440] sm:$0xff] }
  0x9f   :  { %1843 = vmatpush1.bf16.msra.mxu0 %v2357_v1  ;;  %1971 = vmatpush1.bf16.msra.mxu1 %v2421_v8  ;;  %v2437_v1 = vcombine.low %v451_v60, %v455_v62  ;;  %v2438_v8 = vcombine.high %v459_v4, %v463_v6  ;;  %v467_v12 = vld [vmem:[#allocation9 + $0x408] sm:$0xff]  ;;  %v482_v53 = vld [vmem:[#allocation9 + $0x480] sm:$0xff] }
  0xa0   :  { %1845 = vmatprep.subr.bf16.mxu0 %v2358_v3  ;;  %1973 = vmatprep.subr.bf16.mxu1 %v2422_v10  ;;  %v462_v3 = vld [vmem:[#allocation9 + $0x3e0] sm:$0xff]  ;;  %v471_v14 = vld [vmem:[#allocation9 + $0x428] sm:$0xff] }
  0xa1   :  { %v2374_v5 = vcombine.high %v458_v2, %v462_v3  ;;  %v2375_v7 = vcombine.low %v458_v2, %v462_v3  ;;  %v466_v10 = vld [vmem:[#allocation9 + $0x400] sm:$0xff]  ;;  %v479_v44 = vld [vmem:[#allocation9 + $0x468] sm:$0xff] }
  0xa2   :  { %v495_v2 = vld [vmem:[#allocation9 + $0x4e8] sm:$0xff] }
  0xa3   :  { %1847 = vmatpush1.bf16.msra.mxu0 %v2359_v9  ;;  %1975 = vmatpush1.bf16.msra.mxu1 %v2423_v16  ;;  %v2439_v9 = vcombine.low %v459_v4, %v463_v6  ;;  %v2440_v16 = vcombine.high %v467_v12, %v471_v14 }
  0xa4   :  { %1849 = vmatprep.subr.bf16.mxu0 %v2360_v11  ;;  %1977 = vmatprep.subr.bf16.mxu1 %v2424_v18  ;;  %v470_v11 = vld [vmem:[#allocation9 + $0x420] sm:$0xff]  ;;  %v284_v18 = vlaneseq }
  0xa5   :  { %v2376_v13 = vcombine.high %v466_v10, %v470_v11  ;;  %v2377_v15 = vcombine.low %v466_v10, %v470_v11  ;;  %v503_v10 = vld [vmem:[#allocation9 + $0x528] sm:$0xff] }
  0xa7   :  { %1851 = vmatpush1.bf16.msra.mxu0 %v2361_v17  ;;  %1979 = vmatpush1.bf16.msra.mxu1 %v2425_v24  ;;  %v2441_v17 = vcombine.low %v467_v12, %v471_v14 }
  0xa8   :  { %1853 = vmatprep.subr.bf16.mxu0 %v2362_v19  ;;  %1981 = vmatprep.subr.bf16.mxu1 %v2426_v26  ;;  %v2924_v19 = vshrl.u32 %v284_v18, 7  ;;  %v511_v18 = vld [vmem:[#allocation9 + $0x568] sm:$0xff] }
  0xaa   :  { %v2927_v20 = vsub.s32 0, %v2924_v19  ;;  %v2930_v22 = vsub.s32 1, %v2924_v19  ;;  %v2933_v24 = vsub.s32 2, %v2924_v19  ;;  %v2937_v26 = vsub.s32 3, %v2924_v19 }
  0xab   :  { %1855 = vmatpush1.bf16.msra.mxu0 %v2363_v25  ;;  %1983 = vmatpush1.bf16.msra.mxu1 %v2427_v32 }
  0xac   :  { %1857 = vmatprep.subr.bf16.mxu0 %v2364_v27  ;;  %1985 = vmatprep.subr.bf16.mxu1 %v2428_v34  ;;  %v287_v25 = vrot.slane %v282_v21, %v2927_v20  ;;  %v291_v27 = vrot.slane %v282_v21, %v2930_v22  ;;  %v313_v28 = vrot.slane %v308_v23, %v2927_v20 }
  0xad   :  { %v317_v30 = vrot.slane %v308_v23, %v2930_v22  ;;  %v295_v31 = vrot.slane %v282_v21, %v2933_v24  ;;  %v299_v34 = vrot.slane %v282_v21, %v2937_v26  ;;  %v321_v36 = vrot.slane %v308_v23, %v2933_v24 }
  0xaf   :  { %1859 = vmatpush1.bf16.msra.mxu0 %v2365_v33  ;;  %1987 = vmatpush1.bf16.msra.mxu1 %v2429_v40  ;;  %v325_v40 = vrot.slane %v308_v23, %v2937_v26 }
  0xb0   :  { %1861 = vmatprep.subr.bf16.mxu0 %v2366_v35  ;;  %1989 = vmatprep.subr.bf16.mxu1 %v2430_v42  ;;  %v478_v42 = vld [vmem:[#allocation9 + $0x460] sm:$0xff] }
  0xb1   :  { %v2379_v59 = vcombine.low %v474_v38, %v478_v42 }
  0xb3   :  { %1863 = vmatpush1.bf16.msra.mxu0 %v2367_v41  ;;  %1991 = vmatpush1.bf16.msra.mxu1 %v2431_v48 }
  0xb4   :  { %1865 = vmatprep.subr.bf16.mxu0 %v2368_v43  ;;  %1993 = vmatprep.subr.bf16.mxu1 %v2432_v50  ;;  %v475_v43 = vld [vmem:[#allocation9 + $0x448] sm:$0xff] }
  0xb5   :  { %v2442_v52 = vcombine.high %v475_v43, %v479_v44  ;;  %v2443_v60 = vcombine.low %v475_v43, %v479_v44  ;;  %v530_v44 = vld [vmem:[#allocation9 + $0x600] sm:$0xff] }
  0xb7   :  { %1867 = vmatpush1.bf16.msra.mxu0 %v2369_v49  ;;  %1995 = vmatpush1.bf16.msra.mxu1 %v2433_v54 }
  0xb8   :  { %1869 = vmatprep.subr.bf16.mxu0 %v2370_v51  ;;  %1997 = vmatprep.subr.bf16.mxu1 %v2434_v56  ;;  %v2378_v51 = vcombine.high %v474_v38, %v478_v42  ;;  %v483_v56 = vld [vmem:[#allocation9 + $0x488] sm:$0xff] }
  0xb9   :  { %v523_v38 = vld [vmem:[#allocation9 + $0x5c8] sm:$0xff] }
  0xbb   :  { %1871 = vmatpush1.bf16.msra.mxu0 %v2371_v55  ;;  %1999 = vmatpush1.bf16.msra.mxu1 %v2435_v57  ;;  %v486_v55 = vld [vmem:[#allocation9 + $0x4a0] sm:$0xff]  ;;  %v487_v57 = vld [vmem:[#allocation9 + $0x4a8] sm:$0xff] }
  0xbc   :  { %1873 = vmatprep.subr.bf16.mxu0 %v2372_v61  ;;  %2001 = vmatprep.subr.bf16.mxu1 %v2436_v0  ;;  %v2380_v61 = vcombine.high %v482_v53, %v486_v55  ;;  %v2444_v62 = vcombine.high %v483_v56, %v487_v57  ;;  %v494_v0 = vld [vmem:[#allocation9 + $0x4e0] sm:$0xff]  ;;  %v2381_v3 = vcombine.low %v482_v53, %v486_v55 }
  0xbd   :  { %v2445_v4 = vcombine.low %v483_v56, %v487_v57  ;;  %v538_v55 = vld [vmem:[#allocation9 + $0x640] sm:$0xff]  ;;  %v539_v57 = vld [vmem:[#allocation9 + $0x648] sm:$0xff] }
  0xbe   :  { %v542_v56 = vld [vmem:[#allocation9 + $0x660] sm:$0xff] }
  0xbf   :  { %1875 = vmatpush1.bf16.msra.mxu0 %v2373_v63  ;;  %2003 = vmatpush1.bf16.msra.mxu1 %v2437_v1  ;;  %v490_v63 = vld [vmem:[#allocation9 + $0x4c0] sm:$0xff]  ;;  %v491_v1 = vld [vmem:[#allocation9 + $0x4c8] sm:$0xff] }
  0xc0   :  { %1877 = vmatprep.subr.bf16.mxu0 %v2374_v5  ;;  %2005 = vmatprep.subr.bf16.mxu1 %v2438_v8  ;;  %v2382_v5 = vcombine.high %v490_v63, %v494_v0  ;;  %v2446_v6 = vcombine.high %v491_v1, %v495_v2  ;;  %v502_v8 = vld [vmem:[#allocation9 + $0x520] sm:$0xff]  ;;  %v2383_v11 = vcombine.low %v490_v63, %v494_v0 }
  0xc1   :  { %v2447_v12 = vcombine.low %v491_v1, %v495_v2  ;;  %v546_v0 = vld [vmem:[#allocation9 + $0x680] sm:$0xff]  ;;  %v547_v2 = vld [vmem:[#allocation9 + $0x688] sm:$0xff] }
  0xc2   :  { %v550_v1 = vld [vmem:[#allocation9 + $0x6a0] sm:$0xff] }
  0xc3   :  { %1879 = vmatpush1.bf16.msra.mxu0 %v2375_v7  ;;  %2007 = vmatpush1.bf16.msra.mxu1 %v2439_v9  ;;  %v498_v7 = vld [vmem:[#allocation9 + $0x500] sm:$0xff]  ;;  %v499_v9 = vld [vmem:[#allocation9 + $0x508] sm:$0xff] }
  0xc4   :  { %1881 = vmatprep.subr.bf16.mxu0 %v2376_v13  ;;  %2009 = vmatprep.subr.bf16.mxu1 %v2440_v16  ;;  %v2384_v13 = vcombine.high %v498_v7, %v502_v8  ;;  %v2448_v14 = vcombine.high %v499_v9, %v503_v10  ;;  %v510_v16 = vld [vmem:[#allocation9 + $0x560] sm:$0xff]  ;;  %v2385_v21 = vcombine.low %v498_v7, %v502_v8 }
  0xc5   :  { %v2449_v23 = vcombine.low %v499_v9, %v503_v10  ;;  %v554_v8 = vld [vmem:[#allocation9 + $0x6c0] sm:$0xff]  ;;  %v555_v10 = vld [vmem:[#allocation9 + $0x6c8] sm:$0xff] }
  0xc6   :  { %v558_v9 = vld [vmem:[#allocation9 + $0x6e0] sm:$0xff] }
 0x159   :  { %v206_v29 = vpop.f32.mrb[0].mxu0  ;;  %v277_v39 = vpop.f32.mrb[0].mxu1 }
 0x15a   :  { %v304_v32 = vmul.f32 %v287_v25, %v206_v29  ;;  %v208_v33 = vpop.f32.mrb[1].mxu0  ;;  %v306_v45 = vmul.f32 %v295_v31, %v277_v39  ;;  %v279_v46 = vpop.f32.mrb[1].mxu1  ;;  %v518_v29 = vld [vmem:[#allocation9 + $0x5a0] sm:$0xff]  ;;  %v519_v31 = vld [vmem:[#allocation9 + $0x5a8] sm:$0xff] }
 0x15b   :  { %v305_v35 = vmul.f32 %v291_v27, %v208_v33  ;;  %v307_v47 = vmul.f32 %v299_v34, %v279_v46  ;;  %v527_v39 = vld [vmem:[#allocation9 + $0x5e8] sm:$0xff] }
 0x15c   :  { %v330_v37 = vadd.f32 %v313_v28, %v304_v32  ;;  %v2948_v49 = vadd.f32 %v321_v36, %v306_v45  ;;  %v514_v28 = vld [vmem:[#allocation9 + $0x580] sm:$0xff]  ;;  %v2454_v43 = vcombine.high %v523_v38, %v527_v39  ;;  %v531_v46 = vld [vmem:[#allocation9 + $0x608] sm:$0xff] }
 0x15d   :  { %v331_v41 = vadd.f32 %v317_v30, %v305_v35  ;;  %v333_v54 = vadd.f32 %v325_v40, %v307_v47  ;;  %v515_v30 = vld [vmem:[#allocation9 + $0x588] sm:$0xff]  ;;  %v2388_v34 = vcombine.high %v514_v28, %v518_v29  ;;  %v522_v36 = vld [vmem:[#allocation9 + $0x5c0] sm:$0xff]  ;;  %v2389_v40 = vcombine.low %v514_v28, %v518_v29 }
 0x15e   :  { %v2950_v50 = vmax.f32 %v330_v37, 0.0  ;;  %v2452_v35 = vcombine.high %v515_v30, %v519_v31  ;;  %v526_v37 = vld [vmem:[#allocation9 + $0x5e0] sm:$0xff]  ;;  %v535_v47 = vld [vmem:[#allocation9 + $0x628] sm:$0xff] }
 0x15f   :  { %v2946_v48 = vmax.f32 %v331_v41, 0.0  ;;  %v2956_v58 = vmax.f32 %v333_v54, 0.0  ;;  %v2453_v41 = vcombine.low %v515_v30, %v519_v31  ;;  %v2390_v42 = vcombine.high %v522_v36, %v526_v37  ;;  %v534_v45 = vld [vmem:[#allocation9 + $0x620] sm:$0xff]  ;;  %v571_v31 = vld [vmem:[#allocation9 + $0x748] sm:$0xff] }
 0x160   :  { %v2392_v53 = vcombine.high %v530_v44, %v534_v45  ;;  %v2456_v54 = vcombine.high %v531_v46, %v535_v47  ;;  %v570_v29 = vld [vmem:[#allocation9 + $0x740] sm:$0xff] }
 0x161   :  { %1170 = vmatprep.mubr.f32.mxu0 %v2946_v48  ;;  %1312 = vmatprep.mubr.f32.mxu1 %v2946_v48  ;;  %v574_v30 = vld [vmem:[#allocation9 + $0x760] sm:$0xff] }
 0x162   :  { %1171 = vmatmul.mubr.f32.vlgmr.msra.gmra.mrb[2].mxu0 %v2950_v50  ;;  %1313 = vmatmul.mubr.f32.vlgmr.msra.gmra.mrb[2].mxu1 %v2950_v50 }
 0x163   :  { %1883 = vmatpush1.bf16.msra.mxu0 %v2377_v15  ;;  %2011 = vmatpush1.bf16.msra.mxu1 %v2441_v17  ;;  %v506_v15 = vld [vmem:[#allocation9 + $0x540] sm:$0xff]  ;;  %v507_v17 = vld [vmem:[#allocation9 + $0x548] sm:$0xff] }
 0x164   :  { %1885 = vmatprep.subr.bf16.mxu0 %v2378_v51  ;;  %2013 = vmatprep.subr.bf16.mxu1 %v2442_v52  ;;  %v2386_v25 = vcombine.high %v506_v15, %v510_v16  ;;  %v2450_v27 = vcombine.high %v507_v17, %v511_v18  ;;  %v2387_v32 = vcombine.low %v506_v15, %v510_v16  ;;  %v562_v16 = vld [vmem:[#allocation9 + $0x700] sm:$0xff] }
 0x165   :  { %1241 = vmatprep.mubr.f32.mxu0 %v2956_v58  ;;  %1383 = vmatprep.mubr.f32.mxu1 %v2956_v58  ;;  %v2451_v33 = vcombine.low %v507_v17, %v511_v18  ;;  %v2391_v51 = vcombine.low %v522_v36, %v526_v37  ;;  %v2455_v52 = vcombine.low %v523_v38, %v527_v39  ;;  %v566_v17 = vld [vmem:[#allocation9 + $0x720] sm:$0xff]  ;;  %v563_v18 = vld [vmem:[#allocation9 + $0x708] sm:$0xff] }
 0x166   :  { %v578_v37 = vld [vmem:[#allocation9 + $0x780] sm:$0xff]  ;;  %v579_v39 = vld [vmem:[#allocation9 + $0x788] sm:$0xff] }
 0x167   :  { %1887 = vmatpush1.bf16.msra.mxu0 %v2379_v59  ;;  %2015 = vmatpush1.bf16.msra.mxu1 %v2443_v60  ;;  %v543_v59 = vld [vmem:[#allocation9 + $0x668] sm:$0xff]  ;;  %v2393_v60 = vcombine.low %v530_v44, %v534_v45  ;;  %v582_v38 = vld [vmem:[#allocation9 + $0x7a0] sm:$0xff] }
 0x168   :  { %1889 = vmatprep.subr.bf16.mxu0 %v2380_v61  ;;  %2017 = vmatprep.subr.bf16.mxu1 %v2444_v62  ;;  %v2457_v61 = vcombine.low %v531_v46, %v535_v47  ;;  %v2394_v62 = vcombine.high %v538_v55, %v542_v56  ;;  %v2458_v63 = vcombine.high %v539_v57, %v543_v59  ;;  %v586_v45 = vld [vmem:[#allocation9 + $0x7c0] sm:$0xff]  ;;  %v587_v47 = vld [vmem:[#allocation9 + $0x7c8] sm:$0xff] }
 0x169   :  { %v590_v46 = vld [vmem:[#allocation9 + $0x7e0] sm:$0xff] }
 0x16b   :  { %1891 = vmatpush1.bf16.msra.mxu0 %v2381_v3  ;;  %2019 = vmatpush1.bf16.msra.mxu1 %v2445_v4  ;;  %v551_v3 = vld [vmem:[#allocation9 + $0x6a8] sm:$0xff]  ;;  %v2395_v4 = vcombine.low %v538_v55, %v542_v56  ;;  %v340_v56 = vld [vmem:[#allocation9 + $0x10] sm:$0xff] }
 0x16c   :  { %1893 = vmatprep.subr.bf16.mxu0 %v2382_v5  ;;  %2021 = vmatprep.subr.bf16.mxu1 %v2446_v6  ;;  %v2459_v5 = vcombine.low %v539_v57, %v543_v59  ;;  %v2396_v6 = vcombine.high %v546_v0, %v550_v1  ;;  %v2460_v7 = vcombine.high %v547_v2, %v551_v3  ;;  %v344_v57 = vld [vmem:[#allocation9 + $0x30] sm:$0xff]  ;;  %v341_v59 = vld [vmem:[#allocation9 + $0x18] sm:$0xff] }
 0x16f   :  { %1895 = vmatpush1.bf16.msra.mxu0 %v2383_v11  ;;  %2023 = vmatpush1.bf16.msra.mxu1 %v2447_v12  ;;  %v559_v11 = vld [vmem:[#allocation9 + $0x6e8] sm:$0xff]  ;;  %v2397_v12 = vcombine.low %v546_v0, %v550_v1  ;;  %v348_v1 = vld [vmem:[#allocation9 + $0x50] sm:$0xff] }
 0x170   :  { %1897 = vmatprep.subr.bf16.mxu0 %v2384_v13  ;;  %2025 = vmatprep.subr.bf16.mxu1 %v2448_v14  ;;  %v2461_v13 = vcombine.low %v547_v2, %v551_v3  ;;  %v2398_v14 = vcombine.high %v554_v8, %v558_v9  ;;  %v2462_v15 = vcombine.high %v555_v10, %v559_v11  ;;  %v2961_v2 = vmax.f32 %v2948_v49, 0.0  ;;  %v352_v3 = vld [vmem:[#allocation9 + $0x70] sm:$0xff]  ;;  %v361_v49 = vld [vmem:[#allocation9 + $0xb8] sm:$0xff] }
 0x173   :  { %1899 = vmatpush1.bf16.msra.mxu0 %v2385_v21  ;;  %2027 = vmatpush1.bf16.msra.mxu1 %v2449_v23  ;;  %v567_v21 = vld [vmem:[#allocation9 + $0x728] sm:$0xff]  ;;  %v2399_v23 = vcombine.low %v554_v8, %v558_v9  ;;  %v2474_v8 = vcombine.high %v348_v1, %v352_v3 }
 0x174   :  { %1901 = vmatprep.subr.bf16.mxu0 %v2386_v25  ;;  %2029 = vmatprep.subr.bf16.mxu1 %v2450_v27  ;;  %v2463_v25 = vcombine.low %v555_v10, %v559_v11  ;;  %v2400_v27 = vcombine.high %v562_v16, %v566_v17  ;;  %v2464_v28 = vcombine.high %v563_v18, %v567_v21  ;;  %v356_v10 = vld [vmem:[#allocation9 + $0x90] sm:$0xff] }
 0x175   :  { %v360_v11 = vld [vmem:[#allocation9 + $0xb0] sm:$0xff] }
 0x177   :  { %1903 = vmatpush1.bf16.msra.mxu0 %v2387_v32  ;;  %2031 = vmatpush1.bf16.msra.mxu1 %v2451_v33  ;;  %v575_v32 = vld [vmem:[#allocation9 + $0x768] sm:$0xff]  ;;  %v2401_v33 = vcombine.low %v562_v16, %v566_v17  ;;  %v364_v17 = vld [vmem:[#allocation9 + $0xd0] sm:$0xff] }
 0x178   :  { %1905 = vmatprep.subr.bf16.mxu0 %v2388_v34  ;;  %2033 = vmatprep.subr.bf16.mxu1 %v2452_v35  ;;  %v2465_v34 = vcombine.low %v563_v18, %v567_v21  ;;  %v2402_v35 = vcombine.high %v570_v29, %v574_v30  ;;  %v2466_v36 = vcombine.high %v571_v31, %v575_v32  ;;  %v368_v18 = vld [vmem:[#allocation9 + $0xf0] sm:$0xff]  ;;  %v365_v21 = vld [vmem:[#allocation9 + $0xd8] sm:$0xff] }
 0x17b   :  { %1907 = vmatpush1.bf16.msra.mxu0 %v2389_v40  ;;  %2035 = vmatpush1.bf16.msra.mxu1 %v2453_v41  ;;  %v583_v40 = vld [vmem:[#allocation9 + $0x7a8] sm:$0xff]  ;;  %v2403_v41 = vcombine.low %v570_v29, %v574_v30  ;;  %v372_v30 = vld [vmem:[#allocation9 + $0x110] sm:$0xff] }
 0x17c   :  { %1909 = vmatprep.subr.bf16.mxu0 %v2390_v42  ;;  %2037 = vmatprep.subr.bf16.mxu1 %v2454_v43  ;;  %v2467_v42 = vcombine.low %v571_v31, %v575_v32  ;;  %v2404_v43 = vcombine.high %v578_v37, %v582_v38  ;;  %v2468_v44 = vcombine.high %v579_v39, %v583_v40  ;;  %v376_v31 = vld [vmem:[#allocation9 + $0x130] sm:$0xff]  ;;  %v377_v32 = vld [vmem:[#allocation9 + $0x138] sm:$0xff] }
 0x17f   :  { %1911 = vmatpush1.bf16.msra.mxu0 %v2391_v51  ;;  %2039 = vmatpush1.bf16.msra.mxu1 %v2455_v52  ;;  %v591_v51 = vld [vmem:[#allocation9 + $0x7e8] sm:$0xff]  ;;  %v2405_v52 = vcombine.low %v578_v37, %v582_v38  ;;  %v380_v37 = vld [vmem:[#allocation9 + $0x150] sm:$0xff] }
 0x180   :  { %1913 = vmatprep.subr.bf16.mxu0 %v2392_v53  ;;  %2041 = vmatprep.subr.bf16.mxu1 %v2456_v54  ;;  %v2469_v53 = vcombine.low %v579_v39, %v583_v40  ;;  %v2406_v54 = vcombine.high %v586_v45, %v590_v46  ;;  %v2470_v55 = vcombine.high %v587_v47, %v591_v51  ;;  %v384_v38 = vld [vmem:[#allocation9 + $0x170] sm:$0xff]  ;;  %v381_v39 = vld [vmem:[#allocation9 + $0x158] sm:$0xff] }
 0x181   :  { %v385_v40 = vld [vmem:[#allocation9 + $0x178] sm:$0xff] }
 0x183   :  { %1915 = vmatpush1.bf16.msra.mxu0 %v2393_v60  ;;  %2043 = vmatpush1.bf16.msra.mxu1 %v2457_v61  ;;  %v345_v60 = vld [vmem:[#allocation9 + $0x38] sm:$0xff]  ;;  %v2407_v61 = vcombine.low %v586_v45, %v590_v46  ;;  %v388_v45 = vld [vmem:[#allocation9 + $0x190] sm:$0xff] }
 0x184   :  { %1917 = vmatprep.subr.bf16.mxu0 %v2394_v62  ;;  %2045 = vmatprep.subr.bf16.mxu1 %v2458_v63  ;;  %v2471_v62 = vcombine.low %v587_v47, %v591_v51  ;;  %v2472_v63 = vcombine.high %v340_v56, %v344_v57  ;;  %v2536_v0 = vcombine.high %v341_v59, %v345_v60  ;;  %v392_v46 = vld [vmem:[#allocation9 + $0x1b0] sm:$0xff]  ;;  %v389_v47 = vld [vmem:[#allocation9 + $0x198] sm:$0xff] }
 0x185   :  { %v393_v51 = vld [vmem:[#allocation9 + $0x1b8] sm:$0xff] }
 0x187   :  { %1919 = vmatpush1.bf16.msra.mxu0 %v2395_v4  ;;  %2047 = vmatpush1.bf16.msra.mxu1 %v2459_v5  ;;  %v349_v4 = vld [vmem:[#allocation9 + $0x58] sm:$0xff] }
 0x188   :  { %1921 = vmatprep.subr.bf16.mxu0 %v2396_v6  ;;  %2049 = vmatprep.subr.bf16.mxu1 %v2460_v7  ;;  %v353_v5 = vld [vmem:[#allocation9 + $0x78] sm:$0xff]  ;;  %v2473_v6 = vcombine.low %v340_v56, %v344_v57  ;;  %v2537_v7 = vcombine.low %v341_v59, %v345_v60  ;;  %v396_v56 = vld [vmem:[#allocation9 + $0x1d0] sm:$0xff] }
 0x189   :  { %v2538_v9 = vcombine.high %v349_v4, %v353_v5  ;;  %v400_v57 = vld [vmem:[#allocation9 + $0x1f0] sm:$0xff]  ;;  %v397_v59 = vld [vmem:[#allocation9 + $0x1d8] sm:$0xff] }
 0x18a   :  { %v401_v60 = vld [vmem:[#allocation9 + $0x1f8] sm:$0xff] }
 0x18b   :  { %1923 = vmatpush1.bf16.msra.mxu0 %v2397_v12  ;;  %2051 = vmatpush1.bf16.msra.mxu1 %v2461_v13  ;;  %v357_v12 = vld [vmem:[#allocation9 + $0x98] sm:$0xff]  ;;  %v2475_v13 = vcombine.low %v348_v1, %v352_v3  ;;  %v404_v1 = vld [vmem:[#allocation9 + $0x210] sm:$0xff] }
 0x18c   :  { %1925 = vmatprep.subr.bf16.mxu0 %v2398_v14  ;;  %2053 = vmatprep.subr.bf16.mxu1 %v2462_v15  ;;  %v2539_v14 = vcombine.low %v349_v4, %v353_v5  ;;  %v2476_v15 = vcombine.high %v356_v10, %v360_v11  ;;  %v2540_v16 = vcombine.high %v357_v12, %v361_v49  ;;  %v408_v3 = vld [vmem:[#allocation9 + $0x230] sm:$0xff]  ;;  %v405_v4 = vld [vmem:[#allocation9 + $0x218] sm:$0xff] }
 0x18d   :  { %v409_v5 = vld [vmem:[#allocation9 + $0x238] sm:$0xff] }
 0x18f   :  { %1927 = vmatpush1.bf16.msra.mxu0 %v2399_v23  ;;  %2055 = vmatpush1.bf16.msra.mxu1 %v2463_v25  ;;  %v369_v23 = vld [vmem:[#allocation9 + $0xf8] sm:$0xff]  ;;  %v2477_v25 = vcombine.low %v356_v10, %v360_v11  ;;  %v412_v10 = vld [vmem:[#allocation9 + $0x250] sm:$0xff] }
 0x190   :  { %1929 = vmatprep.subr.bf16.mxu0 %v2400_v27  ;;  %2057 = vmatprep.subr.bf16.mxu1 %v2464_v28  ;;  %v2541_v27 = vcombine.low %v357_v12, %v361_v49  ;;  %v2478_v28 = vcombine.high %v364_v17, %v368_v18  ;;  %v2542_v29 = vcombine.high %v365_v21, %v369_v23  ;;  %v416_v11 = vld [vmem:[#allocation9 + $0x270] sm:$0xff]  ;;  %v413_v12 = vld [vmem:[#allocation9 + $0x258] sm:$0xff] }
 0x191   :  { %v417_v49 = vld [vmem:[#allocation9 + $0x278] sm:$0xff] }
 0x193   :  { %1931 = vmatpush1.bf16.msra.mxu0 %v2401_v33  ;;  %2059 = vmatpush1.bf16.msra.mxu1 %v2465_v34  ;;  %v2479_v33 = vcombine.low %v364_v17, %v368_v18  ;;  %v2543_v34 = vcombine.low %v365_v21, %v369_v23  ;;  %v420_v17 = vld [vmem:[#allocation9 + $0x290] sm:$0xff]  ;;  %v421_v21 = vld [vmem:[#allocation9 + $0x298] sm:$0xff] }
 0x194   :  { %1933 = vmatprep.subr.bf16.mxu0 %v2402_v35  ;;  %2061 = vmatprep.subr.bf16.mxu1 %v2466_v36  ;;  %v2480_v35 = vcombine.high %v372_v30, %v376_v31  ;;  %v424_v18 = vld [vmem:[#allocation9 + $0x2b0] sm:$0xff]  ;;  %v425_v23 = vld [vmem:[#allocation9 + $0x2b8] sm:$0xff] }
 0x197   :  { %1935 = vmatpush1.bf16.msra.mxu0 %v2403_v41  ;;  %2063 = vmatpush1.bf16.msra.mxu1 %v2467_v42  ;;  %v2481_v41 = vcombine.low %v372_v30, %v376_v31  ;;  %v428_v30 = vld [vmem:[#allocation9 + $0x2d0] sm:$0xff] }
 0x198   :  { %1937 = vmatprep.subr.bf16.mxu0 %v2404_v43  ;;  %2065 = vmatprep.subr.bf16.mxu1 %v2468_v44  ;;  %v2482_v43 = vcombine.high %v380_v37, %v384_v38  ;;  %v2546_v44 = vcombine.high %v381_v39, %v385_v40  ;;  %v432_v31 = vld [vmem:[#allocation9 + $0x2f0] sm:$0xff] }
 0x19b   :  { %1939 = vmatpush1.bf16.msra.mxu0 %v2405_v52  ;;  %2067 = vmatpush1.bf16.msra.mxu1 %v2469_v53  ;;  %v2483_v52 = vcombine.low %v380_v37, %v384_v38  ;;  %v2547_v53 = vcombine.low %v381_v39, %v385_v40  ;;  %v436_v37 = vld [vmem:[#allocation9 + $0x310] sm:$0xff]  ;;  %v437_v39 = vld [vmem:[#allocation9 + $0x318] sm:$0xff] }
 0x19c   :  { %1941 = vmatprep.subr.bf16.mxu0 %v2406_v54  ;;  %2069 = vmatprep.subr.bf16.mxu1 %v2470_v55  ;;  %v2484_v54 = vcombine.high %v388_v45, %v392_v46  ;;  %v2548_v55 = vcombine.high %v389_v47, %v393_v51  ;;  %v440_v38 = vld [vmem:[#allocation9 + $0x330] sm:$0xff]  ;;  %v441_v40 = vld [vmem:[#allocation9 + $0x338] sm:$0xff] }
 0x19f   :  { %1943 = vmatpush1.bf16.msra.mxu0 %v2407_v61  ;;  %2071 = vmatpush1.bf16.msra.mxu1 %v2471_v62  ;;  %v2485_v61 = vcombine.low %v388_v45, %v392_v46  ;;  %v2549_v62 = vcombine.low %v389_v47, %v393_v51  ;;  %v444_v45 = vld [vmem:[#allocation9 + $0x350] sm:$0xff]  ;;  %v445_v47 = vld [vmem:[#allocation9 + $0x358] sm:$0xff] }
 0x1a0   :  { %2073 = vmatprep.subr.bf16.mxu0 %v2472_v63  ;;  %2201 = vmatprep.subr.bf16.mxu1 %v2536_v0  ;;  %v2486_v63 = vcombine.high %v396_v56, %v400_v57  ;;  %v2550_v0 = vcombine.high %v397_v59, %v401_v60  ;;  %v448_v46 = vld [vmem:[#allocation9 + $0x370] sm:$0xff]  ;;  %v449_v51 = vld [vmem:[#allocation9 + $0x378] sm:$0xff] }
 0x1a2   :  { %1242 = vmatmul.mubr.f32.vlgmr.msra.gmra.mrb[2].mxu0 %v2961_v2  ;;  %1384 = vmatmul.mubr.f32.vlgmr.msra.gmra.mrb[2].mxu1 %v2961_v2 }
 0x1a3   :  { %2075 = vmatpush1.bf16.msra.mxu0 %v2473_v6  ;;  %1454 = vmatprep.mubr.f32.mxu0 %v2946_v48  ;;  %v2487_v6 = vcombine.low %v396_v56, %v400_v57  ;;  %v452_v56 = vld [vmem:[#allocation9 + $0x390] sm:$0xff] }
 0x1a4   :  { %2203 = vmatpush1.bf16.msra.mxu1 %v2537_v7  ;;  %1596 = vmatprep.mubr.f32.mxu1 %v2946_v48  ;;  %v373_v48 = vld [vmem:[#allocation9 + $0x118] sm:$0xff]  ;;  %v2551_v7 = vcombine.low %v397_v59, %v401_v60  ;;  %v456_v57 = vld [vmem:[#allocation9 + $0x3b0] sm:$0xff] }
 0x1a5   :  { %2077 = vmatprep.subr.bf16.mxu0 %v2474_v8  ;;  %2205 = vmatprep.subr.bf16.mxu1 %v2538_v9  ;;  %v2544_v36 = vcombine.high %v373_v48, %v377_v32  ;;  %v2545_v42 = vcombine.low %v373_v48, %v377_v32  ;;  %v2488_v8 = vcombine.high %v404_v1, %v408_v3  ;;  %v429_v48 = vld [vmem:[#allocation9 + $0x2d8] sm:$0xff] }
 0x1a6   :  { %v2552_v9 = vcombine.high %v405_v4, %v409_v5  ;;  %v433_v32 = vld [vmem:[#allocation9 + $0x2f8] sm:$0xff] }
 0x1a7   :  { %2079 = vmatpush1.bf16.msra.mxu0 %v2475_v13  ;;  %v2489_v13 = vcombine.low %v404_v1, %v408_v3  ;;  %v453_v59 = vld [vmem:[#allocation9 + $0x398] sm:$0xff]  ;;  %v460_v1 = vld [vmem:[#allocation9 + $0x3d0] sm:$0xff] }
 0x1a8   :  { %2207 = vmatpush1.bf16.msra.mxu1 %v2539_v14  ;;  %2081 = vmatprep.subr.bf16.mxu0 %v2476_v15  ;;  %v2553_v14 = vcombine.low %v405_v4, %v409_v5  ;;  %v2490_v15 = vcombine.high %v412_v10, %v416_v11  ;;  %v457_v60 = vld [vmem:[#allocation9 + $0x3b8] sm:$0xff]  ;;  %v464_v3 = vld [vmem:[#allocation9 + $0x3f0] sm:$0xff] }
 0x1a9   :  { %2209 = vmatprep.subr.bf16.mxu1 %v2540_v16  ;;  %v2554_v16 = vcombine.high %v413_v12, %v417_v49  ;;  %v461_v4 = vld [vmem:[#allocation9 + $0x3d8] sm:$0xff] }
 0x1aa   :  { %v465_v5 = vld [vmem:[#allocation9 + $0x3f8] sm:$0xff] }
 0x1ab   :  { %2083 = vmatpush1.bf16.msra.mxu0 %v2477_v25  ;;  %v2491_v25 = vcombine.low %v412_v10, %v416_v11  ;;  %v468_v10 = vld [vmem:[#allocation9 + $0x410] sm:$0xff] }
 0x1ac   :  { %2211 = vmatpush1.bf16.msra.mxu1 %v2541_v27  ;;  %2085 = vmatprep.subr.bf16.mxu0 %v2478_v28  ;;  %v2555_v27 = vcombine.low %v413_v12, %v417_v49  ;;  %v2492_v28 = vcombine.high %v420_v17, %v424_v18  ;;  %v472_v11 = vld [vmem:[#allocation9 + $0x430] sm:$0xff]  ;;  %v469_v12 = vld [vmem:[#allocation9 + $0x418] sm:$0xff] }
 0x1ad   :  { %2213 = vmatprep.subr.bf16.mxu1 %v2542_v29  ;;  %v2556_v29 = vcombine.high %v421_v21, %v425_v23  ;;  %v473_v49 = vld [vmem:[#allocation9 + $0x438] sm:$0xff] }
 0x1af   :  { %2087 = vmatpush1.bf16.msra.mxu0 %v2479_v33  ;;  %v2493_v33 = vcombine.low %v420_v17, %v424_v18  ;;  %v476_v17 = vld [vmem:[#allocation9 + $0x450] sm:$0xff] }
 0x1b0   :  { %2215 = vmatpush1.bf16.msra.mxu1 %v2543_v34  ;;  %2089 = vmatprep.subr.bf16.mxu0 %v2480_v35  ;;  %v2557_v34 = vcombine.low %v421_v21, %v425_v23  ;;  %v2494_v35 = vcombine.high %v428_v30, %v432_v31  ;;  %v480_v18 = vld [vmem:[#allocation9 + $0x470] sm:$0xff]  ;;  %v2505_v21 = vcombine.low %v468_v10, %v472_v11  ;;  %v477_v23 = vld [vmem:[#allocation9 + $0x458] sm:$0xff] }
 0x1b1   :  { %2217 = vmatprep.subr.bf16.mxu1 %v2544_v36  ;;  %v2558_v36 = vcombine.high %v429_v48, %v433_v32 }
 0x1b3   :  { %2091 = vmatpush1.bf16.msra.mxu0 %v2481_v41  ;;  %v2495_v41 = vcombine.low %v428_v30, %v432_v31  ;;  %v488_v30 = vld [vmem:[#allocation9 + $0x4b0] sm:$0xff] }
 0x1b4   :  { %2219 = vmatpush1.bf16.msra.mxu1 %v2545_v42  ;;  %2093 = vmatprep.subr.bf16.mxu0 %v2482_v43  ;;  %v2559_v42 = vcombine.low %v429_v48, %v433_v32  ;;  %v2496_v43 = vcombine.high %v436_v37, %v440_v38  ;;  %v485_v48 = vld [vmem:[#allocation9 + $0x498] sm:$0xff] }
 0x1b5   :  { %2221 = vmatprep.subr.bf16.mxu1 %v2546_v44  ;;  %v2560_v44 = vcombine.high %v437_v39, %v441_v40  ;;  %v489_v32 = vld [vmem:[#allocation9 + $0x4b8] sm:$0xff] }
 0x1b7   :  { %2095 = vmatpush1.bf16.msra.mxu0 %v2483_v52  ;;  %v2497_v52 = vcombine.low %v436_v37, %v440_v38  ;;  %v492_v37 = vld [vmem:[#allocation9 + $0x4d0] sm:$0xff] }
 0x1b8   :  { %2223 = vmatpush1.bf16.msra.mxu1 %v2547_v53  ;;  %2097 = vmatprep.subr.bf16.mxu0 %v2484_v54  ;;  %v2561_v53 = vcombine.low %v437_v39, %v441_v40  ;;  %v2498_v54 = vcombine.high %v444_v45, %v448_v46  ;;  %v496_v38 = vld [vmem:[#allocation9 + $0x4f0] sm:$0xff]  ;;  %v493_v39 = vld [vmem:[#allocation9 + $0x4d8] sm:$0xff] }
 0x1b9   :  { %2225 = vmatprep.subr.bf16.mxu1 %v2548_v55  ;;  %v2562_v55 = vcombine.high %v445_v47, %v449_v51  ;;  %v497_v40 = vld [vmem:[#allocation9 + $0x4f8] sm:$0xff] }
 0x1bb   :  { %2099 = vmatpush1.bf16.msra.mxu0 %v2485_v61  ;;  %v2499_v61 = vcombine.low %v444_v45, %v448_v46  ;;  %v504_v45 = vld [vmem:[#allocation9 + $0x530] sm:$0xff]  ;;  %v501_v46 = vld [vmem:[#allocation9 + $0x518] sm:$0xff] }
 0x1bc   :  { %2227 = vmatpush1.bf16.msra.mxu1 %v2549_v62  ;;  %2101 = vmatprep.subr.bf16.mxu0 %v2486_v63  ;;  %v2563_v62 = vcombine.low %v445_v47, %v449_v51  ;;  %v2500_v63 = vcombine.high %v452_v56, %v456_v57  ;;  %v505_v47 = vld [vmem:[#allocation9 + $0x538] sm:$0xff]  ;;  %v2575_v51 = vcombine.low %v493_v39, %v497_v40 }
 0x1bd   :  { %2229 = vmatprep.subr.bf16.mxu1 %v2550_v0  ;;  %v2564_v0 = vcombine.high %v453_v59, %v457_v60 }
 0x1bf   :  { %2103 = vmatpush1.bf16.msra.mxu0 %v2487_v6  ;;  %v2501_v6 = vcombine.low %v452_v56, %v456_v57  ;;  %v509_v56 = vld [vmem:[#allocation9 + $0x558] sm:$0xff] }
 0x1c0   :  { %2231 = vmatpush1.bf16.msra.mxu1 %v2551_v7  ;;  %2105 = vmatprep.subr.bf16.mxu0 %v2488_v8  ;;  %v2565_v7 = vcombine.low %v453_v59, %v457_v60  ;;  %v2502_v8 = vcombine.high %v460_v1, %v464_v3  ;;  %v513_v57 = vld [vmem:[#allocation9 + $0x578] sm:$0xff]  ;;  %v2577_v60 = vcombine.low %v501_v46, %v505_v47 }
 0x1c1   :  { %2233 = vmatprep.subr.bf16.mxu1 %v2552_v9  ;;  %v2566_v9 = vcombine.high %v461_v4, %v465_v5 }
 0x1c3   :  { %2107 = vmatpush1.bf16.msra.mxu0 %v2489_v13  ;;  %v2503_v13 = vcombine.low %v460_v1, %v464_v3  ;;  %v517_v1 = vld [vmem:[#allocation9 + $0x598] sm:$0xff] }
 0x1c4   :  { %2235 = vmatpush1.bf16.msra.mxu1 %v2553_v14  ;;  %2109 = vmatprep.subr.bf16.mxu0 %v2490_v15  ;;  %v2567_v14 = vcombine.low %v461_v4, %v465_v5  ;;  %v2504_v15 = vcombine.high %v468_v10, %v472_v11  ;;  %v521_v3 = vld [vmem:[#allocation9 + $0x5b8] sm:$0xff]  ;;  %v2579_v5 = vcombine.low %v509_v56, %v513_v57 }
 0x1c5   :  { %2237 = vmatprep.subr.bf16.mxu1 %v2554_v16  ;;  %v2568_v16 = vcombine.high %v469_v12, %v473_v49  ;;  %v525_v10 = vld [vmem:[#allocation9 + $0x5d8] sm:$0xff] }
 0x1c6   :  { %v529_v11 = vld [vmem:[#allocation9 + $0x5f8] sm:$0xff] }
 0x1c7   :  { %2111 = vmatpush1.bf16.msra.mxu0 %v2491_v25  ;;  %v481_v25 = vld [vmem:[#allocation9 + $0x478] sm:$0xff] }
 0x1c8   :  { %2239 = vmatpush1.bf16.msra.mxu1 %v2555_v27  ;;  %2113 = vmatprep.subr.bf16.mxu0 %v2492_v28  ;;  %v2569_v27 = vcombine.low %v469_v12, %v473_v49  ;;  %v2506_v28 = vcombine.high %v476_v17, %v480_v18  ;;  %v2570_v31 = vcombine.high %v477_v23, %v481_v25 }
 0x1c9   :  { %2241 = vmatprep.subr.bf16.mxu1 %v2556_v29  ;;  %v484_v29 = vld [vmem:[#allocation9 + $0x490] sm:$0xff]  ;;  %v2581_v49 = vcombine.low %v517_v1, %v521_v3 }
 0x1cb   :  { %2115 = vmatpush1.bf16.msra.mxu0 %v2493_v33  ;;  %v2507_v33 = vcombine.low %v476_v17, %v480_v18  ;;  %v533_v17 = vld [vmem:[#allocation9 + $0x618] sm:$0xff] }
 0x1cc   :  { %2243 = vmatpush1.bf16.msra.mxu1 %v2557_v34  ;;  %2117 = vmatprep.subr.bf16.mxu0 %v2494_v35  ;;  %v2571_v34 = vcombine.low %v477_v23, %v481_v25  ;;  %v2508_v35 = vcombine.high %v484_v29, %v488_v30  ;;  %v537_v18 = vld [vmem:[#allocation9 + $0x638] sm:$0xff]  ;;  %v2583_v23 = vcombine.low %v525_v10, %v529_v11 }
 0x1cd   :  { %2245 = vmatprep.subr.bf16.mxu1 %v2558_v36  ;;  %v2572_v36 = vcombine.high %v485_v48, %v489_v32 }
 0x1cf   :  { %2119 = vmatpush1.bf16.msra.mxu0 %v2495_v41  ;;  %v2509_v41 = vcombine.low %v484_v29, %v488_v30  ;;  %v544_v29 = vld [vmem:[#allocation9 + $0x670] sm:$0xff]  ;;  %v541_v30 = vld [vmem:[#allocation9 + $0x658] sm:$0xff] }
 0x1d0   :  { %2247 = vmatpush1.bf16.msra.mxu1 %v2559_v42  ;;  %2121 = vmatprep.subr.bf16.mxu0 %v2496_v43  ;;  %v2510_v42 = vcombine.high %v492_v37, %v496_v38  ;;  %v2574_v43 = vcombine.high %v493_v39, %v497_v40 }
 0x1d1   :  { %2249 = vmatprep.subr.bf16.mxu1 %v2560_v44  ;;  %v500_v44 = vld [vmem:[#allocation9 + $0x510] sm:$0xff] }
 0x1d2   :  { %v2513_v59 = vcombine.low %v500_v44, %v504_v45 }
 0x1d3   :  { %2123 = vmatpush1.bf16.msra.mxu0 %v2497_v52  ;;  %v2512_v52 = vcombine.high %v500_v44, %v504_v45  ;;  %v557_v44 = vld [vmem:[#allocation9 + $0x6d8] sm:$0xff] }
 0x1d4   :  { %2251 = vmatpush1.bf16.msra.mxu1 %v2561_v53  ;;  %2125 = vmatprep.subr.bf16.mxu0 %v2498_v54  ;;  %v2576_v53 = vcombine.high %v501_v46, %v505_v47  ;;  %v508_v54 = vld [vmem:[#allocation9 + $0x550] sm:$0xff]  ;;  %v561_v45 = vld [vmem:[#allocation9 + $0x6f8] sm:$0xff] }
 0x1d5   :  { %2253 = vmatprep.subr.bf16.mxu1 %v2562_v55  ;;  %v512_v55 = vld [vmem:[#allocation9 + $0x570] sm:$0xff] }
 0x1d6   :  { %v2515_v4 = vcombine.low %v508_v54, %v512_v55 }
 0x1d7   :  { %2127 = vmatpush1.bf16.msra.mxu0 %v2499_v61  ;;  %v2514_v61 = vcombine.high %v508_v54, %v512_v55  ;;  %v565_v54 = vld [vmem:[#allocation9 + $0x718] sm:$0xff] }
 0x1d8   :  { %2255 = vmatpush1.bf16.msra.mxu1 %v2563_v62  ;;  %2129 = vmatprep.subr.bf16.mxu0 %v2500_v63  ;;  %v2578_v62 = vcombine.high %v509_v56, %v513_v57  ;;  %v516_v63 = vld [vmem:[#allocation9 + $0x590] sm:$0xff]  ;;  %v569_v55 = vld [vmem:[#allocation9 + $0x738] sm:$0xff]  ;;  %v2591_v57 = vcombine.low %v557_v44, %v561_v45 }
 0x1d9   :  { %2257 = vmatprep.subr.bf16.mxu1 %v2564_v0  ;;  %v520_v0 = vld [vmem:[#allocation9 + $0x5b0] sm:$0xff] }
 0x1da   :  { %v2517_v12 = vcombine.low %v516_v63, %v520_v0 }
 0x1db   :  { %2131 = vmatpush1.bf16.msra.mxu0 %v2501_v6  ;;  %v2516_v6 = vcombine.high %v516_v63, %v520_v0  ;;  %v573_v63 = vld [vmem:[#allocation9 + $0x758] sm:$0xff] }
 0x1dc   :  { %2259 = vmatpush1.bf16.msra.mxu1 %v2565_v7  ;;  %2133 = vmatprep.subr.bf16.mxu0 %v2502_v8  ;;  %v2580_v7 = vcombine.high %v517_v1, %v521_v3  ;;  %v524_v8 = vld [vmem:[#allocation9 + $0x5d0] sm:$0xff]  ;;  %v577_v0 = vld [vmem:[#allocation9 + $0x778] sm:$0xff]  ;;  %v2593_v3 = vcombine.low %v565_v54, %v569_v55 }
 0x1dd   :  { %2261 = vmatprep.subr.bf16.mxu1 %v2566_v9  ;;  %v528_v9 = vld [vmem:[#allocation9 + $0x5f0] sm:$0xff] }
 0x1df   :  { %2135 = vmatpush1.bf16.msra.mxu0 %v2503_v13  ;;  %v2518_v13 = vcombine.high %v524_v8, %v528_v9 }
 0x1e0   :  { %2263 = vmatpush1.bf16.msra.mxu1 %v2567_v14  ;;  %2137 = vmatprep.subr.bf16.mxu0 %v2504_v15  ;;  %v2582_v14 = vcombine.high %v525_v10, %v529_v11  ;;  %v532_v15 = vld [vmem:[#allocation9 + $0x610] sm:$0xff]  ;;  %v2595_v11 = vcombine.low %v573_v63, %v577_v0 }
 0x1e1   :  { %2265 = vmatprep.subr.bf16.mxu1 %v2568_v16  ;;  %v536_v16 = vld [vmem:[#allocation9 + $0x630] sm:$0xff] }
 0x1e2   :  { %1455 = vmatmul.mubr.f32.vlgmr.msra.gmra.mrb[4].mxu0 %v2950_v50  ;;  %v2520_v25 = vcombine.high %v532_v15, %v536_v16 }
 0x1e3   :  { %1597 = vmatmul.mubr.f32.vlgmr.msra.gmra.mrb[4].mxu1 %v2950_v50  ;;  %2139 = vmatpush1.bf16.msra.mxu0 %v2505_v21  ;;  %v2573_v50 = vcombine.low %v485_v48, %v489_v32  ;;  %v2519_v21 = vcombine.low %v524_v8, %v528_v9  ;;  %v2521_v48 = vcombine.low %v532_v15, %v536_v16  ;;  %v581_v8 = vld [vmem:[#allocation9 + $0x798] sm:$0xff] }
 0x1e4   :  { %1525 = vmatprep.mubr.f32.mxu0 %v2956_v58  ;;  %2267 = vmatpush1.bf16.msra.mxu1 %v2569_v27  ;;  %v2584_v27 = vcombine.high %v533_v17, %v537_v18  ;;  %v2585_v32 = vcombine.low %v533_v17, %v537_v18  ;;  %v585_v9 = vld [vmem:[#allocation9 + $0x7b8] sm:$0xff] }
 0x1e5   :  { %1667 = vmatprep.mubr.f32.mxu1 %v2956_v58  ;;  %2141 = vmatprep.subr.bf16.mxu0 %v2506_v28  ;;  %v2511_v58 = vcombine.low %v492_v37, %v496_v38  ;;  %v540_v28 = vld [vmem:[#allocation9 + $0x650] sm:$0xff]  ;;  %v549_v37 = vld [vmem:[#allocation9 + $0x698] sm:$0xff]  ;;  %v2597_v18 = vcombine.low %v581_v8, %v585_v9 }
 0x1e6   :  { %2269 = vmatprep.subr.bf16.mxu1 %v2570_v31  ;;  %v545_v31 = vld [vmem:[#allocation9 + $0x678] sm:$0xff]  ;;  %v2523_v39 = vcombine.low %v540_v28, %v544_v29 }
 0x1e7   :  { %2143 = vmatpush1.bf16.msra.mxu0 %v2507_v33  ;;  %v2522_v33 = vcombine.high %v540_v28, %v544_v29  ;;  %v553_v38 = vld [vmem:[#allocation9 + $0x6b8] sm:$0xff]  ;;  %v2587_v40 = vcombine.low %v541_v30, %v545_v31  ;;  %v1674_v28 = vld [vmem:[#allocation10] sm:$0xff]  ;;  %v1724_v29 = vld [vmem:[#allocation12] sm:$0xff] }
 0x1e8   :  { %2271 = vmatpush1.bf16.msra.mxu1 %v2571_v34  ;;  %2145 = vmatprep.subr.bf16.mxu0 %v2508_v35  ;;  %v2586_v34 = vcombine.high %v541_v30, %v545_v31  ;;  %v548_v35 = vld [vmem:[#allocation9 + $0x690] sm:$0xff]  ;;  %v2589_v47 = vcombine.low %v549_v37, %v553_v38  ;;  %v589_v15 = vld [vmem:[#allocation9 + $0x7d8] sm:$0xff]  ;;  %v1679_v30 = vrot.slane %v1674_v28, %v2927_v20 }
 0x1e9   :  { %2273 = vmatprep.subr.bf16.mxu1 %v2572_v36  ;;  %v552_v36 = vld [vmem:[#allocation9 + $0x6b0] sm:$0xff]  ;;  %v593_v16 = vld [vmem:[#allocation9 + $0x7f8] sm:$0xff]  ;;  %v1687_v31 = vrot.slane %v1674_v28, %v2933_v24 }
 0x1ea   :  { %v2525_v46 = vcombine.low %v548_v35, %v552_v36 }
 0x1eb   :  { %2147 = vmatpush1.bf16.msra.mxu0 %v2509_v41  ;;  %v2524_v41 = vcombine.high %v548_v35, %v552_v36 }
 0x1ec   :  { %2275 = vmatpush1.bf16.msra.mxu1 %v2573_v50  ;;  %2149 = vmatprep.subr.bf16.mxu0 %v2510_v42  ;;  %v2588_v50 = vcombine.high %v549_v37, %v553_v38  ;;  %v556_v42 = vld [vmem:[#allocation9 + $0x6d0] sm:$0xff]  ;;  %v1733_v37 = vrot.slane %v1724_v29, %v2930_v22 }
 0x1ed   :  { %2277 = vmatprep.subr.bf16.mxu1 %v2574_v43  ;;  %v560_v43 = vld [vmem:[#allocation9 + $0x6f0] sm:$0xff] }
 0x1ee   :  { %v2527_v56 = vcombine.low %v556_v42, %v560_v43 }
 0x1ef   :  { %2151 = vmatpush1.bf16.msra.mxu0 %v2511_v58  ;;  %v2526_v58 = vcombine.high %v556_v42, %v560_v43 }
 0x1f0   :  { %2279 = vmatpush1.bf16.msra.mxu1 %v2575_v51  ;;  %2153 = vmatprep.subr.bf16.mxu0 %v2512_v52  ;;  %v2590_v51 = vcombine.high %v557_v44, %v561_v45  ;;  %v564_v52 = vld [vmem:[#allocation9 + $0x710] sm:$0xff] }
 0x1f1   :  { %2281 = vmatprep.subr.bf16.mxu1 %v2576_v53  ;;  %v568_v53 = vld [vmem:[#allocation9 + $0x730] sm:$0xff] }
 0x1f2   :  { %v2529_v1 = vcombine.low %v564_v52, %v568_v53 }
 0x1f3   :  { %2155 = vmatpush1.bf16.msra.mxu0 %v2513_v59  ;;  %v2528_v59 = vcombine.high %v564_v52, %v568_v53  ;;  %v1706_v52 = vsub.s32 7, %v2924_v19 }
 0x1f4   :  { %2283 = vmatpush1.bf16.msra.mxu1 %v2577_v60  ;;  %2157 = vmatprep.subr.bf16.mxu0 %v2514_v61  ;;  %v2592_v60 = vcombine.high %v565_v54, %v569_v55  ;;  %v572_v61 = vld [vmem:[#allocation9 + $0x750] sm:$0xff] }
 0x1f5   :  { %2285 = vmatprep.subr.bf16.mxu1 %v2578_v62  ;;  %v576_v62 = vld [vmem:[#allocation9 + $0x770] sm:$0xff] }
 0x1f6   :  { %v2531_v10 = vcombine.low %v572_v61, %v576_v62 }
 0x1f7   :  { %2159 = vmatpush1.bf16.msra.mxu0 %v2515_v4  ;;  %v2530_v4 = vcombine.high %v572_v61, %v576_v62 }
 0x1f8   :  { %2287 = vmatpush1.bf16.msra.mxu1 %v2579_v5  ;;  %2161 = vmatprep.subr.bf16.mxu0 %v2516_v6  ;;  %v2594_v5 = vcombine.high %v573_v63, %v577_v0  ;;  %v580_v6 = vld [vmem:[#allocation9 + $0x790] sm:$0xff] }
 0x1f9   :  { %2289 = vmatprep.subr.bf16.mxu1 %v2580_v7  ;;  %v584_v7 = vld [vmem:[#allocation9 + $0x7b0] sm:$0xff] }
 0x1fa   :  { %v2533_v17 = vcombine.low %v580_v6, %v584_v7 }
 0x1fb   :  { %2163 = vmatpush1.bf16.msra.mxu0 %v2517_v12  ;;  %v2532_v12 = vcombine.high %v580_v6, %v584_v7 }
 0x1fc   :  { %2291 = vmatpush1.bf16.msra.mxu1 %v2581_v49  ;;  %2165 = vmatprep.subr.bf16.mxu0 %v2518_v13  ;;  %v2596_v49 = vcombine.high %v581_v8, %v585_v9  ;;  %v588_v13 = vld [vmem:[#allocation9 + $0x7d0] sm:$0xff] }
 0x1fd   :  { %2293 = vmatprep.subr.bf16.mxu1 %v2582_v14  ;;  %v592_v14 = vld [vmem:[#allocation9 + $0x7f0] sm:$0xff] }
 0x1ff   :  { %2167 = vmatpush1.bf16.msra.mxu0 %v2519_v21  ;;  %v2534_v21 = vcombine.high %v588_v13, %v592_v14 }
 0x200   :  { %2295 = vmatpush1.bf16.msra.mxu1 %v2583_v23  ;;  %2169 = vmatprep.subr.bf16.mxu0 %v2520_v25  ;;  %v2598_v23 = vcombine.high %v589_v15, %v593_v16  ;;  %v2535_v25 = vcombine.low %v588_v13, %v592_v14 }
 0x201   :  { %2297 = vmatprep.subr.bf16.mxu1 %v2584_v27  ;;  %v2599_v27 = vcombine.low %v589_v15, %v593_v16 }
 0x203   :  { %2171 = vmatpush1.bf16.msra.mxu0 %v2521_v48  ;;  %v1683_v48 = vrot.slane %v1674_v28, %v2930_v22  ;;  %v1694_v22 = vsub.s32 4, %v2924_v19 }
 0x204   :  { %2299 = vmatpush1.bf16.msra.mxu1 %v2585_v32  ;;  %2173 = vmatprep.subr.bf16.mxu0 %v2522_v33  ;;  %v1691_v32 = vrot.slane %v1674_v28, %v2937_v26  ;;  %v1729_v33 = vrot.slane %v1724_v29, %v2927_v20 }
 0x205   :  { %2301 = vmatprep.subr.bf16.mxu1 %v2586_v34  ;;  %v1737_v34 = vrot.slane %v1724_v29, %v2933_v24  ;;  %v1695_v53 = vrot.slane %v1674_v28, %v1694_v22 }
 0x207   :  { %2175 = vmatpush1.bf16.msra.mxu0 %v2523_v39 }
 0x208   :  { %2303 = vmatpush1.bf16.msra.mxu1 %v2587_v40  ;;  %2177 = vmatprep.subr.bf16.mxu0 %v2524_v41 }
 0x209   :  { %2305 = vmatprep.subr.bf16.mxu1 %v2588_v50 }
 0x20b   :  { %2179 = vmatpush1.bf16.msra.mxu0 %v2525_v46 }
 0x20c   :  { %2307 = vmatpush1.bf16.msra.mxu1 %v2589_v47  ;;  %2181 = vmatprep.subr.bf16.mxu0 %v2526_v58 }
 0x20d   :  { %2309 = vmatprep.subr.bf16.mxu1 %v2590_v51  ;;  %v1698_v51 = vsub.s32 5, %v2924_v19 }
 0x20f   :  { %2183 = vmatpush1.bf16.msra.mxu0 %v2527_v56  ;;  %v1699_v55 = vrot.slane %v1674_v28, %v1698_v51  ;;  %v1745_v56 = vrot.slane %v1724_v29, %v1694_v22  ;;  %v1749_v61 = vrot.slane %v1724_v29, %v1698_v51 }
 0x210   :  { %2311 = vmatpush1.bf16.msra.mxu1 %v2591_v57  ;;  %2185 = vmatprep.subr.bf16.mxu0 %v2528_v59  ;;  %v1707_v57 = vrot.slane %v1674_v28, %v1706_v52 }
 0x211   :  { %2313 = vmatprep.subr.bf16.mxu1 %v2592_v60 }
 0x213   :  { %2187 = vmatpush1.bf16.msra.mxu0 %v2529_v1  ;;  %v1757_v1 = vrot.slane %v1724_v29, %v1706_v52 }
 0x214   :  { %2315 = vmatpush1.bf16.msra.mxu1 %v2593_v3  ;;  %2189 = vmatprep.subr.bf16.mxu0 %v2530_v4 }
 0x215   :  { %2317 = vmatprep.subr.bf16.mxu1 %v2594_v5 }
 0x217   :  { %2191 = vmatpush1.bf16.msra.mxu0 %v2531_v10 }
 0x218   :  { %2319 = vmatpush1.bf16.msra.mxu1 %v2595_v11  ;;  %2193 = vmatprep.subr.bf16.mxu0 %v2532_v12 }
 0x219   :  { %2321 = vmatprep.subr.bf16.mxu1 %v2596_v49 }
 0x21b   :  { %2195 = vmatpush1.bf16.msra.mxu0 %v2533_v17 }
 0x21c   :  { %2323 = vmatpush1.bf16.msra.mxu1 %v2597_v18  ;;  %2197 = vmatprep.subr.bf16.mxu0 %v2534_v21 }
 0x21d   :  { %2325 = vmatprep.subr.bf16.mxu1 %v2598_v23 }
 0x21f   :  { %2199 = vmatpush1.bf16.msra.mxu0 %v2535_v25 }
 0x220   :  { %2327 = vmatpush1.bf16.msra.mxu1 %v2599_v27 }
 0x222   :  { %1526 = vmatmul.mubr.f32.vlgmr.msra.gmra.mrb[4].mxu0 %v2961_v2 }
 0x223   :  { %1668 = vmatmul.mubr.f32.vlgmr.msra.gmra.mrb[4].mxu1 %v2961_v2  ;;  %v1741_v2 = vrot.slane %v1724_v29, %v2937_v26  ;;  %v1702_v26 = vsub.s32 6, %v2924_v19 }
 0x225   :  { %v1703_v54 = vrot.slane %v1674_v28, %v1702_v26  ;;  %v1753_v60 = vrot.slane %v1724_v29, %v1702_v26 }
 0x275   :  { %v1243_v35 = vpop.f32.mrb[2].mxu0  ;;  %v1385_v36 = vpop.f32.mrb[2].mxu1 }
 0x276   :  { %v1716_v38 = vmul.f32 %v1679_v30, %v1243_v35  ;;  %v1718_v39 = vmul.f32 %v1687_v31, %v1385_v36  ;;  %v1245_v40 = vpop.f32.mrb[3].mxu0  ;;  %v1387_v41 = vpop.f32.mrb[3].mxu1 }
 0x277   :  { %v1717_v50 = vmul.f32 %v1683_v48, %v1245_v40  ;;  %v1719_v42 = vmul.f32 %v1691_v32, %v1387_v41 }
 0x278   :  { %v1766_v43 = vadd.f32 %v1729_v33, %v1716_v38  ;;  %v1768_v44 = vadd.f32 %v1737_v34, %v1718_v39 }
 0x279   :  { %v1767_v45 = vadd.f32 %v1733_v37, %v1717_v50  ;;  %v1769_v46 = vadd.f32 %v1741_v2, %v1719_v42 }
 0x27a   :  { %v1774_v47 = vmax.f32 %v1766_v43, 0.0  ;;  %v1776_v20 = vmax.f32 %v1768_v44, 0.0 }
 0x27b   :  { %v1775_v58 = vmax.f32 %v1767_v45, 0.0  ;;  %v1777_v24 = vmax.f32 %v1769_v46, 0.0 }
 0x27c   :  { %1782 = vst [vmem:[%s3016_s7] sm:$0xff] %v1774_v47  ;;  %1784 = vst [vmem:[%s3016_s7 + $0x10] sm:$0xff] %v1776_v20 }
 0x27d   :  { %1783 = vst [vmem:[%s3016_s7 + $0x8] sm:$0xff] %v1775_v58  ;;  %1785 = vst [vmem:[%s3016_s7 + $0x18] sm:$0xff] %v1777_v24 }
 0x2f5   :  { %v1527_v59 = vpop.f32.mrb[4].mxu0 }
 0x2f6   :  { %v1720_v62 = vmul.f32 %v1695_v53, %v1527_v59  ;;  %v1669_v63 = vpop.f32.mrb[4].mxu1  ;;  %v1529_v0 = vpop.f32.mrb[5].mxu0 }
 0x2f7   :  { %v1722_v3 = vmul.f32 %v1703_v54, %v1669_v63  ;;  %v1721_v4 = vmul.f32 %v1699_v55, %v1529_v0  ;;  %v1671_v5 = vpop.f32.mrb[5].mxu1 }
 0x2f8   :  { %v1770_v6 = vadd.f32 %v1745_v56, %v1720_v62  ;;  %v1723_v7 = vmul.f32 %v1707_v57, %v1671_v5 }
 0x2f9   :  { %v1772_v8 = vadd.f32 %v1753_v60, %v1722_v3  ;;  %v1771_v9 = vadd.f32 %v1749_v61, %v1721_v4 }
 0x2fa   :  { %v1778_v19 = vmax.f32 %v1770_v6, 0.0  ;;  %v1773_v10 = vadd.f32 %v1757_v1, %v1723_v7 }
 0x2fb   :  { %v1780_v11 = vmax.f32 %v1772_v8, 0.0  ;;  %v1779_v12 = vmax.f32 %v1771_v9, 0.0 }
 0x2fc   :  { %1786 = vst [vmem:[%s3016_s7 + $0x20] sm:$0xff] %v1778_v19  ;;  %v1781_v49 = vmax.f32 %v1773_v10, 0.0 }
 0x2fd   :  { %1788 = vst [vmem:[%s3016_s7 + $0x30] sm:$0xff] %v1780_v11  ;;  %1787 = vst [vmem:[%s3016_s7 + $0x28] sm:$0xff] %v1779_v12 }
 0x2fe   :  { %1789 = vst [vmem:[%s3016_s7 + $0x38] sm:$0xff] %v1781_v49 }
 0x2ff   :  { %1794 = vsyncpa [#allocation3], 1 }
 0x300   :  { %1795 = vsyncpa [#allocation5], 1 }
 0x301   :  { %1796 = vsyncpa [#allocation8], 1 }
 0x302   :  { %1797 = vsyncpa [#allocation11], 1 }

// kernel: cnn_decoder_forward.5
= control target key start
LH: loop header
LB: loop body
LE: loop exit
PB: predicated region body
PF: predicated region fallthrough
CT: control target
= control target key end

     0   :  { %9 = vsyncpa [#allocation3], 0  ;;  %s4048_s0 = inlined_call_operand.vmem [shape: f32[392,576], index: 0, kind: input, shape index: {}]   ;;  %s4049_s1 = inlined_call_operand.vmem [shape: bf16[576,32], index: 1, kind: input, shape index: {}]   ;;  %s4050_s2 = inlined_call_operand.hbm [shape: f32[1,32], index: 2, kind: input, shape index: {}]   ;;  %s4051_s3 = inlined_call_operand.hbm [shape: f32[1,32], index: 3, kind: input, shape index: {}]   ;;  %s4052_s4 = inlined_call_operand.vmem [shape: f32[392,32], index: 4, kind: output, shape index: {}]  }
   0x1   :  { %10 = vsyncpa [#allocation5], 0  ;;  %s2515_s15 = smov [#allocation2]   ;;  %s2516_s17 = smov [#allocation4]  }
   0x2   :  { %s21_s16 = sshll.u32 %s2515_s15, 4  ;;  %s31_s18 = sshll.u32 %s2516_s17, 4  ;;  %s22_s16 = int_to_ptr.vmem [resolvable:$true] %s21_s16  ;;  %s32_s18 = int_to_ptr.vmem [resolvable:$true] %s31_s18 }
   0x3   :  { %s2467_s21 = scalar_lea.hbm %s4050_s2, 16 }
   0x4   :  { %p2468_p0 = scmp.ne.s32.totalorder %s4050_s2, %s2467_s21  ;;  %p2471_p1 = scmp.lt.u32.totalorder %s2467_s21, %s4050_s2 }
   0x6   :  { %p2473_p2 = pnand %p2471_p1, %p2468_p0 }
   0x8   :  { %2476 = shalt.err (!%p2473_p2)
}
   0x9   :  { %s2477_s26 = scalar_lea.vmem %s22_s16, 16  ;;  %s2481_s27 = scalar_lea.vmem %s22_s16, 32 }
   0xa   :  { %p2478_p3 = scmp.ne.s32.totalorder %s22_s16, %s2477_s26  ;;  %p2482_p4 = scmp.lt.s32.totalorder %s22_s16, %s22_s16 }
   0xb   :  { %p2483_p5 = scmp.lt.s32.totalorder %s2481_s27, %s2477_s26 }
   0xd   :  { %p2484_p6 = por %p2483_p5, %p2482_p4 }
   0xf   :  { %p2485_p7 = pnand %p2484_p6, %p2478_p3 }
  0x11   :  { %2488 = shalt.err (!%p2485_p7)
}
  0x12   :  { %24 = dma.hbm_to_vmem [thread:$0]  %s4050_s2, 16, %s22_s16, [#allocation3]  }
  0x13   :  { %s2489_s6 = scalar_lea.hbm %s4051_s3, 16 }
  0x14   :  { %p2490_p8 = scmp.ne.s32.totalorder %s4051_s3, %s2489_s6  ;;  %p2493_p9 = scmp.lt.u32.totalorder %s2489_s6, %s4051_s3 }
  0x16   :  { %p2495_p10 = pnand %p2493_p9, %p2490_p8 }
  0x18   :  { %2498 = shalt.err (!%p2495_p10)
}
  0x19   :  { %s2499_s11 = scalar_lea.vmem %s32_s18, 16  ;;  %s2503_s12 = scalar_lea.vmem %s32_s18, 32 }
  0x1a   :  { %p2500_p11 = scmp.ne.s32.totalorder %s32_s18, %s2499_s11  ;;  %p2504_p12 = scmp.lt.s32.totalorder %s32_s18, %s32_s18 }
  0x1b   :  { %p2505_p13 = scmp.lt.s32.totalorder %s2503_s12, %s2499_s11 }
  0x1d   :  { %p2506_p0 = por %p2505_p13, %p2504_p12 }
  0x1f   :  { %p2507_p1 = pnand %p2506_p0, %p2500_p11 }
  0x21   :  { %2510 = shalt.err (!%p2507_p1)
}
  0x22   :  { %34 = dma.hbm_to_vmem [thread:$0]  %s4051_s3, 16, %s32_s18, [#allocation5]  }
  0x23   :  { %2511 = dma.done.wait [#allocation3], 16  }
  0x24   :  { %2512 = vsyncadd [#allocation3], 4294967280 }
  0x25   :  { %2513 = dma.done.wait [#allocation5], 16  }
  0x26   :  { %2514 = vsyncadd [#allocation5], 4294967280  ;;  %v2517_v0 = vmov 0.0|0.0   ;;  %v1777_v1 = vld [vmem:[%s4049_s1] sm:$0xff]   ;;  %v1920_v3 = vld [vmem:[%s4049_s1 + $0x8] sm:$0xff]   ;;  %vm2518_vm0 = vmmov 0  }
  0x27   :  { %2175 = vmatprep.subr.bf16.mxu1 %v2517_v0  ;;  %2223 = vmatprep.subr.bf16.mxu0 %v2517_v0  ;;  %v2577_v2 = vld [vmem:[%s4049_s1 + $0x80] sm:$0xff]   ;;  %v2588_v4 = vld [vmem:[%s4049_s1 + $0x88] sm:$0xff]   ;;  %v1921_v5 = vld [vmem:[%s4049_s1 + $0x10] sm:$0xff]   ;;  %vm430_vm1 = vcmask 523264   ;;  %vm1669_vm2 = vcmask 261120  }
  0x28   :  { %2177 = vmatpush1.bf16.msra.mxu1 %v1777_v1  ;;  %2225 = vmatpush1.bf16.msra.mxu0 %v2577_v2  ;;  %v2599_v6 = vld [vmem:[%s4049_s1 + $0x90] sm:$0xff]   ;;  %v1922_v7 = vld [vmem:[%s4049_s1 + $0x18] sm:$0xff]   ;;  %v186_v9 = vld [vmem:[%s4048_s0 + $0x8] sm:$0xff] }
  0x29   :  { %2178 = vmatprep.subr.bf16.mxu1 %v2517_v0  ;;  %2226 = vmatprep.subr.bf16.mxu0 %v2517_v0  ;;  %v2610_v8 = vld [vmem:[%s4049_s1 + $0x98] sm:$0xff]   ;;  %v1923_v11 = vld [vmem:[%s4049_s1 + $0x20] sm:$0xff]   ;;  %v1924_v13 = vld [vmem:[%s4049_s1 + $0x28] sm:$0xff]  }
  0x2a   :  { %642 = vmatprep.mubr.f32.mxu1 %v186_v9  ;;  %v188_v10 = vld [vmem:[%s4048_s0 + $0x18] sm:$0xff]  ;;  %v2627_v12 = vld [vmem:[%s4049_s1 + $0xa0] sm:$0xff]   ;;  %v2638_v14 = vld [vmem:[%s4049_s1 + $0xa8] sm:$0xff]  }
  0x2b   :  { %952 = vmatprep.mubr.f32.mxu0 %v188_v10  ;;  %v1925_v15 = vld [vmem:[%s4049_s1 + $0x30] sm:$0xff]   ;;  %v1926_v17 = vld [vmem:[%s4049_s1 + $0x38] sm:$0xff]   ;;  %v1927_v19 = vld [vmem:[%s4049_s1 + $0x40] sm:$0xff]  }
  0x2c   :  { %2180 = vmatpush1.bf16.msra.mxu1 %v1920_v3  ;;  %2228 = vmatpush1.bf16.msra.mxu0 %v2588_v4  ;;  %v2649_v16 = vld [vmem:[%s4049_s1 + $0xb0] sm:$0xff]   ;;  %v2660_v18 = vld [vmem:[%s4049_s1 + $0xb8] sm:$0xff]   ;;  %v2671_v20 = vld [vmem:[%s4049_s1 + $0xc0] sm:$0xff]  }
  0x2d   :  { %2181 = vmatprep.subr.bf16.mxu1 %v2517_v0  ;;  %2229 = vmatprep.subr.bf16.mxu0 %v2517_v0  ;;  %v1928_v21 = vld [vmem:[%s4049_s1 + $0x48] sm:$0xff]   ;;  %v1929_v23 = vld [vmem:[%s4049_s1 + $0x50] sm:$0xff]   ;;  %v1930_v25 = vld [vmem:[%s4049_s1 + $0x58] sm:$0xff]  }
  0x2e   :  { %v2682_v22 = vld [vmem:[%s4049_s1 + $0xc8] sm:$0xff]   ;;  %v2693_v24 = vld [vmem:[%s4049_s1 + $0xd0] sm:$0xff]   ;;  %v2704_v26 = vld [vmem:[%s4049_s1 + $0xd8] sm:$0xff]  }
  0x2f   :  { %v1931_v27 = vld [vmem:[%s4049_s1 + $0x60] sm:$0xff]   ;;  %v1932_v29 = vld [vmem:[%s4049_s1 + $0x68] sm:$0xff]   ;;  %v1933_v31 = vld [vmem:[%s4049_s1 + $0x70] sm:$0xff]  }
  0x30   :  { %2183 = vmatpush1.bf16.msra.mxu1 %v1921_v5  ;;  %2231 = vmatpush1.bf16.msra.mxu0 %v2599_v6  ;;  %v2715_v28 = vld [vmem:[%s4049_s1 + $0xe0] sm:$0xff]   ;;  %v2726_v30 = vld [vmem:[%s4049_s1 + $0xe8] sm:$0xff]   ;;  %v2737_v32 = vld [vmem:[%s4049_s1 + $0xf0] sm:$0xff]  }
  0x31   :  { %2184 = vmatprep.subr.bf16.mxu1 %v2517_v0  ;;  %2232 = vmatprep.subr.bf16.mxu0 %v2517_v0  ;;  %v1934_v33 = vld [vmem:[%s4049_s1 + $0x78] sm:$0xff]   ;;  %v185_v35 = vld [vmem:[%s4048_s0] sm:$0xff]  ;;  %v187_v36 = vld [vmem:[%s4048_s0 + $0x10] sm:$0xff] }
  0x32   :  { %v2748_v34 = vld [vmem:[%s4049_s1 + $0xf8] sm:$0xff]   ;;  %v1951_v37 = vld [vmem:[%s4049_s1 + $0x100] sm:$0xff]   ;;  %v191_v38 = vld [vmem:[%s4048_s0 + $0x30] sm:$0xff] }
  0x33   :  { %v193_v39 = vld [vmem:[%s4048_s0 + $0x40] sm:$0xff]  ;;  %v190_v40 = vld [vmem:[%s4048_s0 + $0x28] sm:$0xff]  ;;  %v192_v41 = vld [vmem:[%s4048_s0 + $0x38] sm:$0xff] }
  0x34   :  { %2186 = vmatpush1.bf16.msra.mxu1 %v1922_v7  ;;  %2234 = vmatpush1.bf16.msra.mxu0 %v2610_v8  ;;  %v196_v42 = vld [vmem:[%s4048_s0 + $0x58] sm:$0xff]  ;;  %v198_v43 = vld [vmem:[%s4048_s0 + $0x68] sm:$0xff]  ;;  %v195_v45 = vld [vmem:[%s4048_s0 + $0x50] sm:$0xff] }
  0x35   :  { %2187 = vmatprep.subr.bf16.mxu1 %v2517_v0  ;;  %2235 = vmatprep.subr.bf16.mxu0 %v2517_v0  ;;  %v1952_v44 = vld [vmem:[%s4049_s1 + $0x108] sm:$0xff]   ;;  %v197_v46 = vld [vmem:[%s4048_s0 + $0x60] sm:$0xff]  ;;  %v203_v48 = vld [vmem:[%s4048_s0 + $0x90] sm:$0xff] }
  0x36   :  { %v201_v47 = vld [vmem:[%s4048_s0 + $0x80] sm:$0xff]  ;;  %v1953_v49 = vld [vmem:[%s4049_s1 + $0x110] sm:$0xff]   ;;  %v200_v50 = vld [vmem:[%s4048_s0 + $0x78] sm:$0xff] }
  0x37   :  { %v202_v51 = vld [vmem:[%s4048_s0 + $0x88] sm:$0xff]  ;;  %v208_v53 = vld [vmem:[%s4048_s0 + $0xb8] sm:$0xff]  ;;  %v205_v55 = vld [vmem:[%s4048_s0 + $0xa0] sm:$0xff] }
  0x38   :  { %2189 = vmatpush1.bf16.msra.mxu1 %v1923_v11  ;;  %2237 = vmatpush1.bf16.msra.mxu0 %v2627_v12  ;;  %v206_v52 = vld [vmem:[%s4048_s0 + $0xa8] sm:$0xff]  ;;  %v1954_v54 = vld [vmem:[%s4049_s1 + $0x118] sm:$0xff]   ;;  %v207_v56 = vld [vmem:[%s4048_s0 + $0xb0] sm:$0xff] }
  0x39   :  { %2190 = vmatprep.subr.bf16.mxu1 %v2517_v0  ;;  %2238 = vmatprep.subr.bf16.mxu0 %v2517_v0  ;;  %v211_v57 = vld [vmem:[%s4048_s0 + $0xd0] sm:$0xff]  ;;  %v213_v58 = vld [vmem:[%s4048_s0 + $0xe0] sm:$0xff]  ;;  %v210_v59 = vld [vmem:[%s4048_s0 + $0xc8] sm:$0xff] }
  0x3a   :  { %v212_v60 = vld [vmem:[%s4048_s0 + $0xd8] sm:$0xff]  ;;  %v218_v62 = vld [vmem:[%s4048_s0 + $0x108] sm:$0xff]  ;;  %v215_v63 = vld [vmem:[%s4048_s0 + $0xf0] sm:$0xff] }
  0x3b   :  { %v216_v61 = vld [vmem:[%s4048_s0 + $0xf8] sm:$0xff]  ;;  %v217_v1 = vld [vmem:[%s4048_s0 + $0x100] sm:$0xff]  ;;  %v223_v3 = vld [vmem:[%s4048_s0 + $0x130] sm:$0xff] }
  0x3c   :  { %2192 = vmatpush1.bf16.msra.mxu1 %v1924_v13  ;;  %2240 = vmatpush1.bf16.msra.mxu0 %v2638_v14  ;;  %v222_v5 = vld [vmem:[%s4048_s0 + $0x128] sm:$0xff]  ;;  %v228_v7 = vld [vmem:[%s4048_s0 + $0x158] sm:$0xff]  ;;  %v227_v9 = vld [vmem:[%s4048_s0 + $0x150] sm:$0xff] }
  0x3d   :  { %2193 = vmatprep.subr.bf16.mxu1 %v2517_v0  ;;  %2241 = vmatprep.subr.bf16.mxu0 %v2517_v0  ;;  %v231_v10 = vld [vmem:[%s4048_s0 + $0x170] sm:$0xff]  ;;  %v233_v11 = vld [vmem:[%s4048_s0 + $0x180] sm:$0xff]  ;;  %v232_v13 = vld [vmem:[%s4048_s0 + $0x178] sm:$0xff] }
  0x40   :  { %2195 = vmatpush1.bf16.msra.mxu1 %v1925_v15  ;;  %2243 = vmatpush1.bf16.msra.mxu0 %v2649_v16  ;;  %v238_v15 = vld [vmem:[%s4048_s0 + $0x1a8] sm:$0xff] }
  0x41   :  { %2196 = vmatprep.subr.bf16.mxu1 %v2517_v0  ;;  %2244 = vmatprep.subr.bf16.mxu0 %v2517_v0 }
  0x44   :  { %2198 = vmatpush1.bf16.msra.mxu1 %v1926_v17  ;;  %2246 = vmatpush1.bf16.msra.mxu0 %v2660_v18  ;;  %v237_v17 = vld [vmem:[%s4048_s0 + $0x1a0] sm:$0xff] }
  0x45   :  { %2199 = vmatprep.subr.bf16.mxu1 %v2517_v0  ;;  %2247 = vmatprep.subr.bf16.mxu0 %v2517_v0 }
  0x48   :  { %2201 = vmatpush1.bf16.msra.mxu1 %v1927_v19  ;;  %2249 = vmatpush1.bf16.msra.mxu0 %v2671_v20  ;;  %v243_v19 = vld [vmem:[%s4048_s0 + $0x1d0] sm:$0xff] }
  0x49   :  { %2202 = vmatprep.subr.bf16.mxu1 %v2517_v0  ;;  %2250 = vmatprep.subr.bf16.mxu0 %v2517_v0 }
  0x4c   :  { %2204 = vmatpush1.bf16.msra.mxu1 %v1928_v21  ;;  %2252 = vmatpush1.bf16.msra.mxu0 %v2682_v22  ;;  %v242_v21 = vld [vmem:[%s4048_s0 + $0x1c8] sm:$0xff] }
  0x4d   :  { %2205 = vmatprep.subr.bf16.mxu1 %v2517_v0  ;;  %2253 = vmatprep.subr.bf16.mxu0 %v2517_v0 }
  0x50   :  { %2207 = vmatpush1.bf16.msra.mxu1 %v1929_v23  ;;  %2255 = vmatpush1.bf16.msra.mxu0 %v2693_v24  ;;  %v246_v23 = vld [vmem:[%s4048_s0 + $0x1e8] sm:$0xff] }
  0x51   :  { %2208 = vmatprep.subr.bf16.mxu1 %v2517_v0  ;;  %2256 = vmatprep.subr.bf16.mxu0 %v2517_v0 }
  0x54   :  { %2210 = vmatpush1.bf16.msra.mxu1 %v1930_v25  ;;  %2258 = vmatpush1.bf16.msra.mxu0 %v2704_v26  ;;  %v245_v25 = vld [vmem:[%s4048_s0 + $0x1e0] sm:$0xff] }
  0x55   :  { %2211 = vmatprep.subr.bf16.mxu1 %v2517_v0  ;;  %2259 = vmatprep.subr.bf16.mxu0 %v2517_v0 }
  0x58   :  { %2213 = vmatpush1.bf16.msra.mxu1 %v1931_v27  ;;  %2261 = vmatpush1.bf16.msra.mxu0 %v2715_v28  ;;  %v247_v27 = vld [vmem:[%s4048_s0 + $0x1f0] sm:$0xff] }
  0x59   :  { %2214 = vmatprep.subr.bf16.mxu1 %v2517_v0  ;;  %2262 = vmatprep.subr.bf16.mxu0 %v2517_v0 }
  0x5c   :  { %2216 = vmatpush1.bf16.msra.mxu1 %v1932_v29  ;;  %2264 = vmatpush1.bf16.msra.mxu0 %v2726_v30  ;;  %v251_v29 = vld [vmem:[%s4048_s0 + $0x210] sm:$0xff] }
  0x5d   :  { %2217 = vmatprep.subr.bf16.mxu1 %v2517_v0  ;;  %2265 = vmatprep.subr.bf16.mxu0 %v2517_v0 }
  0x60   :  { %2219 = vmatpush1.bf16.msra.mxu1 %v1933_v31  ;;  %2267 = vmatpush1.bf16.msra.mxu0 %v2737_v32  ;;  %v250_v31 = vld [vmem:[%s4048_s0 + $0x208] sm:$0xff] }
  0x61   :  { %2220 = vmatprep.subr.bf16.mxu1 %v2517_v0  ;;  %2268 = vmatprep.subr.bf16.mxu0 %v2517_v0 }
  0x64   :  { %2222 = vmatpush1.bf16.msra.mxu1 %v1934_v33  ;;  %2270 = vmatpush1.bf16.msra.mxu0 %v2748_v34  ;;  %v252_v33 = vld [vmem:[%s4048_s0 + $0x218] sm:$0xff] }
  0x65   :  { %2271 = vmatprep.subr.bf16.mxu0 %v2517_v0  ;;  %2283 = vmatprep.subr.bf16.mxu1 %v2517_v0 }
  0x67   :  { %643 = vmatmul.mubr.f32.vlgmr.msra.gmra.mrb[0].mxu1 %v185_v35  ;;  %953 = vmatmul.mubr.f32.vlgmr.msra.gmra.mrb[0].mxu0 %v187_v36  ;;  %v256_v35 = vld [vmem:[%s4048_s0 + $0x238] sm:$0xff]  ;;  %v255_v36 = vld [vmem:[%s4048_s0 + $0x230] sm:$0xff] }
  0x68   :  { %2273 = vmatpush3.bf16.msra.mxu0 %v1951_v37  ;;  %647 = vmatprep.mubr.f32.mxu1 %v191_v38  ;;  %v257_v37 = vld [vmem:[%s4048_s0 + $0x240] sm:$0xff] }
  0x69   :  { %957 = vmatprep.mubr.f32.mxu0 %v193_v39  ;;  %2299 = vmatpush1.bf16.msra.mxu1 %v2577_v2  ;;  %v221_v2 = vld [vmem:[%s4048_s0 + $0x120] sm:$0xff]  ;;  %v260_v39 = vld [vmem:[%s4048_s0 + $0x258] sm:$0xff] }
  0x6a   :  { %2284 = vmatprep.subr.bf16.mxu1 %v2517_v0  ;;  %2274 = vmatprep.subr.bf16.mxu0 %v2517_v0  ;;  %v261_v38 = vld [vmem:[%s4048_s0 + $0x260] sm:$0xff] }
  0x6b   :  { %648 = vmatmul.mubr.f32.gmra.mrb[2].mxu1 %v190_v40  ;;  %958 = vmatmul.mubr.f32.gmra.mrb[2].mxu0 %v192_v41  ;;  %v262_v40 = vld [vmem:[%s4048_s0 + $0x268] sm:$0xff] }
  0x6c   :  { %652 = vmatprep.mubr.f32.mxu1 %v196_v42  ;;  %962 = vmatprep.mubr.f32.mxu0 %v198_v43  ;;  %v266_v41 = vld [vmem:[%s4048_s0 + $0x288] sm:$0xff]  ;;  %v265_v42 = vld [vmem:[%s4048_s0 + $0x280] sm:$0xff]  ;;  %v267_v43 = vld [vmem:[%s4048_s0 + $0x290] sm:$0xff] }
  0x6d   :  { %2300 = vmatpush1.bf16.msra.mxu1 %v2588_v4  ;;  %2276 = vmatpush3.bf16.msra.mxu0 %v1952_v44  ;;  %v220_v4 = vld [vmem:[%s4048_s0 + $0x118] sm:$0xff]  ;;  %v271_v44 = vld [vmem:[%s4048_s0 + $0x2b0] sm:$0xff] }
  0x6e   :  { %2285 = vmatprep.subr.bf16.mxu1 %v2517_v0  ;;  %2277 = vmatprep.subr.bf16.mxu0 %v2517_v0 }
  0x6f   :  { %653 = vmatmul.mubr.f32.gmra.mrb[4].mxu1 %v195_v45  ;;  %963 = vmatmul.mubr.f32.gmra.mrb[4].mxu0 %v197_v46  ;;  %v272_v45 = vld [vmem:[%s4048_s0 + $0x2b8] sm:$0xff] }
  0x70   :  { %657 = vmatprep.mubr.f32.mxu1 %v201_v47  ;;  %967 = vmatprep.mubr.f32.mxu0 %v203_v48  ;;  %v276_v46 = vld [vmem:[%s4048_s0 + $0x2d8] sm:$0xff]  ;;  %v275_v47 = vld [vmem:[%s4048_s0 + $0x2d0] sm:$0xff]  ;;  %v277_v48 = vld [vmem:[%s4048_s0 + $0x2e0] sm:$0xff] }
  0x71   :  { %2301 = vmatpush1.bf16.msra.mxu1 %v2599_v6  ;;  %2279 = vmatpush3.bf16.msra.mxu0 %v1953_v49  ;;  %v226_v6 = vld [vmem:[%s4048_s0 + $0x148] sm:$0xff]  ;;  %v281_v49 = vld [vmem:[%s4048_s0 + $0x300] sm:$0xff] }
  0x72   :  { %2286 = vmatprep.subr.bf16.mxu1 %v2517_v0  ;;  %2280 = vmatprep.subr.bf16.mxu0 %v2517_v0 }
  0x73   :  { %658 = vmatmul.mubr.f32.gmra.mrb[6].mxu1 %v200_v50  ;;  %968 = vmatmul.mubr.f32.gmra.mrb[6].mxu0 %v202_v51  ;;  %v283_v50 = vld [vmem:[%s4048_s0 + $0x310] sm:$0xff]  ;;  %v280_v51 = vld [vmem:[%s4048_s0 + $0x2f8] sm:$0xff] }
  0x74   :  { %662 = vmatprep.mubr.f32.mxu1 %v206_v52  ;;  %972 = vmatprep.mubr.f32.mxu0 %v208_v53  ;;  %v282_v52 = vld [vmem:[%s4048_s0 + $0x308] sm:$0xff] }
  0x75   :  { %2302 = vmatpush1.bf16.msra.mxu1 %v2610_v8  ;;  %2282 = vmatpush3.bf16.msra.mxu0 %v1954_v54  ;;  %v225_v8 = vld [vmem:[%s4048_s0 + $0x140] sm:$0xff]  ;;  %v286_v53 = vld [vmem:[%s4048_s0 + $0x328] sm:$0xff]  ;;  %v288_v54 = vld [vmem:[%s4048_s0 + $0x338] sm:$0xff] }
  0x76   :  { %2287 = vmatprep.subr.bf16.mxu1 %v2517_v0 }
  0x77   :  { %663 = vmatmul.mubr.f32.gmra.mrb[8].mxu1 %v205_v55  ;;  %973 = vmatmul.mubr.f32.gmra.mrb[8].mxu0 %v207_v56  ;;  %v285_v55 = vld [vmem:[%s4048_s0 + $0x320] sm:$0xff]  ;;  %v287_v56 = vld [vmem:[%s4048_s0 + $0x330] sm:$0xff] }
  0x78   :  { %667 = vmatprep.mubr.f32.mxu1 %v211_v57  ;;  %977 = vmatprep.mubr.f32.mxu0 %v213_v58  ;;  %v291_v57 = vld [vmem:[%s4048_s0 + $0x350] sm:$0xff]  ;;  %v293_v58 = vld [vmem:[%s4048_s0 + $0x360] sm:$0xff] }
  0x79   :  { %2303 = vmatpush1.bf16.msra.mxu1 %v2627_v12  ;;  %v230_v12 = vld [vmem:[%s4048_s0 + $0x168] sm:$0xff] }
  0x7a   :  { %2288 = vmatprep.subr.bf16.mxu1 %v2517_v0 }
  0x7b   :  { %668 = vmatmul.mubr.f32.gmra.mrb[10].mxu1 %v210_v59  ;;  %978 = vmatmul.mubr.f32.gmra.mrb[10].mxu0 %v212_v60  ;;  %v290_v59 = vld [vmem:[%s4048_s0 + $0x348] sm:$0xff]  ;;  %v292_v60 = vld [vmem:[%s4048_s0 + $0x358] sm:$0xff] }
  0x7c   :  { %672 = vmatprep.mubr.f32.mxu1 %v216_v61  ;;  %982 = vmatprep.mubr.f32.mxu0 %v218_v62  ;;  %v296_v61 = vld [vmem:[%s4048_s0 + $0x378] sm:$0xff]  ;;  %v298_v62 = vld [vmem:[%s4048_s0 + $0x388] sm:$0xff] }
  0x7d   :  { %2304 = vmatpush1.bf16.msra.mxu1 %v2638_v14  ;;  %v236_v14 = vld [vmem:[%s4048_s0 + $0x198] sm:$0xff] }
  0x7e   :  { %2289 = vmatprep.subr.bf16.mxu1 %v2517_v0 }
  0x7f   :  { %673 = vmatmul.mubr.f32.gmra.mrb[12].mxu1 %v215_v63  ;;  %983 = vmatmul.mubr.f32.gmra.mrb[12].mxu0 %v217_v1  ;;  %v295_v63 = vld [vmem:[%s4048_s0 + $0x370] sm:$0xff]  ;;  %v297_v1 = vld [vmem:[%s4048_s0 + $0x380] sm:$0xff] }
  0x80   :  { %677 = vmatprep.mubr.f32.mxu1 %v221_v2  ;;  %987 = vmatprep.mubr.f32.mxu0 %v223_v3  ;;  %v301_v2 = vld [vmem:[%s4048_s0 + $0x3a0] sm:$0xff]  ;;  %v303_v3 = vld [vmem:[%s4048_s0 + $0x3b0] sm:$0xff] }
  0x81   :  { %2305 = vmatpush1.bf16.msra.mxu1 %v2649_v16  ;;  %v235_v16 = vld [vmem:[%s4048_s0 + $0x190] sm:$0xff] }
  0x82   :  { %2290 = vmatprep.subr.bf16.mxu1 %v2517_v0 }
  0x83   :  { %678 = vmatmul.mubr.f32.gmra.mrb[14].mxu1 %v220_v4  ;;  %988 = vmatmul.mubr.f32.gmra.mrb[14].mxu0 %v222_v5  ;;  %v300_v4 = vld [vmem:[%s4048_s0 + $0x398] sm:$0xff]  ;;  %v302_v5 = vld [vmem:[%s4048_s0 + $0x3a8] sm:$0xff] }
  0x84   :  { %682 = vmatprep.mubr.f32.mxu1 %v226_v6  ;;  %992 = vmatprep.mubr.f32.mxu0 %v228_v7  ;;  %v306_v6 = vld [vmem:[%s4048_s0 + $0x3c8] sm:$0xff]  ;;  %v308_v7 = vld [vmem:[%s4048_s0 + $0x3d8] sm:$0xff] }
  0x85   :  { %2306 = vmatpush1.bf16.msra.mxu1 %v2660_v18  ;;  %v241_v18 = vld [vmem:[%s4048_s0 + $0x1c0] sm:$0xff] }
  0x86   :  { %2291 = vmatprep.subr.bf16.mxu1 %v2517_v0 }
  0x87   :  { %683 = vmatmul.mubr.f32.gmra.mrb[16].mxu1 %v225_v8  ;;  %993 = vmatmul.mubr.f32.gmra.mrb[16].mxu0 %v227_v9  ;;  %v305_v8 = vld [vmem:[%s4048_s0 + $0x3c0] sm:$0xff]  ;;  %v307_v9 = vld [vmem:[%s4048_s0 + $0x3d0] sm:$0xff] }
  0x88   :  { %687 = vmatprep.mubr.f32.mxu1 %v231_v10  ;;  %997 = vmatprep.mubr.f32.mxu0 %v233_v11  ;;  %v311_v10 = vld [vmem:[%s4048_s0 + $0x3f0] sm:$0xff]  ;;  %v2519_v11 = vmov 0.0  }
  0x89   :  { %2307 = vmatpush1.bf16.msra.mxu1 %v2671_v20  ;;  %v240_v20 = vld [vmem:[%s4048_s0 + $0x1b8] sm:$0xff] }
  0x8a   :  { %2292 = vmatprep.subr.bf16.mxu1 %v2517_v0 }
  0x8b   :  { %688 = vmatmul.mubr.f32.gmra.mrb[18].mxu1 %v230_v12  ;;  %998 = vmatmul.mubr.f32.gmra.mrb[18].mxu0 %v232_v13  ;;  %v310_v12 = vld [vmem:[%s4048_s0 + $0x3e8] sm:$0xff]  ;;  %v189_v13 = vld [vmem:[%s4048_s0 + $0x20] sm:$0xff] }
  0x8c   :  { %692 = vmatprep.mubr.f32.mxu1 %v236_v14  ;;  %1002 = vmatprep.mubr.f32.mxu0 %v238_v15  ;;  %v316_v14 = vld [vmem:[%s4048_s0 + $0x418] sm:$0xff]  ;;  %v315_v15 = vld [vmem:[%s4048_s0 + $0x410] sm:$0xff] }
  0x8d   :  { %2308 = vmatpush1.bf16.msra.mxu1 %v2682_v22  ;;  %v248_v22 = vld [vmem:[%s4048_s0 + $0x1f8] sm:$0xff] }
  0x8e   :  { %2293 = vmatprep.subr.bf16.mxu1 %v2517_v0 }
  0x8f   :  { %693 = vmatmul.mubr.f32.gmra.mrb[20].mxu1 %v235_v16  ;;  %1003 = vmatmul.mubr.f32.gmra.mrb[20].mxu0 %v237_v17  ;;  %v194_v16 = vld [vmem:[%s4048_s0 + $0x48] sm:$0xff]  ;;  %v321_v17 = vld [vmem:[%s4048_s0 + $0x440] sm:$0xff] }
  0x90   :  { %697 = vmatprep.mubr.f32.mxu1 %v241_v18  ;;  %1007 = vmatprep.mubr.f32.mxu0 %v243_v19  ;;  %v320_v18 = vld [vmem:[%s4048_s0 + $0x438] sm:$0xff]  ;;  %v199_v19 = vld [vmem:[%s4048_s0 + $0x70] sm:$0xff] }
  0x91   :  { %2309 = vmatpush1.bf16.msra.mxu1 %v2693_v24  ;;  %v253_v24 = vld [vmem:[%s4048_s0 + $0x220] sm:$0xff] }
  0x92   :  { %2294 = vmatprep.subr.bf16.mxu1 %v2517_v0 }
  0x93   :  { %698 = vmatmul.mubr.f32.gmra.mrb[22].mxu1 %v240_v20  ;;  %1008 = vmatmul.mubr.f32.gmra.mrb[22].mxu0 %v242_v21  ;;  %v326_v20 = vld [vmem:[%s4048_s0 + $0x468] sm:$0xff]  ;;  %v325_v21 = vld [vmem:[%s4048_s0 + $0x460] sm:$0xff] }
  0x94   :  { %702 = vmatprep.mubr.f32.mxu1 %v246_v23  ;;  %1012 = vmatprep.mubr.f32.mxu0 %v248_v22  ;;  %v204_v23 = vld [vmem:[%s4048_s0 + $0x98] sm:$0xff]  ;;  %v331_v22 = vld [vmem:[%s4048_s0 + $0x490] sm:$0xff] }
  0x95   :  { %2310 = vmatpush1.bf16.msra.mxu1 %v2704_v26  ;;  %v258_v26 = vld [vmem:[%s4048_s0 + $0x248] sm:$0xff] }
  0x96   :  { %2295 = vmatprep.subr.bf16.mxu1 %v2517_v0 }
  0x97   :  { %703 = vmatmul.mubr.f32.gmra.mrb[24].mxu1 %v245_v25  ;;  %1013 = vmatmul.mubr.f32.gmra.mrb[24].mxu0 %v247_v27  ;;  %v330_v25 = vld [vmem:[%s4048_s0 + $0x488] sm:$0xff]  ;;  %v209_v27 = vld [vmem:[%s4048_s0 + $0xc0] sm:$0xff] }
  0x98   :  { %707 = vmatprep.mubr.f32.mxu1 %v251_v29  ;;  %1017 = vmatprep.mubr.f32.mxu0 %v253_v24  ;;  %v336_v29 = vld [vmem:[%s4048_s0 + $0x4b8] sm:$0xff]  ;;  %v335_v24 = vld [vmem:[%s4048_s0 + $0x4b0] sm:$0xff] }
  0x99   :  { %2311 = vmatpush1.bf16.msra.mxu1 %v2715_v28  ;;  %v263_v28 = vld [vmem:[%s4048_s0 + $0x270] sm:$0xff] }
  0x9a   :  { %2296 = vmatprep.subr.bf16.mxu1 %v2517_v0 }
  0x9b   :  { %708 = vmatmul.mubr.f32.gmra.mrb[26].mxu1 %v250_v31  ;;  %1018 = vmatmul.mubr.f32.gmra.mrb[26].mxu0 %v252_v33  ;;  %v214_v31 = vld [vmem:[%s4048_s0 + $0xe8] sm:$0xff]  ;;  %v341_v33 = vld [vmem:[%s4048_s0 + $0x4e0] sm:$0xff] }
  0x9c   :  { %712 = vmatprep.mubr.f32.mxu1 %v256_v35  ;;  %1022 = vmatprep.mubr.f32.mxu0 %v258_v26  ;;  %v340_v35 = vld [vmem:[%s4048_s0 + $0x4d8] sm:$0xff]  ;;  %v219_v26 = vld [vmem:[%s4048_s0 + $0x110] sm:$0xff] }
  0x9d   :  { %2312 = vmatpush1.bf16.msra.mxu1 %v2726_v30  ;;  %v268_v30 = vld [vmem:[%s4048_s0 + $0x298] sm:$0xff] }
  0x9e   :  { %2297 = vmatprep.subr.bf16.mxu1 %v2517_v0 }
  0x9f   :  { %713 = vmatmul.mubr.f32.gmra.mrb[28].mxu1 %v255_v36  ;;  %1023 = vmatmul.mubr.f32.gmra.mrb[28].mxu0 %v257_v37  ;;  %v346_v36 = vld [vmem:[%s4048_s0 + $0x508] sm:$0xff]  ;;  %v345_v37 = vld [vmem:[%s4048_s0 + $0x500] sm:$0xff] }
  0xa0   :  { %717 = vmatprep.mubr.f32.mxu1 %v261_v38  ;;  %1027 = vmatprep.mubr.f32.mxu0 %v263_v28  ;;  %v224_v38 = vld [vmem:[%s4048_s0 + $0x138] sm:$0xff]  ;;  %v351_v28 = vld [vmem:[%s4048_s0 + $0x530] sm:$0xff] }
  0xa1   :  { %2313 = vmatpush1.bf16.msra.mxu1 %v2737_v32  ;;  %v270_v32 = vld [vmem:[%s4048_s0 + $0x2a8] sm:$0xff] }
  0xa2   :  { %2298 = vmatprep.subr.bf16.mxu1 %v2517_v0  ;;  %v273_v0 = vld [vmem:[%s4048_s0 + $0x2c0] sm:$0xff] }
  0xa3   :  { %718 = vmatmul.mubr.f32.gmra.mrb[30].mxu1 %v260_v39  ;;  %1028 = vmatmul.mubr.f32.gmra.mrb[30].mxu0 %v262_v40  ;;  %v350_v39 = vld [vmem:[%s4048_s0 + $0x528] sm:$0xff]  ;;  %v229_v40 = vld [vmem:[%s4048_s0 + $0x160] sm:$0xff] }
  0xa4   :  { %722 = vmatprep.mubr.f32.mxu1 %v266_v41  ;;  %1032 = vmatprep.mubr.f32.mxu0 %v268_v30  ;;  %v356_v41 = vld [vmem:[%s4048_s0 + $0x558] sm:$0xff]  ;;  %v355_v30 = vld [vmem:[%s4048_s0 + $0x550] sm:$0xff] }
  0xa5   :  { %2314 = vmatpush1.bf16.msra.mxu1 %v2748_v34  ;;  %v278_v34 = vld [vmem:[%s4048_s0 + $0x2e8] sm:$0xff] }
  0xa7   :  { %723 = vmatmul.mubr.f32.gmra.mrb[32].mxu1 %v265_v42  ;;  %1033 = vmatmul.mubr.f32.gmra.mrb[32].mxu0 %v267_v43  ;;  %v234_v42 = vld [vmem:[%s4048_s0 + $0x188] sm:$0xff]  ;;  %v361_v43 = vld [vmem:[%s4048_s0 + $0x580] sm:$0xff] }
  0xa8   :  { %727 = vmatprep.mubr.f32.mxu1 %v271_v44  ;;  %1037 = vmatprep.mubr.f32.mxu0 %v273_v0  ;;  %v360_v44 = vld [vmem:[%s4048_s0 + $0x578] sm:$0xff]  ;;  %v239_v0 = vld [vmem:[%s4048_s0 + $0x1b0] sm:$0xff] }
  0xab   :  { %728 = vmatmul.mubr.f32.gmra.mrb[34].mxu1 %v270_v32  ;;  %1038 = vmatmul.mubr.f32.gmra.mrb[34].mxu0 %v272_v45  ;;  %v366_v32 = vld [vmem:[%s4048_s0 + $0x5a8] sm:$0xff]  ;;  %v365_v45 = vld [vmem:[%s4048_s0 + $0x5a0] sm:$0xff] }
  0xac   :  { %732 = vmatprep.mubr.f32.mxu1 %v276_v46  ;;  %1042 = vmatprep.mubr.f32.mxu0 %v278_v34  ;;  %v244_v46 = vld [vmem:[%s4048_s0 + $0x1d8] sm:$0xff]  ;;  %v371_v34 = vld [vmem:[%s4048_s0 + $0x5d0] sm:$0xff] }
  0xaf   :  { %733 = vmatmul.mubr.f32.gmra.mrb[36].mxu1 %v275_v47  ;;  %1043 = vmatmul.mubr.f32.gmra.mrb[36].mxu0 %v277_v48  ;;  %v370_v47 = vld [vmem:[%s4048_s0 + $0x5c8] sm:$0xff]  ;;  %v249_v48 = vld [vmem:[%s4048_s0 + $0x200] sm:$0xff] }
  0xb0   :  { %737 = vmatprep.mubr.f32.mxu1 %v281_v49  ;;  %1047 = vmatprep.mubr.f32.mxu0 %v283_v50  ;;  %v376_v49 = vld [vmem:[%s4048_s0 + $0x5f8] sm:$0xff]  ;;  %v375_v50 = vld [vmem:[%s4048_s0 + $0x5f0] sm:$0xff] }
  0xb3   :  { %738 = vmatmul.mubr.f32.gmra.mrb[38].mxu1 %v280_v51  ;;  %1048 = vmatmul.mubr.f32.gmra.mrb[38].mxu0 %v282_v52  ;;  %v254_v51 = vld [vmem:[%s4048_s0 + $0x228] sm:$0xff]  ;;  %v381_v52 = vld [vmem:[%s4048_s0 + $0x620] sm:$0xff] }
  0xb4   :  { %742 = vmatprep.mubr.f32.mxu1 %v286_v53  ;;  %1052 = vmatprep.mubr.f32.mxu0 %v288_v54  ;;  %v380_v53 = vld [vmem:[%s4048_s0 + $0x618] sm:$0xff]  ;;  %v259_v54 = vld [vmem:[%s4048_s0 + $0x250] sm:$0xff] }
  0xb7   :  { %743 = vmatmul.mubr.f32.gmra.mrb[40].mxu1 %v285_v55  ;;  %1053 = vmatmul.mubr.f32.gmra.mrb[40].mxu0 %v287_v56  ;;  %v386_v55 = vld [vmem:[%s4048_s0 + $0x648] sm:$0xff]  ;;  %v385_v56 = vld [vmem:[%s4048_s0 + $0x640] sm:$0xff] }
  0xb8   :  { %747 = vmatprep.mubr.f32.mxu1 %v291_v57  ;;  %1057 = vmatprep.mubr.f32.mxu0 %v293_v58  ;;  %v264_v57 = vld [vmem:[%s4048_s0 + $0x278] sm:$0xff]  ;;  %v391_v58 = vld [vmem:[%s4048_s0 + $0x670] sm:$0xff] }
  0xbb   :  { %748 = vmatmul.mubr.f32.gmra.mrb[42].mxu1 %v290_v59  ;;  %1058 = vmatmul.mubr.f32.gmra.mrb[42].mxu0 %v292_v60  ;;  %v390_v59 = vld [vmem:[%s4048_s0 + $0x668] sm:$0xff]  ;;  %v269_v60 = vld [vmem:[%s4048_s0 + $0x2a0] sm:$0xff] }
  0xbc   :  { %752 = vmatprep.mubr.f32.mxu1 %v296_v61  ;;  %1062 = vmatprep.mubr.f32.mxu0 %v298_v62  ;;  %v396_v61 = vld [vmem:[%s4048_s0 + $0x698] sm:$0xff]  ;;  %v395_v62 = vld [vmem:[%s4048_s0 + $0x690] sm:$0xff] }
  0xbf   :  { %753 = vmatmul.mubr.f32.gmra.mrb[44].mxu1 %v295_v63  ;;  %1063 = vmatmul.mubr.f32.gmra.mrb[44].mxu0 %v297_v1  ;;  %v274_v63 = vld [vmem:[%s4048_s0 + $0x2c8] sm:$0xff]  ;;  %v401_v1 = vld [vmem:[%s4048_s0 + $0x6c0] sm:$0xff] }
  0xc0   :  { %757 = vmatprep.mubr.f32.mxu1 %v301_v2  ;;  %1067 = vmatprep.mubr.f32.mxu0 %v303_v3  ;;  %v400_v2 = vld [vmem:[%s4048_s0 + $0x6b8] sm:$0xff]  ;;  %v279_v3 = vld [vmem:[%s4048_s0 + $0x2f0] sm:$0xff] }
  0xc3   :  { %758 = vmatmul.mubr.f32.gmra.mrb[46].mxu1 %v300_v4  ;;  %1068 = vmatmul.mubr.f32.gmra.mrb[46].mxu0 %v302_v5  ;;  %v406_v4 = vld [vmem:[%s4048_s0 + $0x6e8] sm:$0xff]  ;;  %v405_v5 = vld [vmem:[%s4048_s0 + $0x6e0] sm:$0xff] }
  0xc4   :  { %762 = vmatprep.mubr.f32.mxu1 %v306_v6  ;;  %1072 = vmatprep.mubr.f32.mxu0 %v308_v7  ;;  %v284_v6 = vld [vmem:[%s4048_s0 + $0x318] sm:$0xff]  ;;  %v411_v7 = vld [vmem:[%s4048_s0 + $0x710] sm:$0xff] }
  0xc7   :  { %763 = vmatmul.mubr.f32.gmra.mrb[48].mxu1 %v305_v8  ;;  %1073 = vmatmul.mubr.f32.gmra.mrb[48].mxu0 %v307_v9  ;;  %v410_v8 = vld [vmem:[%s4048_s0 + $0x708] sm:$0xff]  ;;  %v289_v9 = vld [vmem:[%s4048_s0 + $0x340] sm:$0xff] }
  0xc8   :  { %767 = vmatprep.mubr.f32.mxu1 %v311_v10  ;;  %2028 = vmatprep.mubr.msk.f32.mxu0 %vm2518_vm0, %v2519_v11  ;;  %v416_v10 = vld [vmem:[%s4048_s0 + $0x738] sm:$0xff] }
  0xcb   :  { %768 = vmatmul.mubr.f32.gmra.mrb[50].mxu1 %v310_v12  ;;  %2029 = vmatmul.mubr.msk.f32.vlgmr.msra.gmra.mrb[0].mxu0 %vm430_vm1, %v189_v13  ;;  %v415_v12 = vld [vmem:[%s4048_s0 + $0x730] sm:$0xff]  ;;  %v294_v13 = vld [vmem:[%s4048_s0 + $0x368] sm:$0xff] }
  0xcc   :  { %772 = vmatprep.mubr.f32.mxu1 %v316_v14  ;;  %2031 = vmatprep.mubr.msk.f32.mxu0 %vm2518_vm0, %v2519_v11  ;;  %v421_v14 = vld [vmem:[%s4048_s0 + $0x760] sm:$0xff] }
  0xcf   :  { %773 = vmatmul.mubr.f32.gmra.mrb[52].mxu1 %v315_v15  ;;  %2032 = vmatmul.mubr.msk.f32.gmra.mrb[2].mxu0 %vm430_vm1, %v194_v16  ;;  %v420_v15 = vld [vmem:[%s4048_s0 + $0x758] sm:$0xff]  ;;  %v299_v16 = vld [vmem:[%s4048_s0 + $0x390] sm:$0xff] }
  0xd0   :  { %777 = vmatprep.mubr.f32.mxu1 %v321_v17  ;;  %2034 = vmatprep.mubr.msk.f32.mxu0 %vm2518_vm0, %v2519_v11  ;;  %v426_v17 = vld [vmem:[%s4048_s0 + $0x788] sm:$0xff] }
  0xd3   :  { %778 = vmatmul.mubr.f32.gmra.mrb[54].mxu1 %v320_v18  ;;  %2035 = vmatmul.mubr.msk.f32.gmra.mrb[4].mxu0 %vm430_vm1, %v199_v19  ;;  %v425_v18 = vld [vmem:[%s4048_s0 + $0x780] sm:$0xff]  ;;  %v304_v19 = vld [vmem:[%s4048_s0 + $0x3b8] sm:$0xff] }
  0xd4   :  { %782 = vmatprep.mubr.f32.mxu1 %v326_v20  ;;  %2037 = vmatprep.mubr.msk.f32.mxu0 %vm2518_vm0, %v2519_v11  ;;  %v313_v20 = vld [vmem:[%s4048_s0 + $0x400] sm:$0xff] }
  0xd7   :  { %783 = vmatmul.mubr.f32.gmra.mrb[56].mxu1 %v325_v21  ;;  %2038 = vmatmul.mubr.msk.f32.gmra.mrb[6].mxu0 %vm430_vm1, %v204_v23  ;;  %v312_v21 = vld [vmem:[%s4048_s0 + $0x3f8] sm:$0xff]  ;;  %v309_v23 = vld [vmem:[%s4048_s0 + $0x3e0] sm:$0xff] }
  0xd8   :  { %787 = vmatprep.mubr.f32.mxu1 %v331_v22  ;;  %2040 = vmatprep.mubr.msk.f32.mxu0 %vm2518_vm0, %v2519_v11  ;;  %v318_v22 = vld [vmem:[%s4048_s0 + $0x428] sm:$0xff] }
  0xdb   :  { %788 = vmatmul.mubr.f32.gmra.mrb[58].mxu1 %v330_v25  ;;  %2041 = vmatmul.mubr.msk.f32.gmra.mrb[8].mxu0 %vm430_vm1, %v209_v27  ;;  %v317_v25 = vld [vmem:[%s4048_s0 + $0x420] sm:$0xff]  ;;  %v314_v27 = vld [vmem:[%s4048_s0 + $0x408] sm:$0xff] }
  0xdc   :  { %792 = vmatprep.mubr.f32.mxu1 %v336_v29  ;;  %2043 = vmatprep.mubr.msk.f32.mxu0 %vm2518_vm0, %v2519_v11  ;;  %v323_v29 = vld [vmem:[%s4048_s0 + $0x450] sm:$0xff] }
  0xdf   :  { %793 = vmatmul.mubr.f32.gmra.mrb[60].mxu1 %v335_v24  ;;  %2044 = vmatmul.mubr.msk.f32.gmra.mrb[10].mxu0 %vm430_vm1, %v214_v31  ;;  %v322_v24 = vld [vmem:[%s4048_s0 + $0x448] sm:$0xff]  ;;  %v319_v31 = vld [vmem:[%s4048_s0 + $0x430] sm:$0xff] }
  0xe0   :  { %797 = vmatprep.mubr.f32.mxu1 %v341_v33  ;;  %2046 = vmatprep.mubr.msk.f32.mxu0 %vm2518_vm0, %v2519_v11  ;;  %v328_v33 = vld [vmem:[%s4048_s0 + $0x478] sm:$0xff] }
  0xe3   :  { %798 = vmatmul.mubr.f32.gmra.mrb[62].mxu1 %v340_v35  ;;  %2047 = vmatmul.mubr.msk.f32.gmra.mrb[12].mxu0 %vm430_vm1, %v219_v26  ;;  %v327_v35 = vld [vmem:[%s4048_s0 + $0x470] sm:$0xff]  ;;  %v324_v26 = vld [vmem:[%s4048_s0 + $0x458] sm:$0xff] }
  0xe4   :  { %802 = vmatprep.mubr.f32.mxu1 %v346_v36  ;;  %2049 = vmatprep.mubr.msk.f32.mxu0 %vm2518_vm0, %v2519_v11  ;;  %v333_v36 = vld [vmem:[%s4048_s0 + $0x4a0] sm:$0xff] }
  0xe7   :  { %803 = vmatmul.mubr.f32.gmra.mrb[64].mxu1 %v345_v37  ;;  %2050 = vmatmul.mubr.msk.f32.gmra.mrb[14].mxu0 %vm430_vm1, %v224_v38  ;;  %v332_v37 = vld [vmem:[%s4048_s0 + $0x498] sm:$0xff]  ;;  %v329_v38 = vld [vmem:[%s4048_s0 + $0x480] sm:$0xff] }
  0xe8   :  { %807 = vmatprep.mubr.f32.mxu1 %v351_v28  ;;  %2052 = vmatprep.mubr.msk.f32.mxu0 %vm2518_vm0, %v2519_v11  ;;  %v338_v28 = vld [vmem:[%s4048_s0 + $0x4c8] sm:$0xff] }
  0xeb   :  { %808 = vmatmul.mubr.f32.gmra.mrb[66].mxu1 %v350_v39  ;;  %2053 = vmatmul.mubr.msk.f32.gmra.mrb[16].mxu0 %vm430_vm1, %v229_v40 }
  0xec   :  { %812 = vmatprep.mubr.f32.mxu1 %v356_v41  ;;  %2055 = vmatprep.mubr.msk.f32.mxu0 %vm2518_vm0, %v2519_v11  ;;  %v337_v41 = vld [vmem:[%s4048_s0 + $0x4c0] sm:$0xff] }
  0xef   :  { %813 = vmatmul.mubr.f32.gmra.mrb[68].mxu1 %v355_v30  ;;  %2056 = vmatmul.mubr.msk.f32.gmra.mrb[18].mxu0 %vm430_vm1, %v234_v42  ;;  %v334_v30 = vld [vmem:[%s4048_s0 + $0x4a8] sm:$0xff]  ;;  %v343_v42 = vld [vmem:[%s4048_s0 + $0x4f0] sm:$0xff] }
  0xf0   :  { %817 = vmatprep.mubr.f32.mxu1 %v361_v43  ;;  %2058 = vmatprep.mubr.msk.f32.mxu0 %vm2518_vm0, %v2519_v11 }
  0xf3   :  { %818 = vmatmul.mubr.f32.gmra.mrb[70].mxu1 %v360_v44  ;;  %2059 = vmatmul.mubr.msk.f32.gmra.mrb[20].mxu0 %vm430_vm1, %v239_v0  ;;  %v342_v0 = vld [vmem:[%s4048_s0 + $0x4e8] sm:$0xff] }
  0xf4   :  { %822 = vmatprep.mubr.f32.mxu1 %v366_v32  ;;  %2061 = vmatprep.mubr.msk.f32.mxu0 %vm2518_vm0, %v2519_v11  ;;  %v339_v32 = vld [vmem:[%s4048_s0 + $0x4d0] sm:$0xff] }
  0xf7   :  { %823 = vmatmul.mubr.f32.gmra.mrb[72].mxu1 %v365_v45  ;;  %2062 = vmatmul.mubr.msk.f32.gmra.mrb[22].mxu0 %vm430_vm1, %v244_v46  ;;  %v348_v45 = vld [vmem:[%s4048_s0 + $0x518] sm:$0xff] }
  0xf8   :  { %827 = vmatprep.mubr.f32.mxu1 %v371_v34  ;;  %2064 = vmatprep.mubr.msk.f32.mxu0 %vm2518_vm0, %v2519_v11 }
  0xfb   :  { %828 = vmatmul.mubr.f32.gmra.mrb[74].mxu1 %v370_v47  ;;  %2065 = vmatmul.mubr.msk.f32.gmra.mrb[24].mxu0 %vm430_vm1, %v249_v48  ;;  %v347_v47 = vld [vmem:[%s4048_s0 + $0x510] sm:$0xff]  ;;  %v344_v48 = vld [vmem:[%s4048_s0 + $0x4f8] sm:$0xff] }
  0xfc   :  { %832 = vmatprep.mubr.f32.mxu1 %v376_v49  ;;  %2067 = vmatprep.mubr.msk.f32.mxu0 %vm2518_vm0, %v2519_v11  ;;  %v353_v49 = vld [vmem:[%s4048_s0 + $0x540] sm:$0xff] }
  0xff   :  { %833 = vmatmul.mubr.f32.gmra.mrb[76].mxu1 %v375_v50  ;;  %2068 = vmatmul.mubr.msk.f32.gmra.mrb[26].mxu0 %vm430_vm1, %v254_v51 }
 0x100   :  { %837 = vmatprep.mubr.f32.mxu1 %v381_v52  ;;  %2070 = vmatprep.mubr.msk.f32.mxu0 %vm2518_vm0, %v2519_v11  ;;  %v352_v52 = vld [vmem:[%s4048_s0 + $0x538] sm:$0xff] }
 0x103   :  { %838 = vmatmul.mubr.f32.gmra.mrb[78].mxu1 %v380_v53  ;;  %2071 = vmatmul.mubr.msk.f32.gmra.mrb[28].mxu0 %vm430_vm1, %v259_v54  ;;  %v349_v53 = vld [vmem:[%s4048_s0 + $0x520] sm:$0xff]  ;;  %v358_v54 = vld [vmem:[%s4048_s0 + $0x568] sm:$0xff] }
 0x104   :  { %842 = vmatprep.mubr.f32.mxu1 %v386_v55  ;;  %2073 = vmatprep.mubr.msk.f32.mxu0 %vm2518_vm0, %v2519_v11 }
 0x107   :  { %843 = vmatmul.mubr.f32.gmra.mrb[80].mxu1 %v385_v56  ;;  %2074 = vmatmul.mubr.msk.f32.gmra.mrb[30].mxu0 %vm430_vm1, %v264_v57  ;;  %v357_v57 = vld [vmem:[%s4048_s0 + $0x560] sm:$0xff] }
 0x108   :  { %847 = vmatprep.mubr.f32.mxu1 %v391_v58  ;;  %2076 = vmatprep.mubr.msk.f32.mxu0 %vm2518_vm0, %v2519_v11  ;;  %v354_v58 = vld [vmem:[%s4048_s0 + $0x548] sm:$0xff] }
 0x10b   :  { %848 = vmatmul.mubr.f32.gmra.mrb[82].mxu1 %v390_v59  ;;  %2077 = vmatmul.mubr.msk.f32.gmra.mrb[32].mxu0 %vm430_vm1, %v269_v60  ;;  %v363_v59 = vld [vmem:[%s4048_s0 + $0x590] sm:$0xff] }
 0x10c   :  { %852 = vmatprep.mubr.f32.mxu1 %v396_v61  ;;  %2079 = vmatprep.mubr.msk.f32.mxu0 %vm2518_vm0, %v2519_v11 }
 0x10f   :  { %853 = vmatmul.mubr.f32.gmra.mrb[84].mxu1 %v395_v62  ;;  %2080 = vmatmul.mubr.msk.f32.gmra.mrb[34].mxu0 %vm430_vm1, %v274_v63  ;;  %v362_v62 = vld [vmem:[%s4048_s0 + $0x588] sm:$0xff]  ;;  %v359_v63 = vld [vmem:[%s4048_s0 + $0x570] sm:$0xff] }
 0x110   :  { %857 = vmatprep.mubr.f32.mxu1 %v401_v1  ;;  %2082 = vmatprep.mubr.msk.f32.mxu0 %vm2518_vm0, %v2519_v11  ;;  %v368_v1 = vld [vmem:[%s4048_s0 + $0x5b8] sm:$0xff] }
 0x113   :  { %858 = vmatmul.mubr.f32.gmra.mrb[86].mxu1 %v400_v2  ;;  %2083 = vmatmul.mubr.msk.f32.gmra.mrb[36].mxu0 %vm430_vm1, %v279_v3 }
 0x114   :  { %862 = vmatprep.mubr.f32.mxu1 %v406_v4  ;;  %2085 = vmatprep.mubr.msk.f32.mxu0 %vm2518_vm0, %v2519_v11  ;;  %v367_v4 = vld [vmem:[%s4048_s0 + $0x5b0] sm:$0xff] }
 0x117   :  { %863 = vmatmul.mubr.f32.gmra.mrb[88].mxu1 %v405_v5  ;;  %2086 = vmatmul.mubr.msk.f32.gmra.mrb[38].mxu0 %vm430_vm1, %v284_v6  ;;  %v364_v5 = vld [vmem:[%s4048_s0 + $0x598] sm:$0xff]  ;;  %v373_v6 = vld [vmem:[%s4048_s0 + $0x5e0] sm:$0xff] }
 0x118   :  { %867 = vmatprep.mubr.f32.mxu1 %v411_v7  ;;  %2088 = vmatprep.mubr.msk.f32.mxu0 %vm2518_vm0, %v2519_v11 }
 0x11b   :  { %868 = vmatmul.mubr.f32.gmra.mrb[90].mxu1 %v410_v8  ;;  %2089 = vmatmul.mubr.msk.f32.gmra.mrb[40].mxu0 %vm430_vm1, %v289_v9  ;;  %v372_v9 = vld [vmem:[%s4048_s0 + $0x5d8] sm:$0xff] }
 0x11c   :  { %872 = vmatprep.mubr.f32.mxu1 %v416_v10  ;;  %2091 = vmatprep.mubr.msk.f32.mxu0 %vm2518_vm0, %v2519_v11  ;;  %v369_v10 = vld [vmem:[%s4048_s0 + $0x5c0] sm:$0xff] }
 0x11f   :  { %873 = vmatmul.mubr.f32.gmra.mrb[92].mxu1 %v415_v12  ;;  %2092 = vmatmul.mubr.msk.f32.gmra.mrb[42].mxu0 %vm430_vm1, %v294_v13  ;;  %v378_v12 = vld [vmem:[%s4048_s0 + $0x608] sm:$0xff] }
 0x120   :  { %877 = vmatprep.mubr.f32.mxu1 %v421_v14  ;;  %2094 = vmatprep.mubr.msk.f32.mxu0 %vm2518_vm0, %v2519_v11 }
 0x123   :  { %878 = vmatmul.mubr.f32.gmra.mrb[94].mxu1 %v420_v15  ;;  %2095 = vmatmul.mubr.msk.f32.gmra.mrb[44].mxu0 %vm430_vm1, %v299_v16  ;;  %v377_v15 = vld [vmem:[%s4048_s0 + $0x600] sm:$0xff]  ;;  %v374_v16 = vld [vmem:[%s4048_s0 + $0x5e8] sm:$0xff] }
 0x124   :  { %882 = vmatprep.mubr.f32.mxu1 %v426_v17  ;;  %2097 = vmatprep.mubr.msk.f32.mxu0 %vm2518_vm0, %v2519_v11  ;;  %v383_v17 = vld [vmem:[%s4048_s0 + $0x630] sm:$0xff] }
 0x127   :  { %883 = vmatmul.mubr.f32.gmra.mrb[96].mxu1 %v425_v18  ;;  %2098 = vmatmul.mubr.msk.f32.gmra.mrb[46].mxu0 %vm430_vm1, %v304_v19 }
 0x128   :  { %1077 = vmatprep.mubr.f32.mxu1 %v313_v20  ;;  %2100 = vmatprep.mubr.msk.f32.mxu0 %vm2518_vm0, %v2519_v11  ;;  %v382_v20 = vld [vmem:[%s4048_s0 + $0x628] sm:$0xff] }
 0x12b   :  { %1078 = vmatmul.mubr.f32.vlgmr.msra.gmra.mrb[50].mxu1 %v312_v21  ;;  %2101 = vmatmul.mubr.msk.f32.gmra.mrb[48].mxu0 %vm430_vm1, %v309_v23  ;;  %v379_v21 = vld [vmem:[%s4048_s0 + $0x610] sm:$0xff]  ;;  %v388_v23 = vld [vmem:[%s4048_s0 + $0x658] sm:$0xff] }
 0x12c   :  { %1082 = vmatprep.mubr.f32.mxu1 %v318_v22  ;;  %2103 = vmatprep.mubr.msk.f32.mxu0 %vm2518_vm0, %v2519_v11 }
 0x12f   :  { %1083 = vmatmul.mubr.f32.gmra.mrb[52].mxu1 %v317_v25  ;;  %2104 = vmatmul.mubr.msk.f32.gmra.mrb[50].mxu0 %vm430_vm1, %v314_v27  ;;  %v387_v27 = vld [vmem:[%s4048_s0 + $0x650] sm:$0xff] }
 0x130   :  { %1087 = vmatprep.mubr.f32.mxu1 %v323_v29  ;;  %2106 = vmatprep.mubr.msk.f32.mxu0 %vm2518_vm0, %v2519_v11  ;;  %v384_v29 = vld [vmem:[%s4048_s0 + $0x638] sm:$0xff] }
 0x133   :  { %1088 = vmatmul.mubr.f32.gmra.mrb[54].mxu1 %v322_v24  ;;  %2107 = vmatmul.mubr.msk.f32.gmra.mrb[52].mxu0 %vm430_vm1, %v319_v31  ;;  %v393_v24 = vld [vmem:[%s4048_s0 + $0x680] sm:$0xff] }
 0x134   :  { %1092 = vmatprep.mubr.f32.mxu1 %v328_v33  ;;  %2109 = vmatprep.mubr.msk.f32.mxu0 %vm2518_vm0, %v2519_v11 }
 0x137   :  { %1093 = vmatmul.mubr.f32.gmra.mrb[56].mxu1 %v327_v35  ;;  %2110 = vmatmul.mubr.msk.f32.gmra.mrb[54].mxu0 %vm430_vm1, %v324_v26  ;;  %v392_v35 = vld [vmem:[%s4048_s0 + $0x678] sm:$0xff]  ;;  %v389_v26 = vld [vmem:[%s4048_s0 + $0x660] sm:$0xff] }
 0x138   :  { %1097 = vmatprep.mubr.f32.mxu1 %v333_v36  ;;  %2112 = vmatprep.mubr.msk.f32.mxu0 %vm2518_vm0, %v2519_v11  ;;  %v398_v36 = vld [vmem:[%s4048_s0 + $0x6a8] sm:$0xff] }
 0x13a   :  { %v3443_v39 = vpop.f32.mrb[0].mxu1 }
 0x13b   :  { %1098 = vmatmul.mubr.f32.gmra.mrb[58].mxu1 %v332_v37  ;;  %2113 = vmatmul.mubr.msk.f32.gmra.mrb[56].mxu0 %vm430_vm1, %v329_v38  ;;  %v646_v40 = vpop.f32.mrb[1].mxu1 }
 0x13c   :  { %1102 = vmatprep.mubr.f32.mxu1 %v338_v28  ;;  %2115 = vmatprep.mubr.msk.f32.mxu0 %vm2518_vm0, %v2519_v11  ;;  %v397_v28 = vld [vmem:[%s4048_s0 + $0x6a0] sm:$0xff]  ;;  %v394_v40 = vld [vmem:[%s4048_s0 + $0x688] sm:$0xff] }
 0x13e   :  { %v3457_v43 = vpop.f32.mrb[2].mxu1 }
 0x13f   :  { %1103 = vmatmul.mubr.f32.gmra.mrb[60].mxu1 %v337_v41  ;;  %2116 = vmatmul.mubr.msk.f32.gmra.mrb[58].mxu0 %vm430_vm1, %v334_v30  ;;  %v651_v44 = vpop.f32.mrb[3].mxu1  ;;  %v403_v41 = vld [vmem:[%s4048_s0 + $0x6d0] sm:$0xff] }
 0x140   :  { %1107 = vmatprep.mubr.f32.mxu1 %v343_v42  ;;  %2118 = vmatprep.mubr.msk.f32.mxu0 %vm2518_vm0, %v2519_v11  ;;  %v402_v44 = vld [vmem:[%s4048_s0 + $0x6c8] sm:$0xff] }
 0x142   :  { %v3471_v46 = vpop.f32.mrb[4].mxu1 }
 0x143   :  { %1108 = vmatmul.mubr.f32.gmra.mrb[62].mxu1 %v342_v0  ;;  %2119 = vmatmul.mubr.msk.f32.gmra.mrb[60].mxu0 %vm430_vm1, %v339_v32  ;;  %v656_v34 = vpop.f32.mrb[5].mxu1  ;;  %v399_v0 = vld [vmem:[%s4048_s0 + $0x6b0] sm:$0xff]  ;;  %v408_v32 = vld [vmem:[%s4048_s0 + $0x6f8] sm:$0xff] }
 0x144   :  { %1112 = vmatprep.mubr.f32.mxu1 %v348_v45  ;;  %2121 = vmatprep.mubr.msk.f32.mxu0 %vm2518_vm0, %v2519_v11 }
 0x146   :  { %v3485_v50 = vpop.f32.mrb[6].mxu1 }
 0x147   :  { %1113 = vmatmul.mubr.f32.gmra.mrb[64].mxu1 %v347_v47  ;;  %2122 = vmatmul.mubr.msk.f32.gmra.mrb[62].mxu0 %vm430_vm1, %v344_v48  ;;  %v661_v51 = vpop.f32.mrb[7].mxu1  ;;  %v407_v47 = vld [vmem:[%s4048_s0 + $0x6f0] sm:$0xff]  ;;  %v404_v48 = vld [vmem:[%s4048_s0 + $0x6d8] sm:$0xff] }
 0x148   :  { %1117 = vmatprep.mubr.f32.mxu1 %v353_v49  ;;  %2124 = vmatprep.mubr.msk.f32.mxu0 %vm2518_vm0, %v2519_v11  ;;  %v413_v49 = vld [vmem:[%s4048_s0 + $0x720] sm:$0xff] }
 0x14a   :  { %v3499_v55 = vpop.f32.mrb[8].mxu1 }
 0x14b   :  { %1118 = vmatmul.mubr.f32.gmra.mrb[66].mxu1 %v352_v52  ;;  %2125 = vmatmul.mubr.msk.f32.gmra.mrb[64].mxu0 %vm430_vm1, %v349_v53  ;;  %v666_v56 = vpop.f32.mrb[9].mxu1  ;;  %v412_v53 = vld [vmem:[%s4048_s0 + $0x718] sm:$0xff] }
 0x14c   :  { %1122 = vmatprep.mubr.f32.mxu1 %v358_v54  ;;  %2127 = vmatprep.mubr.msk.f32.mxu0 %vm2518_vm0, %v2519_v11  ;;  %v409_v54 = vld [vmem:[%s4048_s0 + $0x700] sm:$0xff]  ;;  %v418_v56 = vld [vmem:[%s4048_s0 + $0x748] sm:$0xff] }
 0x14e   :  { %v3513_v60 = vpop.f32.mrb[10].mxu1 }
 0x14f   :  { %1123 = vmatmul.mubr.f32.gmra.mrb[68].mxu1 %v357_v57  ;;  %2128 = vmatmul.mubr.msk.f32.gmra.mrb[66].mxu0 %vm430_vm1, %v354_v58  ;;  %v671_v61 = vpop.f32.mrb[11].mxu1 }
 0x150   :  { %1127 = vmatprep.mubr.f32.mxu1 %v363_v59  ;;  %2130 = vmatprep.mubr.msk.f32.mxu0 %vm2518_vm0, %v2519_v11  ;;  %v417_v59 = vld [vmem:[%s4048_s0 + $0x740] sm:$0xff]  ;;  %v414_v61 = vld [vmem:[%s4048_s0 + $0x728] sm:$0xff] }
 0x152   :  { %v3527_v2 = vpop.f32.mrb[12].mxu1 }
 0x153   :  { %1128 = vmatmul.mubr.f32.gmra.mrb[70].mxu1 %v362_v62  ;;  %2131 = vmatmul.mubr.msk.f32.gmra.mrb[68].mxu0 %vm430_vm1, %v359_v63  ;;  %v676_v3 = vpop.f32.mrb[13].mxu1  ;;  %v423_v62 = vld [vmem:[%s4048_s0 + $0x770] sm:$0xff] }
 0x154   :  { %1132 = vmatprep.mubr.f32.mxu1 %v368_v1  ;;  %2133 = vmatprep.mubr.msk.f32.mxu0 %vm2518_vm0, %v2519_v11  ;;  %v422_v3 = vld [vmem:[%s4048_s0 + $0x768] sm:$0xff] }
 0x156   :  { %v3541_v7 = vpop.f32.mrb[14].mxu1 }
 0x157   :  { %1133 = vmatmul.mubr.f32.gmra.mrb[72].mxu1 %v367_v4  ;;  %2134 = vmatmul.mubr.msk.f32.gmra.mrb[70].mxu0 %vm430_vm1, %v364_v5  ;;  %v681_v8 = vpop.f32.mrb[15].mxu1  ;;  %v419_v4 = vld [vmem:[%s4048_s0 + $0x750] sm:$0xff]  ;;  %v428_v5 = vld [vmem:[%s4048_s0 + $0x798] sm:$0xff] }
 0x158   :  { %1137 = vmatprep.mubr.f32.mxu1 %v373_v6  ;;  %2136 = vmatprep.mubr.msk.f32.mxu0 %vm2518_vm0, %v2519_v11 }
 0x15a   :  { %v3555_v13 = vpop.f32.mrb[16].mxu1 }
 0x15b   :  { %1138 = vmatmul.mubr.f32.gmra.mrb[74].mxu1 %v372_v9  ;;  %2137 = vmatmul.mubr.msk.f32.gmra.mrb[72].mxu0 %vm430_vm1, %v369_v10  ;;  %v686_v14 = vpop.f32.mrb[17].mxu1  ;;  %v427_v9 = vld [vmem:[%s4048_s0 + $0x790] sm:$0xff]  ;;  %v424_v10 = vld [vmem:[%s4048_s0 + $0x778] sm:$0xff] }
 0x15c   :  { %1142 = vmatprep.mubr.f32.mxu1 %v378_v12  ;;  %2139 = vmatprep.mubr.msk.f32.mxu0 %vm2518_vm0, %v2519_v11 }
 0x15e   :  { %v3569_v18 = vpop.f32.mrb[18].mxu1 }
 0x15f   :  { %1143 = vmatmul.mubr.f32.gmra.mrb[76].mxu1 %v377_v15  ;;  %2140 = vmatmul.mubr.msk.f32.gmra.mrb[74].mxu0 %vm430_vm1, %v374_v16  ;;  %v691_v19 = vpop.f32.mrb[19].mxu1  ;;  %v429_v15 = vld [vmem:[%s4048_s0 + $0x7a0] sm:$0xff] }
 0x160   :  { %1147 = vmatprep.mubr.f32.mxu1 %v383_v17  ;;  %2142 = vmatprep.mubr.msk.f32.mxu0 %vm2518_vm0, %v2519_v11 }
 0x162   :  { %v3583_v22 = vpop.f32.mrb[20].mxu1 }
 0x163   :  { %1148 = vmatmul.mubr.f32.gmra.mrb[78].mxu1 %v382_v20  ;;  %2143 = vmatmul.mubr.msk.f32.gmra.mrb[76].mxu0 %vm430_vm1, %v379_v21  ;;  %v696_v25 = vpop.f32.mrb[21].mxu1 }
 0x164   :  { %1152 = vmatprep.mubr.f32.mxu1 %v388_v23  ;;  %2145 = vmatprep.mubr.msk.f32.mxu0 %vm2518_vm0, %v2519_v11 }
 0x166   :  { %v3597_v31 = vpop.f32.mrb[22].mxu1 }
 0x167   :  { %1153 = vmatmul.mubr.f32.gmra.mrb[80].mxu1 %v387_v27  ;;  %2146 = vmatmul.mubr.msk.f32.gmra.mrb[78].mxu0 %vm430_vm1, %v384_v29  ;;  %v701_v33 = vpop.f32.mrb[23].mxu1 }
 0x168   :  { %1157 = vmatprep.mubr.f32.mxu1 %v393_v24  ;;  %2148 = vmatprep.mubr.msk.f32.mxu0 %vm2518_vm0, %v2519_v11  ;;  %v3725_v33 = vld [vmem:[#allocation2] ss:$0 sm:$0xff] }
 0x16a   :  { %v3611_v37 = vpop.f32.mrb[24].mxu1 }
 0x16b   :  { %1158 = vmatmul.mubr.f32.gmra.mrb[82].mxu1 %v392_v35  ;;  %2149 = vmatmul.mubr.msk.f32.gmra.mrb[80].mxu0 %vm430_vm1, %v389_v26  ;;  %v706_v38 = vpop.f32.mrb[25].mxu1 }
 0x16c   :  { %1162 = vmatprep.mubr.f32.mxu1 %v398_v36  ;;  %2151 = vmatprep.mubr.msk.f32.mxu0 %vm2518_vm0, %v2519_v11  ;;  %v3728_v36 = vld [vmem:[#allocation4] ss:$0 sm:$0xff] }
 0x16e   :  { %v3625_v30 = vpop.f32.mrb[26].mxu1 }
 0x16f   :  { %1163 = vmatmul.mubr.f32.gmra.mrb[84].mxu1 %v397_v28  ;;  %2152 = vmatmul.mubr.msk.f32.gmra.mrb[82].mxu0 %vm430_vm1, %v394_v40  ;;  %v711_v42 = vpop.f32.mrb[27].mxu1 }
 0x170   :  { %1167 = vmatprep.mubr.f32.mxu1 %v403_v41  ;;  %2154 = vmatprep.mubr.msk.f32.mxu0 %vm2518_vm0, %v2519_v11 }
 0x172   :  { %v3639_v45 = vpop.f32.mrb[28].mxu1 }
 0x173   :  { %1168 = vmatmul.mubr.f32.gmra.mrb[86].mxu1 %v402_v44  ;;  %2155 = vmatmul.mubr.msk.f32.gmra.mrb[84].mxu0 %vm430_vm1, %v399_v0  ;;  %v716_v34 = vpop.f32.mrb[29].mxu1 }
 0x174   :  { %1172 = vmatprep.mubr.f32.mxu1 %v408_v32  ;;  %2157 = vmatprep.mubr.msk.f32.mxu0 %vm2518_vm0, %v2519_v11 }
 0x176   :  { %v3653_v51 = vpop.f32.mrb[30].mxu1 }
 0x177   :  { %1173 = vmatmul.mubr.f32.gmra.mrb[88].mxu1 %v407_v47  ;;  %2158 = vmatmul.mubr.msk.f32.gmra.mrb[86].mxu0 %vm430_vm1, %v404_v48  ;;  %v721_v52 = vpop.f32.mrb[31].mxu1 }
 0x178   :  { %1177 = vmatprep.mubr.f32.mxu1 %v413_v49  ;;  %2160 = vmatprep.mubr.msk.f32.mxu0 %vm2518_vm0, %v2519_v11 }
 0x17a   :  { %v3667_v57 = vpop.f32.mrb[32].mxu1 }
 0x17b   :  { %1178 = vmatmul.mubr.f32.gmra.mrb[90].mxu1 %v412_v53  ;;  %2161 = vmatmul.mubr.msk.f32.gmra.mrb[88].mxu0 %vm430_vm1, %v409_v54  ;;  %v726_v58 = vpop.f32.mrb[33].mxu1 }
 0x17c   :  { %1182 = vmatprep.mubr.f32.mxu1 %v418_v56  ;;  %2163 = vmatprep.mubr.msk.f32.mxu0 %vm2518_vm0, %v2519_v11 }
 0x17e   :  { %v3681_v63 = vpop.f32.mrb[34].mxu1 }
 0x17f   :  { %1183 = vmatmul.mubr.f32.gmra.mrb[92].mxu1 %v417_v59  ;;  %2164 = vmatmul.mubr.msk.f32.gmra.mrb[90].mxu0 %vm430_vm1, %v414_v61  ;;  %v731_v1 = vpop.f32.mrb[35].mxu1 }
 0x180   :  { %1187 = vmatprep.mubr.f32.mxu1 %v423_v62  ;;  %2166 = vmatprep.mubr.msk.f32.mxu0 %vm2518_vm0, %v2519_v11 }
 0x182   :  { %v3695_v6 = vpop.f32.mrb[36].mxu1 }
 0x183   :  { %1188 = vmatmul.mubr.f32.gmra.mrb[94].mxu1 %v422_v3  ;;  %2167 = vmatmul.mubr.msk.f32.gmra.mrb[92].mxu0 %vm430_vm1, %v419_v4  ;;  %v736_v8 = vpop.f32.mrb[37].mxu1 }
 0x184   :  { %1192 = vmatprep.mubr.f32.mxu1 %v428_v5  ;;  %2169 = vmatprep.mubr.msk.f32.mxu0 %vm2518_vm0, %v2519_v11 }
 0x186   :  { %v3706_v12 = vpop.f32.mrb[38].mxu1 }
 0x187   :  { %1193 = vmatmul.mubr.f32.gmra.mrb[96].mxu1 %v427_v9  ;;  %2170 = vmatmul.mubr.msk.f32.gmra.mrb[94].mxu0 %vm430_vm1, %v424_v10  ;;  %v741_v14 = vpop.f32.mrb[39].mxu1 }
 0x188   :  { %2172 = vmatprep.mubr.msk.f32.mxu0 %vm2518_vm0, %v2519_v11 }
 0x18a   :  { %v3714_v16 = vpop.f32.mrb[40].mxu1 }
 0x18b   :  { %2173 = vmatmul.mubr.msk.f32.gmra.mrb[96].mxu0 %vm430_vm1, %v429_v15  ;;  %v746_v17 = vpop.f32.mrb[41].mxu1 }
 0x18e   :  { %v3717_v19 = vpop.f32.mrb[42].mxu1 }
 0x18f   :  { %v751_v20 = vpop.f32.mrb[43].mxu1 }
 0x192   :  { %v3719_v21 = vpop.f32.mrb[44].mxu1 }
 0x193   :  { %v756_v23 = vpop.f32.mrb[45].mxu1 }
 0x196   :  { %v3721_v25 = vpop.f32.mrb[46].mxu1 }
 0x197   :  { %v761_v27 = vpop.f32.mrb[47].mxu1 }
 0x19a   :  { %v3723_v29 = vpop.f32.mrb[48].mxu1 }
 0x19b   :  { %v766_v11 = vpop.f32.mrb[49].mxu1 }
 0x19e   :  { %v1264_v24 = vpop.f32.mrb[0].mxu0 }
 0x19f   :  { %v2315_v35 = vadd.f32 %v1264_v24, %v3443_v39  ;;  %v2030_v26 = vpop.f32.mrb[1].mxu0 }
 0x1a1   :  { %v1515_v38 = vmul.f32 %v2315_v35, %v3725_v33 }
 0x1a2   :  { %v1269_v28 = vpop.f32.mrb[2].mxu0 }
 0x1a3   :  { %v1571_v40 = vadd.f32 %v3728_v36, %v1515_v38  ;;  %v2316_v41 = vadd.f32 %v1269_v28, %v3457_v43  ;;  %v2033_v42 = vpop.f32.mrb[3].mxu0 }
 0x1a5   :  { %v1620_v44 = vmax.f32 %v1571_v40, 0.0  ;;  %v1516_v0 = vmul.f32 %v2316_v41, %v3725_v33 }
 0x1a6   :  { %v1274_v32 = vpop.f32.mrb[4].mxu0 }
 0x1a7   :  { %1670 = vst.msk [vmem:[%s4052_s4] sm:$0xff] %vm1669_vm2, %v1620_v44  ;;  %v1572_v39 = vadd.f32 %v3728_v36, %v1516_v0  ;;  %v2317_v34 = vadd.f32 %v1274_v32, %v3471_v46  ;;  %v2036_v47 = vpop.f32.mrb[5].mxu0 }
 0x1a9   :  { %v1621_v48 = vmax.f32 %v1572_v39, 0.0  ;;  %v1517_v49 = vmul.f32 %v2317_v34, %v3725_v33 }
 0x1aa   :  { %v1279_v43 = vpop.f32.mrb[6].mxu0 }
 0x1ab   :  { %1671 = vst.msk [vmem:[%s4052_s4 + $0x8] sm:$0xff] %vm1669_vm2, %v1621_v48  ;;  %v1573_v52 = vadd.f32 %v3728_v36, %v1517_v49  ;;  %v2318_v53 = vadd.f32 %v1279_v43, %v3485_v50  ;;  %v2039_v54 = vpop.f32.mrb[7].mxu0 }
 0x1ad   :  { %v1622_v56 = vmax.f32 %v1573_v52, 0.0  ;;  %v1518_v58 = vmul.f32 %v2318_v53, %v3725_v33 }
 0x1ae   :  { %v1284_v59 = vpop.f32.mrb[8].mxu0 }
 0x1af   :  { %1672 = vst.msk [vmem:[%s4052_s4 + $0x10] sm:$0xff] %vm1669_vm2, %v1622_v56  ;;  %v1574_v46 = vadd.f32 %v3728_v36, %v1518_v58  ;;  %v2319_v61 = vadd.f32 %v1284_v59, %v3499_v55  ;;  %v2042_v62 = vpop.f32.mrb[9].mxu0 }
 0x1b1   :  { %v1623_v1 = vmax.f32 %v1574_v46, 0.0  ;;  %v1519_v3 = vmul.f32 %v2319_v61, %v3725_v33 }
 0x1b2   :  { %v1289_v4 = vpop.f32.mrb[10].mxu0 }
 0x1b3   :  { %1673 = vst.msk [vmem:[%s4052_s4 + $0x18] sm:$0xff] %vm1669_vm2, %v1623_v1  ;;  %v1575_v50 = vadd.f32 %v3728_v36, %v1519_v3  ;;  %v2320_v5 = vadd.f32 %v1289_v4, %v3513_v60  ;;  %v2045_v8 = vpop.f32.mrb[11].mxu0 }
 0x1b5   :  { %v1624_v9 = vmax.f32 %v1575_v50, 0.0  ;;  %v1520_v10 = vmul.f32 %v2320_v5, %v3725_v33 }
 0x1b6   :  { %v1294_v14 = vpop.f32.mrb[12].mxu0 }
 0x1b7   :  { %1674 = vst.msk [vmem:[%s4052_s4 + $0x20] sm:$0xff] %vm1669_vm2, %v1624_v9  ;;  %v1576_v55 = vadd.f32 %v3728_v36, %v1520_v10  ;;  %v2321_v15 = vadd.f32 %v1294_v14, %v3527_v2  ;;  %v2048_v17 = vpop.f32.mrb[13].mxu0 }
 0x1b9   :  { %v1625_v20 = vmax.f32 %v1576_v55, 0.0  ;;  %v1521_v23 = vmul.f32 %v2321_v15, %v3725_v33 }
 0x1ba   :  { %v1299_v27 = vpop.f32.mrb[14].mxu0 }
 0x1bb   :  { %1675 = vst.msk [vmem:[%s4052_s4 + $0x28] sm:$0xff] %vm1669_vm2, %v1625_v20  ;;  %v1577_v60 = vadd.f32 %v3728_v36, %v1521_v23  ;;  %v2322_v11 = vadd.f32 %v1299_v27, %v3541_v7  ;;  %v2051_v24 = vpop.f32.mrb[15].mxu0 }
 0x1bd   :  { %v1626_v35 = vmax.f32 %v1577_v60, 0.0  ;;  %v1522_v26 = vmul.f32 %v2322_v11, %v3725_v33 }
 0x1be   :  { %v1304_v38 = vpop.f32.mrb[16].mxu0 }
 0x1bf   :  { %1676 = vst.msk [vmem:[%s4052_s4 + $0x30] sm:$0xff] %vm1669_vm2, %v1626_v35  ;;  %v1578_v2 = vadd.f32 %v3728_v36, %v1522_v26  ;;  %v2323_v28 = vadd.f32 %v1304_v38, %v3555_v13  ;;  %v2054_v40 = vpop.f32.mrb[17].mxu0 }
 0x1c1   :  { %v1627_v41 = vmax.f32 %v1578_v2, 0.0  ;;  %v1523_v42 = vmul.f32 %v2323_v28, %v3725_v33 }
 0x1c2   :  { %v1309_v44 = vpop.f32.mrb[18].mxu0 }
 0x1c3   :  { %1677 = vst.msk [vmem:[%s4052_s4 + $0x38] sm:$0xff] %vm1669_vm2, %v1627_v41  ;;  %v1579_v7 = vadd.f32 %v3728_v36, %v1523_v42  ;;  %v2324_v0 = vadd.f32 %v1309_v44, %v3569_v18  ;;  %v2057_v32 = vpop.f32.mrb[19].mxu0 }
 0x1c5   :  { %v1628_v39 = vmax.f32 %v1579_v7, 0.0  ;;  %v1524_v34 = vmul.f32 %v2324_v0, %v3725_v33 }
 0x1c6   :  { %v1314_v47 = vpop.f32.mrb[20].mxu0 }
 0x1c7   :  { %1678 = vst.msk [vmem:[%s4052_s4 + $0x40] sm:$0xff] %vm1669_vm2, %v1628_v39  ;;  %v1580_v13 = vadd.f32 %v3728_v36, %v1524_v34  ;;  %v2325_v48 = vadd.f32 %v1314_v47, %v3583_v22  ;;  %v2060_v49 = vpop.f32.mrb[21].mxu0 }
 0x1c9   :  { %v1629_v43 = vmax.f32 %v1580_v13, 0.0  ;;  %v1525_v52 = vmul.f32 %v2325_v48, %v3725_v33 }
 0x1ca   :  { %v1319_v53 = vpop.f32.mrb[22].mxu0 }
 0x1cb   :  { %1679 = vst.msk [vmem:[%s4052_s4 + $0x48] sm:$0xff] %vm1669_vm2, %v1629_v43  ;;  %v1581_v18 = vadd.f32 %v3728_v36, %v1525_v52  ;;  %v2326_v54 = vadd.f32 %v1319_v53, %v3597_v31  ;;  %v2063_v56 = vpop.f32.mrb[23].mxu0 }
 0x1cd   :  { %v1630_v58 = vmax.f32 %v1581_v18, 0.0  ;;  %v1526_v59 = vmul.f32 %v2326_v54, %v3725_v33 }
 0x1ce   :  { %v1324_v46 = vpop.f32.mrb[24].mxu0 }
 0x1cf   :  { %1680 = vst.msk [vmem:[%s4052_s4 + $0x50] sm:$0xff] %vm1669_vm2, %v1630_v58  ;;  %v1582_v22 = vadd.f32 %v3728_v36, %v1526_v59  ;;  %v2327_v61 = vadd.f32 %v1324_v46, %v3611_v37  ;;  %v2066_v62 = vpop.f32.mrb[25].mxu0 }
 0x1d1   :  { %v1631_v1 = vmax.f32 %v1582_v22, 0.0  ;;  %v1527_v3 = vmul.f32 %v2327_v61, %v3725_v33 }
 0x1d2   :  { %v1329_v4 = vpop.f32.mrb[26].mxu0 }
 0x1d3   :  { %1681 = vst.msk [vmem:[%s4052_s4 + $0x58] sm:$0xff] %vm1669_vm2, %v1631_v1  ;;  %v1583_v31 = vadd.f32 %v3728_v36, %v1527_v3  ;;  %v2328_v50 = vadd.f32 %v1329_v4, %v3625_v30  ;;  %v2069_v5 = vpop.f32.mrb[27].mxu0 }
 0x1d5   :  { %v1632_v8 = vmax.f32 %v1583_v31, 0.0  ;;  %v1528_v9 = vmul.f32 %v2328_v50, %v3725_v33 }
 0x1d6   :  { %v1334_v10 = vpop.f32.mrb[28].mxu0 }
 0x1d7   :  { %1682 = vst.msk [vmem:[%s4052_s4 + $0x60] sm:$0xff] %vm1669_vm2, %v1632_v8  ;;  %v1584_v37 = vadd.f32 %v3728_v36, %v1528_v9  ;;  %v2329_v14 = vadd.f32 %v1334_v10, %v3639_v45  ;;  %v2072_v55 = vpop.f32.mrb[29].mxu0 }
 0x1d9   :  { %v1633_v15 = vmax.f32 %v1584_v37, 0.0  ;;  %v1529_v17 = vmul.f32 %v2329_v14, %v3725_v33 }
 0x1da   :  { %v1339_v20 = vpop.f32.mrb[30].mxu0 }
 0x1db   :  { %1683 = vst.msk [vmem:[%s4052_s4 + $0x68] sm:$0xff] %vm1669_vm2, %v1633_v15  ;;  %v1585_v30 = vadd.f32 %v3728_v36, %v1529_v17  ;;  %v2330_v23 = vadd.f32 %v1339_v20, %v3653_v51  ;;  %v2075_v27 = vpop.f32.mrb[31].mxu0 }
 0x1dd   :  { %v1634_v60 = vmax.f32 %v1585_v30, 0.0  ;;  %v1530_v11 = vmul.f32 %v2330_v23, %v3725_v33 }
 0x1de   :  { %v1344_v24 = vpop.f32.mrb[32].mxu0 }
 0x1df   :  { %1684 = vst.msk [vmem:[%s4052_s4 + $0x70] sm:$0xff] %vm1669_vm2, %v1634_v60  ;;  %v1586_v45 = vadd.f32 %v3728_v36, %v1530_v11  ;;  %v2331_v35 = vadd.f32 %v1344_v24, %v3667_v57  ;;  %v2078_v26 = vpop.f32.mrb[33].mxu0 }
 0x1e1   :  { %v1635_v38 = vmax.f32 %v1586_v45, 0.0  ;;  %v1531_v2 = vmul.f32 %v2331_v35, %v3725_v33 }
 0x1e2   :  { %v1349_v28 = vpop.f32.mrb[34].mxu0 }
 0x1e3   :  { %1685 = vst.msk [vmem:[%s4052_s4 + $0x78] sm:$0xff] %vm1669_vm2, %v1635_v38  ;;  %v1587_v51 = vadd.f32 %v3728_v36, %v1531_v2  ;;  %v2332_v40 = vadd.f32 %v1349_v28, %v3681_v63  ;;  %v2081_v41 = vpop.f32.mrb[35].mxu0 }
 0x1e5   :  { %v1636_v42 = vmax.f32 %v1587_v51, 0.0  ;;  %v1532_v44 = vmul.f32 %v2332_v40, %v3725_v33 }
 0x1e6   :  { %v1354_v7 = vpop.f32.mrb[36].mxu0 }
 0x1e7   :  { %1686 = vst.msk [vmem:[%s4052_s4 + $0x80] sm:$0xff] %vm1669_vm2, %v1636_v42  ;;  %v1588_v57 = vadd.f32 %v3728_v36, %v1532_v44  ;;  %v2333_v0 = vadd.f32 %v1354_v7, %v3695_v6  ;;  %v2084_v32 = vpop.f32.mrb[37].mxu0 }
 0x1e9   :  { %v1637_v39 = vmax.f32 %v1588_v57, 0.0  ;;  %v1533_v34 = vmul.f32 %v2333_v0, %v3725_v33 }
 0x1ea   :  { %v1359_v47 = vpop.f32.mrb[38].mxu0 }
 0x1eb   :  { %1687 = vst.msk [vmem:[%s4052_s4 + $0x88] sm:$0xff] %vm1669_vm2, %v1637_v39  ;;  %v1589_v63 = vadd.f32 %v3728_v36, %v1533_v34  ;;  %v2334_v13 = vadd.f32 %v1359_v47, %v3706_v12  ;;  %v2087_v48 = vpop.f32.mrb[39].mxu0 }
 0x1ed   :  { %v1638_v49 = vmax.f32 %v1589_v63, 0.0  ;;  %v1534_v43 = vmul.f32 %v2334_v13, %v3725_v33 }
 0x1ee   :  { %v1364_v52 = vpop.f32.mrb[40].mxu0 }
 0x1ef   :  { %1688 = vst.msk [vmem:[%s4052_s4 + $0x90] sm:$0xff] %vm1669_vm2, %v1638_v49  ;;  %v1590_v6 = vadd.f32 %v3728_v36, %v1534_v43  ;;  %v2335_v53 = vadd.f32 %v1364_v52, %v3714_v16  ;;  %v2090_v18 = vpop.f32.mrb[41].mxu0 }
 0x1f1   :  { %v1639_v54 = vmax.f32 %v1590_v6, 0.0  ;;  %v1535_v56 = vmul.f32 %v2335_v53, %v3725_v33 }
 0x1f2   :  { %v1369_v58 = vpop.f32.mrb[42].mxu0 }
 0x1f3   :  { %1689 = vst.msk [vmem:[%s4052_s4 + $0x98] sm:$0xff] %vm1669_vm2, %v1639_v54  ;;  %v1591_v12 = vadd.f32 %v3728_v36, %v1535_v56  ;;  %v2336_v59 = vadd.f32 %v1369_v58, %v3717_v19  ;;  %v2093_v46 = vpop.f32.mrb[43].mxu0 }
 0x1f5   :  { %v1640_v22 = vmax.f32 %v1591_v12, 0.0  ;;  %v1536_v61 = vmul.f32 %v2336_v59, %v3725_v33 }
 0x1f6   :  { %v1374_v62 = vpop.f32.mrb[44].mxu0 }
 0x1f7   :  { %1690 = vst.msk [vmem:[%s4052_s4 + $0xa0] sm:$0xff] %vm1669_vm2, %v1640_v22  ;;  %v1592_v16 = vadd.f32 %v3728_v36, %v1536_v61  ;;  %v2337_v1 = vadd.f32 %v1374_v62, %v3719_v21  ;;  %v2096_v3 = vpop.f32.mrb[45].mxu0 }
 0x1f9   :  { %v1641_v4 = vmax.f32 %v1592_v16, 0.0  ;;  %v1537_v31 = vmul.f32 %v2337_v1, %v3725_v33 }
 0x1fa   :  { %v1379_v50 = vpop.f32.mrb[46].mxu0 }
 0x1fb   :  { %1691 = vst.msk [vmem:[%s4052_s4 + $0xa8] sm:$0xff] %vm1669_vm2, %v1641_v4  ;;  %v1593_v19 = vadd.f32 %v3728_v36, %v1537_v31  ;;  %v2338_v5 = vadd.f32 %v1379_v50, %v3721_v25  ;;  %v2099_v8 = vpop.f32.mrb[47].mxu0 }
 0x1fd   :  { %v1642_v9 = vmax.f32 %v1593_v19, 0.0  ;;  %v1538_v10 = vmul.f32 %v2338_v5, %v3725_v33 }
 0x1fe   :  { %v1079_v37 = vpop.f32.mrb[50].mxu1  ;;  %v1384_v21 = vpop.f32.mrb[48].mxu0 }
 0x1ff   :  { %1692 = vst.msk [vmem:[%s4052_s4 + $0xb0] sm:$0xff] %vm1669_vm2, %v1642_v9  ;;  %v1594_v14 = vadd.f32 %v3728_v36, %v1538_v10  ;;  %v2339_v55 = vadd.f32 %v1384_v21, %v3723_v29  ;;  %v1081_v15 = vpop.f32.mrb[51].mxu1  ;;  %v2102_v17 = vpop.f32.mrb[49].mxu0 }
 0x201   :  { %v1643_v20 = vmax.f32 %v1594_v14, 0.0  ;;  %v1539_v25 = vmul.f32 %v2339_v55, %v3725_v33 }
 0x202   :  { %v1084_v30 = vpop.f32.mrb[52].mxu1  ;;  %v1389_v23 = vpop.f32.mrb[50].mxu0 }
 0x203   :  { %1693 = vst.msk [vmem:[%s4052_s4 + $0xb8] sm:$0xff] %vm1669_vm2, %v1643_v20  ;;  %v1595_v27 = vadd.f32 %v3728_v36, %v1539_v25  ;;  %v2340_v60 = vadd.f32 %v1389_v23, %v1079_v37  ;;  %v1086_v11 = vpop.f32.mrb[53].mxu1  ;;  %v2105_v24 = vpop.f32.mrb[51].mxu0 }
 0x205   :  { %v1644_v45 = vmax.f32 %v1595_v27, 0.0  ;;  %v1540_v29 = vmul.f32 %v2340_v60, %v3725_v33 }
 0x206   :  { %v1089_v35 = vpop.f32.mrb[54].mxu1  ;;  %v1394_v26 = vpop.f32.mrb[52].mxu0 }
 0x207   :  { %1694 = vst.msk [vmem:[%s4052_s4 + $0xc0] sm:$0xff] %vm1669_vm2, %v1644_v45  ;;  %v1596_v38 = vadd.f32 %v3728_v36, %v1540_v29  ;;  %v2341_v2 = vadd.f32 %v1394_v26, %v1084_v30  ;;  %v1091_v28 = vpop.f32.mrb[55].mxu1  ;;  %v2108_v51 = vpop.f32.mrb[53].mxu0 }
 0x209   :  { %v1645_v40 = vmax.f32 %v1596_v38, 0.0  ;;  %v1541_v41 = vmul.f32 %v2341_v2, %v3725_v33 }
 0x20a   :  { %v1094_v42 = vpop.f32.mrb[56].mxu1  ;;  %v1399_v44 = vpop.f32.mrb[54].mxu0 }
 0x20b   :  { %1695 = vst.msk [vmem:[%s4052_s4 + $0xc8] sm:$0xff] %vm1669_vm2, %v1645_v40  ;;  %v1597_v7 = vadd.f32 %v3728_v36, %v1541_v41  ;;  %v2342_v57 = vadd.f32 %v1399_v44, %v1089_v35  ;;  %v1096_v0 = vpop.f32.mrb[57].mxu1  ;;  %v2111_v32 = vpop.f32.mrb[55].mxu0 }
 0x20d   :  { %v1646_v39 = vmax.f32 %v1597_v7, 0.0  ;;  %v1542_v34 = vmul.f32 %v2342_v57, %v3725_v33 }
 0x20e   :  { %v1099_v47 = vpop.f32.mrb[58].mxu1  ;;  %v1404_v63 = vpop.f32.mrb[56].mxu0 }
 0x20f   :  { %1696 = vst.msk [vmem:[%s4052_s4 + $0xd0] sm:$0xff] %vm1669_vm2, %v1646_v39  ;;  %v1598_v13 = vadd.f32 %v3728_v36, %v1542_v34  ;;  %v2343_v48 = vadd.f32 %v1404_v63, %v1094_v42  ;;  %v1101_v49 = vpop.f32.mrb[59].mxu1  ;;  %v2114_v43 = vpop.f32.mrb[57].mxu0 }
 0x211   :  { %v1647_v52 = vmax.f32 %v1598_v13, 0.0  ;;  %v1543_v6 = vmul.f32 %v2343_v48, %v3725_v33 }
 0x212   :  { %v1104_v53 = vpop.f32.mrb[60].mxu1  ;;  %v1409_v18 = vpop.f32.mrb[58].mxu0 }
 0x213   :  { %1697 = vst.msk [vmem:[%s4052_s4 + $0xd8] sm:$0xff] %vm1669_vm2, %v1647_v52  ;;  %v1599_v54 = vadd.f32 %v3728_v36, %v1543_v6  ;;  %v2344_v56 = vadd.f32 %v1409_v18, %v1099_v47  ;;  %v1106_v58 = vpop.f32.mrb[61].mxu1  ;;  %v2117_v12 = vpop.f32.mrb[59].mxu0 }
 0x215   :  { %v1648_v59 = vmax.f32 %v1599_v54, 0.0  ;;  %v1544_v46 = vmul.f32 %v2344_v56, %v3725_v33 }
 0x216   :  { %v1109_v22 = vpop.f32.mrb[62].mxu1  ;;  %v1414_v61 = vpop.f32.mrb[60].mxu0 }
 0x217   :  { %1698 = vst.msk [vmem:[%s4052_s4 + $0xe0] sm:$0xff] %vm1669_vm2, %v1648_v59  ;;  %v1600_v62 = vadd.f32 %v3728_v36, %v1544_v46  ;;  %v2345_v16 = vadd.f32 %v1414_v61, %v1104_v53  ;;  %v1111_v1 = vpop.f32.mrb[63].mxu1  ;;  %v2120_v3 = vpop.f32.mrb[61].mxu0 }
 0x219   :  { %v1649_v4 = vmax.f32 %v1600_v62, 0.0  ;;  %v1545_v31 = vmul.f32 %v2345_v16, %v3725_v33 }
 0x21a   :  { %v1114_v50 = vpop.f32.mrb[64].mxu1  ;;  %v1419_v19 = vpop.f32.mrb[62].mxu0 }
 0x21b   :  { %1699 = vst.msk [vmem:[%s4052_s4 + $0xe8] sm:$0xff] %vm1669_vm2, %v1649_v4  ;;  %v1601_v5 = vadd.f32 %v3728_v36, %v1545_v31  ;;  %v2346_v8 = vadd.f32 %v1419_v19, %v1109_v22  ;;  %v1116_v9 = vpop.f32.mrb[65].mxu1  ;;  %v2123_v10 = vpop.f32.mrb[63].mxu0 }
 0x21d   :  { %v1650_v37 = vmax.f32 %v1601_v5, 0.0  ;;  %v1546_v21 = vmul.f32 %v2346_v8, %v3725_v33 }
 0x21e   :  { %v1119_v14 = vpop.f32.mrb[66].mxu1  ;;  %v1424_v55 = vpop.f32.mrb[64].mxu0 }
 0x21f   :  { %1700 = vst.msk [vmem:[%s4052_s4 + $0xf0] sm:$0xff] %vm1669_vm2, %v1650_v37  ;;  %v1602_v15 = vadd.f32 %v3728_v36, %v1546_v21  ;;  %v2347_v17 = vadd.f32 %v1424_v55, %v1114_v50  ;;  %v1121_v20 = vpop.f32.mrb[67].mxu1  ;;  %v2126_v25 = vpop.f32.mrb[65].mxu0 }
 0x221   :  { %v1651_v30 = vmax.f32 %v1602_v15, 0.0  ;;  %v1547_v23 = vmul.f32 %v2347_v17, %v3725_v33 }
 0x222   :  { %v1124_v27 = vpop.f32.mrb[68].mxu1  ;;  %v1429_v60 = vpop.f32.mrb[66].mxu0 }
 0x223   :  { %1701 = vst.msk [vmem:[%s4052_s4 + $0xf8] sm:$0xff] %vm1669_vm2, %v1651_v30  ;;  %v1603_v11 = vadd.f32 %v3728_v36, %v1547_v23  ;;  %v2348_v24 = vadd.f32 %v1429_v60, %v1119_v14  ;;  %v1126_v45 = vpop.f32.mrb[69].mxu1  ;;  %v2129_v29 = vpop.f32.mrb[67].mxu0 }
 0x225   :  { %v1652_v35 = vmax.f32 %v1603_v11, 0.0  ;;  %v1548_v26 = vmul.f32 %v2348_v24, %v3725_v33 }
 0x226   :  { %v1129_v38 = vpop.f32.mrb[70].mxu1  ;;  %v1434_v2 = vpop.f32.mrb[68].mxu0 }
 0x227   :  { %1702 = vst.msk [vmem:[%s4052_s4 + $0x100] sm:$0xff] %vm1669_vm2, %v1652_v35  ;;  %v1604_v28 = vadd.f32 %v3728_v36, %v1548_v26  ;;  %v2349_v51 = vadd.f32 %v1434_v2, %v1124_v27  ;;  %v1131_v40 = vpop.f32.mrb[71].mxu1  ;;  %v2132_v41 = vpop.f32.mrb[69].mxu0 }
 0x229   :  { %v1653_v42 = vmax.f32 %v1604_v28, 0.0  ;;  %v1549_v44 = vmul.f32 %v2349_v51, %v3725_v33 }
 0x22a   :  { %v1134_v7 = vpop.f32.mrb[72].mxu1  ;;  %v1439_v57 = vpop.f32.mrb[70].mxu0 }
 0x22b   :  { %1703 = vst.msk [vmem:[%s4052_s4 + $0x108] sm:$0xff] %vm1669_vm2, %v1653_v42  ;;  %v1605_v0 = vadd.f32 %v3728_v36, %v1549_v44  ;;  %v2350_v32 = vadd.f32 %v1439_v57, %v1129_v38  ;;  %v1136_v39 = vpop.f32.mrb[73].mxu1  ;;  %v2135_v34 = vpop.f32.mrb[71].mxu0 }
 0x22d   :  { %v1654_v47 = vmax.f32 %v1605_v0, 0.0  ;;  %v1550_v63 = vmul.f32 %v2350_v32, %v3725_v33 }
 0x22e   :  { %v1139_v13 = vpop.f32.mrb[74].mxu1  ;;  %v1444_v48 = vpop.f32.mrb[72].mxu0 }
 0x22f   :  { %1704 = vst.msk [vmem:[%s4052_s4 + $0x110] sm:$0xff] %vm1669_vm2, %v1654_v47  ;;  %v1606_v49 = vadd.f32 %v3728_v36, %v1550_v63  ;;  %v2351_v43 = vadd.f32 %v1444_v48, %v1134_v7  ;;  %v1141_v52 = vpop.f32.mrb[75].mxu1  ;;  %v2138_v6 = vpop.f32.mrb[73].mxu0 }
 0x231   :  { %v1655_v53 = vmax.f32 %v1606_v49, 0.0  ;;  %v1551_v18 = vmul.f32 %v2351_v43, %v3725_v33 }
 0x232   :  { %v1144_v54 = vpop.f32.mrb[76].mxu1  ;;  %v1449_v56 = vpop.f32.mrb[74].mxu0 }
 0x233   :  { %1705 = vst.msk [vmem:[%s4052_s4 + $0x118] sm:$0xff] %vm1669_vm2, %v1655_v53  ;;  %v1607_v58 = vadd.f32 %v3728_v36, %v1551_v18  ;;  %v2352_v12 = vadd.f32 %v1449_v56, %v1139_v13  ;;  %v1146_v59 = vpop.f32.mrb[77].mxu1  ;;  %v2141_v46 = vpop.f32.mrb[75].mxu0 }
 0x235   :  { %v1656_v22 = vmax.f32 %v1607_v58, 0.0  ;;  %v1552_v61 = vmul.f32 %v2352_v12, %v3725_v33 }
 0x236   :  { %v1149_v62 = vpop.f32.mrb[78].mxu1  ;;  %v1454_v16 = vpop.f32.mrb[76].mxu0 }
 0x237   :  { %1706 = vst.msk [vmem:[%s4052_s4 + $0x120] sm:$0xff] %vm1669_vm2, %v1656_v22  ;;  %v1608_v1 = vadd.f32 %v3728_v36, %v1552_v61  ;;  %v2353_v3 = vadd.f32 %v1454_v16, %v1144_v54  ;;  %v1151_v4 = vpop.f32.mrb[79].mxu1  ;;  %v2144_v31 = vpop.f32.mrb[77].mxu0 }
 0x239   :  { %v1657_v50 = vmax.f32 %v1608_v1, 0.0  ;;  %v1553_v19 = vmul.f32 %v2353_v3, %v3725_v33 }
 0x23a   :  { %v1154_v5 = vpop.f32.mrb[80].mxu1  ;;  %v1459_v8 = vpop.f32.mrb[78].mxu0 }
 0x23b   :  { %1707 = vst.msk [vmem:[%s4052_s4 + $0x128] sm:$0xff] %vm1669_vm2, %v1657_v50  ;;  %v1609_v9 = vadd.f32 %v3728_v36, %v1553_v19  ;;  %v2354_v10 = vadd.f32 %v1459_v8, %v1149_v62  ;;  %v1156_v37 = vpop.f32.mrb[81].mxu1  ;;  %v2147_v21 = vpop.f32.mrb[79].mxu0 }
 0x23d   :  { %v1658_v14 = vmax.f32 %v1609_v9, 0.0  ;;  %v1554_v55 = vmul.f32 %v2354_v10, %v3725_v33 }
 0x23e   :  { %v1159_v15 = vpop.f32.mrb[82].mxu1  ;;  %v1464_v17 = vpop.f32.mrb[80].mxu0 }
 0x23f   :  { %1708 = vst.msk [vmem:[%s4052_s4 + $0x130] sm:$0xff] %vm1669_vm2, %v1658_v14  ;;  %v1610_v20 = vadd.f32 %v3728_v36, %v1554_v55  ;;  %v2355_v25 = vadd.f32 %v1464_v17, %v1154_v5  ;;  %v1161_v30 = vpop.f32.mrb[83].mxu1  ;;  %v2150_v23 = vpop.f32.mrb[81].mxu0 }
 0x241   :  { %v1659_v27 = vmax.f32 %v1610_v20, 0.0  ;;  %v1555_v60 = vmul.f32 %v2355_v25, %v3725_v33 }
 0x242   :  { %v1164_v11 = vpop.f32.mrb[84].mxu1  ;;  %v1469_v24 = vpop.f32.mrb[82].mxu0 }
 0x243   :  { %1709 = vst.msk [vmem:[%s4052_s4 + $0x138] sm:$0xff] %vm1669_vm2, %v1659_v27  ;;  %v1611_v45 = vadd.f32 %v3728_v36, %v1555_v60  ;;  %v2356_v29 = vadd.f32 %v1469_v24, %v1159_v15  ;;  %v1166_v35 = vpop.f32.mrb[85].mxu1  ;;  %v2153_v26 = vpop.f32.mrb[83].mxu0 }
 0x245   :  { %v1660_v38 = vmax.f32 %v1611_v45, 0.0  ;;  %v1556_v2 = vmul.f32 %v2356_v29, %v3725_v33 }
 0x246   :  { %v1169_v28 = vpop.f32.mrb[86].mxu1  ;;  %v1474_v51 = vpop.f32.mrb[84].mxu0 }
 0x247   :  { %1710 = vst.msk [vmem:[%s4052_s4 + $0x140] sm:$0xff] %vm1669_vm2, %v1660_v38  ;;  %v1612_v40 = vadd.f32 %v3728_v36, %v1556_v2  ;;  %v2357_v41 = vadd.f32 %v1474_v51, %v1164_v11  ;;  %v1171_v42 = vpop.f32.mrb[87].mxu1  ;;  %v2156_v44 = vpop.f32.mrb[85].mxu0 }
 0x249   :  { %v1661_v7 = vmax.f32 %v1612_v40, 0.0  ;;  %v1557_v57 = vmul.f32 %v2357_v41, %v3725_v33 }
 0x24a   :  { %v1174_v0 = vpop.f32.mrb[88].mxu1  ;;  %v1479_v32 = vpop.f32.mrb[86].mxu0 }
 0x24b   :  { %1711 = vst.msk [vmem:[%s4052_s4 + $0x148] sm:$0xff] %vm1669_vm2, %v1661_v7  ;;  %v1613_v39 = vadd.f32 %v3728_v36, %v1557_v57  ;;  %v2358_v34 = vadd.f32 %v1479_v32, %v1169_v28  ;;  %v1176_v47 = vpop.f32.mrb[89].mxu1  ;;  %v2159_v63 = vpop.f32.mrb[87].mxu0 }
 0x24d   :  { %v1662_v13 = vmax.f32 %v1613_v39, 0.0  ;;  %v1558_v48 = vmul.f32 %v2358_v34, %v3725_v33 }
 0x24e   :  { %v1179_v49 = vpop.f32.mrb[90].mxu1  ;;  %v1484_v43 = vpop.f32.mrb[88].mxu0 }
 0x24f   :  { %1712 = vst.msk [vmem:[%s4052_s4 + $0x150] sm:$0xff] %vm1669_vm2, %v1662_v13  ;;  %v1614_v52 = vadd.f32 %v3728_v36, %v1558_v48  ;;  %v2359_v6 = vadd.f32 %v1484_v43, %v1174_v0  ;;  %v1181_v53 = vpop.f32.mrb[91].mxu1  ;;  %v2162_v18 = vpop.f32.mrb[89].mxu0 }
 0x251   :  { %v1663_v54 = vmax.f32 %v1614_v52, 0.0  ;;  %v1559_v56 = vmul.f32 %v2359_v6, %v3725_v33 }
 0x252   :  { %v1184_v58 = vpop.f32.mrb[92].mxu1  ;;  %v1489_v12 = vpop.f32.mrb[90].mxu0 }
 0x253   :  { %1713 = vst.msk [vmem:[%s4052_s4 + $0x158] sm:$0xff] %vm1669_vm2, %v1663_v54  ;;  %v1615_v59 = vadd.f32 %v3728_v36, %v1559_v56  ;;  %v2360_v46 = vadd.f32 %v1489_v12, %v1179_v49  ;;  %v1186_v22 = vpop.f32.mrb[93].mxu1  ;;  %v2165_v61 = vpop.f32.mrb[91].mxu0 }
 0x255   :  { %v1664_v62 = vmax.f32 %v1615_v59, 0.0  ;;  %v1560_v16 = vmul.f32 %v2360_v46, %v3725_v33 }
 0x256   :  { %v1189_v1 = vpop.f32.mrb[94].mxu1  ;;  %v1494_v3 = vpop.f32.mrb[92].mxu0 }
 0x257   :  { %1714 = vst.msk [vmem:[%s4052_s4 + $0x160] sm:$0xff] %vm1669_vm2, %v1664_v62  ;;  %v1616_v4 = vadd.f32 %v3728_v36, %v1560_v16  ;;  %v2361_v31 = vadd.f32 %v1494_v3, %v1184_v58  ;;  %v1191_v50 = vpop.f32.mrb[95].mxu1  ;;  %v2168_v19 = vpop.f32.mrb[93].mxu0 }
 0x259   :  { %v1665_v5 = vmax.f32 %v1616_v4, 0.0  ;;  %v1561_v8 = vmul.f32 %v2361_v31, %v3725_v33 }
 0x25a   :  { %v1194_v9 = vpop.f32.mrb[96].mxu1  ;;  %v1499_v10 = vpop.f32.mrb[94].mxu0 }
 0x25b   :  { %1715 = vst.msk [vmem:[%s4052_s4 + $0x168] sm:$0xff] %vm1669_vm2, %v1665_v5  ;;  %v1617_v37 = vadd.f32 %v3728_v36, %v1561_v8  ;;  %v2362_v21 = vadd.f32 %v1499_v10, %v1189_v1  ;;  %v1196_v14 = vpop.f32.mrb[97].mxu1  ;;  %v2171_v55 = vpop.f32.mrb[95].mxu0 }
 0x25d   :  { %v1666_v15 = vmax.f32 %v1617_v37, 0.0  ;;  %v1562_v17 = vmul.f32 %v2362_v21, %v3725_v33 }
 0x25e   :  { %v1504_v20 = vpop.f32.mrb[96].mxu0 }
 0x25f   :  { %1716 = vst.msk [vmem:[%s4052_s4 + $0x170] sm:$0xff] %vm1669_vm2, %v1666_v15  ;;  %v1618_v25 = vadd.f32 %v3728_v36, %v1562_v17  ;;  %v2363_v30 = vadd.f32 %v1504_v20, %v1194_v9  ;;  %v2174_v23 = vpop.f32.mrb[97].mxu0 }
 0x261   :  { %v1667_v27 = vmax.f32 %v1618_v25, 0.0  ;;  %v1563_v60 = vmul.f32 %v2363_v30, %v3725_v33 }
 0x263   :  { %1717 = vst.msk [vmem:[%s4052_s4 + $0x178] sm:$0xff] %vm1669_vm2, %v1667_v27  ;;  %v1619_v11 = vadd.f32 %v3728_v36, %v1563_v60 }
 0x265   :  { %v1668_v24 = vmax.f32 %v1619_v11, 0.0 }
 0x267   :  { %1718 = vst.msk [vmem:[%s4052_s4 + $0x180] sm:$0xff] %vm1669_vm2, %v1668_v24 }
 0x268   :  { %1723 = vsyncpa [#allocation3], 1 }
 0x269   :  { %1724 = vsyncpa [#allocation5], 1 }

// kernel: cnn_decoder_forward.6
= control target key start
LH: loop header
LB: loop body
LE: loop exit
PB: predicated region body
PF: predicated region fallthrough
CT: control target
= control target key end

     0   :  { %s2710_s15 = smov 0   ;;  %s3677_s0 = inlined_call_operand.vmem [shape: f32[1568,512], index: 0, kind: input, shape index: {}]   ;;  %s3678_s1 = inlined_call_operand.vmem [shape: bf16[512,16], index: 1, kind: input, shape index: {}]   ;;  %s3679_s2 = inlined_call_operand.vmem [shape: f32[1,16], index: 2, kind: input, shape index: {}]   ;;  %s3680_s3 = inlined_call_operand.vmem [shape: f32[1,16], index: 3, kind: input, shape index: {}]   ;;  %s3681_s4 = inlined_call_operand.vmem [shape: f32[1568,16], index: 4, kind: output, shape index: {}]  }
   0x1 LB: > { %s2297_s16 = sadd.s32 4294967295, %s2682_s15   ;;  %p2301_p0 = scmp.ge.s32.totalorder %s2682_s15, 1  ;;  %s2682_s15 = sphi %s2710_s15, %s14_s15  }
   0x2   : > { %p164_p1 = scmp.lt.s32.totalorder %s2682_s15, 3 }
   0x4   : > { %p165_p2 = pnand %p2301_p0, %p164_p1 }
   0x5   : > { %v2311_v0 = vld [vmem:[%s3678_s1] sm:$0xff] (!%p165_p2)   ;;  %s191_s21 = smul.u32 (!%p165_p2), 98, %s2297_s16  ;;  %v2684_v2 = vmov (!%p165_p2), 0.0|0.0   ;;  %v2438_v3 = vld [vmem:[%s3678_s1 + $0x8] sm:$0xff] (!%p165_p2)   ;;  %v2439_v5 = vld [vmem:[%s3678_s1 + $0x10] sm:$0xff] (!%p165_p2)   ;;  %vm2142_vm0 = vcmask (!%p165_p2), 130048  }
   0x6   : > { %168 = sbr.rel (%p165_p2) target bundleno = 679 (0x2a7), region = 36  ;;  %v2453_v1 = vld [vmem:[%s3678_s1 + $0x80] sm:$0xff] (!%p165_p2)   ;;  %2469 = vmatprep.subr.bf16.mxu1 (!%p165_p2), %v2684_v2  ;;  %2517 = vmatprep.subr.bf16.mxu0 (!%p165_p2), %v2684_v2  ;;  %v2454_v4 = vld [vmem:[%s3678_s1 + $0x88] sm:$0xff] (!%p165_p2)   ;;  %v2455_v6 = vld [vmem:[%s3678_s1 + $0x90] sm:$0xff] (!%p165_p2)  }
   0x7   : > { %2471 = vmatpush1.bf16.msra.mxu1 (!%p165_p2), %v2311_v0  ;;  %2519 = vmatpush1.bf16.msra.mxu0 (!%p165_p2), %v2453_v1  ;;  %p192_p3 = scmp.lt.s32.totalorder (!%p165_p2), %s191_s21, 195  ;;  %v2440_v8 = vld [vmem:[%s3678_s1 + $0x18] sm:$0xff] (!%p165_p2)   ;;  %v2441_v11 = vld [vmem:[%s3678_s1 + $0x20] sm:$0xff] (!%p165_p2)   ;;  %v2442_v13 = vld [vmem:[%s3678_s1 + $0x28] sm:$0xff] (!%p165_p2)  }
   0x8   : > { %2472 = vmatprep.subr.bf16.mxu1 (!%p165_p2), %v2684_v2  ;;  %2520 = vmatprep.subr.bf16.mxu0 (!%p165_p2), %v2684_v2  ;;  %v2456_v9 = vld [vmem:[%s3678_s1 + $0x98] sm:$0xff] (!%p165_p2)   ;;  %v2457_v12 = vld [vmem:[%s3678_s1 + $0xa0] sm:$0xff] (!%p165_p2)   ;;  %v2458_v14 = vld [vmem:[%s3678_s1 + $0xa8] sm:$0xff] (!%p165_p2)  }
   0x9   : > { %v2443_v15 = vld [vmem:[%s3678_s1 + $0x30] sm:$0xff] (!%p165_p2)   ;;  %v2444_v17 = vld [vmem:[%s3678_s1 + $0x38] sm:$0xff] (!%p165_p2)   ;;  %v2445_v19 = vld [vmem:[%s3678_s1 + $0x40] sm:$0xff] (!%p165_p2)  }
   0xa   : > { %v2459_v16 = vld [vmem:[%s3678_s1 + $0xb0] sm:$0xff] (!%p165_p2)   ;;  %v2460_v18 = vld [vmem:[%s3678_s1 + $0xb8] sm:$0xff] (!%p165_p2)   ;;  %v2461_v20 = vld [vmem:[%s3678_s1 + $0xc0] sm:$0xff] (!%p165_p2)  }
   0xb   : > { %2474 = vmatpush1.bf16.msra.mxu1 (!%p165_p2), %v2438_v3  ;;  %2522 = vmatpush1.bf16.msra.mxu0 (!%p165_p2), %v2454_v4  ;;  %v2446_v21 = vld [vmem:[%s3678_s1 + $0x48] sm:$0xff] (!%p165_p2)   ;;  %v2447_v23 = vld [vmem:[%s3678_s1 + $0x50] sm:$0xff] (!%p165_p2)   ;;  %v2448_v25 = vld [vmem:[%s3678_s1 + $0x58] sm:$0xff] (!%p165_p2)  }
   0xc   : > { %2475 = vmatprep.subr.bf16.mxu1 (!%p165_p2), %v2684_v2  ;;  %2523 = vmatprep.subr.bf16.mxu0 (!%p165_p2), %v2684_v2  ;;  %v2462_v22 = vld [vmem:[%s3678_s1 + $0xc8] sm:$0xff] (!%p165_p2)   ;;  %v2463_v24 = vld [vmem:[%s3678_s1 + $0xd0] sm:$0xff] (!%p165_p2)   ;;  %v2464_v26 = vld [vmem:[%s3678_s1 + $0xd8] sm:$0xff] (!%p165_p2)  }
   0xd   : > { %s3683_s21 = smov (!%p192_p3, %s191_s21), 195  ;;  %v2449_v27 = vld [vmem:[%s3678_s1 + $0x60] sm:$0xff]   ;;  %v2450_v29 = vld [vmem:[%s3678_s1 + $0x68] sm:$0xff]   ;;  %v2451_v31 = vld [vmem:[%s3678_s1 + $0x70] sm:$0xff]  }
   0xe   : > { %s2309_s26 = sshll.u32 %s3683_s21, 5  ;;  %v2465_v28 = vld [vmem:[%s3678_s1 + $0xe0] sm:$0xff]   ;;  %v2466_v30 = vld [vmem:[%s3678_s1 + $0xe8] sm:$0xff]   ;;  %v2467_v32 = vld [vmem:[%s3678_s1 + $0xf0] sm:$0xff]   ;;  %s2304_s19 = sshll.u32 %s3683_s21, 3 }
   0xf   : > { %s2748_s7 = scalar_lea.vmem %s3677_s0, %s2309_s26  ;;  %2477 = vmatpush1.bf16.msra.mxu1 %v2439_v5  ;;  %2525 = vmatpush1.bf16.msra.mxu0 %v2455_v6  ;;  %v2452_v33 = vld [vmem:[%s3678_s1 + $0x78] sm:$0xff]   ;;  %s3092_s21 = scalar_lea.vmem %s3681_s4, %s2304_s19 }
  0x10   : > { %v333_v7 = vld [vmem:[%s2748_s7 + $0x8] sm:$0xff]  ;;  %2478 = vmatprep.subr.bf16.mxu1 %v2684_v2  ;;  %2526 = vmatprep.subr.bf16.mxu0 %v2684_v2  ;;  %v335_v10 = vld [vmem:[%s2748_s7 + $0x18] sm:$0xff]  ;;  %v332_v35 = vld [vmem:[%s2748_s7] sm:$0xff] }
  0x11   : > { %788 = vmatprep.mubr.f32.mxu1 %v333_v7  ;;  %1343 = vmatprep.mubr.f32.mxu0 %v335_v10  ;;  %v2468_v34 = vld [vmem:[%s3678_s1 + $0xf8] sm:$0xff]   ;;  %v334_v36 = vld [vmem:[%s2748_s7 + $0x10] sm:$0xff]  ;;  %v337_v37 = vld [vmem:[%s2748_s7 + $0x28] sm:$0xff] }
  0x12   : > { %v339_v38 = vld [vmem:[%s2748_s7 + $0x38] sm:$0xff]  ;;  %v336_v39 = vld [vmem:[%s2748_s7 + $0x20] sm:$0xff]  ;;  %v338_v40 = vld [vmem:[%s2748_s7 + $0x30] sm:$0xff] }
  0x13   : > { %2480 = vmatpush1.bf16.msra.mxu1 %v2440_v8  ;;  %2528 = vmatpush1.bf16.msra.mxu0 %v2456_v9  ;;  %v341_v41 = vld [vmem:[%s2748_s7 + $0x48] sm:$0xff]  ;;  %v343_v42 = vld [vmem:[%s2748_s7 + $0x58] sm:$0xff]  ;;  %v340_v43 = vld [vmem:[%s2748_s7 + $0x40] sm:$0xff] }
  0x14   : > { %2481 = vmatprep.subr.bf16.mxu1 %v2684_v2  ;;  %2529 = vmatprep.subr.bf16.mxu0 %v2684_v2  ;;  %v342_v44 = vld [vmem:[%s2748_s7 + $0x50] sm:$0xff]  ;;  %v345_v45 = vld [vmem:[%s2748_s7 + $0x68] sm:$0xff]  ;;  %v347_v46 = vld [vmem:[%s2748_s7 + $0x78] sm:$0xff] }
  0x15   : > { %v344_v47 = vld [vmem:[%s2748_s7 + $0x60] sm:$0xff]  ;;  %v346_v48 = vld [vmem:[%s2748_s7 + $0x70] sm:$0xff]  ;;  %v349_v49 = vld [vmem:[%s2748_s7 + $0x88] sm:$0xff] }
  0x16   : > { %v351_v50 = vld [vmem:[%s2748_s7 + $0x98] sm:$0xff]  ;;  %v348_v51 = vld [vmem:[%s2748_s7 + $0x80] sm:$0xff]  ;;  %v350_v52 = vld [vmem:[%s2748_s7 + $0x90] sm:$0xff] }
  0x17   : > { %2483 = vmatpush1.bf16.msra.mxu1 %v2441_v11  ;;  %2531 = vmatpush1.bf16.msra.mxu0 %v2457_v12  ;;  %v353_v53 = vld [vmem:[%s2748_s7 + $0xa8] sm:$0xff]  ;;  %v355_v54 = vld [vmem:[%s2748_s7 + $0xb8] sm:$0xff]  ;;  %v352_v55 = vld [vmem:[%s2748_s7 + $0xa0] sm:$0xff] }
  0x18   : > { %2484 = vmatprep.subr.bf16.mxu1 %v2684_v2  ;;  %2532 = vmatprep.subr.bf16.mxu0 %v2684_v2  ;;  %v354_v56 = vld [vmem:[%s2748_s7 + $0xb0] sm:$0xff]  ;;  %v357_v57 = vld [vmem:[%s2748_s7 + $0xc8] sm:$0xff]  ;;  %v359_v58 = vld [vmem:[%s2748_s7 + $0xd8] sm:$0xff] }
  0x19   : > { %v356_v59 = vld [vmem:[%s2748_s7 + $0xc0] sm:$0xff]  ;;  %v358_v60 = vld [vmem:[%s2748_s7 + $0xd0] sm:$0xff]  ;;  %v361_v61 = vld [vmem:[%s2748_s7 + $0xe8] sm:$0xff] }
  0x1a   : > { %v363_v62 = vld [vmem:[%s2748_s7 + $0xf8] sm:$0xff]  ;;  %v360_v63 = vld [vmem:[%s2748_s7 + $0xe0] sm:$0xff]  ;;  %v362_v0 = vld [vmem:[%s2748_s7 + $0xf0] sm:$0xff] }
  0x1b   : > { %2486 = vmatpush1.bf16.msra.mxu1 %v2442_v13  ;;  %2534 = vmatpush1.bf16.msra.mxu0 %v2458_v14  ;;  %v365_v1 = vld [vmem:[%s2748_s7 + $0x108] sm:$0xff]  ;;  %v364_v3 = vld [vmem:[%s2748_s7 + $0x100] sm:$0xff]  ;;  %v366_v4 = vld [vmem:[%s2748_s7 + $0x110] sm:$0xff] }
  0x1c   : > { %2487 = vmatprep.subr.bf16.mxu1 %v2684_v2  ;;  %2535 = vmatprep.subr.bf16.mxu0 %v2684_v2  ;;  %v369_v5 = vld [vmem:[%s2748_s7 + $0x128] sm:$0xff]  ;;  %v371_v6 = vld [vmem:[%s2748_s7 + $0x138] sm:$0xff]  ;;  %v368_v7 = vld [vmem:[%s2748_s7 + $0x120] sm:$0xff] }
  0x1d   : > { %v370_v8 = vld [vmem:[%s2748_s7 + $0x130] sm:$0xff]  ;;  %v373_v9 = vld [vmem:[%s2748_s7 + $0x148] sm:$0xff]  ;;  %v375_v10 = vld [vmem:[%s2748_s7 + $0x158] sm:$0xff] }
  0x1e   : > { %v372_v11 = vld [vmem:[%s2748_s7 + $0x140] sm:$0xff]  ;;  %v374_v12 = vld [vmem:[%s2748_s7 + $0x150] sm:$0xff]  ;;  %v377_v13 = vld [vmem:[%s2748_s7 + $0x168] sm:$0xff] }
  0x1f   : > { %2489 = vmatpush1.bf16.msra.mxu1 %v2443_v15  ;;  %2537 = vmatpush1.bf16.msra.mxu0 %v2459_v16  ;;  %v379_v14 = vld [vmem:[%s2748_s7 + $0x178] sm:$0xff]  ;;  %v376_v15 = vld [vmem:[%s2748_s7 + $0x160] sm:$0xff]  ;;  %v378_v16 = vld [vmem:[%s2748_s7 + $0x170] sm:$0xff] }
  0x20   : > { %2490 = vmatprep.subr.bf16.mxu1 %v2684_v2  ;;  %2538 = vmatprep.subr.bf16.mxu0 %v2684_v2 }
  0x23   : > { %2492 = vmatpush1.bf16.msra.mxu1 %v2444_v17  ;;  %2540 = vmatpush1.bf16.msra.mxu0 %v2460_v18  ;;  %v381_v17 = vld [vmem:[%s2748_s7 + $0x188] sm:$0xff]  ;;  %v383_v18 = vld [vmem:[%s2748_s7 + $0x198] sm:$0xff] }
  0x24   : > { %2493 = vmatprep.subr.bf16.mxu1 %v2684_v2  ;;  %2541 = vmatprep.subr.bf16.mxu0 %v2684_v2 }
  0x27   : > { %2495 = vmatpush1.bf16.msra.mxu1 %v2445_v19  ;;  %2543 = vmatpush1.bf16.msra.mxu0 %v2461_v20  ;;  %v380_v19 = vld [vmem:[%s2748_s7 + $0x180] sm:$0xff]  ;;  %v382_v20 = vld [vmem:[%s2748_s7 + $0x190] sm:$0xff] }
  0x28   : > { %2496 = vmatprep.subr.bf16.mxu1 %v2684_v2  ;;  %2544 = vmatprep.subr.bf16.mxu0 %v2684_v2 }
  0x2b   : > { %2498 = vmatpush1.bf16.msra.mxu1 %v2446_v21  ;;  %2546 = vmatpush1.bf16.msra.mxu0 %v2462_v22  ;;  %v385_v21 = vld [vmem:[%s2748_s7 + $0x1a8] sm:$0xff]  ;;  %v387_v22 = vld [vmem:[%s2748_s7 + $0x1b8] sm:$0xff] }
  0x2c   : > { %2499 = vmatprep.subr.bf16.mxu1 %v2684_v2  ;;  %2547 = vmatprep.subr.bf16.mxu0 %v2684_v2 }
  0x2f   : > { %2501 = vmatpush1.bf16.msra.mxu1 %v2447_v23  ;;  %2549 = vmatpush1.bf16.msra.mxu0 %v2463_v24  ;;  %v384_v23 = vld [vmem:[%s2748_s7 + $0x1a0] sm:$0xff]  ;;  %v386_v24 = vld [vmem:[%s2748_s7 + $0x1b0] sm:$0xff] }
  0x30   : > { %2502 = vmatprep.subr.bf16.mxu1 %v2684_v2  ;;  %2550 = vmatprep.subr.bf16.mxu0 %v2684_v2 }
  0x33   : > { %2504 = vmatpush1.bf16.msra.mxu1 %v2448_v25  ;;  %2552 = vmatpush1.bf16.msra.mxu0 %v2464_v26  ;;  %v389_v25 = vld [vmem:[%s2748_s7 + $0x1c8] sm:$0xff]  ;;  %v391_v26 = vld [vmem:[%s2748_s7 + $0x1d8] sm:$0xff] }
  0x34   : > { %2505 = vmatprep.subr.bf16.mxu1 %v2684_v2  ;;  %2553 = vmatprep.subr.bf16.mxu0 %v2684_v2 }
  0x37   : > { %2507 = vmatpush1.bf16.msra.mxu1 %v2449_v27  ;;  %2555 = vmatpush1.bf16.msra.mxu0 %v2465_v28  ;;  %v388_v27 = vld [vmem:[%s2748_s7 + $0x1c0] sm:$0xff]  ;;  %v390_v28 = vld [vmem:[%s2748_s7 + $0x1d0] sm:$0xff] }
  0x38   : > { %2508 = vmatprep.subr.bf16.mxu1 %v2684_v2  ;;  %2556 = vmatprep.subr.bf16.mxu0 %v2684_v2 }
  0x3b   : > { %2510 = vmatpush1.bf16.msra.mxu1 %v2450_v29  ;;  %2558 = vmatpush1.bf16.msra.mxu0 %v2466_v30  ;;  %v393_v29 = vld [vmem:[%s2748_s7 + $0x1e8] sm:$0xff]  ;;  %v395_v30 = vld [vmem:[%s2748_s7 + $0x1f8] sm:$0xff] }
  0x3c   : > { %2511 = vmatprep.subr.bf16.mxu1 %v2684_v2  ;;  %2559 = vmatprep.subr.bf16.mxu0 %v2684_v2 }
  0x3f   : > { %2513 = vmatpush1.bf16.msra.mxu1 %v2451_v31  ;;  %2561 = vmatpush1.bf16.msra.mxu0 %v2467_v32  ;;  %v392_v31 = vld [vmem:[%s2748_s7 + $0x1e0] sm:$0xff]  ;;  %v394_v32 = vld [vmem:[%s2748_s7 + $0x1f0] sm:$0xff] }
  0x40   : > { %2514 = vmatprep.subr.bf16.mxu1 %v2684_v2  ;;  %2562 = vmatprep.subr.bf16.mxu0 %v2684_v2  ;;  %v367_v2 = vld [vmem:[%s2748_s7 + $0x118] sm:$0xff] }
  0x43   : > { %2516 = vmatpush1.bf16.msra.mxu1 %v2452_v33  ;;  %2564 = vmatpush1.bf16.msra.mxu0 %v2468_v34  ;;  %v397_v33 = vld [vmem:[%s2748_s7 + $0x208] sm:$0xff]  ;;  %v399_v34 = vld [vmem:[%s2748_s7 + $0x218] sm:$0xff] }
  0x46   : > { %789 = vmatmul.mubr.f32.vlgmr.msra.gmra.mrb[0].mxu1 %v332_v35  ;;  %1344 = vmatmul.mubr.f32.vlgmr.msra.gmra.mrb[0].mxu0 %v334_v36  ;;  %v396_v35 = vld [vmem:[%s2748_s7 + $0x200] sm:$0xff]  ;;  %v398_v36 = vld [vmem:[%s2748_s7 + $0x210] sm:$0xff] }
  0x47   : > { %793 = vmatprep.mubr.f32.mxu1 %v337_v37  ;;  %1348 = vmatprep.mubr.f32.mxu0 %v339_v38  ;;  %v401_v37 = vld [vmem:[%s2748_s7 + $0x228] sm:$0xff]  ;;  %v403_v38 = vld [vmem:[%s2748_s7 + $0x238] sm:$0xff] }
  0x4a   : > { %794 = vmatmul.mubr.f32.gmra.mrb[2].mxu1 %v336_v39  ;;  %1349 = vmatmul.mubr.f32.gmra.mrb[2].mxu0 %v338_v40  ;;  %v400_v39 = vld [vmem:[%s2748_s7 + $0x220] sm:$0xff]  ;;  %v402_v40 = vld [vmem:[%s2748_s7 + $0x230] sm:$0xff] }
  0x4b   : > { %798 = vmatprep.mubr.f32.mxu1 %v341_v41  ;;  %1353 = vmatprep.mubr.f32.mxu0 %v343_v42  ;;  %v405_v41 = vld [vmem:[%s2748_s7 + $0x248] sm:$0xff]  ;;  %v407_v42 = vld [vmem:[%s2748_s7 + $0x258] sm:$0xff] }
  0x4e   : > { %799 = vmatmul.mubr.f32.gmra.mrb[4].mxu1 %v340_v43  ;;  %1354 = vmatmul.mubr.f32.gmra.mrb[4].mxu0 %v342_v44  ;;  %v404_v43 = vld [vmem:[%s2748_s7 + $0x240] sm:$0xff]  ;;  %v406_v44 = vld [vmem:[%s2748_s7 + $0x250] sm:$0xff] }
  0x4f   : > { %803 = vmatprep.mubr.f32.mxu1 %v345_v45  ;;  %1358 = vmatprep.mubr.f32.mxu0 %v347_v46  ;;  %v409_v45 = vld [vmem:[%s2748_s7 + $0x268] sm:$0xff]  ;;  %v411_v46 = vld [vmem:[%s2748_s7 + $0x278] sm:$0xff] }
  0x52   : > { %804 = vmatmul.mubr.f32.gmra.mrb[6].mxu1 %v344_v47  ;;  %1359 = vmatmul.mubr.f32.gmra.mrb[6].mxu0 %v346_v48  ;;  %v408_v47 = vld [vmem:[%s2748_s7 + $0x260] sm:$0xff]  ;;  %v410_v48 = vld [vmem:[%s2748_s7 + $0x270] sm:$0xff] }
  0x53   : > { %808 = vmatprep.mubr.f32.mxu1 %v349_v49  ;;  %1363 = vmatprep.mubr.f32.mxu0 %v351_v50  ;;  %v413_v49 = vld [vmem:[%s2748_s7 + $0x288] sm:$0xff]  ;;  %v415_v50 = vld [vmem:[%s2748_s7 + $0x298] sm:$0xff] }
  0x56   : > { %809 = vmatmul.mubr.f32.gmra.mrb[8].mxu1 %v348_v51  ;;  %1364 = vmatmul.mubr.f32.gmra.mrb[8].mxu0 %v350_v52  ;;  %v412_v51 = vld [vmem:[%s2748_s7 + $0x280] sm:$0xff]  ;;  %v414_v52 = vld [vmem:[%s2748_s7 + $0x290] sm:$0xff] }
  0x57   : > { %813 = vmatprep.mubr.f32.mxu1 %v353_v53  ;;  %1368 = vmatprep.mubr.f32.mxu0 %v355_v54  ;;  %v417_v53 = vld [vmem:[%s2748_s7 + $0x2a8] sm:$0xff]  ;;  %v419_v54 = vld [vmem:[%s2748_s7 + $0x2b8] sm:$0xff] }
  0x5a   : > { %814 = vmatmul.mubr.f32.gmra.mrb[10].mxu1 %v352_v55  ;;  %1369 = vmatmul.mubr.f32.gmra.mrb[10].mxu0 %v354_v56  ;;  %v416_v55 = vld [vmem:[%s2748_s7 + $0x2a0] sm:$0xff]  ;;  %v418_v56 = vld [vmem:[%s2748_s7 + $0x2b0] sm:$0xff] }
  0x5b   : > { %818 = vmatprep.mubr.f32.mxu1 %v357_v57  ;;  %1373 = vmatprep.mubr.f32.mxu0 %v359_v58  ;;  %v421_v57 = vld [vmem:[%s2748_s7 + $0x2c8] sm:$0xff]  ;;  %v423_v58 = vld [vmem:[%s2748_s7 + $0x2d8] sm:$0xff] }
  0x5e   : > { %819 = vmatmul.mubr.f32.gmra.mrb[12].mxu1 %v356_v59  ;;  %1374 = vmatmul.mubr.f32.gmra.mrb[12].mxu0 %v358_v60  ;;  %v420_v59 = vld [vmem:[%s2748_s7 + $0x2c0] sm:$0xff]  ;;  %v422_v60 = vld [vmem:[%s2748_s7 + $0x2d0] sm:$0xff] }
  0x5f   : > { %823 = vmatprep.mubr.f32.mxu1 %v361_v61  ;;  %1378 = vmatprep.mubr.f32.mxu0 %v363_v62  ;;  %v425_v61 = vld [vmem:[%s2748_s7 + $0x2e8] sm:$0xff]  ;;  %v427_v62 = vld [vmem:[%s2748_s7 + $0x2f8] sm:$0xff] }
  0x62   : > { %824 = vmatmul.mubr.f32.gmra.mrb[14].mxu1 %v360_v63  ;;  %1379 = vmatmul.mubr.f32.gmra.mrb[14].mxu0 %v362_v0  ;;  %v424_v63 = vld [vmem:[%s2748_s7 + $0x2e0] sm:$0xff]  ;;  %v426_v0 = vld [vmem:[%s2748_s7 + $0x2f0] sm:$0xff] }
  0x63   : > { %828 = vmatprep.mubr.f32.mxu1 %v365_v1  ;;  %1383 = vmatprep.mubr.f32.mxu0 %v367_v2  ;;  %v429_v1 = vld [vmem:[%s2748_s7 + $0x308] sm:$0xff]  ;;  %v431_v2 = vld [vmem:[%s2748_s7 + $0x318] sm:$0xff] }
  0x66   : > { %829 = vmatmul.mubr.f32.gmra.mrb[16].mxu1 %v364_v3  ;;  %1384 = vmatmul.mubr.f32.gmra.mrb[16].mxu0 %v366_v4  ;;  %v428_v3 = vld [vmem:[%s2748_s7 + $0x300] sm:$0xff]  ;;  %v430_v4 = vld [vmem:[%s2748_s7 + $0x310] sm:$0xff] }
  0x67   : > { %833 = vmatprep.mubr.f32.mxu1 %v369_v5  ;;  %1388 = vmatprep.mubr.f32.mxu0 %v371_v6  ;;  %v433_v5 = vld [vmem:[%s2748_s7 + $0x328] sm:$0xff]  ;;  %v435_v6 = vld [vmem:[%s2748_s7 + $0x338] sm:$0xff] }
  0x6a   : > { %834 = vmatmul.mubr.f32.gmra.mrb[18].mxu1 %v368_v7  ;;  %1389 = vmatmul.mubr.f32.gmra.mrb[18].mxu0 %v370_v8  ;;  %v432_v7 = vld [vmem:[%s2748_s7 + $0x320] sm:$0xff]  ;;  %v434_v8 = vld [vmem:[%s2748_s7 + $0x330] sm:$0xff] }
  0x6b   : > { %838 = vmatprep.mubr.f32.mxu1 %v373_v9  ;;  %1393 = vmatprep.mubr.f32.mxu0 %v375_v10  ;;  %v437_v9 = vld [vmem:[%s2748_s7 + $0x348] sm:$0xff]  ;;  %v439_v10 = vld [vmem:[%s2748_s7 + $0x358] sm:$0xff] }
  0x6e   : > { %839 = vmatmul.mubr.f32.gmra.mrb[20].mxu1 %v372_v11  ;;  %1394 = vmatmul.mubr.f32.gmra.mrb[20].mxu0 %v374_v12  ;;  %v436_v11 = vld [vmem:[%s2748_s7 + $0x340] sm:$0xff]  ;;  %v438_v12 = vld [vmem:[%s2748_s7 + $0x350] sm:$0xff] }
  0x6f   : > { %843 = vmatprep.mubr.f32.mxu1 %v377_v13  ;;  %1398 = vmatprep.mubr.f32.mxu0 %v379_v14  ;;  %v441_v13 = vld [vmem:[%s2748_s7 + $0x368] sm:$0xff]  ;;  %v443_v14 = vld [vmem:[%s2748_s7 + $0x378] sm:$0xff] }
  0x72   : > { %844 = vmatmul.mubr.f32.gmra.mrb[22].mxu1 %v376_v15  ;;  %1399 = vmatmul.mubr.f32.gmra.mrb[22].mxu0 %v378_v16  ;;  %v440_v15 = vld [vmem:[%s2748_s7 + $0x360] sm:$0xff]  ;;  %v442_v16 = vld [vmem:[%s2748_s7 + $0x370] sm:$0xff] }
  0x73   : > { %848 = vmatprep.mubr.f32.mxu1 %v381_v17  ;;  %1403 = vmatprep.mubr.f32.mxu0 %v383_v18  ;;  %v445_v17 = vld [vmem:[%s2748_s7 + $0x388] sm:$0xff]  ;;  %v447_v18 = vld [vmem:[%s2748_s7 + $0x398] sm:$0xff] }
  0x76   : > { %849 = vmatmul.mubr.f32.gmra.mrb[24].mxu1 %v380_v19  ;;  %1404 = vmatmul.mubr.f32.gmra.mrb[24].mxu0 %v382_v20  ;;  %v444_v19 = vld [vmem:[%s2748_s7 + $0x380] sm:$0xff]  ;;  %v446_v20 = vld [vmem:[%s2748_s7 + $0x390] sm:$0xff] }
  0x77   : > { %853 = vmatprep.mubr.f32.mxu1 %v385_v21  ;;  %1408 = vmatprep.mubr.f32.mxu0 %v387_v22  ;;  %v449_v21 = vld [vmem:[%s2748_s7 + $0x3a8] sm:$0xff]  ;;  %v451_v22 = vld [vmem:[%s2748_s7 + $0x3b8] sm:$0xff] }
  0x7a   : > { %854 = vmatmul.mubr.f32.gmra.mrb[26].mxu1 %v384_v23  ;;  %1409 = vmatmul.mubr.f32.gmra.mrb[26].mxu0 %v386_v24  ;;  %v448_v23 = vld [vmem:[%s2748_s7 + $0x3a0] sm:$0xff]  ;;  %v450_v24 = vld [vmem:[%s2748_s7 + $0x3b0] sm:$0xff] }
  0x7b   : > { %858 = vmatprep.mubr.f32.mxu1 %v389_v25  ;;  %1413 = vmatprep.mubr.f32.mxu0 %v391_v26  ;;  %v453_v25 = vld [vmem:[%s2748_s7 + $0x3c8] sm:$0xff]  ;;  %v455_v26 = vld [vmem:[%s2748_s7 + $0x3d8] sm:$0xff] }
  0x7e   : > { %859 = vmatmul.mubr.f32.gmra.mrb[28].mxu1 %v388_v27  ;;  %1414 = vmatmul.mubr.f32.gmra.mrb[28].mxu0 %v390_v28  ;;  %v452_v27 = vld [vmem:[%s2748_s7 + $0x3c0] sm:$0xff]  ;;  %v454_v28 = vld [vmem:[%s2748_s7 + $0x3d0] sm:$0xff] }
  0x7f   : > { %863 = vmatprep.mubr.f32.mxu1 %v393_v29  ;;  %1418 = vmatprep.mubr.f32.mxu0 %v395_v30  ;;  %v457_v29 = vld [vmem:[%s2748_s7 + $0x3e8] sm:$0xff]  ;;  %v459_v30 = vld [vmem:[%s2748_s7 + $0x3f8] sm:$0xff] }
  0x82   : > { %864 = vmatmul.mubr.f32.gmra.mrb[30].mxu1 %v392_v31  ;;  %1419 = vmatmul.mubr.f32.gmra.mrb[30].mxu0 %v394_v32  ;;  %v456_v31 = vld [vmem:[%s2748_s7 + $0x3e0] sm:$0xff]  ;;  %v458_v32 = vld [vmem:[%s2748_s7 + $0x3f0] sm:$0xff] }
  0x83   : > { %868 = vmatprep.mubr.f32.mxu1 %v397_v33  ;;  %1423 = vmatprep.mubr.f32.mxu0 %v399_v34  ;;  %v461_v33 = vld [vmem:[%s2748_s7 + $0x408] sm:$0xff]  ;;  %v463_v34 = vld [vmem:[%s2748_s7 + $0x418] sm:$0xff] }
  0x86   : > { %869 = vmatmul.mubr.f32.gmra.mrb[32].mxu1 %v396_v35  ;;  %1424 = vmatmul.mubr.f32.gmra.mrb[32].mxu0 %v398_v36  ;;  %v460_v35 = vld [vmem:[%s2748_s7 + $0x400] sm:$0xff]  ;;  %v462_v36 = vld [vmem:[%s2748_s7 + $0x410] sm:$0xff] }
  0x87   : > { %873 = vmatprep.mubr.f32.mxu1 %v401_v37  ;;  %1428 = vmatprep.mubr.f32.mxu0 %v403_v38  ;;  %v465_v37 = vld [vmem:[%s2748_s7 + $0x428] sm:$0xff]  ;;  %v467_v38 = vld [vmem:[%s2748_s7 + $0x438] sm:$0xff] }
  0x8a   : > { %874 = vmatmul.mubr.f32.gmra.mrb[34].mxu1 %v400_v39  ;;  %1429 = vmatmul.mubr.f32.gmra.mrb[34].mxu0 %v402_v40  ;;  %v464_v39 = vld [vmem:[%s2748_s7 + $0x420] sm:$0xff]  ;;  %v466_v40 = vld [vmem:[%s2748_s7 + $0x430] sm:$0xff] }
  0x8b   : > { %878 = vmatprep.mubr.f32.mxu1 %v405_v41  ;;  %1433 = vmatprep.mubr.f32.mxu0 %v407_v42  ;;  %v469_v41 = vld [vmem:[%s2748_s7 + $0x448] sm:$0xff]  ;;  %v471_v42 = vld [vmem:[%s2748_s7 + $0x458] sm:$0xff] }
  0x8e   : > { %879 = vmatmul.mubr.f32.gmra.mrb[36].mxu1 %v404_v43  ;;  %1434 = vmatmul.mubr.f32.gmra.mrb[36].mxu0 %v406_v44  ;;  %v468_v43 = vld [vmem:[%s2748_s7 + $0x440] sm:$0xff]  ;;  %v470_v44 = vld [vmem:[%s2748_s7 + $0x450] sm:$0xff] }
  0x8f   : > { %883 = vmatprep.mubr.f32.mxu1 %v409_v45  ;;  %1438 = vmatprep.mubr.f32.mxu0 %v411_v46  ;;  %v473_v45 = vld [vmem:[%s2748_s7 + $0x468] sm:$0xff]  ;;  %v475_v46 = vld [vmem:[%s2748_s7 + $0x478] sm:$0xff] }
  0x92   : > { %884 = vmatmul.mubr.f32.gmra.mrb[38].mxu1 %v408_v47  ;;  %1439 = vmatmul.mubr.f32.gmra.mrb[38].mxu0 %v410_v48  ;;  %v472_v47 = vld [vmem:[%s2748_s7 + $0x460] sm:$0xff]  ;;  %v474_v48 = vld [vmem:[%s2748_s7 + $0x470] sm:$0xff] }
  0x93   : > { %888 = vmatprep.mubr.f32.mxu1 %v413_v49  ;;  %1443 = vmatprep.mubr.f32.mxu0 %v415_v50  ;;  %v477_v49 = vld [vmem:[%s2748_s7 + $0x488] sm:$0xff]  ;;  %v479_v50 = vld [vmem:[%s2748_s7 + $0x498] sm:$0xff] }
  0x96   : > { %889 = vmatmul.mubr.f32.gmra.mrb[40].mxu1 %v412_v51  ;;  %1444 = vmatmul.mubr.f32.gmra.mrb[40].mxu0 %v414_v52  ;;  %v476_v51 = vld [vmem:[%s2748_s7 + $0x480] sm:$0xff]  ;;  %v478_v52 = vld [vmem:[%s2748_s7 + $0x490] sm:$0xff] }
  0x97   : > { %893 = vmatprep.mubr.f32.mxu1 %v417_v53  ;;  %1448 = vmatprep.mubr.f32.mxu0 %v419_v54  ;;  %v481_v53 = vld [vmem:[%s2748_s7 + $0x4a8] sm:$0xff]  ;;  %v483_v54 = vld [vmem:[%s2748_s7 + $0x4b8] sm:$0xff] }
  0x9a   : > { %894 = vmatmul.mubr.f32.gmra.mrb[42].mxu1 %v416_v55  ;;  %1449 = vmatmul.mubr.f32.gmra.mrb[42].mxu0 %v418_v56  ;;  %v480_v55 = vld [vmem:[%s2748_s7 + $0x4a0] sm:$0xff]  ;;  %v482_v56 = vld [vmem:[%s2748_s7 + $0x4b0] sm:$0xff] }
  0x9b   : > { %898 = vmatprep.mubr.f32.mxu1 %v421_v57  ;;  %1453 = vmatprep.mubr.f32.mxu0 %v423_v58  ;;  %v485_v57 = vld [vmem:[%s2748_s7 + $0x4c8] sm:$0xff]  ;;  %v487_v58 = vld [vmem:[%s2748_s7 + $0x4d8] sm:$0xff] }
  0x9e   : > { %899 = vmatmul.mubr.f32.gmra.mrb[44].mxu1 %v420_v59  ;;  %1454 = vmatmul.mubr.f32.gmra.mrb[44].mxu0 %v422_v60  ;;  %v484_v59 = vld [vmem:[%s2748_s7 + $0x4c0] sm:$0xff]  ;;  %v486_v60 = vld [vmem:[%s2748_s7 + $0x4d0] sm:$0xff] }
  0x9f   : > { %903 = vmatprep.mubr.f32.mxu1 %v425_v61  ;;  %1458 = vmatprep.mubr.f32.mxu0 %v427_v62  ;;  %v489_v61 = vld [vmem:[%s2748_s7 + $0x4e8] sm:$0xff]  ;;  %v491_v62 = vld [vmem:[%s2748_s7 + $0x4f8] sm:$0xff] }
  0xa2   : > { %904 = vmatmul.mubr.f32.gmra.mrb[46].mxu1 %v424_v63  ;;  %1459 = vmatmul.mubr.f32.gmra.mrb[46].mxu0 %v426_v0  ;;  %v488_v63 = vld [vmem:[%s2748_s7 + $0x4e0] sm:$0xff]  ;;  %v490_v0 = vld [vmem:[%s2748_s7 + $0x4f0] sm:$0xff] }
  0xa3   : > { %908 = vmatprep.mubr.f32.mxu1 %v429_v1  ;;  %1463 = vmatprep.mubr.f32.mxu0 %v431_v2  ;;  %v493_v1 = vld [vmem:[%s2748_s7 + $0x508] sm:$0xff]  ;;  %v495_v2 = vld [vmem:[%s2748_s7 + $0x518] sm:$0xff] }
  0xa6   : > { %909 = vmatmul.mubr.f32.gmra.mrb[48].mxu1 %v428_v3  ;;  %1464 = vmatmul.mubr.f32.gmra.mrb[48].mxu0 %v430_v4  ;;  %v492_v3 = vld [vmem:[%s2748_s7 + $0x500] sm:$0xff]  ;;  %v494_v4 = vld [vmem:[%s2748_s7 + $0x510] sm:$0xff] }
  0xa7   : > { %913 = vmatprep.mubr.f32.mxu1 %v433_v5  ;;  %1468 = vmatprep.mubr.f32.mxu0 %v435_v6  ;;  %v497_v5 = vld [vmem:[%s2748_s7 + $0x528] sm:$0xff]  ;;  %v499_v6 = vld [vmem:[%s2748_s7 + $0x538] sm:$0xff] }
  0xaa   : > { %914 = vmatmul.mubr.f32.gmra.mrb[50].mxu1 %v432_v7  ;;  %1469 = vmatmul.mubr.f32.gmra.mrb[50].mxu0 %v434_v8  ;;  %v496_v7 = vld [vmem:[%s2748_s7 + $0x520] sm:$0xff]  ;;  %v498_v8 = vld [vmem:[%s2748_s7 + $0x530] sm:$0xff] }
  0xab   : > { %918 = vmatprep.mubr.f32.mxu1 %v437_v9  ;;  %1473 = vmatprep.mubr.f32.mxu0 %v439_v10  ;;  %v501_v9 = vld [vmem:[%s2748_s7 + $0x548] sm:$0xff]  ;;  %v503_v10 = vld [vmem:[%s2748_s7 + $0x558] sm:$0xff] }
  0xae   : > { %919 = vmatmul.mubr.f32.gmra.mrb[52].mxu1 %v436_v11  ;;  %1474 = vmatmul.mubr.f32.gmra.mrb[52].mxu0 %v438_v12  ;;  %v500_v11 = vld [vmem:[%s2748_s7 + $0x540] sm:$0xff]  ;;  %v502_v12 = vld [vmem:[%s2748_s7 + $0x550] sm:$0xff] }
  0xaf   : > { %923 = vmatprep.mubr.f32.mxu1 %v441_v13  ;;  %1478 = vmatprep.mubr.f32.mxu0 %v443_v14  ;;  %v505_v13 = vld [vmem:[%s2748_s7 + $0x568] sm:$0xff]  ;;  %v507_v14 = vld [vmem:[%s2748_s7 + $0x578] sm:$0xff] }
  0xb2   : > { %924 = vmatmul.mubr.f32.gmra.mrb[54].mxu1 %v440_v15  ;;  %1479 = vmatmul.mubr.f32.gmra.mrb[54].mxu0 %v442_v16  ;;  %v504_v15 = vld [vmem:[%s2748_s7 + $0x560] sm:$0xff]  ;;  %v506_v16 = vld [vmem:[%s2748_s7 + $0x570] sm:$0xff] }
  0xb3   : > { %928 = vmatprep.mubr.f32.mxu1 %v445_v17  ;;  %1483 = vmatprep.mubr.f32.mxu0 %v447_v18  ;;  %v509_v17 = vld [vmem:[%s2748_s7 + $0x588] sm:$0xff]  ;;  %v511_v18 = vld [vmem:[%s2748_s7 + $0x598] sm:$0xff] }
  0xb6   : > { %929 = vmatmul.mubr.f32.gmra.mrb[56].mxu1 %v444_v19  ;;  %1484 = vmatmul.mubr.f32.gmra.mrb[56].mxu0 %v446_v20  ;;  %v508_v19 = vld [vmem:[%s2748_s7 + $0x580] sm:$0xff]  ;;  %v510_v20 = vld [vmem:[%s2748_s7 + $0x590] sm:$0xff] }
  0xb7   : > { %933 = vmatprep.mubr.f32.mxu1 %v449_v21  ;;  %1488 = vmatprep.mubr.f32.mxu0 %v451_v22  ;;  %v513_v21 = vld [vmem:[%s2748_s7 + $0x5a8] sm:$0xff]  ;;  %v515_v22 = vld [vmem:[%s2748_s7 + $0x5b8] sm:$0xff] }
  0xba   : > { %934 = vmatmul.mubr.f32.gmra.mrb[58].mxu1 %v448_v23  ;;  %1489 = vmatmul.mubr.f32.gmra.mrb[58].mxu0 %v450_v24  ;;  %v512_v23 = vld [vmem:[%s2748_s7 + $0x5a0] sm:$0xff]  ;;  %v514_v24 = vld [vmem:[%s2748_s7 + $0x5b0] sm:$0xff] }
  0xbb   : > { %938 = vmatprep.mubr.f32.mxu1 %v453_v25  ;;  %1493 = vmatprep.mubr.f32.mxu0 %v455_v26  ;;  %v517_v25 = vld [vmem:[%s2748_s7 + $0x5c8] sm:$0xff]  ;;  %v519_v26 = vld [vmem:[%s2748_s7 + $0x5d8] sm:$0xff] }
  0xbe   : > { %939 = vmatmul.mubr.f32.gmra.mrb[60].mxu1 %v452_v27  ;;  %1494 = vmatmul.mubr.f32.gmra.mrb[60].mxu0 %v454_v28  ;;  %v516_v27 = vld [vmem:[%s2748_s7 + $0x5c0] sm:$0xff]  ;;  %v518_v28 = vld [vmem:[%s2748_s7 + $0x5d0] sm:$0xff] }
  0xbf   : > { %943 = vmatprep.mubr.f32.mxu1 %v457_v29  ;;  %1498 = vmatprep.mubr.f32.mxu0 %v459_v30  ;;  %v521_v29 = vld [vmem:[%s2748_s7 + $0x5e8] sm:$0xff]  ;;  %v523_v30 = vld [vmem:[%s2748_s7 + $0x5f8] sm:$0xff] }
  0xc2   : > { %944 = vmatmul.mubr.f32.gmra.mrb[62].mxu1 %v456_v31  ;;  %1499 = vmatmul.mubr.f32.gmra.mrb[62].mxu0 %v458_v32  ;;  %v520_v31 = vld [vmem:[%s2748_s7 + $0x5e0] sm:$0xff]  ;;  %v522_v32 = vld [vmem:[%s2748_s7 + $0x5f0] sm:$0xff] }
  0xc3   : > { %948 = vmatprep.mubr.f32.mxu1 %v461_v33  ;;  %1503 = vmatprep.mubr.f32.mxu0 %v463_v34  ;;  %v525_v33 = vld [vmem:[%s2748_s7 + $0x608] sm:$0xff]  ;;  %v527_v34 = vld [vmem:[%s2748_s7 + $0x618] sm:$0xff] }
  0xc6   : > { %949 = vmatmul.mubr.f32.gmra.mrb[64].mxu1 %v460_v35  ;;  %1504 = vmatmul.mubr.f32.gmra.mrb[64].mxu0 %v462_v36  ;;  %v524_v35 = vld [vmem:[%s2748_s7 + $0x600] sm:$0xff]  ;;  %v526_v36 = vld [vmem:[%s2748_s7 + $0x610] sm:$0xff] }
  0xc7   : > { %953 = vmatprep.mubr.f32.mxu1 %v465_v37  ;;  %1508 = vmatprep.mubr.f32.mxu0 %v467_v38  ;;  %v529_v37 = vld [vmem:[%s2748_s7 + $0x628] sm:$0xff]  ;;  %v531_v38 = vld [vmem:[%s2748_s7 + $0x638] sm:$0xff] }
  0xca   : > { %954 = vmatmul.mubr.f32.gmra.mrb[66].mxu1 %v464_v39  ;;  %1509 = vmatmul.mubr.f32.gmra.mrb[66].mxu0 %v466_v40  ;;  %v528_v39 = vld [vmem:[%s2748_s7 + $0x620] sm:$0xff]  ;;  %v530_v40 = vld [vmem:[%s2748_s7 + $0x630] sm:$0xff] }
  0xcb   : > { %958 = vmatprep.mubr.f32.mxu1 %v469_v41  ;;  %1513 = vmatprep.mubr.f32.mxu0 %v471_v42  ;;  %v533_v41 = vld [vmem:[%s2748_s7 + $0x648] sm:$0xff]  ;;  %v535_v42 = vld [vmem:[%s2748_s7 + $0x658] sm:$0xff] }
  0xce   : > { %959 = vmatmul.mubr.f32.gmra.mrb[68].mxu1 %v468_v43  ;;  %1514 = vmatmul.mubr.f32.gmra.mrb[68].mxu0 %v470_v44  ;;  %v532_v43 = vld [vmem:[%s2748_s7 + $0x640] sm:$0xff]  ;;  %v534_v44 = vld [vmem:[%s2748_s7 + $0x650] sm:$0xff] }
  0xcf   : > { %963 = vmatprep.mubr.f32.mxu1 %v473_v45  ;;  %1518 = vmatprep.mubr.f32.mxu0 %v475_v46  ;;  %v537_v45 = vld [vmem:[%s2748_s7 + $0x668] sm:$0xff]  ;;  %v539_v46 = vld [vmem:[%s2748_s7 + $0x678] sm:$0xff] }
  0xd2   : > { %964 = vmatmul.mubr.f32.gmra.mrb[70].mxu1 %v472_v47  ;;  %1519 = vmatmul.mubr.f32.gmra.mrb[70].mxu0 %v474_v48  ;;  %v536_v47 = vld [vmem:[%s2748_s7 + $0x660] sm:$0xff]  ;;  %v538_v48 = vld [vmem:[%s2748_s7 + $0x670] sm:$0xff] }
  0xd3   : > { %968 = vmatprep.mubr.f32.mxu1 %v477_v49  ;;  %1523 = vmatprep.mubr.f32.mxu0 %v479_v50  ;;  %v541_v49 = vld [vmem:[%s2748_s7 + $0x688] sm:$0xff]  ;;  %v543_v50 = vld [vmem:[%s2748_s7 + $0x698] sm:$0xff] }
  0xd6   : > { %969 = vmatmul.mubr.f32.gmra.mrb[72].mxu1 %v476_v51  ;;  %1524 = vmatmul.mubr.f32.gmra.mrb[72].mxu0 %v478_v52  ;;  %v540_v51 = vld [vmem:[%s2748_s7 + $0x680] sm:$0xff]  ;;  %v542_v52 = vld [vmem:[%s2748_s7 + $0x690] sm:$0xff] }
  0xd7   : > { %973 = vmatprep.mubr.f32.mxu1 %v481_v53  ;;  %1528 = vmatprep.mubr.f32.mxu0 %v483_v54  ;;  %v545_v53 = vld [vmem:[%s2748_s7 + $0x6a8] sm:$0xff]  ;;  %v547_v54 = vld [vmem:[%s2748_s7 + $0x6b8] sm:$0xff] }
  0xda   : > { %974 = vmatmul.mubr.f32.gmra.mrb[74].mxu1 %v480_v55  ;;  %1529 = vmatmul.mubr.f32.gmra.mrb[74].mxu0 %v482_v56  ;;  %v544_v55 = vld [vmem:[%s2748_s7 + $0x6a0] sm:$0xff]  ;;  %v546_v56 = vld [vmem:[%s2748_s7 + $0x6b0] sm:$0xff] }
  0xdb   : > { %978 = vmatprep.mubr.f32.mxu1 %v485_v57  ;;  %1533 = vmatprep.mubr.f32.mxu0 %v487_v58  ;;  %v549_v57 = vld [vmem:[%s2748_s7 + $0x6c8] sm:$0xff]  ;;  %v551_v58 = vld [vmem:[%s2748_s7 + $0x6d8] sm:$0xff] }
  0xde   : > { %979 = vmatmul.mubr.f32.gmra.mrb[76].mxu1 %v484_v59  ;;  %1534 = vmatmul.mubr.f32.gmra.mrb[76].mxu0 %v486_v60 }
  0xdf   : > { %983 = vmatprep.mubr.f32.mxu1 %v489_v61  ;;  %1538 = vmatprep.mubr.f32.mxu0 %v491_v62  ;;  %v3075_v61 = vld [vmem:[%s3679_s2] ss:$0 sm:$0xff] }
  0xe2   : > { %984 = vmatmul.mubr.f32.gmra.mrb[78].mxu1 %v488_v63  ;;  %1539 = vmatmul.mubr.f32.gmra.mrb[78].mxu0 %v490_v0 }
  0xe3   : > { %988 = vmatprep.mubr.f32.mxu1 %v493_v1  ;;  %1543 = vmatprep.mubr.f32.mxu0 %v495_v2  ;;  %v3080_v1 = vld [vmem:[%s3680_s3] ss:$0 sm:$0xff] }
  0xe4   : > { %v548_v2 = vld [vmem:[%s2748_s7 + $0x6c0] sm:$0xff] }
  0xe6   : > { %989 = vmatmul.mubr.f32.gmra.mrb[80].mxu1 %v492_v3  ;;  %1544 = vmatmul.mubr.f32.gmra.mrb[80].mxu0 %v494_v4  ;;  %v550_v3 = vld [vmem:[%s2748_s7 + $0x6d0] sm:$0xff] }
  0xe7   : > { %993 = vmatprep.mubr.f32.mxu1 %v497_v5  ;;  %1548 = vmatprep.mubr.f32.mxu0 %v499_v6  ;;  %v553_v5 = vld [vmem:[%s2748_s7 + $0x6e8] sm:$0xff]  ;;  %v555_v6 = vld [vmem:[%s2748_s7 + $0x6f8] sm:$0xff] }
  0xea   : > { %994 = vmatmul.mubr.f32.gmra.mrb[82].mxu1 %v496_v7  ;;  %1549 = vmatmul.mubr.f32.gmra.mrb[82].mxu0 %v498_v8 }
  0xeb   : > { %998 = vmatprep.mubr.f32.mxu1 %v501_v9  ;;  %1553 = vmatprep.mubr.f32.mxu0 %v503_v10 }
  0xee   : > { %999 = vmatmul.mubr.f32.gmra.mrb[84].mxu1 %v500_v11  ;;  %1554 = vmatmul.mubr.f32.gmra.mrb[84].mxu0 %v502_v12 }
  0xef   : > { %1003 = vmatprep.mubr.f32.mxu1 %v505_v13  ;;  %1558 = vmatprep.mubr.f32.mxu0 %v507_v14  ;;  %v552_v13 = vld [vmem:[%s2748_s7 + $0x6e0] sm:$0xff]  ;;  %v554_v14 = vld [vmem:[%s2748_s7 + $0x6f0] sm:$0xff] }
  0xf2   : > { %1004 = vmatmul.mubr.f32.gmra.mrb[86].mxu1 %v504_v15  ;;  %1559 = vmatmul.mubr.f32.gmra.mrb[86].mxu0 %v506_v16 }
  0xf3   : > { %1008 = vmatprep.mubr.f32.mxu1 %v509_v17  ;;  %1563 = vmatprep.mubr.f32.mxu0 %v511_v18  ;;  %v557_v17 = vld [vmem:[%s2748_s7 + $0x708] sm:$0xff]  ;;  %v559_v18 = vld [vmem:[%s2748_s7 + $0x718] sm:$0xff] }
  0xf6   : > { %1009 = vmatmul.mubr.f32.gmra.mrb[88].mxu1 %v508_v19  ;;  %1564 = vmatmul.mubr.f32.gmra.mrb[88].mxu0 %v510_v20 }
  0xf7   : > { %1013 = vmatprep.mubr.f32.mxu1 %v513_v21  ;;  %1568 = vmatprep.mubr.f32.mxu0 %v515_v22 }
  0xfa   : > { %1014 = vmatmul.mubr.f32.gmra.mrb[90].mxu1 %v512_v23  ;;  %1569 = vmatmul.mubr.f32.gmra.mrb[90].mxu0 %v514_v24 }
  0xfb   : > { %1018 = vmatprep.mubr.f32.mxu1 %v517_v25  ;;  %1573 = vmatprep.mubr.f32.mxu0 %v519_v26  ;;  %v556_v25 = vld [vmem:[%s2748_s7 + $0x700] sm:$0xff]  ;;  %v558_v26 = vld [vmem:[%s2748_s7 + $0x710] sm:$0xff] }
  0xfe   : > { %1019 = vmatmul.mubr.f32.gmra.mrb[92].mxu1 %v516_v27  ;;  %1574 = vmatmul.mubr.f32.gmra.mrb[92].mxu0 %v518_v28 }
  0xff   : > { %1023 = vmatprep.mubr.f32.mxu1 %v521_v29  ;;  %1578 = vmatprep.mubr.f32.mxu0 %v523_v30  ;;  %v561_v29 = vld [vmem:[%s2748_s7 + $0x728] sm:$0xff]  ;;  %v563_v30 = vld [vmem:[%s2748_s7 + $0x738] sm:$0xff] }
 0x102   : > { %1024 = vmatmul.mubr.f32.gmra.mrb[94].mxu1 %v520_v31  ;;  %1579 = vmatmul.mubr.f32.gmra.mrb[94].mxu0 %v522_v32 }
 0x103   : > { %1028 = vmatprep.mubr.f32.mxu1 %v525_v33  ;;  %1583 = vmatprep.mubr.f32.mxu0 %v527_v34 }
 0x106   : > { %1029 = vmatmul.mubr.f32.gmra.mrb[96].mxu1 %v524_v35  ;;  %1584 = vmatmul.mubr.f32.gmra.mrb[96].mxu0 %v526_v36 }
 0x107   : > { %1033 = vmatprep.mubr.f32.mxu1 %v529_v37  ;;  %1588 = vmatprep.mubr.f32.mxu0 %v531_v38  ;;  %v560_v37 = vld [vmem:[%s2748_s7 + $0x720] sm:$0xff]  ;;  %v562_v38 = vld [vmem:[%s2748_s7 + $0x730] sm:$0xff] }
 0x10a   : > { %1034 = vmatmul.mubr.f32.gmra.mrb[98].mxu1 %v528_v39  ;;  %1589 = vmatmul.mubr.f32.gmra.mrb[98].mxu0 %v530_v40 }
 0x10b   : > { %1038 = vmatprep.mubr.f32.mxu1 %v533_v41  ;;  %1593 = vmatprep.mubr.f32.mxu0 %v535_v42  ;;  %v565_v41 = vld [vmem:[%s2748_s7 + $0x748] sm:$0xff]  ;;  %v567_v42 = vld [vmem:[%s2748_s7 + $0x758] sm:$0xff] }
 0x10e   : > { %1039 = vmatmul.mubr.f32.gmra.mrb[100].mxu1 %v532_v43  ;;  %1594 = vmatmul.mubr.f32.gmra.mrb[100].mxu0 %v534_v44 }
 0x10f   : > { %1043 = vmatprep.mubr.f32.mxu1 %v537_v45  ;;  %1598 = vmatprep.mubr.f32.mxu0 %v539_v46 }
 0x112   : > { %1044 = vmatmul.mubr.f32.gmra.mrb[102].mxu1 %v536_v47  ;;  %1599 = vmatmul.mubr.f32.gmra.mrb[102].mxu0 %v538_v48 }
 0x113   : > { %1048 = vmatprep.mubr.f32.mxu1 %v541_v49  ;;  %1603 = vmatprep.mubr.f32.mxu0 %v543_v50  ;;  %v564_v49 = vld [vmem:[%s2748_s7 + $0x740] sm:$0xff]  ;;  %v566_v50 = vld [vmem:[%s2748_s7 + $0x750] sm:$0xff] }
 0x116   : > { %1049 = vmatmul.mubr.f32.gmra.mrb[104].mxu1 %v540_v51  ;;  %1604 = vmatmul.mubr.f32.gmra.mrb[104].mxu0 %v542_v52 }
 0x117   : > { %1053 = vmatprep.mubr.f32.mxu1 %v545_v53  ;;  %1608 = vmatprep.mubr.f32.mxu0 %v547_v54  ;;  %v569_v53 = vld [vmem:[%s2748_s7 + $0x768] sm:$0xff]  ;;  %v571_v54 = vld [vmem:[%s2748_s7 + $0x778] sm:$0xff] }
 0x119   : > { %v790_v59 = vpop.f32.mrb[0].mxu1  ;;  %v1345_v60 = vpop.f32.mrb[0].mxu0 }
 0x11a   : > { %v1346_v62 = vadd.f32 %v1345_v60, %v790_v59  ;;  %v792_v63 = vpop.f32.mrb[1].mxu1  ;;  %1054 = vmatmul.mubr.f32.gmra.mrb[106].mxu1 %v544_v55  ;;  %v1347_v0 = vpop.f32.mrb[1].mxu0  ;;  %1609 = vmatmul.mubr.f32.gmra.mrb[106].mxu0 %v546_v56 }
 0x11b   : > { %1058 = vmatprep.mubr.f32.mxu1 %v549_v57  ;;  %1613 = vmatprep.mubr.f32.mxu0 %v551_v58  ;;  %v570_v63 = vld [vmem:[%s2748_s7 + $0x770] sm:$0xff] }
 0x11c   : > { %v1841_v4 = vmul.f32 %v3075_v61, %v1346_v62  ;;  %v568_v62 = vld [vmem:[%s2748_s7 + $0x760] sm:$0xff] }
 0x11d   : > { %v795_v7 = vpop.f32.mrb[2].mxu1  ;;  %v1350_v8 = vpop.f32.mrb[2].mxu0 }
 0x11e   : > { %v1946_v9 = vadd.f32 %v3080_v1, %v1841_v4  ;;  %v1351_v10 = vadd.f32 %v1350_v8, %v795_v7  ;;  %v797_v11 = vpop.f32.mrb[3].mxu1  ;;  %1059 = vmatmul.mubr.f32.gmra.mrb[108].mxu1 %v548_v2  ;;  %v1352_v12 = vpop.f32.mrb[3].mxu0  ;;  %1614 = vmatmul.mubr.f32.gmra.mrb[108].mxu0 %v550_v3  ;;  %v573_v3 = vld [vmem:[%s2748_s7 + $0x788] sm:$0xff]  ;;  %v575_v4 = vld [vmem:[%s2748_s7 + $0x798] sm:$0xff] }
 0x11f   : > { %1063 = vmatprep.mubr.f32.mxu1 %v553_v5  ;;  %1618 = vmatprep.mubr.f32.mxu0 %v555_v6  ;;  %v572_v11 = vld [vmem:[%s2748_s7 + $0x780] sm:$0xff]  ;;  %v574_v12 = vld [vmem:[%s2748_s7 + $0x790] sm:$0xff] }
 0x120   : > { %v2044_v15 = vmax.f32 %v1946_v9, 0.0  ;;  %v1842_v16 = vmul.f32 %v3075_v61, %v1351_v10 }
 0x121   : > { %v800_v19 = vpop.f32.mrb[4].mxu1  ;;  %v1355_v20 = vpop.f32.mrb[4].mxu0 }
 0x122   : > { %2143 = vst.msk [vmem:[%s3092_s21] sm:$0xff] %vm2142_vm0, %v2044_v15  ;;  %v1947_v21 = vadd.f32 %v3080_v1, %v1842_v16  ;;  %v1356_v22 = vadd.f32 %v1355_v20, %v800_v19  ;;  %v802_v23 = vpop.f32.mrb[5].mxu1  ;;  %1064 = vmatmul.mubr.f32.gmra.mrb[110].mxu1 %v552_v13  ;;  %v1357_v24 = vpop.f32.mrb[5].mxu0  ;;  %1619 = vmatmul.mubr.f32.gmra.mrb[110].mxu0 %v554_v14  ;;  %v577_v15 = vld [vmem:[%s2748_s7 + $0x7a8] sm:$0xff]  ;;  %v579_v16 = vld [vmem:[%s2748_s7 + $0x7b8] sm:$0xff] }
 0x123   : > { %1068 = vmatprep.mubr.f32.mxu1 %v557_v17  ;;  %1623 = vmatprep.mubr.f32.mxu0 %v559_v18  ;;  %v576_v23 = vld [vmem:[%s2748_s7 + $0x7a0] sm:$0xff]  ;;  %v578_v24 = vld [vmem:[%s2748_s7 + $0x7b0] sm:$0xff] }
 0x124   : > { %v2045_v27 = vmax.f32 %v1947_v21, 0.0  ;;  %v1843_v28 = vmul.f32 %v3075_v61, %v1356_v22 }
 0x125   : > { %v805_v31 = vpop.f32.mrb[6].mxu1  ;;  %v1360_v32 = vpop.f32.mrb[6].mxu0 }
 0x126   : > { %2144 = vst.msk [vmem:[%s3092_s21 + $0x8] sm:$0xff] %vm2142_vm0, %v2045_v27  ;;  %v1948_v33 = vadd.f32 %v3080_v1, %v1843_v28  ;;  %v1361_v34 = vadd.f32 %v1360_v32, %v805_v31  ;;  %v807_v35 = vpop.f32.mrb[7].mxu1  ;;  %1069 = vmatmul.mubr.f32.gmra.mrb[112].mxu1 %v556_v25  ;;  %v1362_v36 = vpop.f32.mrb[7].mxu0  ;;  %1624 = vmatmul.mubr.f32.gmra.mrb[112].mxu0 %v558_v26  ;;  %v581_v27 = vld [vmem:[%s2748_s7 + $0x7c8] sm:$0xff]  ;;  %v583_v28 = vld [vmem:[%s2748_s7 + $0x7d8] sm:$0xff] }
 0x127   : > { %1073 = vmatprep.mubr.f32.mxu1 %v561_v29  ;;  %1628 = vmatprep.mubr.f32.mxu0 %v563_v30  ;;  %v580_v35 = vld [vmem:[%s2748_s7 + $0x7c0] sm:$0xff]  ;;  %v582_v36 = vld [vmem:[%s2748_s7 + $0x7d0] sm:$0xff] }
 0x128   : > { %v2046_v39 = vmax.f32 %v1948_v33, 0.0  ;;  %v1844_v40 = vmul.f32 %v3075_v61, %v1361_v34 }
 0x129   : > { %v810_v43 = vpop.f32.mrb[8].mxu1  ;;  %v1365_v44 = vpop.f32.mrb[8].mxu0 }
 0x12a   : > { %2145 = vst.msk [vmem:[%s3092_s21 + $0x10] sm:$0xff] %vm2142_vm0, %v2046_v39  ;;  %v1949_v45 = vadd.f32 %v3080_v1, %v1844_v40  ;;  %v1366_v46 = vadd.f32 %v1365_v44, %v810_v43  ;;  %v812_v47 = vpop.f32.mrb[9].mxu1  ;;  %1074 = vmatmul.mubr.f32.gmra.mrb[114].mxu1 %v560_v37  ;;  %v1367_v48 = vpop.f32.mrb[9].mxu0  ;;  %1629 = vmatmul.mubr.f32.gmra.mrb[114].mxu0 %v562_v38  ;;  %v585_v39 = vld [vmem:[%s2748_s7 + $0x7e8] sm:$0xff]  ;;  %v587_v40 = vld [vmem:[%s2748_s7 + $0x7f8] sm:$0xff] }
 0x12b   : > { %1078 = vmatprep.mubr.f32.mxu1 %v565_v41  ;;  %1633 = vmatprep.mubr.f32.mxu0 %v567_v42  ;;  %v584_v47 = vld [vmem:[%s2748_s7 + $0x7e0] sm:$0xff]  ;;  %v586_v48 = vld [vmem:[%s2748_s7 + $0x7f0] sm:$0xff] }
 0x12c   : > { %v2047_v51 = vmax.f32 %v1949_v45, 0.0  ;;  %v1845_v52 = vmul.f32 %v3075_v61, %v1366_v46 }
 0x12d   : > { %v815_v55 = vpop.f32.mrb[10].mxu1  ;;  %v1370_v56 = vpop.f32.mrb[10].mxu0 }
 0x12e   : > { %2146 = vst.msk [vmem:[%s3092_s21 + $0x18] sm:$0xff] %vm2142_vm0, %v2047_v51  ;;  %v1950_v57 = vadd.f32 %v3080_v1, %v1845_v52  ;;  %v1371_v58 = vadd.f32 %v1370_v56, %v815_v55  ;;  %v817_v59 = vpop.f32.mrb[11].mxu1  ;;  %1079 = vmatmul.mubr.f32.gmra.mrb[116].mxu1 %v564_v49  ;;  %v1372_v60 = vpop.f32.mrb[11].mxu0  ;;  %1634 = vmatmul.mubr.f32.gmra.mrb[116].mxu0 %v566_v50  ;;  %v589_v51 = vld [vmem:[%s2748_s7 + $0x808] sm:$0xff]  ;;  %v591_v52 = vld [vmem:[%s2748_s7 + $0x818] sm:$0xff] }
 0x12f   : > { %1083 = vmatprep.mubr.f32.mxu1 %v569_v53  ;;  %1638 = vmatprep.mubr.f32.mxu0 %v571_v54  ;;  %v588_v59 = vld [vmem:[%s2748_s7 + $0x800] sm:$0xff]  ;;  %v590_v60 = vld [vmem:[%s2748_s7 + $0x810] sm:$0xff] }
 0x130   : > { %v2048_v0 = vmax.f32 %v1950_v57, 0.0  ;;  %v1846_v2 = vmul.f32 %v3075_v61, %v1371_v58 }
 0x131   : > { %v820_v5 = vpop.f32.mrb[12].mxu1  ;;  %v1375_v6 = vpop.f32.mrb[12].mxu0 }
 0x132   : > { %2147 = vst.msk [vmem:[%s3092_s21 + $0x20] sm:$0xff] %vm2142_vm0, %v2048_v0  ;;  %v1951_v7 = vadd.f32 %v3080_v1, %v1846_v2  ;;  %v1376_v8 = vadd.f32 %v1375_v6, %v820_v5  ;;  %v822_v9 = vpop.f32.mrb[13].mxu1  ;;  %1084 = vmatmul.mubr.f32.gmra.mrb[118].mxu1 %v568_v62  ;;  %v1377_v10 = vpop.f32.mrb[13].mxu0  ;;  %1639 = vmatmul.mubr.f32.gmra.mrb[118].mxu0 %v570_v63  ;;  %v593_v0 = vld [vmem:[%s2748_s7 + $0x828] sm:$0xff]  ;;  %v595_v2 = vld [vmem:[%s2748_s7 + $0x838] sm:$0xff] }
 0x133   : > { %1088 = vmatprep.mubr.f32.mxu1 %v573_v3  ;;  %1643 = vmatprep.mubr.f32.mxu0 %v575_v4  ;;  %v592_v9 = vld [vmem:[%s2748_s7 + $0x820] sm:$0xff]  ;;  %v594_v10 = vld [vmem:[%s2748_s7 + $0x830] sm:$0xff] }
 0x134   : > { %v2049_v13 = vmax.f32 %v1951_v7, 0.0  ;;  %v1847_v14 = vmul.f32 %v3075_v61, %v1376_v8 }
 0x135   : > { %v825_v17 = vpop.f32.mrb[14].mxu1  ;;  %v1380_v18 = vpop.f32.mrb[14].mxu0 }
 0x136   : > { %2148 = vst.msk [vmem:[%s3092_s21 + $0x28] sm:$0xff] %vm2142_vm0, %v2049_v13  ;;  %v1952_v19 = vadd.f32 %v3080_v1, %v1847_v14  ;;  %v1381_v20 = vadd.f32 %v1380_v18, %v825_v17  ;;  %v827_v21 = vpop.f32.mrb[15].mxu1  ;;  %1089 = vmatmul.mubr.f32.gmra.mrb[120].mxu1 %v572_v11  ;;  %v1382_v22 = vpop.f32.mrb[15].mxu0  ;;  %1644 = vmatmul.mubr.f32.gmra.mrb[120].mxu0 %v574_v12  ;;  %v597_v13 = vld [vmem:[%s2748_s7 + $0x848] sm:$0xff]  ;;  %v599_v14 = vld [vmem:[%s2748_s7 + $0x858] sm:$0xff] }
 0x137   : > { %1093 = vmatprep.mubr.f32.mxu1 %v577_v15  ;;  %1648 = vmatprep.mubr.f32.mxu0 %v579_v16  ;;  %v596_v21 = vld [vmem:[%s2748_s7 + $0x840] sm:$0xff]  ;;  %v598_v22 = vld [vmem:[%s2748_s7 + $0x850] sm:$0xff] }
 0x138   : > { %v2050_v25 = vmax.f32 %v1952_v19, 0.0  ;;  %v1848_v26 = vmul.f32 %v3075_v61, %v1381_v20 }
 0x139   : > { %v830_v29 = vpop.f32.mrb[16].mxu1  ;;  %v1385_v30 = vpop.f32.mrb[16].mxu0 }
 0x13a   : > { %2149 = vst.msk [vmem:[%s3092_s21 + $0x30] sm:$0xff] %vm2142_vm0, %v2050_v25  ;;  %v1953_v31 = vadd.f32 %v3080_v1, %v1848_v26  ;;  %v1386_v32 = vadd.f32 %v1385_v30, %v830_v29  ;;  %v832_v33 = vpop.f32.mrb[17].mxu1  ;;  %1094 = vmatmul.mubr.f32.gmra.mrb[122].mxu1 %v576_v23  ;;  %v1387_v34 = vpop.f32.mrb[17].mxu0  ;;  %1649 = vmatmul.mubr.f32.gmra.mrb[122].mxu0 %v578_v24  ;;  %v601_v25 = vld [vmem:[%s2748_s7 + $0x868] sm:$0xff]  ;;  %v603_v26 = vld [vmem:[%s2748_s7 + $0x878] sm:$0xff] }
 0x13b   : > { %1098 = vmatprep.mubr.f32.mxu1 %v581_v27  ;;  %1653 = vmatprep.mubr.f32.mxu0 %v583_v28  ;;  %v600_v33 = vld [vmem:[%s2748_s7 + $0x860] sm:$0xff]  ;;  %v602_v34 = vld [vmem:[%s2748_s7 + $0x870] sm:$0xff] }
 0x13c   : > { %v2051_v37 = vmax.f32 %v1953_v31, 0.0  ;;  %v1849_v38 = vmul.f32 %v3075_v61, %v1386_v32 }
 0x13d   : > { %v835_v41 = vpop.f32.mrb[18].mxu1  ;;  %v1390_v42 = vpop.f32.mrb[18].mxu0 }
 0x13e   : > { %2150 = vst.msk [vmem:[%s3092_s21 + $0x38] sm:$0xff] %vm2142_vm0, %v2051_v37  ;;  %v1954_v43 = vadd.f32 %v3080_v1, %v1849_v38  ;;  %v1391_v44 = vadd.f32 %v1390_v42, %v835_v41  ;;  %v837_v45 = vpop.f32.mrb[19].mxu1  ;;  %1099 = vmatmul.mubr.f32.gmra.mrb[124].mxu1 %v580_v35  ;;  %v1392_v46 = vpop.f32.mrb[19].mxu0  ;;  %1654 = vmatmul.mubr.f32.gmra.mrb[124].mxu0 %v582_v36  ;;  %v605_v37 = vld [vmem:[%s2748_s7 + $0x888] sm:$0xff]  ;;  %v607_v38 = vld [vmem:[%s2748_s7 + $0x898] sm:$0xff] }
 0x13f   : > { %1103 = vmatprep.mubr.f32.mxu1 %v585_v39  ;;  %1658 = vmatprep.mubr.f32.mxu0 %v587_v40  ;;  %v604_v45 = vld [vmem:[%s2748_s7 + $0x880] sm:$0xff]  ;;  %v606_v46 = vld [vmem:[%s2748_s7 + $0x890] sm:$0xff] }
 0x140   : > { %v2052_v49 = vmax.f32 %v1954_v43, 0.0  ;;  %v1850_v50 = vmul.f32 %v3075_v61, %v1391_v44 }
 0x141   : > { %v840_v53 = vpop.f32.mrb[20].mxu1  ;;  %v1395_v54 = vpop.f32.mrb[20].mxu0 }
 0x142   : > { %2151 = vst.msk [vmem:[%s3092_s21 + $0x40] sm:$0xff] %vm2142_vm0, %v2052_v49  ;;  %v1955_v55 = vadd.f32 %v3080_v1, %v1850_v50  ;;  %v1396_v56 = vadd.f32 %v1395_v54, %v840_v53  ;;  %v842_v57 = vpop.f32.mrb[21].mxu1  ;;  %1104 = vmatmul.mubr.f32.gmra.mrb[126].mxu1 %v584_v47  ;;  %v1397_v58 = vpop.f32.mrb[21].mxu0  ;;  %1659 = vmatmul.mubr.f32.gmra.mrb[126].mxu0 %v586_v48  ;;  %v609_v49 = vld [vmem:[%s2748_s7 + $0x8a8] sm:$0xff]  ;;  %v611_v50 = vld [vmem:[%s2748_s7 + $0x8b8] sm:$0xff] }
 0x143   : > { %1108 = vmatprep.mubr.f32.mxu1 %v589_v51  ;;  %1663 = vmatprep.mubr.f32.mxu0 %v591_v52  ;;  %v608_v57 = vld [vmem:[%s2748_s7 + $0x8a0] sm:$0xff]  ;;  %v610_v58 = vld [vmem:[%s2748_s7 + $0x8b0] sm:$0xff] }
 0x144   : > { %v2053_v62 = vmax.f32 %v1955_v55, 0.0  ;;  %v1851_v63 = vmul.f32 %v3075_v61, %v1396_v56 }
 0x145   : > { %v845_v3 = vpop.f32.mrb[22].mxu1  ;;  %v1400_v4 = vpop.f32.mrb[22].mxu0 }
 0x146   : > { %2152 = vst.msk [vmem:[%s3092_s21 + $0x48] sm:$0xff] %vm2142_vm0, %v2053_v62  ;;  %v1956_v5 = vadd.f32 %v3080_v1, %v1851_v63  ;;  %v1401_v6 = vadd.f32 %v1400_v4, %v845_v3  ;;  %v847_v7 = vpop.f32.mrb[23].mxu1  ;;  %1109 = vmatmul.mubr.f32.gmra.mrb[128].mxu1 %v588_v59  ;;  %v1402_v8 = vpop.f32.mrb[23].mxu0  ;;  %1664 = vmatmul.mubr.f32.gmra.mrb[128].mxu0 %v590_v60  ;;  %v613_v62 = vld [vmem:[%s2748_s7 + $0x8c8] sm:$0xff]  ;;  %v615_v63 = vld [vmem:[%s2748_s7 + $0x8d8] sm:$0xff] }
 0x147   : > { %1113 = vmatprep.mubr.f32.mxu1 %v593_v0  ;;  %1668 = vmatprep.mubr.f32.mxu0 %v595_v2  ;;  %v612_v7 = vld [vmem:[%s2748_s7 + $0x8c0] sm:$0xff]  ;;  %v614_v8 = vld [vmem:[%s2748_s7 + $0x8d0] sm:$0xff] }
 0x148   : > { %v2054_v11 = vmax.f32 %v1956_v5, 0.0  ;;  %v1852_v12 = vmul.f32 %v3075_v61, %v1401_v6 }
 0x149   : > { %v850_v15 = vpop.f32.mrb[24].mxu1  ;;  %v1405_v16 = vpop.f32.mrb[24].mxu0 }
 0x14a   : > { %2153 = vst.msk [vmem:[%s3092_s21 + $0x50] sm:$0xff] %vm2142_vm0, %v2054_v11  ;;  %v1957_v17 = vadd.f32 %v3080_v1, %v1852_v12  ;;  %v1406_v18 = vadd.f32 %v1405_v16, %v850_v15  ;;  %v852_v19 = vpop.f32.mrb[25].mxu1  ;;  %1114 = vmatmul.mubr.f32.gmra.mrb[130].mxu1 %v592_v9  ;;  %v1407_v20 = vpop.f32.mrb[25].mxu0  ;;  %1669 = vmatmul.mubr.f32.gmra.mrb[130].mxu0 %v594_v10  ;;  %v617_v11 = vld [vmem:[%s2748_s7 + $0x8e8] sm:$0xff]  ;;  %v619_v12 = vld [vmem:[%s2748_s7 + $0x8f8] sm:$0xff] }
 0x14b   : > { %1118 = vmatprep.mubr.f32.mxu1 %v597_v13  ;;  %1673 = vmatprep.mubr.f32.mxu0 %v599_v14  ;;  %v616_v19 = vld [vmem:[%s2748_s7 + $0x8e0] sm:$0xff]  ;;  %v618_v20 = vld [vmem:[%s2748_s7 + $0x8f0] sm:$0xff] }
 0x14c   : > { %v2055_v23 = vmax.f32 %v1957_v17, 0.0  ;;  %v1853_v24 = vmul.f32 %v3075_v61, %v1406_v18 }
 0x14d   : > { %v855_v27 = vpop.f32.mrb[26].mxu1  ;;  %v1410_v28 = vpop.f32.mrb[26].mxu0 }
 0x14e   : > { %2154 = vst.msk [vmem:[%s3092_s21 + $0x58] sm:$0xff] %vm2142_vm0, %v2055_v23  ;;  %v1958_v29 = vadd.f32 %v3080_v1, %v1853_v24  ;;  %v1411_v30 = vadd.f32 %v1410_v28, %v855_v27  ;;  %v857_v31 = vpop.f32.mrb[27].mxu1  ;;  %1119 = vmatmul.mubr.f32.gmra.mrb[132].mxu1 %v596_v21  ;;  %v1412_v32 = vpop.f32.mrb[27].mxu0  ;;  %1674 = vmatmul.mubr.f32.gmra.mrb[132].mxu0 %v598_v22  ;;  %v621_v23 = vld [vmem:[%s2748_s7 + $0x908] sm:$0xff]  ;;  %v623_v24 = vld [vmem:[%s2748_s7 + $0x918] sm:$0xff] }
 0x14f   : > { %1123 = vmatprep.mubr.f32.mxu1 %v601_v25  ;;  %1678 = vmatprep.mubr.f32.mxu0 %v603_v26  ;;  %v620_v31 = vld [vmem:[%s2748_s7 + $0x900] sm:$0xff]  ;;  %v622_v32 = vld [vmem:[%s2748_s7 + $0x910] sm:$0xff] }
 0x150   : > { %v2056_v35 = vmax.f32 %v1958_v29, 0.0  ;;  %v1854_v36 = vmul.f32 %v3075_v61, %v1411_v30 }
 0x151   : > { %v860_v39 = vpop.f32.mrb[28].mxu1  ;;  %v1415_v40 = vpop.f32.mrb[28].mxu0 }
 0x152   : > { %2155 = vst.msk [vmem:[%s3092_s21 + $0x60] sm:$0xff] %vm2142_vm0, %v2056_v35  ;;  %v1959_v41 = vadd.f32 %v3080_v1, %v1854_v36  ;;  %v1416_v42 = vadd.f32 %v1415_v40, %v860_v39  ;;  %v862_v43 = vpop.f32.mrb[29].mxu1  ;;  %1124 = vmatmul.mubr.f32.gmra.mrb[134].mxu1 %v600_v33  ;;  %v1417_v44 = vpop.f32.mrb[29].mxu0  ;;  %1679 = vmatmul.mubr.f32.gmra.mrb[134].mxu0 %v602_v34  ;;  %v625_v35 = vld [vmem:[%s2748_s7 + $0x928] sm:$0xff]  ;;  %v627_v36 = vld [vmem:[%s2748_s7 + $0x938] sm:$0xff] }
 0x153   : > { %1128 = vmatprep.mubr.f32.mxu1 %v605_v37  ;;  %1683 = vmatprep.mubr.f32.mxu0 %v607_v38  ;;  %v624_v43 = vld [vmem:[%s2748_s7 + $0x920] sm:$0xff]  ;;  %v626_v44 = vld [vmem:[%s2748_s7 + $0x930] sm:$0xff] }
 0x154   : > { %v2057_v47 = vmax.f32 %v1959_v41, 0.0  ;;  %v1855_v48 = vmul.f32 %v3075_v61, %v1416_v42 }
 0x155   : > { %v865_v51 = vpop.f32.mrb[30].mxu1  ;;  %v1420_v52 = vpop.f32.mrb[30].mxu0 }
 0x156   : > { %2156 = vst.msk [vmem:[%s3092_s21 + $0x68] sm:$0xff] %vm2142_vm0, %v2057_v47  ;;  %v1960_v53 = vadd.f32 %v3080_v1, %v1855_v48  ;;  %v1421_v54 = vadd.f32 %v1420_v52, %v865_v51  ;;  %v867_v55 = vpop.f32.mrb[31].mxu1  ;;  %1129 = vmatmul.mubr.f32.gmra.mrb[136].mxu1 %v604_v45  ;;  %v1422_v56 = vpop.f32.mrb[31].mxu0  ;;  %1684 = vmatmul.mubr.f32.gmra.mrb[136].mxu0 %v606_v46  ;;  %v629_v47 = vld [vmem:[%s2748_s7 + $0x948] sm:$0xff]  ;;  %v631_v48 = vld [vmem:[%s2748_s7 + $0x958] sm:$0xff] }
 0x157   : > { %1133 = vmatprep.mubr.f32.mxu1 %v609_v49  ;;  %1688 = vmatprep.mubr.f32.mxu0 %v611_v50  ;;  %v628_v55 = vld [vmem:[%s2748_s7 + $0x940] sm:$0xff]  ;;  %v630_v56 = vld [vmem:[%s2748_s7 + $0x950] sm:$0xff] }
 0x158   : > { %v2058_v59 = vmax.f32 %v1960_v53, 0.0  ;;  %v1856_v60 = vmul.f32 %v3075_v61, %v1421_v54 }
 0x159   : > { %v870_v0 = vpop.f32.mrb[32].mxu1  ;;  %v1425_v2 = vpop.f32.mrb[32].mxu0 }
 0x15a   : > { %2157 = vst.msk [vmem:[%s3092_s21 + $0x70] sm:$0xff] %vm2142_vm0, %v2058_v59  ;;  %v1961_v3 = vadd.f32 %v3080_v1, %v1856_v60  ;;  %v1426_v4 = vadd.f32 %v1425_v2, %v870_v0  ;;  %v872_v5 = vpop.f32.mrb[33].mxu1  ;;  %1134 = vmatmul.mubr.f32.gmra.mrb[138].mxu1 %v608_v57  ;;  %v1427_v6 = vpop.f32.mrb[33].mxu0  ;;  %1689 = vmatmul.mubr.f32.gmra.mrb[138].mxu0 %v610_v58  ;;  %v633_v59 = vld [vmem:[%s2748_s7 + $0x968] sm:$0xff]  ;;  %v635_v60 = vld [vmem:[%s2748_s7 + $0x978] sm:$0xff] }
 0x15b   : > { %1138 = vmatprep.mubr.f32.mxu1 %v613_v62  ;;  %1693 = vmatprep.mubr.f32.mxu0 %v615_v63  ;;  %v632_v5 = vld [vmem:[%s2748_s7 + $0x960] sm:$0xff]  ;;  %v634_v6 = vld [vmem:[%s2748_s7 + $0x970] sm:$0xff] }
 0x15c   : > { %v2059_v9 = vmax.f32 %v1961_v3, 0.0  ;;  %v1857_v10 = vmul.f32 %v3075_v61, %v1426_v4 }
 0x15d   : > { %v875_v13 = vpop.f32.mrb[34].mxu1  ;;  %v1430_v14 = vpop.f32.mrb[34].mxu0 }
 0x15e   : > { %2158 = vst.msk [vmem:[%s3092_s21 + $0x78] sm:$0xff] %vm2142_vm0, %v2059_v9  ;;  %v1962_v15 = vadd.f32 %v3080_v1, %v1857_v10  ;;  %v1431_v16 = vadd.f32 %v1430_v14, %v875_v13  ;;  %v877_v17 = vpop.f32.mrb[35].mxu1  ;;  %1139 = vmatmul.mubr.f32.gmra.mrb[140].mxu1 %v612_v7  ;;  %v1432_v18 = vpop.f32.mrb[35].mxu0  ;;  %1694 = vmatmul.mubr.f32.gmra.mrb[140].mxu0 %v614_v8  ;;  %v637_v9 = vld [vmem:[%s2748_s7 + $0x988] sm:$0xff]  ;;  %v639_v10 = vld [vmem:[%s2748_s7 + $0x998] sm:$0xff] }
 0x15f   : > { %1143 = vmatprep.mubr.f32.mxu1 %v617_v11  ;;  %1698 = vmatprep.mubr.f32.mxu0 %v619_v12  ;;  %v636_v17 = vld [vmem:[%s2748_s7 + $0x980] sm:$0xff]  ;;  %v638_v18 = vld [vmem:[%s2748_s7 + $0x990] sm:$0xff] }
 0x160   : > { %v2060_v21 = vmax.f32 %v1962_v15, 0.0  ;;  %v1858_v22 = vmul.f32 %v3075_v61, %v1431_v16 }
 0x161   : > { %v880_v25 = vpop.f32.mrb[36].mxu1  ;;  %v1435_v26 = vpop.f32.mrb[36].mxu0 }
 0x162   : > { %2159 = vst.msk [vmem:[%s3092_s21 + $0x80] sm:$0xff] %vm2142_vm0, %v2060_v21  ;;  %v1963_v27 = vadd.f32 %v3080_v1, %v1858_v22  ;;  %v1436_v28 = vadd.f32 %v1435_v26, %v880_v25  ;;  %v882_v29 = vpop.f32.mrb[37].mxu1  ;;  %1144 = vmatmul.mubr.f32.gmra.mrb[142].mxu1 %v616_v19  ;;  %v1437_v30 = vpop.f32.mrb[37].mxu0  ;;  %1699 = vmatmul.mubr.f32.gmra.mrb[142].mxu0 %v618_v20  ;;  %v641_v21 = vld [vmem:[%s2748_s7 + $0x9a8] sm:$0xff]  ;;  %v643_v22 = vld [vmem:[%s2748_s7 + $0x9b8] sm:$0xff] }
 0x163   : > { %1148 = vmatprep.mubr.f32.mxu1 %v621_v23  ;;  %1703 = vmatprep.mubr.f32.mxu0 %v623_v24  ;;  %v640_v29 = vld [vmem:[%s2748_s7 + $0x9a0] sm:$0xff]  ;;  %v642_v30 = vld [vmem:[%s2748_s7 + $0x9b0] sm:$0xff] }
 0x164   : > { %v2061_v33 = vmax.f32 %v1963_v27, 0.0  ;;  %v1859_v34 = vmul.f32 %v3075_v61, %v1436_v28 }
 0x165   : > { %v885_v37 = vpop.f32.mrb[38].mxu1  ;;  %v1440_v38 = vpop.f32.mrb[38].mxu0 }
 0x166   : > { %2160 = vst.msk [vmem:[%s3092_s21 + $0x88] sm:$0xff] %vm2142_vm0, %v2061_v33  ;;  %v1964_v39 = vadd.f32 %v3080_v1, %v1859_v34  ;;  %v1441_v40 = vadd.f32 %v1440_v38, %v885_v37  ;;  %v887_v41 = vpop.f32.mrb[39].mxu1  ;;  %1149 = vmatmul.mubr.f32.gmra.mrb[144].mxu1 %v620_v31  ;;  %v1442_v42 = vpop.f32.mrb[39].mxu0  ;;  %1704 = vmatmul.mubr.f32.gmra.mrb[144].mxu0 %v622_v32  ;;  %v645_v33 = vld [vmem:[%s2748_s7 + $0x9c8] sm:$0xff]  ;;  %v647_v34 = vld [vmem:[%s2748_s7 + $0x9d8] sm:$0xff] }
 0x167   : > { %1153 = vmatprep.mubr.f32.mxu1 %v625_v35  ;;  %1708 = vmatprep.mubr.f32.mxu0 %v627_v36  ;;  %v644_v41 = vld [vmem:[%s2748_s7 + $0x9c0] sm:$0xff]  ;;  %v646_v42 = vld [vmem:[%s2748_s7 + $0x9d0] sm:$0xff] }
 0x168   : > { %v2062_v45 = vmax.f32 %v1964_v39, 0.0  ;;  %v1860_v46 = vmul.f32 %v3075_v61, %v1441_v40 }
 0x169   : > { %v890_v49 = vpop.f32.mrb[40].mxu1  ;;  %v1445_v50 = vpop.f32.mrb[40].mxu0 }
 0x16a   : > { %2161 = vst.msk [vmem:[%s3092_s21 + $0x90] sm:$0xff] %vm2142_vm0, %v2062_v45  ;;  %v1965_v51 = vadd.f32 %v3080_v1, %v1860_v46  ;;  %v1446_v52 = vadd.f32 %v1445_v50, %v890_v49  ;;  %v892_v53 = vpop.f32.mrb[41].mxu1  ;;  %1154 = vmatmul.mubr.f32.gmra.mrb[146].mxu1 %v624_v43  ;;  %v1447_v54 = vpop.f32.mrb[41].mxu0  ;;  %1709 = vmatmul.mubr.f32.gmra.mrb[146].mxu0 %v626_v44  ;;  %v649_v45 = vld [vmem:[%s2748_s7 + $0x9e8] sm:$0xff]  ;;  %v651_v46 = vld [vmem:[%s2748_s7 + $0x9f8] sm:$0xff] }
 0x16b   : > { %1158 = vmatprep.mubr.f32.mxu1 %v629_v47  ;;  %1713 = vmatprep.mubr.f32.mxu0 %v631_v48  ;;  %v648_v53 = vld [vmem:[%s2748_s7 + $0x9e0] sm:$0xff]  ;;  %v650_v54 = vld [vmem:[%s2748_s7 + $0x9f0] sm:$0xff] }
 0x16c   : > { %v2063_v57 = vmax.f32 %v1965_v51, 0.0  ;;  %v1861_v58 = vmul.f32 %v3075_v61, %v1446_v52 }
 0x16d   : > { %v895_v62 = vpop.f32.mrb[42].mxu1  ;;  %v1450_v63 = vpop.f32.mrb[42].mxu0 }
 0x16e   : > { %2162 = vst.msk [vmem:[%s3092_s21 + $0x98] sm:$0xff] %vm2142_vm0, %v2063_v57  ;;  %v1966_v0 = vadd.f32 %v3080_v1, %v1861_v58  ;;  %v1451_v2 = vadd.f32 %v1450_v63, %v895_v62  ;;  %v897_v3 = vpop.f32.mrb[43].mxu1  ;;  %1159 = vmatmul.mubr.f32.gmra.mrb[148].mxu1 %v628_v55  ;;  %v1452_v4 = vpop.f32.mrb[43].mxu0  ;;  %1714 = vmatmul.mubr.f32.gmra.mrb[148].mxu0 %v630_v56  ;;  %v653_v57 = vld [vmem:[%s2748_s7 + $0xa08] sm:$0xff]  ;;  %v655_v58 = vld [vmem:[%s2748_s7 + $0xa18] sm:$0xff] }
 0x16f   : > { %1163 = vmatprep.mubr.f32.mxu1 %v633_v59  ;;  %1718 = vmatprep.mubr.f32.mxu0 %v635_v60  ;;  %v652_v3 = vld [vmem:[%s2748_s7 + $0xa00] sm:$0xff]  ;;  %v654_v4 = vld [vmem:[%s2748_s7 + $0xa10] sm:$0xff] }
 0x170   : > { %v2064_v7 = vmax.f32 %v1966_v0, 0.0  ;;  %v1862_v8 = vmul.f32 %v3075_v61, %v1451_v2 }
 0x171   : > { %v900_v11 = vpop.f32.mrb[44].mxu1  ;;  %v1455_v12 = vpop.f32.mrb[44].mxu0 }
 0x172   : > { %2163 = vst.msk [vmem:[%s3092_s21 + $0xa0] sm:$0xff] %vm2142_vm0, %v2064_v7  ;;  %v1967_v13 = vadd.f32 %v3080_v1, %v1862_v8  ;;  %v1456_v14 = vadd.f32 %v1455_v12, %v900_v11  ;;  %v902_v15 = vpop.f32.mrb[45].mxu1  ;;  %1164 = vmatmul.mubr.f32.gmra.mrb[150].mxu1 %v632_v5  ;;  %v1457_v16 = vpop.f32.mrb[45].mxu0  ;;  %1719 = vmatmul.mubr.f32.gmra.mrb[150].mxu0 %v634_v6  ;;  %v657_v7 = vld [vmem:[%s2748_s7 + $0xa28] sm:$0xff]  ;;  %v659_v8 = vld [vmem:[%s2748_s7 + $0xa38] sm:$0xff] }
 0x173   : > { %1168 = vmatprep.mubr.f32.mxu1 %v637_v9  ;;  %1723 = vmatprep.mubr.f32.mxu0 %v639_v10  ;;  %v656_v15 = vld [vmem:[%s2748_s7 + $0xa20] sm:$0xff]  ;;  %v658_v16 = vld [vmem:[%s2748_s7 + $0xa30] sm:$0xff] }
 0x174   : > { %v2065_v19 = vmax.f32 %v1967_v13, 0.0  ;;  %v1863_v20 = vmul.f32 %v3075_v61, %v1456_v14 }
 0x175   : > { %v905_v23 = vpop.f32.mrb[46].mxu1  ;;  %v1460_v24 = vpop.f32.mrb[46].mxu0 }
 0x176   : > { %2164 = vst.msk [vmem:[%s3092_s21 + $0xa8] sm:$0xff] %vm2142_vm0, %v2065_v19  ;;  %v1968_v25 = vadd.f32 %v3080_v1, %v1863_v20  ;;  %v1461_v26 = vadd.f32 %v1460_v24, %v905_v23  ;;  %v907_v27 = vpop.f32.mrb[47].mxu1  ;;  %1169 = vmatmul.mubr.f32.gmra.mrb[152].mxu1 %v636_v17  ;;  %v1462_v28 = vpop.f32.mrb[47].mxu0  ;;  %1724 = vmatmul.mubr.f32.gmra.mrb[152].mxu0 %v638_v18  ;;  %v661_v19 = vld [vmem:[%s2748_s7 + $0xa48] sm:$0xff]  ;;  %v663_v20 = vld [vmem:[%s2748_s7 + $0xa58] sm:$0xff] }
 0x177   : > { %1173 = vmatprep.mubr.f32.mxu1 %v641_v21  ;;  %1728 = vmatprep.mubr.f32.mxu0 %v643_v22  ;;  %v660_v27 = vld [vmem:[%s2748_s7 + $0xa40] sm:$0xff]  ;;  %v662_v28 = vld [vmem:[%s2748_s7 + $0xa50] sm:$0xff] }
 0x178   : > { %v2066_v31 = vmax.f32 %v1968_v25, 0.0  ;;  %v1864_v32 = vmul.f32 %v3075_v61, %v1461_v26 }
 0x179   : > { %v910_v35 = vpop.f32.mrb[48].mxu1  ;;  %v1465_v36 = vpop.f32.mrb[48].mxu0 }
 0x17a   : > { %2165 = vst.msk [vmem:[%s3092_s21 + $0xb0] sm:$0xff] %vm2142_vm0, %v2066_v31  ;;  %v1969_v37 = vadd.f32 %v3080_v1, %v1864_v32  ;;  %v1466_v38 = vadd.f32 %v1465_v36, %v910_v35  ;;  %v912_v39 = vpop.f32.mrb[49].mxu1  ;;  %1174 = vmatmul.mubr.f32.gmra.mrb[154].mxu1 %v640_v29  ;;  %v1467_v40 = vpop.f32.mrb[49].mxu0  ;;  %1729 = vmatmul.mubr.f32.gmra.mrb[154].mxu0 %v642_v30  ;;  %v665_v31 = vld [vmem:[%s2748_s7 + $0xa68] sm:$0xff]  ;;  %v667_v32 = vld [vmem:[%s2748_s7 + $0xa78] sm:$0xff] }
 0x17b   : > { %1178 = vmatprep.mubr.f32.mxu1 %v645_v33  ;;  %1733 = vmatprep.mubr.f32.mxu0 %v647_v34  ;;  %v664_v39 = vld [vmem:[%s2748_s7 + $0xa60] sm:$0xff]  ;;  %v666_v40 = vld [vmem:[%s2748_s7 + $0xa70] sm:$0xff] }
 0x17c   : > { %v2067_v43 = vmax.f32 %v1969_v37, 0.0  ;;  %v1865_v44 = vmul.f32 %v3075_v61, %v1466_v38 }
 0x17d   : > { %v915_v47 = vpop.f32.mrb[50].mxu1  ;;  %v1470_v48 = vpop.f32.mrb[50].mxu0 }
 0x17e   : > { %2166 = vst.msk [vmem:[%s3092_s21 + $0xb8] sm:$0xff] %vm2142_vm0, %v2067_v43  ;;  %v1970_v49 = vadd.f32 %v3080_v1, %v1865_v44  ;;  %v1471_v50 = vadd.f32 %v1470_v48, %v915_v47  ;;  %v917_v51 = vpop.f32.mrb[51].mxu1  ;;  %1179 = vmatmul.mubr.f32.gmra.mrb[156].mxu1 %v644_v41  ;;  %v1472_v52 = vpop.f32.mrb[51].mxu0  ;;  %1734 = vmatmul.mubr.f32.gmra.mrb[156].mxu0 %v646_v42  ;;  %v669_v43 = vld [vmem:[%s2748_s7 + $0xa88] sm:$0xff]  ;;  %v671_v44 = vld [vmem:[%s2748_s7 + $0xa98] sm:$0xff] }
 0x17f   : > { %1183 = vmatprep.mubr.f32.mxu1 %v649_v45  ;;  %1738 = vmatprep.mubr.f32.mxu0 %v651_v46  ;;  %v668_v51 = vld [vmem:[%s2748_s7 + $0xa80] sm:$0xff] }
 0x180   : > { %v2068_v55 = vmax.f32 %v1970_v49, 0.0  ;;  %v1866_v56 = vmul.f32 %v3075_v61, %v1471_v50 }
 0x181   : > { %v920_v59 = vpop.f32.mrb[52].mxu1  ;;  %v1475_v60 = vpop.f32.mrb[52].mxu0 }
 0x182   : > { %2167 = vst.msk [vmem:[%s3092_s21 + $0xc0] sm:$0xff] %vm2142_vm0, %v2068_v55  ;;  %v1971_v62 = vadd.f32 %v3080_v1, %v1866_v56  ;;  %v1476_v63 = vadd.f32 %v1475_v60, %v920_v59  ;;  %v922_v0 = vpop.f32.mrb[53].mxu1  ;;  %1184 = vmatmul.mubr.f32.gmra.mrb[158].mxu1 %v648_v53  ;;  %v1477_v2 = vpop.f32.mrb[53].mxu0  ;;  %1739 = vmatmul.mubr.f32.gmra.mrb[158].mxu0 %v650_v54  ;;  %v3331_v53 = vld [vmem:[%s3679_s2] ss:$0 sm:$0xff]  ;;  %v675_v55 = vld [vmem:[%s2748_s7 + $0xab8] sm:$0xff] }
 0x183   : > { %1188 = vmatprep.mubr.f32.mxu1 %v653_v57  ;;  %1743 = vmatprep.mubr.f32.mxu0 %v655_v58  ;;  %v3341_v58 = vld [vmem:[%s3680_s3] ss:$0 sm:$0xff]  ;;  %v674_v2 = vld [vmem:[%s2748_s7 + $0xab0] sm:$0xff] }
 0x184   : > { %v2069_v5 = vmax.f32 %v1971_v62, 0.0  ;;  %v1867_v6 = vmul.f32 %v3075_v61, %v1476_v63  ;;  %v672_v0 = vld [vmem:[%s2748_s7 + $0xaa0] sm:$0xff] }
 0x185   : > { %v925_v9 = vpop.f32.mrb[54].mxu1  ;;  %v1480_v10 = vpop.f32.mrb[54].mxu0 }
 0x186   : > { %2168 = vst.msk [vmem:[%s3092_s21 + $0xc8] sm:$0xff] %vm2142_vm0, %v2069_v5  ;;  %v1972_v11 = vadd.f32 %v3080_v1, %v1867_v6  ;;  %v1481_v12 = vadd.f32 %v1480_v10, %v925_v9  ;;  %v927_v13 = vpop.f32.mrb[55].mxu1  ;;  %1189 = vmatmul.mubr.f32.gmra.mrb[160].mxu1 %v652_v3  ;;  %v1482_v14 = vpop.f32.mrb[55].mxu0  ;;  %1744 = vmatmul.mubr.f32.gmra.mrb[160].mxu0 %v654_v4  ;;  %v677_v5 = vld [vmem:[%s2748_s7 + $0xac8] sm:$0xff]  ;;  %v679_v6 = vld [vmem:[%s2748_s7 + $0xad8] sm:$0xff] }
 0x187   : > { %1193 = vmatprep.mubr.f32.mxu1 %v657_v7  ;;  %1748 = vmatprep.mubr.f32.mxu0 %v659_v8  ;;  %v676_v13 = vld [vmem:[%s2748_s7 + $0xac0] sm:$0xff]  ;;  %v678_v14 = vld [vmem:[%s2748_s7 + $0xad0] sm:$0xff] }
 0x188   : > { %v2070_v17 = vmax.f32 %v1972_v11, 0.0  ;;  %v1868_v18 = vmul.f32 %v3075_v61, %v1481_v12 }
 0x189   : > { %v930_v21 = vpop.f32.mrb[56].mxu1  ;;  %v1485_v22 = vpop.f32.mrb[56].mxu0 }
 0x18a   : > { %2169 = vst.msk [vmem:[%s3092_s21 + $0xd0] sm:$0xff] %vm2142_vm0, %v2070_v17  ;;  %v1973_v23 = vadd.f32 %v3080_v1, %v1868_v18  ;;  %v1486_v24 = vadd.f32 %v1485_v22, %v930_v21  ;;  %v932_v25 = vpop.f32.mrb[57].mxu1  ;;  %1194 = vmatmul.mubr.f32.gmra.mrb[162].mxu1 %v656_v15  ;;  %v1487_v26 = vpop.f32.mrb[57].mxu0  ;;  %1749 = vmatmul.mubr.f32.gmra.mrb[162].mxu0 %v658_v16  ;;  %v681_v17 = vld [vmem:[%s2748_s7 + $0xae8] sm:$0xff]  ;;  %v683_v18 = vld [vmem:[%s2748_s7 + $0xaf8] sm:$0xff] }
 0x18b   : > { %1198 = vmatprep.mubr.f32.mxu1 %v661_v19  ;;  %1753 = vmatprep.mubr.f32.mxu0 %v663_v20  ;;  %v680_v25 = vld [vmem:[%s2748_s7 + $0xae0] sm:$0xff]  ;;  %v682_v26 = vld [vmem:[%s2748_s7 + $0xaf0] sm:$0xff] }
 0x18c   : > { %v2071_v29 = vmax.f32 %v1973_v23, 0.0  ;;  %v1869_v30 = vmul.f32 %v3075_v61, %v1486_v24 }
 0x18d   : > { %v935_v33 = vpop.f32.mrb[58].mxu1  ;;  %v1490_v34 = vpop.f32.mrb[58].mxu0 }
 0x18e   : > { %2170 = vst.msk [vmem:[%s3092_s21 + $0xd8] sm:$0xff] %vm2142_vm0, %v2071_v29  ;;  %v1974_v35 = vadd.f32 %v3080_v1, %v1869_v30  ;;  %v1491_v36 = vadd.f32 %v1490_v34, %v935_v33  ;;  %v937_v37 = vpop.f32.mrb[59].mxu1  ;;  %1199 = vmatmul.mubr.f32.gmra.mrb[164].mxu1 %v660_v27  ;;  %v1492_v38 = vpop.f32.mrb[59].mxu0  ;;  %1754 = vmatmul.mubr.f32.gmra.mrb[164].mxu0 %v662_v28  ;;  %v685_v29 = vld [vmem:[%s2748_s7 + $0xb08] sm:$0xff]  ;;  %v687_v30 = vld [vmem:[%s2748_s7 + $0xb18] sm:$0xff] }
 0x18f   : > { %1203 = vmatprep.mubr.f32.mxu1 %v665_v31  ;;  %1758 = vmatprep.mubr.f32.mxu0 %v667_v32  ;;  %v684_v37 = vld [vmem:[%s2748_s7 + $0xb00] sm:$0xff]  ;;  %v686_v38 = vld [vmem:[%s2748_s7 + $0xb10] sm:$0xff] }
 0x190   : > { %v2072_v41 = vmax.f32 %v1974_v35, 0.0  ;;  %v1870_v42 = vmul.f32 %v3075_v61, %v1491_v36  ;;  %v670_v61 = vld [vmem:[%s2748_s7 + $0xa90] sm:$0xff] }
 0x191   : > { %v940_v45 = vpop.f32.mrb[60].mxu1  ;;  %v1495_v46 = vpop.f32.mrb[60].mxu0 }
 0x192   : > { %2171 = vst.msk [vmem:[%s3092_s21 + $0xe0] sm:$0xff] %vm2142_vm0, %v2072_v41  ;;  %v1975_v47 = vadd.f32 %v3080_v1, %v1870_v42  ;;  %v1496_v48 = vadd.f32 %v1495_v46, %v940_v45  ;;  %v942_v49 = vpop.f32.mrb[61].mxu1  ;;  %1204 = vmatmul.mubr.f32.gmra.mrb[166].mxu1 %v664_v39  ;;  %v1497_v50 = vpop.f32.mrb[61].mxu0  ;;  %1759 = vmatmul.mubr.f32.gmra.mrb[166].mxu0 %v666_v40  ;;  %v673_v1 = vld [vmem:[%s2748_s7 + $0xaa8] sm:$0xff]  ;;  %v691_v42 = vld [vmem:[%s2748_s7 + $0xb38] sm:$0xff] }
 0x193   : > { %1208 = vmatprep.mubr.f32.mxu1 %v669_v43  ;;  %1763 = vmatprep.mubr.f32.mxu0 %v671_v44  ;;  %v689_v41 = vld [vmem:[%s2748_s7 + $0xb28] sm:$0xff]  ;;  %v688_v49 = vld [vmem:[%s2748_s7 + $0xb20] sm:$0xff]  ;;  %v690_v50 = vld [vmem:[%s2748_s7 + $0xb30] sm:$0xff] }
 0x194   : > { %v2073_v52 = vmax.f32 %v1975_v47, 0.0  ;;  %v1871_v54 = vmul.f32 %v3331_v53, %v1496_v48 }
 0x195   : > { %v945_v56 = vpop.f32.mrb[62].mxu1  ;;  %v1500_v57 = vpop.f32.mrb[62].mxu0 }
 0x196   : > { %2172 = vst.msk [vmem:[%s3092_s21 + $0xe8] sm:$0xff] %vm2142_vm0, %v2073_v52  ;;  %v1976_v59 = vadd.f32 %v3341_v58, %v1871_v54  ;;  %v1501_v60 = vadd.f32 %v1500_v57, %v945_v56  ;;  %v947_v62 = vpop.f32.mrb[63].mxu1  ;;  %1209 = vmatmul.mubr.f32.gmra.mrb[168].mxu1 %v668_v51  ;;  %v1502_v63 = vpop.f32.mrb[63].mxu0  ;;  %1764 = vmatmul.mubr.f32.gmra.mrb[168].mxu0 %v670_v61  ;;  %v693_v52 = vld [vmem:[%s2748_s7 + $0xb48] sm:$0xff]  ;;  %v695_v54 = vld [vmem:[%s2748_s7 + $0xb58] sm:$0xff] }
 0x197   : > { %1213 = vmatprep.mubr.f32.mxu1 %v673_v1  ;;  %1768 = vmatprep.mubr.f32.mxu0 %v675_v55  ;;  %v692_v62 = vld [vmem:[%s2748_s7 + $0xb40] sm:$0xff]  ;;  %v694_v63 = vld [vmem:[%s2748_s7 + $0xb50] sm:$0xff] }
 0x198   : > { %v2074_v3 = vmax.f32 %v1976_v59, 0.0  ;;  %v1872_v4 = vmul.f32 %v3331_v53, %v1501_v60 }
 0x199   : > { %v950_v7 = vpop.f32.mrb[64].mxu1  ;;  %v1505_v8 = vpop.f32.mrb[64].mxu0 }
 0x19a   : > { %2173 = vst.msk [vmem:[%s3092_s21 + $0xf0] sm:$0xff] %vm2142_vm0, %v2074_v3  ;;  %v1977_v9 = vadd.f32 %v3341_v58, %v1872_v4  ;;  %v1506_v10 = vadd.f32 %v1505_v8, %v950_v7  ;;  %v952_v11 = vpop.f32.mrb[65].mxu1  ;;  %1214 = vmatmul.mubr.f32.gmra.mrb[170].mxu1 %v672_v0  ;;  %v1507_v12 = vpop.f32.mrb[65].mxu0  ;;  %1769 = vmatmul.mubr.f32.gmra.mrb[170].mxu0 %v674_v2  ;;  %v697_v3 = vld [vmem:[%s2748_s7 + $0xb68] sm:$0xff]  ;;  %v699_v4 = vld [vmem:[%s2748_s7 + $0xb78] sm:$0xff] }
 0x19b   : > { %1218 = vmatprep.mubr.f32.mxu1 %v677_v5  ;;  %1773 = vmatprep.mubr.f32.mxu0 %v679_v6  ;;  %v696_v11 = vld [vmem:[%s2748_s7 + $0xb60] sm:$0xff]  ;;  %v698_v12 = vld [vmem:[%s2748_s7 + $0xb70] sm:$0xff] }
 0x19c   : > { %v2075_v15 = vmax.f32 %v1977_v9, 0.0  ;;  %v1873_v16 = vmul.f32 %v3331_v53, %v1506_v10 }
 0x19d   : > { %v955_v19 = vpop.f32.mrb[66].mxu1  ;;  %v1510_v20 = vpop.f32.mrb[66].mxu0 }
 0x19e   : > { %2174 = vst.msk [vmem:[%s3092_s21 + $0xf8] sm:$0xff] %vm2142_vm0, %v2075_v15  ;;  %v1978_v21 = vadd.f32 %v3341_v58, %v1873_v16  ;;  %v1511_v22 = vadd.f32 %v1510_v20, %v955_v19  ;;  %v957_v23 = vpop.f32.mrb[67].mxu1  ;;  %1219 = vmatmul.mubr.f32.gmra.mrb[172].mxu1 %v676_v13  ;;  %v1512_v24 = vpop.f32.mrb[67].mxu0  ;;  %1774 = vmatmul.mubr.f32.gmra.mrb[172].mxu0 %v678_v14  ;;  %v701_v15 = vld [vmem:[%s2748_s7 + $0xb88] sm:$0xff]  ;;  %v703_v16 = vld [vmem:[%s2748_s7 + $0xb98] sm:$0xff] }
 0x19f   : > { %1223 = vmatprep.mubr.f32.mxu1 %v681_v17  ;;  %1778 = vmatprep.mubr.f32.mxu0 %v683_v18  ;;  %v700_v23 = vld [vmem:[%s2748_s7 + $0xb80] sm:$0xff]  ;;  %v702_v24 = vld [vmem:[%s2748_s7 + $0xb90] sm:$0xff] }
 0x1a0   : > { %v2076_v27 = vmax.f32 %v1978_v21, 0.0  ;;  %v1874_v28 = vmul.f32 %v3331_v53, %v1511_v22 }
 0x1a1   : > { %v960_v31 = vpop.f32.mrb[68].mxu1  ;;  %v1515_v32 = vpop.f32.mrb[68].mxu0 }
 0x1a2   : > { %2175 = vst.msk [vmem:[%s3092_s21 + $0x100] sm:$0xff] %vm2142_vm0, %v2076_v27  ;;  %v1979_v33 = vadd.f32 %v3341_v58, %v1874_v28  ;;  %v1516_v34 = vadd.f32 %v1515_v32, %v960_v31  ;;  %v962_v35 = vpop.f32.mrb[69].mxu1  ;;  %1224 = vmatmul.mubr.f32.gmra.mrb[174].mxu1 %v680_v25  ;;  %v1517_v36 = vpop.f32.mrb[69].mxu0  ;;  %1779 = vmatmul.mubr.f32.gmra.mrb[174].mxu0 %v682_v26  ;;  %v705_v27 = vld [vmem:[%s2748_s7 + $0xba8] sm:$0xff]  ;;  %v707_v28 = vld [vmem:[%s2748_s7 + $0xbb8] sm:$0xff] }
 0x1a3   : > { %1228 = vmatprep.mubr.f32.mxu1 %v685_v29  ;;  %1783 = vmatprep.mubr.f32.mxu0 %v687_v30  ;;  %v704_v35 = vld [vmem:[%s2748_s7 + $0xba0] sm:$0xff]  ;;  %v706_v36 = vld [vmem:[%s2748_s7 + $0xbb0] sm:$0xff] }
 0x1a4   : > { %v2077_v39 = vmax.f32 %v1979_v33, 0.0  ;;  %v1875_v40 = vmul.f32 %v3331_v53, %v1516_v34 }
 0x1a5   : > { %v965_v43 = vpop.f32.mrb[70].mxu1  ;;  %v1520_v44 = vpop.f32.mrb[70].mxu0 }
 0x1a6   : > { %2176 = vst.msk [vmem:[%s3092_s21 + $0x108] sm:$0xff] %vm2142_vm0, %v2077_v39  ;;  %v1980_v45 = vadd.f32 %v3341_v58, %v1875_v40  ;;  %v1521_v46 = vadd.f32 %v1520_v44, %v965_v43  ;;  %v967_v47 = vpop.f32.mrb[71].mxu1  ;;  %1229 = vmatmul.mubr.f32.gmra.mrb[176].mxu1 %v684_v37  ;;  %v1522_v48 = vpop.f32.mrb[71].mxu0  ;;  %1784 = vmatmul.mubr.f32.gmra.mrb[176].mxu0 %v686_v38  ;;  %v709_v39 = vld [vmem:[%s2748_s7 + $0xbc8] sm:$0xff]  ;;  %v711_v40 = vld [vmem:[%s2748_s7 + $0xbd8] sm:$0xff] }
 0x1a7   : > { %1233 = vmatprep.mubr.f32.mxu1 %v689_v41  ;;  %1788 = vmatprep.mubr.f32.mxu0 %v691_v42  ;;  %v708_v47 = vld [vmem:[%s2748_s7 + $0xbc0] sm:$0xff]  ;;  %v710_v48 = vld [vmem:[%s2748_s7 + $0xbd0] sm:$0xff] }
 0x1a8   : > { %v2078_v51 = vmax.f32 %v1980_v45, 0.0  ;;  %v1876_v61 = vmul.f32 %v3331_v53, %v1521_v46 }
 0x1a9   : > { %v970_v1 = vpop.f32.mrb[72].mxu1  ;;  %v1525_v55 = vpop.f32.mrb[72].mxu0 }
 0x1aa   : > { %2177 = vst.msk [vmem:[%s3092_s21 + $0x110] sm:$0xff] %vm2142_vm0, %v2078_v51  ;;  %v1981_v56 = vadd.f32 %v3341_v58, %v1876_v61  ;;  %v1526_v57 = vadd.f32 %v1525_v55, %v970_v1  ;;  %v972_v59 = vpop.f32.mrb[73].mxu1  ;;  %1234 = vmatmul.mubr.f32.gmra.mrb[178].mxu1 %v688_v49  ;;  %v1527_v60 = vpop.f32.mrb[73].mxu0  ;;  %1789 = vmatmul.mubr.f32.gmra.mrb[178].mxu0 %v690_v50  ;;  %v713_v51 = vld [vmem:[%s2748_s7 + $0xbe8] sm:$0xff]  ;;  %v715_v61 = vld [vmem:[%s2748_s7 + $0xbf8] sm:$0xff] }
 0x1ab   : > { %1238 = vmatprep.mubr.f32.mxu1 %v693_v52  ;;  %1793 = vmatprep.mubr.f32.mxu0 %v695_v54  ;;  %v712_v59 = vld [vmem:[%s2748_s7 + $0xbe0] sm:$0xff]  ;;  %v714_v60 = vld [vmem:[%s2748_s7 + $0xbf0] sm:$0xff] }
 0x1ac   : > { %v2079_v0 = vmax.f32 %v1981_v56, 0.0  ;;  %v1877_v2 = vmul.f32 %v3331_v53, %v1526_v57 }
 0x1ad   : > { %v975_v5 = vpop.f32.mrb[74].mxu1  ;;  %v1530_v6 = vpop.f32.mrb[74].mxu0 }
 0x1ae   : > { %2178 = vst.msk [vmem:[%s3092_s21 + $0x118] sm:$0xff] %vm2142_vm0, %v2079_v0  ;;  %v1982_v7 = vadd.f32 %v3341_v58, %v1877_v2  ;;  %v1531_v8 = vadd.f32 %v1530_v6, %v975_v5  ;;  %v977_v9 = vpop.f32.mrb[75].mxu1  ;;  %1239 = vmatmul.mubr.f32.gmra.mrb[180].mxu1 %v692_v62  ;;  %v1532_v10 = vpop.f32.mrb[75].mxu0  ;;  %1794 = vmatmul.mubr.f32.gmra.mrb[180].mxu0 %v694_v63  ;;  %v717_v0 = vld [vmem:[%s2748_s7 + $0xc08] sm:$0xff]  ;;  %v719_v2 = vld [vmem:[%s2748_s7 + $0xc18] sm:$0xff] }
 0x1af   : > { %1243 = vmatprep.mubr.f32.mxu1 %v697_v3  ;;  %1798 = vmatprep.mubr.f32.mxu0 %v699_v4  ;;  %v716_v9 = vld [vmem:[%s2748_s7 + $0xc00] sm:$0xff]  ;;  %v718_v10 = vld [vmem:[%s2748_s7 + $0xc10] sm:$0xff] }
 0x1b0   : > { %v2080_v13 = vmax.f32 %v1982_v7, 0.0  ;;  %v1878_v14 = vmul.f32 %v3331_v53, %v1531_v8 }
 0x1b1   : > { %v980_v17 = vpop.f32.mrb[76].mxu1  ;;  %v1535_v18 = vpop.f32.mrb[76].mxu0 }
 0x1b2   : > { %2179 = vst.msk [vmem:[%s3092_s21 + $0x120] sm:$0xff] %vm2142_vm0, %v2080_v13  ;;  %v1983_v19 = vadd.f32 %v3341_v58, %v1878_v14  ;;  %v1536_v20 = vadd.f32 %v1535_v18, %v980_v17  ;;  %v982_v21 = vpop.f32.mrb[77].mxu1  ;;  %1244 = vmatmul.mubr.f32.gmra.mrb[182].mxu1 %v696_v11  ;;  %v1537_v22 = vpop.f32.mrb[77].mxu0  ;;  %1799 = vmatmul.mubr.f32.gmra.mrb[182].mxu0 %v698_v12  ;;  %v721_v13 = vld [vmem:[%s2748_s7 + $0xc28] sm:$0xff]  ;;  %v723_v14 = vld [vmem:[%s2748_s7 + $0xc38] sm:$0xff] }
 0x1b3   : > { %1248 = vmatprep.mubr.f32.mxu1 %v701_v15  ;;  %1803 = vmatprep.mubr.f32.mxu0 %v703_v16  ;;  %v720_v21 = vld [vmem:[%s2748_s7 + $0xc20] sm:$0xff]  ;;  %v722_v22 = vld [vmem:[%s2748_s7 + $0xc30] sm:$0xff] }
 0x1b4   : > { %v2081_v25 = vmax.f32 %v1983_v19, 0.0  ;;  %v1879_v26 = vmul.f32 %v3331_v53, %v1536_v20 }
 0x1b5   : > { %v985_v29 = vpop.f32.mrb[78].mxu1  ;;  %v1540_v30 = vpop.f32.mrb[78].mxu0 }
 0x1b6   : > { %2180 = vst.msk [vmem:[%s3092_s21 + $0x128] sm:$0xff] %vm2142_vm0, %v2081_v25  ;;  %v1984_v31 = vadd.f32 %v3341_v58, %v1879_v26  ;;  %v1541_v32 = vadd.f32 %v1540_v30, %v985_v29  ;;  %v987_v33 = vpop.f32.mrb[79].mxu1  ;;  %1249 = vmatmul.mubr.f32.gmra.mrb[184].mxu1 %v700_v23  ;;  %v1542_v34 = vpop.f32.mrb[79].mxu0  ;;  %1804 = vmatmul.mubr.f32.gmra.mrb[184].mxu0 %v702_v24 }
 0x1b7   : > { %1253 = vmatprep.mubr.f32.mxu1 %v705_v27  ;;  %1808 = vmatprep.mubr.f32.mxu0 %v707_v28 }
 0x1b8   : > { %v2082_v37 = vmax.f32 %v1984_v31, 0.0  ;;  %v1880_v38 = vmul.f32 %v3331_v53, %v1541_v32 }
 0x1b9   : > { %v990_v41 = vpop.f32.mrb[80].mxu1  ;;  %v1545_v42 = vpop.f32.mrb[80].mxu0 }
 0x1ba   : > { %2181 = vst.msk [vmem:[%s3092_s21 + $0x130] sm:$0xff] %vm2142_vm0, %v2082_v37  ;;  %v1985_v43 = vadd.f32 %v3341_v58, %v1880_v38  ;;  %v1546_v44 = vadd.f32 %v1545_v42, %v990_v41  ;;  %v992_v45 = vpop.f32.mrb[81].mxu1  ;;  %1254 = vmatmul.mubr.f32.gmra.mrb[186].mxu1 %v704_v35  ;;  %v1547_v46 = vpop.f32.mrb[81].mxu0  ;;  %1809 = vmatmul.mubr.f32.gmra.mrb[186].mxu0 %v706_v36 }
 0x1bb   : > { %1258 = vmatprep.mubr.f32.mxu1 %v709_v39  ;;  %1813 = vmatprep.mubr.f32.mxu0 %v711_v40 }
 0x1bc   : > { %v2083_v49 = vmax.f32 %v1985_v43, 0.0  ;;  %v1881_v50 = vmul.f32 %v3331_v53, %v1546_v44 }
 0x1bd   : > { %v995_v52 = vpop.f32.mrb[82].mxu1  ;;  %v1550_v54 = vpop.f32.mrb[82].mxu0 }
 0x1be   : > { %2182 = vst.msk [vmem:[%s3092_s21 + $0x138] sm:$0xff] %vm2142_vm0, %v2083_v49  ;;  %v1986_v1 = vadd.f32 %v3341_v58, %v1881_v50  ;;  %v1551_v55 = vadd.f32 %v1550_v54, %v995_v52  ;;  %v997_v56 = vpop.f32.mrb[83].mxu1  ;;  %1259 = vmatmul.mubr.f32.gmra.mrb[188].mxu1 %v708_v47  ;;  %v1552_v57 = vpop.f32.mrb[83].mxu0  ;;  %1814 = vmatmul.mubr.f32.gmra.mrb[188].mxu0 %v710_v48 }
 0x1bf   : > { %1263 = vmatprep.mubr.f32.mxu1 %v713_v51  ;;  %1818 = vmatprep.mubr.f32.mxu0 %v715_v61 }
 0x1c0   : > { %v2084_v62 = vmax.f32 %v1986_v1, 0.0  ;;  %v1882_v63 = vmul.f32 %v3331_v53, %v1551_v55 }
 0x1c1   : > { %v1000_v3 = vpop.f32.mrb[84].mxu1  ;;  %v1555_v4 = vpop.f32.mrb[84].mxu0 }
 0x1c2   : > { %2183 = vst.msk [vmem:[%s3092_s21 + $0x140] sm:$0xff] %vm2142_vm0, %v2084_v62  ;;  %v1987_v5 = vadd.f32 %v3341_v58, %v1882_v63  ;;  %v1556_v6 = vadd.f32 %v1555_v4, %v1000_v3  ;;  %v1002_v7 = vpop.f32.mrb[85].mxu1  ;;  %1264 = vmatmul.mubr.f32.gmra.mrb[190].mxu1 %v712_v59  ;;  %v1557_v8 = vpop.f32.mrb[85].mxu0  ;;  %1819 = vmatmul.mubr.f32.gmra.mrb[190].mxu0 %v714_v60 }
 0x1c3   : > { %1268 = vmatprep.mubr.f32.mxu1 %v717_v0  ;;  %1823 = vmatprep.mubr.f32.mxu0 %v719_v2 }
 0x1c4   : > { %v2085_v11 = vmax.f32 %v1987_v5, 0.0  ;;  %v1883_v12 = vmul.f32 %v3331_v53, %v1556_v6 }
 0x1c5   : > { %v1005_v15 = vpop.f32.mrb[86].mxu1  ;;  %v1560_v16 = vpop.f32.mrb[86].mxu0 }
 0x1c6   : > { %2184 = vst.msk [vmem:[%s3092_s21 + $0x148] sm:$0xff] %vm2142_vm0, %v2085_v11  ;;  %v1988_v17 = vadd.f32 %v3341_v58, %v1883_v12  ;;  %v1561_v18 = vadd.f32 %v1560_v16, %v1005_v15  ;;  %v1007_v19 = vpop.f32.mrb[87].mxu1  ;;  %1269 = vmatmul.mubr.f32.gmra.mrb[192].mxu1 %v716_v9  ;;  %v1562_v20 = vpop.f32.mrb[87].mxu0  ;;  %1824 = vmatmul.mubr.f32.gmra.mrb[192].mxu0 %v718_v10 }
 0x1c7   : > { %1273 = vmatprep.mubr.f32.mxu1 %v721_v13  ;;  %1828 = vmatprep.mubr.f32.mxu0 %v723_v14 }
 0x1c8   : > { %v2086_v23 = vmax.f32 %v1988_v17, 0.0  ;;  %v1884_v24 = vmul.f32 %v3331_v53, %v1561_v18 }
 0x1c9   : > { %v1010_v25 = vpop.f32.mrb[88].mxu1  ;;  %v1565_v26 = vpop.f32.mrb[88].mxu0 }
 0x1ca   : > { %2185 = vst.msk [vmem:[%s3092_s21 + $0x150] sm:$0xff] %vm2142_vm0, %v2086_v23  ;;  %v1989_v27 = vadd.f32 %v3341_v58, %v1884_v24  ;;  %v1566_v28 = vadd.f32 %v1565_v26, %v1010_v25  ;;  %v1012_v29 = vpop.f32.mrb[89].mxu1  ;;  %1274 = vmatmul.mubr.f32.gmra.mrb[194].mxu1 %v720_v21  ;;  %v1567_v30 = vpop.f32.mrb[89].mxu0  ;;  %1829 = vmatmul.mubr.f32.gmra.mrb[194].mxu0 %v722_v22 }
 0x1cc   : > { %v2087_v31 = vmax.f32 %v1989_v27, 0.0  ;;  %v1885_v32 = vmul.f32 %v3331_v53, %v1566_v28 }
 0x1cd   : > { %v1015_v33 = vpop.f32.mrb[90].mxu1  ;;  %v1570_v34 = vpop.f32.mrb[90].mxu0 }
 0x1ce   : > { %2186 = vst.msk [vmem:[%s3092_s21 + $0x158] sm:$0xff] %vm2142_vm0, %v2087_v31  ;;  %v1990_v35 = vadd.f32 %v3341_v58, %v1885_v32  ;;  %v1571_v36 = vadd.f32 %v1570_v34, %v1015_v33  ;;  %v1017_v37 = vpop.f32.mrb[91].mxu1  ;;  %v1572_v38 = vpop.f32.mrb[91].mxu0 }
 0x1d0   : > { %v2088_v39 = vmax.f32 %v1990_v35, 0.0  ;;  %v1886_v40 = vmul.f32 %v3331_v53, %v1571_v36 }
 0x1d1   : > { %v1020_v41 = vpop.f32.mrb[92].mxu1  ;;  %v1575_v42 = vpop.f32.mrb[92].mxu0 }
 0x1d2   : > { %2187 = vst.msk [vmem:[%s3092_s21 + $0x160] sm:$0xff] %vm2142_vm0, %v2088_v39  ;;  %v1991_v43 = vadd.f32 %v3341_v58, %v1886_v40  ;;  %v1576_v44 = vadd.f32 %v1575_v42, %v1020_v41  ;;  %v1022_v45 = vpop.f32.mrb[93].mxu1  ;;  %v1577_v46 = vpop.f32.mrb[93].mxu0 }
 0x1d4   : > { %v2089_v47 = vmax.f32 %v1991_v43, 0.0  ;;  %v1887_v48 = vmul.f32 %v3331_v53, %v1576_v44 }
 0x1d5   : > { %v1025_v49 = vpop.f32.mrb[94].mxu1  ;;  %v1580_v50 = vpop.f32.mrb[94].mxu0 }
 0x1d6   : > { %2188 = vst.msk [vmem:[%s3092_s21 + $0x168] sm:$0xff] %vm2142_vm0, %v2089_v47  ;;  %v1992_v51 = vadd.f32 %v3341_v58, %v1887_v48  ;;  %v1581_v61 = vadd.f32 %v1580_v50, %v1025_v49  ;;  %v1027_v52 = vpop.f32.mrb[95].mxu1  ;;  %v1582_v54 = vpop.f32.mrb[95].mxu0 }
 0x1d8   : > { %v2090_v1 = vmax.f32 %v1992_v51, 0.0  ;;  %v1888_v55 = vmul.f32 %v3331_v53, %v1581_v61 }
 0x1d9   : > { %v1030_v56 = vpop.f32.mrb[96].mxu1  ;;  %v1585_v57 = vpop.f32.mrb[96].mxu0 }
 0x1da   : > { %2189 = vst.msk [vmem:[%s3092_s21 + $0x170] sm:$0xff] %vm2142_vm0, %v2090_v1  ;;  %v1993_v59 = vadd.f32 %v3341_v58, %v1888_v55  ;;  %v1586_v60 = vadd.f32 %v1585_v57, %v1030_v56  ;;  %v1032_v62 = vpop.f32.mrb[97].mxu1  ;;  %v1587_v63 = vpop.f32.mrb[97].mxu0 }
 0x1dc   : > { %v2091_v0 = vmax.f32 %v1993_v59, 0.0  ;;  %v1889_v2 = vmul.f32 %v3331_v53, %v1586_v60 }
 0x1dd   : > { %v1035_v3 = vpop.f32.mrb[98].mxu1  ;;  %v1590_v4 = vpop.f32.mrb[98].mxu0 }
 0x1de   : > { %2190 = vst.msk [vmem:[%s3092_s21 + $0x178] sm:$0xff] %vm2142_vm0, %v2091_v0  ;;  %v1994_v5 = vadd.f32 %v3341_v58, %v1889_v2  ;;  %v1591_v6 = vadd.f32 %v1590_v4, %v1035_v3  ;;  %v1037_v7 = vpop.f32.mrb[99].mxu1  ;;  %v1592_v8 = vpop.f32.mrb[99].mxu0 }
 0x1e0   : > { %v2092_v9 = vmax.f32 %v1994_v5, 0.0  ;;  %v1890_v10 = vmul.f32 %v3331_v53, %v1591_v6 }
 0x1e1   : > { %v1040_v11 = vpop.f32.mrb[100].mxu1  ;;  %v1595_v12 = vpop.f32.mrb[100].mxu0 }
 0x1e2   : > { %2191 = vst.msk [vmem:[%s3092_s21 + $0x180] sm:$0xff] %vm2142_vm0, %v2092_v9  ;;  %v1995_v13 = vadd.f32 %v3341_v58, %v1890_v10  ;;  %v1596_v14 = vadd.f32 %v1595_v12, %v1040_v11  ;;  %v1042_v15 = vpop.f32.mrb[101].mxu1  ;;  %v1597_v16 = vpop.f32.mrb[101].mxu0 }
 0x1e4   : > { %v2093_v17 = vmax.f32 %v1995_v13, 0.0  ;;  %v1891_v18 = vmul.f32 %v3331_v53, %v1596_v14 }
 0x1e5   : > { %v1045_v19 = vpop.f32.mrb[102].mxu1  ;;  %v1600_v20 = vpop.f32.mrb[102].mxu0 }
 0x1e6   : > { %2192 = vst.msk [vmem:[%s3092_s21 + $0x188] sm:$0xff] %vm2142_vm0, %v2093_v17  ;;  %v1996_v21 = vadd.f32 %v3341_v58, %v1891_v18  ;;  %v1601_v22 = vadd.f32 %v1600_v20, %v1045_v19  ;;  %v1047_v23 = vpop.f32.mrb[103].mxu1  ;;  %v1602_v24 = vpop.f32.mrb[103].mxu0 }
 0x1e8   : > { %v2094_v25 = vmax.f32 %v1996_v21, 0.0  ;;  %v1892_v26 = vmul.f32 %v3331_v53, %v1601_v22 }
 0x1e9   : > { %v1050_v27 = vpop.f32.mrb[104].mxu1  ;;  %v1605_v28 = vpop.f32.mrb[104].mxu0 }
 0x1ea   : > { %2193 = vst.msk [vmem:[%s3092_s21 + $0x190] sm:$0xff] %vm2142_vm0, %v2094_v25  ;;  %v1997_v29 = vadd.f32 %v3341_v58, %v1892_v26  ;;  %v1606_v30 = vadd.f32 %v1605_v28, %v1050_v27  ;;  %v1052_v31 = vpop.f32.mrb[105].mxu1  ;;  %v1607_v32 = vpop.f32.mrb[105].mxu0 }
 0x1ec   : > { %v2095_v33 = vmax.f32 %v1997_v29, 0.0  ;;  %v1893_v34 = vmul.f32 %v3331_v53, %v1606_v30 }
 0x1ed   : > { %v1055_v35 = vpop.f32.mrb[106].mxu1  ;;  %v1610_v36 = vpop.f32.mrb[106].mxu0 }
 0x1ee   : > { %2194 = vst.msk [vmem:[%s3092_s21 + $0x198] sm:$0xff] %vm2142_vm0, %v2095_v33  ;;  %v1998_v37 = vadd.f32 %v3341_v58, %v1893_v34  ;;  %v1611_v38 = vadd.f32 %v1610_v36, %v1055_v35  ;;  %v1057_v39 = vpop.f32.mrb[107].mxu1  ;;  %v1612_v40 = vpop.f32.mrb[107].mxu0 }
 0x1f0   : > { %v2096_v41 = vmax.f32 %v1998_v37, 0.0  ;;  %v1894_v42 = vmul.f32 %v3331_v53, %v1611_v38 }
 0x1f1   : > { %v1060_v43 = vpop.f32.mrb[108].mxu1  ;;  %v1615_v44 = vpop.f32.mrb[108].mxu0 }
 0x1f2   : > { %2195 = vst.msk [vmem:[%s3092_s21 + $0x1a0] sm:$0xff] %vm2142_vm0, %v2096_v41  ;;  %v1999_v45 = vadd.f32 %v3341_v58, %v1894_v42  ;;  %v1616_v46 = vadd.f32 %v1615_v44, %v1060_v43  ;;  %v1062_v47 = vpop.f32.mrb[109].mxu1  ;;  %v1617_v48 = vpop.f32.mrb[109].mxu0 }
 0x1f4   : > { %v2097_v49 = vmax.f32 %v1999_v45, 0.0  ;;  %v1895_v50 = vmul.f32 %v3331_v53, %v1616_v46 }
 0x1f5   : > { %v1065_v51 = vpop.f32.mrb[110].mxu1  ;;  %v1620_v61 = vpop.f32.mrb[110].mxu0 }
 0x1f6   : > { %2196 = vst.msk [vmem:[%s3092_s21 + $0x1a8] sm:$0xff] %vm2142_vm0, %v2097_v49  ;;  %v2000_v52 = vadd.f32 %v3341_v58, %v1895_v50  ;;  %v1621_v54 = vadd.f32 %v1620_v61, %v1065_v51  ;;  %v1067_v1 = vpop.f32.mrb[111].mxu1  ;;  %v1622_v55 = vpop.f32.mrb[111].mxu0 }
 0x1f8   : > { %v2098_v56 = vmax.f32 %v2000_v52, 0.0  ;;  %v1896_v57 = vmul.f32 %v3331_v53, %v1621_v54 }
 0x1f9   : > { %v1070_v59 = vpop.f32.mrb[112].mxu1  ;;  %v1625_v60 = vpop.f32.mrb[112].mxu0 }
 0x1fa   : > { %2197 = vst.msk [vmem:[%s3092_s21 + $0x1b0] sm:$0xff] %vm2142_vm0, %v2098_v56  ;;  %v2001_v62 = vadd.f32 %v3341_v58, %v1896_v57  ;;  %v1626_v63 = vadd.f32 %v1625_v60, %v1070_v59  ;;  %v1072_v0 = vpop.f32.mrb[113].mxu1  ;;  %v1627_v2 = vpop.f32.mrb[113].mxu0 }
 0x1fc   : > { %v2099_v3 = vmax.f32 %v2001_v62, 0.0  ;;  %v1897_v4 = vmul.f32 %v3331_v53, %v1626_v63 }
 0x1fd   : > { %v1075_v5 = vpop.f32.mrb[114].mxu1  ;;  %v1630_v6 = vpop.f32.mrb[114].mxu0 }
 0x1fe   : > { %2198 = vst.msk [vmem:[%s3092_s21 + $0x1b8] sm:$0xff] %vm2142_vm0, %v2099_v3  ;;  %v2002_v7 = vadd.f32 %v3341_v58, %v1897_v4  ;;  %v1631_v8 = vadd.f32 %v1630_v6, %v1075_v5  ;;  %v1077_v9 = vpop.f32.mrb[115].mxu1  ;;  %v1632_v10 = vpop.f32.mrb[115].mxu0 }
 0x200   : > { %v2100_v11 = vmax.f32 %v2002_v7, 0.0  ;;  %v1898_v12 = vmul.f32 %v3331_v53, %v1631_v8 }
 0x201   : > { %v1080_v13 = vpop.f32.mrb[116].mxu1  ;;  %v1635_v14 = vpop.f32.mrb[116].mxu0 }
 0x202   : > { %2199 = vst.msk [vmem:[%s3092_s21 + $0x1c0] sm:$0xff] %vm2142_vm0, %v2100_v11  ;;  %v2003_v15 = vadd.f32 %v3341_v58, %v1898_v12  ;;  %v1636_v16 = vadd.f32 %v1635_v14, %v1080_v13  ;;  %v1082_v17 = vpop.f32.mrb[117].mxu1  ;;  %v1637_v18 = vpop.f32.mrb[117].mxu0 }
 0x204   : > { %v2101_v19 = vmax.f32 %v2003_v15, 0.0  ;;  %v1899_v20 = vmul.f32 %v3331_v53, %v1636_v16 }
 0x205   : > { %v1085_v21 = vpop.f32.mrb[118].mxu1  ;;  %v1640_v22 = vpop.f32.mrb[118].mxu0 }
 0x206   : > { %2200 = vst.msk [vmem:[%s3092_s21 + $0x1c8] sm:$0xff] %vm2142_vm0, %v2101_v19  ;;  %v2004_v23 = vadd.f32 %v3341_v58, %v1899_v20  ;;  %v1641_v24 = vadd.f32 %v1640_v22, %v1085_v21  ;;  %v1087_v25 = vpop.f32.mrb[119].mxu1  ;;  %v1642_v26 = vpop.f32.mrb[119].mxu0 }
 0x208   : > { %v2102_v27 = vmax.f32 %v2004_v23, 0.0  ;;  %v1900_v28 = vmul.f32 %v3331_v53, %v1641_v24 }
 0x209   : > { %v1090_v29 = vpop.f32.mrb[120].mxu1  ;;  %v1645_v30 = vpop.f32.mrb[120].mxu0 }
 0x20a   : > { %2201 = vst.msk [vmem:[%s3092_s21 + $0x1d0] sm:$0xff] %vm2142_vm0, %v2102_v27  ;;  %v2005_v31 = vadd.f32 %v3341_v58, %v1900_v28  ;;  %v1646_v32 = vadd.f32 %v1645_v30, %v1090_v29  ;;  %v1092_v33 = vpop.f32.mrb[121].mxu1  ;;  %v1647_v34 = vpop.f32.mrb[121].mxu0 }
 0x20c   : > { %v2103_v35 = vmax.f32 %v2005_v31, 0.0  ;;  %v1901_v36 = vmul.f32 %v3331_v53, %v1646_v32 }
 0x20d   : > { %v1095_v37 = vpop.f32.mrb[122].mxu1  ;;  %v1650_v38 = vpop.f32.mrb[122].mxu0 }
 0x20e   : > { %2202 = vst.msk [vmem:[%s3092_s21 + $0x1d8] sm:$0xff] %vm2142_vm0, %v2103_v35  ;;  %v2006_v39 = vadd.f32 %v3341_v58, %v1901_v36  ;;  %v1651_v40 = vadd.f32 %v1650_v38, %v1095_v37  ;;  %v1097_v41 = vpop.f32.mrb[123].mxu1  ;;  %v1652_v42 = vpop.f32.mrb[123].mxu0 }
 0x210   : > { %v2104_v43 = vmax.f32 %v2006_v39, 0.0  ;;  %v1902_v44 = vmul.f32 %v3331_v53, %v1651_v40 }
 0x211   : > { %v1100_v45 = vpop.f32.mrb[124].mxu1  ;;  %v1655_v46 = vpop.f32.mrb[124].mxu0 }
 0x212   : > { %2203 = vst.msk [vmem:[%s3092_s21 + $0x1e0] sm:$0xff] %vm2142_vm0, %v2104_v43  ;;  %v2007_v47 = vadd.f32 %v3341_v58, %v1902_v44  ;;  %v1656_v48 = vadd.f32 %v1655_v46, %v1100_v45  ;;  %v1102_v49 = vpop.f32.mrb[125].mxu1  ;;  %v1657_v50 = vpop.f32.mrb[125].mxu0 }
 0x214   : > { %v2105_v51 = vmax.f32 %v2007_v47, 0.0  ;;  %v1903_v61 = vmul.f32 %v3331_v53, %v1656_v48 }
 0x215   : > { %v1105_v52 = vpop.f32.mrb[126].mxu1  ;;  %v1660_v54 = vpop.f32.mrb[126].mxu0 }
 0x216   : > { %2204 = vst.msk [vmem:[%s3092_s21 + $0x1e8] sm:$0xff] %vm2142_vm0, %v2105_v51  ;;  %v2008_v1 = vadd.f32 %v3341_v58, %v1903_v61  ;;  %v1661_v55 = vadd.f32 %v1660_v54, %v1105_v52  ;;  %v1107_v56 = vpop.f32.mrb[127].mxu1  ;;  %v1662_v57 = vpop.f32.mrb[127].mxu0 }
 0x218   : > { %v2106_v59 = vmax.f32 %v2008_v1, 0.0  ;;  %v1904_v60 = vmul.f32 %v3331_v53, %v1661_v55 }
 0x219   : > { %v1110_v62 = vpop.f32.mrb[128].mxu1  ;;  %v1665_v63 = vpop.f32.mrb[128].mxu0 }
 0x21a   : > { %2205 = vst.msk [vmem:[%s3092_s21 + $0x1f0] sm:$0xff] %vm2142_vm0, %v2106_v59  ;;  %v2009_v0 = vadd.f32 %v3341_v58, %v1904_v60  ;;  %v1666_v2 = vadd.f32 %v1665_v63, %v1110_v62  ;;  %v1112_v3 = vpop.f32.mrb[129].mxu1  ;;  %v1667_v4 = vpop.f32.mrb[129].mxu0 }
 0x21c   : > { %v2107_v5 = vmax.f32 %v2009_v0, 0.0  ;;  %v1905_v6 = vmul.f32 %v3331_v53, %v1666_v2 }
 0x21d   : > { %v1115_v7 = vpop.f32.mrb[130].mxu1  ;;  %v1670_v8 = vpop.f32.mrb[130].mxu0 }
 0x21e   : > { %2206 = vst.msk [vmem:[%s3092_s21 + $0x1f8] sm:$0xff] %vm2142_vm0, %v2107_v5  ;;  %v2010_v9 = vadd.f32 %v3341_v58, %v1905_v6  ;;  %v1671_v10 = vadd.f32 %v1670_v8, %v1115_v7  ;;  %v1117_v11 = vpop.f32.mrb[131].mxu1  ;;  %v1672_v12 = vpop.f32.mrb[131].mxu0 }
 0x220   : > { %v2108_v13 = vmax.f32 %v2010_v9, 0.0  ;;  %v1906_v14 = vmul.f32 %v3331_v53, %v1671_v10 }
 0x221   : > { %v1120_v15 = vpop.f32.mrb[132].mxu1  ;;  %v1675_v16 = vpop.f32.mrb[132].mxu0 }
 0x222   : > { %2207 = vst.msk [vmem:[%s3092_s21 + $0x200] sm:$0xff] %vm2142_vm0, %v2108_v13  ;;  %v2011_v17 = vadd.f32 %v3341_v58, %v1906_v14  ;;  %v1676_v18 = vadd.f32 %v1675_v16, %v1120_v15  ;;  %v1122_v19 = vpop.f32.mrb[133].mxu1  ;;  %v1677_v20 = vpop.f32.mrb[133].mxu0 }
 0x224   : > { %v2109_v21 = vmax.f32 %v2011_v17, 0.0  ;;  %v1907_v22 = vmul.f32 %v3331_v53, %v1676_v18 }
 0x225   : > { %v1125_v23 = vpop.f32.mrb[134].mxu1  ;;  %v1680_v24 = vpop.f32.mrb[134].mxu0 }
 0x226   : > { %2208 = vst.msk [vmem:[%s3092_s21 + $0x208] sm:$0xff] %vm2142_vm0, %v2109_v21  ;;  %v2012_v25 = vadd.f32 %v3341_v58, %v1907_v22  ;;  %v1681_v26 = vadd.f32 %v1680_v24, %v1125_v23  ;;  %v1127_v27 = vpop.f32.mrb[135].mxu1  ;;  %v1682_v28 = vpop.f32.mrb[135].mxu0 }
 0x228   : > { %v2110_v29 = vmax.f32 %v2012_v25, 0.0  ;;  %v1908_v30 = vmul.f32 %v3331_v53, %v1681_v26 }
 0x229   : > { %v1130_v31 = vpop.f32.mrb[136].mxu1  ;;  %v1685_v32 = vpop.f32.mrb[136].mxu0 }
 0x22a   : > { %2209 = vst.msk [vmem:[%s3092_s21 + $0x210] sm:$0xff] %vm2142_vm0, %v2110_v29  ;;  %v2013_v33 = vadd.f32 %v3341_v58, %v1908_v30  ;;  %v1686_v34 = vadd.f32 %v1685_v32, %v1130_v31  ;;  %v1132_v35 = vpop.f32.mrb[137].mxu1  ;;  %v1687_v36 = vpop.f32.mrb[137].mxu0 }
 0x22c   : > { %v2111_v37 = vmax.f32 %v2013_v33, 0.0  ;;  %v1909_v38 = vmul.f32 %v3331_v53, %v1686_v34 }
 0x22d   : > { %v1135_v39 = vpop.f32.mrb[138].mxu1  ;;  %v1690_v40 = vpop.f32.mrb[138].mxu0 }
 0x22e   : > { %2210 = vst.msk [vmem:[%s3092_s21 + $0x218] sm:$0xff] %vm2142_vm0, %v2111_v37  ;;  %v2014_v41 = vadd.f32 %v3341_v58, %v1909_v38  ;;  %v1691_v42 = vadd.f32 %v1690_v40, %v1135_v39  ;;  %v1137_v43 = vpop.f32.mrb[139].mxu1  ;;  %v1692_v44 = vpop.f32.mrb[139].mxu0  ;;  %v3577_v40 = vld [vmem:[%s3679_s2] ss:$0 sm:$0xff] }
 0x230   : > { %v2112_v45 = vmax.f32 %v2014_v41, 0.0  ;;  %v1910_v46 = vmul.f32 %v3331_v53, %v1691_v42 }
 0x231   : > { %v1140_v47 = vpop.f32.mrb[140].mxu1  ;;  %v1695_v48 = vpop.f32.mrb[140].mxu0 }
 0x232   : > { %2211 = vst.msk [vmem:[%s3092_s21 + $0x220] sm:$0xff] %vm2142_vm0, %v2112_v45  ;;  %v2015_v49 = vadd.f32 %v3341_v58, %v1910_v46  ;;  %v1696_v50 = vadd.f32 %v1695_v48, %v1140_v47  ;;  %v1142_v51 = vpop.f32.mrb[141].mxu1  ;;  %v1697_v61 = vpop.f32.mrb[141].mxu0 }
 0x234   : > { %v2113_v52 = vmax.f32 %v2015_v49, 0.0  ;;  %v1911_v54 = vmul.f32 %v3331_v53, %v1696_v50 }
 0x235   : > { %v1145_v1 = vpop.f32.mrb[142].mxu1  ;;  %v1700_v55 = vpop.f32.mrb[142].mxu0 }
 0x236   : > { %2212 = vst.msk [vmem:[%s3092_s21 + $0x228] sm:$0xff] %vm2142_vm0, %v2113_v52  ;;  %v2016_v56 = vadd.f32 %v3341_v58, %v1911_v54  ;;  %v1701_v57 = vadd.f32 %v1700_v55, %v1145_v1  ;;  %v1147_v59 = vpop.f32.mrb[143].mxu1  ;;  %v1702_v60 = vpop.f32.mrb[143].mxu0 }
 0x238   : > { %v2114_v62 = vmax.f32 %v2016_v56, 0.0  ;;  %v1912_v63 = vmul.f32 %v3331_v53, %v1701_v57 }
 0x239   : > { %v1150_v0 = vpop.f32.mrb[144].mxu1  ;;  %v1705_v2 = vpop.f32.mrb[144].mxu0 }
 0x23a   : > { %2213 = vst.msk [vmem:[%s3092_s21 + $0x230] sm:$0xff] %vm2142_vm0, %v2114_v62  ;;  %v2017_v3 = vadd.f32 %v3341_v58, %v1912_v63  ;;  %v1706_v4 = vadd.f32 %v1705_v2, %v1150_v0  ;;  %v1152_v5 = vpop.f32.mrb[145].mxu1  ;;  %v1707_v6 = vpop.f32.mrb[145].mxu0 }
 0x23c   : > { %v2115_v7 = vmax.f32 %v2017_v3, 0.0  ;;  %v1913_v8 = vmul.f32 %v3331_v53, %v1706_v4 }
 0x23d   : > { %v1155_v9 = vpop.f32.mrb[146].mxu1  ;;  %v1710_v10 = vpop.f32.mrb[146].mxu0 }
 0x23e   : > { %2214 = vst.msk [vmem:[%s3092_s21 + $0x238] sm:$0xff] %vm2142_vm0, %v2115_v7  ;;  %v2018_v11 = vadd.f32 %v3341_v58, %v1913_v8  ;;  %v1711_v12 = vadd.f32 %v1710_v10, %v1155_v9  ;;  %v1157_v13 = vpop.f32.mrb[147].mxu1  ;;  %v1712_v14 = vpop.f32.mrb[147].mxu0 }
 0x240   : > { %v2116_v15 = vmax.f32 %v2018_v11, 0.0  ;;  %v1914_v16 = vmul.f32 %v3331_v53, %v1711_v12 }
 0x241   : > { %v1160_v17 = vpop.f32.mrb[148].mxu1  ;;  %v1715_v18 = vpop.f32.mrb[148].mxu0 }
 0x242   : > { %2215 = vst.msk [vmem:[%s3092_s21 + $0x240] sm:$0xff] %vm2142_vm0, %v2116_v15  ;;  %v2019_v19 = vadd.f32 %v3341_v58, %v1914_v16  ;;  %v1716_v20 = vadd.f32 %v1715_v18, %v1160_v17  ;;  %v1162_v21 = vpop.f32.mrb[149].mxu1  ;;  %v1717_v22 = vpop.f32.mrb[149].mxu0 }
 0x244   : > { %v2117_v23 = vmax.f32 %v2019_v19, 0.0  ;;  %v1915_v24 = vmul.f32 %v3331_v53, %v1716_v20 }
 0x245   : > { %v1165_v25 = vpop.f32.mrb[150].mxu1  ;;  %v1720_v26 = vpop.f32.mrb[150].mxu0 }
 0x246   : > { %2216 = vst.msk [vmem:[%s3092_s21 + $0x248] sm:$0xff] %vm2142_vm0, %v2117_v23  ;;  %v2020_v27 = vadd.f32 %v3341_v58, %v1915_v24  ;;  %v1721_v28 = vadd.f32 %v1720_v26, %v1165_v25  ;;  %v1167_v29 = vpop.f32.mrb[151].mxu1  ;;  %v1722_v30 = vpop.f32.mrb[151].mxu0 }
 0x248   : > { %v2118_v31 = vmax.f32 %v2020_v27, 0.0  ;;  %v1916_v32 = vmul.f32 %v3331_v53, %v1721_v28 }
 0x249   : > { %v1170_v33 = vpop.f32.mrb[152].mxu1  ;;  %v1725_v34 = vpop.f32.mrb[152].mxu0 }
 0x24a   : > { %2217 = vst.msk [vmem:[%s3092_s21 + $0x250] sm:$0xff] %vm2142_vm0, %v2118_v31  ;;  %v2021_v35 = vadd.f32 %v3341_v58, %v1916_v32  ;;  %v1726_v36 = vadd.f32 %v1725_v34, %v1170_v33  ;;  %v1172_v37 = vpop.f32.mrb[153].mxu1  ;;  %v1727_v38 = vpop.f32.mrb[153].mxu0  ;;  %v3585_v58 = vld [vmem:[%s3680_s3] ss:$0 sm:$0xff] }
 0x24c   : > { %v2119_v39 = vmax.f32 %v2021_v35, 0.0  ;;  %v1917_v41 = vmul.f32 %v3577_v40, %v1726_v36 }
 0x24d   : > { %v1175_v42 = vpop.f32.mrb[154].mxu1  ;;  %v1730_v53 = vpop.f32.mrb[154].mxu0 }
 0x24e   : > { %2218 = vst.msk [vmem:[%s3092_s21 + $0x258] sm:$0xff] %vm2142_vm0, %v2119_v39  ;;  %v2022_v43 = vadd.f32 %v3585_v58, %v1917_v41  ;;  %v1731_v44 = vadd.f32 %v1730_v53, %v1175_v42  ;;  %v1177_v45 = vpop.f32.mrb[155].mxu1  ;;  %v1732_v46 = vpop.f32.mrb[155].mxu0 }
 0x250   : > { %v2120_v47 = vmax.f32 %v2022_v43, 0.0  ;;  %v1918_v48 = vmul.f32 %v3577_v40, %v1731_v44 }
 0x251   : > { %v1180_v49 = vpop.f32.mrb[156].mxu1  ;;  %v1735_v50 = vpop.f32.mrb[156].mxu0 }
 0x252   : > { %2219 = vst.msk [vmem:[%s3092_s21 + $0x260] sm:$0xff] %vm2142_vm0, %v2120_v47  ;;  %v2023_v51 = vadd.f32 %v3585_v58, %v1918_v48  ;;  %v1736_v61 = vadd.f32 %v1735_v50, %v1180_v49  ;;  %v1182_v52 = vpop.f32.mrb[157].mxu1  ;;  %v1737_v54 = vpop.f32.mrb[157].mxu0 }
 0x254   : > { %v2121_v1 = vmax.f32 %v2023_v51, 0.0  ;;  %v1919_v55 = vmul.f32 %v3577_v40, %v1736_v61 }
 0x255   : > { %v1185_v56 = vpop.f32.mrb[158].mxu1  ;;  %v1740_v57 = vpop.f32.mrb[158].mxu0 }
 0x256   : > { %2220 = vst.msk [vmem:[%s3092_s21 + $0x268] sm:$0xff] %vm2142_vm0, %v2121_v1  ;;  %v2024_v59 = vadd.f32 %v3585_v58, %v1919_v55  ;;  %v1741_v60 = vadd.f32 %v1740_v57, %v1185_v56  ;;  %v1187_v62 = vpop.f32.mrb[159].mxu1  ;;  %v1742_v63 = vpop.f32.mrb[159].mxu0 }
 0x258   : > { %v2122_v0 = vmax.f32 %v2024_v59, 0.0  ;;  %v1920_v2 = vmul.f32 %v3577_v40, %v1741_v60 }
 0x259   : > { %v1190_v3 = vpop.f32.mrb[160].mxu1  ;;  %v1745_v4 = vpop.f32.mrb[160].mxu0 }
 0x25a   : > { %2221 = vst.msk [vmem:[%s3092_s21 + $0x270] sm:$0xff] %vm2142_vm0, %v2122_v0  ;;  %v2025_v5 = vadd.f32 %v3585_v58, %v1920_v2  ;;  %v1746_v6 = vadd.f32 %v1745_v4, %v1190_v3  ;;  %v1192_v7 = vpop.f32.mrb[161].mxu1  ;;  %v1747_v8 = vpop.f32.mrb[161].mxu0 }
 0x25c   : > { %v2123_v9 = vmax.f32 %v2025_v5, 0.0  ;;  %v1921_v10 = vmul.f32 %v3577_v40, %v1746_v6 }
 0x25d   : > { %v1195_v11 = vpop.f32.mrb[162].mxu1  ;;  %v1750_v12 = vpop.f32.mrb[162].mxu0 }
 0x25e   : > { %2222 = vst.msk [vmem:[%s3092_s21 + $0x278] sm:$0xff] %vm2142_vm0, %v2123_v9  ;;  %v2026_v13 = vadd.f32 %v3585_v58, %v1921_v10  ;;  %v1751_v14 = vadd.f32 %v1750_v12, %v1195_v11  ;;  %v1197_v15 = vpop.f32.mrb[163].mxu1  ;;  %v1752_v16 = vpop.f32.mrb[163].mxu0 }
 0x260   : > { %v2124_v17 = vmax.f32 %v2026_v13, 0.0  ;;  %v1922_v18 = vmul.f32 %v3577_v40, %v1751_v14 }
 0x261   : > { %v1200_v19 = vpop.f32.mrb[164].mxu1  ;;  %v1755_v20 = vpop.f32.mrb[164].mxu0 }
 0x262   : > { %2223 = vst.msk [vmem:[%s3092_s21 + $0x280] sm:$0xff] %vm2142_vm0, %v2124_v17  ;;  %v2027_v21 = vadd.f32 %v3585_v58, %v1922_v18  ;;  %v1756_v22 = vadd.f32 %v1755_v20, %v1200_v19  ;;  %v1202_v23 = vpop.f32.mrb[165].mxu1  ;;  %v1757_v24 = vpop.f32.mrb[165].mxu0 }
 0x264   : > { %v2125_v25 = vmax.f32 %v2027_v21, 0.0  ;;  %v1923_v26 = vmul.f32 %v3577_v40, %v1756_v22 }
 0x265   : > { %v1205_v27 = vpop.f32.mrb[166].mxu1  ;;  %v1760_v28 = vpop.f32.mrb[166].mxu0 }
 0x266   : > { %2224 = vst.msk [vmem:[%s3092_s21 + $0x288] sm:$0xff] %vm2142_vm0, %v2125_v25  ;;  %v2028_v29 = vadd.f32 %v3585_v58, %v1923_v26  ;;  %v1761_v30 = vadd.f32 %v1760_v28, %v1205_v27  ;;  %v1207_v31 = vpop.f32.mrb[167].mxu1  ;;  %v1762_v32 = vpop.f32.mrb[167].mxu0 }
 0x268   : > { %v2126_v33 = vmax.f32 %v2028_v29, 0.0  ;;  %v1924_v34 = vmul.f32 %v3577_v40, %v1761_v30 }
 0x269   : > { %v1210_v35 = vpop.f32.mrb[168].mxu1  ;;  %v1765_v36 = vpop.f32.mrb[168].mxu0 }
 0x26a   : > { %2225 = vst.msk [vmem:[%s3092_s21 + $0x290] sm:$0xff] %vm2142_vm0, %v2126_v33  ;;  %v2029_v37 = vadd.f32 %v3585_v58, %v1924_v34  ;;  %v1766_v38 = vadd.f32 %v1765_v36, %v1210_v35  ;;  %v1212_v39 = vpop.f32.mrb[169].mxu1  ;;  %v1767_v41 = vpop.f32.mrb[169].mxu0 }
 0x26c   : > { %v2127_v42 = vmax.f32 %v2029_v37, 0.0  ;;  %v1925_v53 = vmul.f32 %v3577_v40, %v1766_v38 }
 0x26d   : > { %v1215_v43 = vpop.f32.mrb[170].mxu1  ;;  %v1770_v44 = vpop.f32.mrb[170].mxu0 }
 0x26e   : > { %2226 = vst.msk [vmem:[%s3092_s21 + $0x298] sm:$0xff] %vm2142_vm0, %v2127_v42  ;;  %v2030_v45 = vadd.f32 %v3585_v58, %v1925_v53  ;;  %v1771_v46 = vadd.f32 %v1770_v44, %v1215_v43  ;;  %v1217_v47 = vpop.f32.mrb[171].mxu1  ;;  %v1772_v48 = vpop.f32.mrb[171].mxu0 }
 0x270   : > { %v2128_v49 = vmax.f32 %v2030_v45, 0.0  ;;  %v1926_v50 = vmul.f32 %v3577_v40, %v1771_v46 }
 0x271   : > { %v1220_v51 = vpop.f32.mrb[172].mxu1  ;;  %v1775_v61 = vpop.f32.mrb[172].mxu0 }
 0x272   : > { %2227 = vst.msk [vmem:[%s3092_s21 + $0x2a0] sm:$0xff] %vm2142_vm0, %v2128_v49  ;;  %v2031_v52 = vadd.f32 %v3585_v58, %v1926_v50  ;;  %v1776_v54 = vadd.f32 %v1775_v61, %v1220_v51  ;;  %v1222_v1 = vpop.f32.mrb[173].mxu1  ;;  %v1777_v55 = vpop.f32.mrb[173].mxu0 }
 0x274   : > { %v2129_v56 = vmax.f32 %v2031_v52, 0.0  ;;  %v1927_v57 = vmul.f32 %v3577_v40, %v1776_v54 }
 0x275   : > { %v1225_v59 = vpop.f32.mrb[174].mxu1  ;;  %v1780_v60 = vpop.f32.mrb[174].mxu0 }
 0x276   : > { %2228 = vst.msk [vmem:[%s3092_s21 + $0x2a8] sm:$0xff] %vm2142_vm0, %v2129_v56  ;;  %v2032_v62 = vadd.f32 %v3585_v58, %v1927_v57  ;;  %v1781_v63 = vadd.f32 %v1780_v60, %v1225_v59  ;;  %v1227_v0 = vpop.f32.mrb[175].mxu1  ;;  %v1782_v2 = vpop.f32.mrb[175].mxu0 }
 0x278   : > { %v2130_v3 = vmax.f32 %v2032_v62, 0.0  ;;  %v1928_v4 = vmul.f32 %v3577_v40, %v1781_v63 }
 0x279   : > { %v1230_v5 = vpop.f32.mrb[176].mxu1  ;;  %v1785_v6 = vpop.f32.mrb[176].mxu0 }
 0x27a   : > { %2229 = vst.msk [vmem:[%s3092_s21 + $0x2b0] sm:$0xff] %vm2142_vm0, %v2130_v3  ;;  %v2033_v7 = vadd.f32 %v3585_v58, %v1928_v4  ;;  %v1786_v8 = vadd.f32 %v1785_v6, %v1230_v5  ;;  %v1232_v9 = vpop.f32.mrb[177].mxu1  ;;  %v1787_v10 = vpop.f32.mrb[177].mxu0 }
 0x27c   : > { %v2131_v11 = vmax.f32 %v2033_v7, 0.0  ;;  %v1929_v12 = vmul.f32 %v3577_v40, %v1786_v8 }
 0x27d   : > { %v1235_v13 = vpop.f32.mrb[178].mxu1  ;;  %v1790_v14 = vpop.f32.mrb[178].mxu0 }
 0x27e   : > { %2230 = vst.msk [vmem:[%s3092_s21 + $0x2b8] sm:$0xff] %vm2142_vm0, %v2131_v11  ;;  %v2034_v15 = vadd.f32 %v3585_v58, %v1929_v12  ;;  %v1791_v16 = vadd.f32 %v1790_v14, %v1235_v13  ;;  %v1237_v17 = vpop.f32.mrb[179].mxu1  ;;  %v1792_v18 = vpop.f32.mrb[179].mxu0 }
 0x280   : > { %v2132_v19 = vmax.f32 %v2034_v15, 0.0  ;;  %v1930_v20 = vmul.f32 %v3577_v40, %v1791_v16 }
 0x281   : > { %v1240_v21 = vpop.f32.mrb[180].mxu1  ;;  %v1795_v22 = vpop.f32.mrb[180].mxu0 }
 0x282   : > { %2231 = vst.msk [vmem:[%s3092_s21 + $0x2c0] sm:$0xff] %vm2142_vm0, %v2132_v19  ;;  %v2035_v23 = vadd.f32 %v3585_v58, %v1930_v20  ;;  %v1796_v24 = vadd.f32 %v1795_v22, %v1240_v21  ;;  %v1242_v25 = vpop.f32.mrb[181].mxu1  ;;  %v1797_v26 = vpop.f32.mrb[181].mxu0 }
 0x284   : > { %v2133_v27 = vmax.f32 %v2035_v23, 0.0  ;;  %v1931_v28 = vmul.f32 %v3577_v40, %v1796_v24 }
 0x285   : > { %v1245_v29 = vpop.f32.mrb[182].mxu1  ;;  %v1800_v30 = vpop.f32.mrb[182].mxu0 }
 0x286   : > { %2232 = vst.msk [vmem:[%s3092_s21 + $0x2c8] sm:$0xff] %vm2142_vm0, %v2133_v27  ;;  %v2036_v31 = vadd.f32 %v3585_v58, %v1931_v28  ;;  %v1801_v32 = vadd.f32 %v1800_v30, %v1245_v29  ;;  %v1247_v33 = vpop.f32.mrb[183].mxu1  ;;  %v1802_v34 = vpop.f32.mrb[183].mxu0 }
 0x288   : > { %v2134_v35 = vmax.f32 %v2036_v31, 0.0  ;;  %v1932_v36 = vmul.f32 %v3577_v40, %v1801_v32 }
 0x289   : > { %v1250_v37 = vpop.f32.mrb[184].mxu1  ;;  %v1805_v38 = vpop.f32.mrb[184].mxu0 }
 0x28a   : > { %2233 = vst.msk [vmem:[%s3092_s21 + $0x2d0] sm:$0xff] %vm2142_vm0, %v2134_v35  ;;  %v2037_v39 = vadd.f32 %v3585_v58, %v1932_v36  ;;  %v1806_v41 = vadd.f32 %v1805_v38, %v1250_v37  ;;  %v1252_v42 = vpop.f32.mrb[185].mxu1  ;;  %v1807_v53 = vpop.f32.mrb[185].mxu0 }
 0x28c   : > { %v2135_v43 = vmax.f32 %v2037_v39, 0.0  ;;  %v1933_v44 = vmul.f32 %v3577_v40, %v1806_v41 }
 0x28d   : > { %v1255_v45 = vpop.f32.mrb[186].mxu1  ;;  %v1810_v46 = vpop.f32.mrb[186].mxu0 }
 0x28e   : > { %2234 = vst.msk [vmem:[%s3092_s21 + $0x2d8] sm:$0xff] %vm2142_vm0, %v2135_v43  ;;  %v2038_v47 = vadd.f32 %v3585_v58, %v1933_v44  ;;  %v1811_v48 = vadd.f32 %v1810_v46, %v1255_v45  ;;  %v1257_v49 = vpop.f32.mrb[187].mxu1  ;;  %v1812_v50 = vpop.f32.mrb[187].mxu0 }
 0x290   : > { %v2136_v51 = vmax.f32 %v2038_v47, 0.0  ;;  %v1934_v61 = vmul.f32 %v3577_v40, %v1811_v48 }
 0x291   : > { %v1260_v52 = vpop.f32.mrb[188].mxu1  ;;  %v1815_v54 = vpop.f32.mrb[188].mxu0 }
 0x292   : > { %2235 = vst.msk [vmem:[%s3092_s21 + $0x2e0] sm:$0xff] %vm2142_vm0, %v2136_v51  ;;  %v2039_v1 = vadd.f32 %v3585_v58, %v1934_v61  ;;  %v1816_v55 = vadd.f32 %v1815_v54, %v1260_v52  ;;  %v1262_v56 = vpop.f32.mrb[189].mxu1  ;;  %v1817_v57 = vpop.f32.mrb[189].mxu0 }
 0x294   : > { %v2137_v59 = vmax.f32 %v2039_v1, 0.0  ;;  %v1935_v60 = vmul.f32 %v3577_v40, %v1816_v55 }
 0x295   : > { %v1265_v62 = vpop.f32.mrb[190].mxu1  ;;  %v1820_v63 = vpop.f32.mrb[190].mxu0 }
 0x296   : > { %2236 = vst.msk [vmem:[%s3092_s21 + $0x2e8] sm:$0xff] %vm2142_vm0, %v2137_v59  ;;  %v2040_v0 = vadd.f32 %v3585_v58, %v1935_v60  ;;  %v1821_v2 = vadd.f32 %v1820_v63, %v1265_v62  ;;  %v1267_v3 = vpop.f32.mrb[191].mxu1  ;;  %v1822_v4 = vpop.f32.mrb[191].mxu0 }
 0x298   : > { %v2138_v5 = vmax.f32 %v2040_v0, 0.0  ;;  %v1936_v6 = vmul.f32 %v3577_v40, %v1821_v2 }
 0x299   : > { %v1270_v7 = vpop.f32.mrb[192].mxu1  ;;  %v1825_v8 = vpop.f32.mrb[192].mxu0 }
 0x29a   : > { %2237 = vst.msk [vmem:[%s3092_s21 + $0x2f0] sm:$0xff] %vm2142_vm0, %v2138_v5  ;;  %v2041_v9 = vadd.f32 %v3585_v58, %v1936_v6  ;;  %v1826_v10 = vadd.f32 %v1825_v8, %v1270_v7  ;;  %v1272_v11 = vpop.f32.mrb[193].mxu1  ;;  %v1827_v12 = vpop.f32.mrb[193].mxu0 }
 0x29c   : > { %v2139_v13 = vmax.f32 %v2041_v9, 0.0  ;;  %v1937_v14 = vmul.f32 %v3577_v40, %v1826_v10 }
 0x29d   : > { %v1275_v15 = vpop.f32.mrb[194].mxu1  ;;  %v1830_v16 = vpop.f32.mrb[194].mxu0 }
 0x29e   : > { %2238 = vst.msk [vmem:[%s3092_s21 + $0x2f8] sm:$0xff] %vm2142_vm0, %v2139_v13  ;;  %v2042_v17 = vadd.f32 %v3585_v58, %v1937_v14  ;;  %v1831_v18 = vadd.f32 %v1830_v16, %v1275_v15  ;;  %v1277_v19 = vpop.f32.mrb[195].mxu1  ;;  %v1832_v20 = vpop.f32.mrb[195].mxu0 }
 0x2a0   : > { %v2140_v21 = vmax.f32 %v2042_v17, 0.0  ;;  %v1938_v22 = vmul.f32 %v3577_v40, %v1831_v18 }
 0x2a2   : > { %2239 = vst.msk [vmem:[%s3092_s21 + $0x300] sm:$0xff] %vm2142_vm0, %v2140_v21  ;;  %v2043_v23 = vadd.f32 %v3585_v58, %v1938_v22 }
 0x2a4   : > { %v2141_v24 = vmax.f32 %v2043_v23, 0.0 }
 0x2a6   : > { %2240 = vst.msk [vmem:[%s3092_s21 + $0x308] sm:$0xff] %vm2142_vm0, %v2141_v24 }
 0x2a7 PF: > { %s14_s15 = sadd.s32 1, %s2682_s15  }
 0x2a8   : > { %p11_p4 = scmp.ge.s32.totalorder %s14_s15, 4  }
 0x2aa   :  { %13 = sbr.rel (!%p11_p4) target bundleno = 1 (0x1), region = 66 }

// kernel: cnn_decoder_forward.7
= control target key start
LH: loop header
LB: loop body
LE: loop exit
PB: predicated region body
PF: predicated region fallthrough
CT: control target
= control target key end

     0   :  { %s4743_s15 = smov 0   ;;  %s6074_s0 = inlined_call_operand.vmem [shape: f32[6272,256], index: 0, kind: input, shape index: {}]   ;;  %s6075_s1 = inlined_call_operand.vmem [shape: bf16[256,8], index: 1, kind: input, shape index: {}]   ;;  %s6076_s2 = inlined_call_operand.vmem [shape: f32[1,8], index: 2, kind: input, shape index: {}]   ;;  %s6077_s3 = inlined_call_operand.vmem [shape: f32[1,8], index: 3, kind: input, shape index: {}]   ;;  %s6078_s4 = inlined_call_operand.vmem [shape: f32[6272,8], index: 4, kind: output, shape index: {}]  }
   0x1 LB: > { %s3540_s16 = sadd.s32 4294967295, %s4715_s15   ;;  %p3544_p0 = scmp.ge.s32.totalorder %s4715_s15, 1  ;;  %s4715_s15 = sphi %s4743_s15, %s14_s15  }
   0x2   : > { %p164_p1 = scmp.lt.s32.totalorder %s4715_s15, 5 }
   0x4   : > { %p165_p2 = pnand %p3544_p0, %p164_p1 }
   0x5   : > { %v3750_v0 = vld [vmem:[%s6075_s1] sm:$0xff] (!%p165_p2)   ;;  %s191_s19 = smul.u32 (!%p165_p2), 196, %s3540_s16  ;;  %v4717_v1 = vmov (!%p165_p2), 0.0|0.0   ;;  %v3813_v2 = vld [vmem:[%s6075_s1 + $0x8] sm:$0xff] (!%p165_p2)   ;;  %v3814_v3 = vld [vmem:[%s6075_s1 + $0x10] sm:$0xff] (!%p165_p2)   ;;  %vm3287_vm0 = vcmask (!%p165_p2), 64512  }
   0x6   : > { %168 = sbr.rel (%p165_p2) target bundleno = 704 (0x2c0), region = 36  ;;  %3828 = vmatprep.subr.bf16.mxu0 (!%p165_p2), %v4717_v1  ;;  %3876 = vmatprep.subr.bf16.mxu1 (!%p165_p2), %v4717_v1  ;;  %v3815_v6 = vld [vmem:[%s6075_s1 + $0x18] sm:$0xff] (!%p165_p2)   ;;  %v3816_v7 = vld [vmem:[%s6075_s1 + $0x20] sm:$0xff] (!%p165_p2)   ;;  %v3817_v8 = vld [vmem:[%s6075_s1 + $0x28] sm:$0xff] (!%p165_p2)  }
   0x7   : > { %3830 = vmatpush1.bf16.msra.mxu0 (!%p165_p2), %v3750_v0  ;;  %3892 = vmatpush1.bf16.msra.mxu1 (!%p165_p2), %v3750_v0  ;;  %p192_p3 = scmp.lt.s32.totalorder (!%p165_p2), %s191_s19, 783  ;;  %v3818_v9 = vld [vmem:[%s6075_s1 + $0x30] sm:$0xff] (!%p165_p2)   ;;  %v3819_v10 = vld [vmem:[%s6075_s1 + $0x38] sm:$0xff] (!%p165_p2)   ;;  %v3820_v11 = vld [vmem:[%s6075_s1 + $0x40] sm:$0xff] (!%p165_p2)  }
   0x8   : > { %3831 = vmatprep.subr.bf16.mxu0 (!%p165_p2), %v4717_v1  ;;  %3877 = vmatprep.subr.bf16.mxu1 (!%p165_p2), %v4717_v1  ;;  %v3821_v12 = vld [vmem:[%s6075_s1 + $0x48] sm:$0xff] (!%p165_p2)   ;;  %v3822_v13 = vld [vmem:[%s6075_s1 + $0x50] sm:$0xff] (!%p165_p2)   ;;  %v3823_v14 = vld [vmem:[%s6075_s1 + $0x58] sm:$0xff] (!%p165_p2)  }
   0x9   : > { %v3824_v15 = vld [vmem:[%s6075_s1 + $0x60] sm:$0xff] (!%p165_p2)   ;;  %v3825_v16 = vld [vmem:[%s6075_s1 + $0x68] sm:$0xff] (!%p165_p2)   ;;  %v3826_v17 = vld [vmem:[%s6075_s1 + $0x70] sm:$0xff] (!%p165_p2)  }
   0xa   : > { %v3827_v18 = vld [vmem:[%s6075_s1 + $0x78] sm:$0xff] (!%p165_p2)  }
   0xb   : > { %3833 = vmatpush1.bf16.msra.mxu0 (!%p165_p2), %v3813_v2  ;;  %3893 = vmatpush1.bf16.msra.mxu1 (!%p165_p2), %v3813_v2 }
   0xc   : > { %3834 = vmatprep.subr.bf16.mxu0 (!%p165_p2), %v4717_v1  ;;  %3878 = vmatprep.subr.bf16.mxu1 (!%p165_p2), %v4717_v1 }
   0xd   : > { %s6080_s19 = smov (!%p192_p3, %s191_s19), 783 }
   0xe   : > { %s3748_s22 = sshll.u32 %s6080_s19, 4  ;;  %s3547_s9 = sshll.u32 %s6080_s19, 3 }
   0xf   : > { %s4772_s27 = scalar_lea.vmem %s6074_s0, %s3748_s22  ;;  %3836 = vmatpush1.bf16.msra.mxu0 %v3814_v3  ;;  %3894 = vmatpush1.bf16.msra.mxu1 %v3814_v3  ;;  %s5127_s11 = scalar_lea.vmem %s6078_s4, %s3547_s9 }
  0x10   : > { %v269_v4 = vld [vmem:[%s4772_s27 + $0x8] sm:$0xff]  ;;  %3837 = vmatprep.subr.bf16.mxu0 %v4717_v1  ;;  %3879 = vmatprep.subr.bf16.mxu1 %v4717_v1  ;;  %v268_v19 = vld [vmem:[%s4772_s27] sm:$0xff]  ;;  %v271_v21 = vld [vmem:[%s4772_s27 + $0x18] sm:$0xff] }
  0x11   : > { %v465_v5 = vld [vmem:[%s4772_s27 + $0x628] sm:$0xff]  ;;  %724 = vmatprep.mubr.f32.mxu0 %v269_v4  ;;  %v464_v20 = vld [vmem:[%s4772_s27 + $0x620] sm:$0xff]  ;;  %v467_v22 = vld [vmem:[%s4772_s27 + $0x638] sm:$0xff] }
  0x12   : > { %1214 = vmatprep.mubr.f32.mxu1 %v465_v5  ;;  %v270_v23 = vld [vmem:[%s4772_s27 + $0x10] sm:$0xff]  ;;  %v273_v25 = vld [vmem:[%s4772_s27 + $0x28] sm:$0xff]  ;;  %v272_v27 = vld [vmem:[%s4772_s27 + $0x20] sm:$0xff] }
  0x13   : > { %3839 = vmatpush1.bf16.msra.mxu0 %v3815_v6  ;;  %3895 = vmatpush1.bf16.msra.mxu1 %v3815_v6  ;;  %v466_v24 = vld [vmem:[%s4772_s27 + $0x630] sm:$0xff]  ;;  %v469_v26 = vld [vmem:[%s4772_s27 + $0x648] sm:$0xff]  ;;  %v468_v28 = vld [vmem:[%s4772_s27 + $0x640] sm:$0xff] }
  0x14   : > { %3840 = vmatprep.subr.bf16.mxu0 %v4717_v1  ;;  %3880 = vmatprep.subr.bf16.mxu1 %v4717_v1  ;;  %v275_v29 = vld [vmem:[%s4772_s27 + $0x38] sm:$0xff]  ;;  %v274_v31 = vld [vmem:[%s4772_s27 + $0x30] sm:$0xff]  ;;  %v277_v33 = vld [vmem:[%s4772_s27 + $0x48] sm:$0xff] }
  0x15   : > { %v471_v30 = vld [vmem:[%s4772_s27 + $0x658] sm:$0xff]  ;;  %v470_v32 = vld [vmem:[%s4772_s27 + $0x650] sm:$0xff]  ;;  %v473_v34 = vld [vmem:[%s4772_s27 + $0x668] sm:$0xff] }
  0x16   : > { %v276_v35 = vld [vmem:[%s4772_s27 + $0x40] sm:$0xff]  ;;  %v279_v37 = vld [vmem:[%s4772_s27 + $0x58] sm:$0xff]  ;;  %v278_v39 = vld [vmem:[%s4772_s27 + $0x50] sm:$0xff] }
  0x17   : > { %3842 = vmatpush1.bf16.msra.mxu0 %v3816_v7  ;;  %3896 = vmatpush1.bf16.msra.mxu1 %v3816_v7  ;;  %v472_v36 = vld [vmem:[%s4772_s27 + $0x660] sm:$0xff]  ;;  %v475_v38 = vld [vmem:[%s4772_s27 + $0x678] sm:$0xff]  ;;  %v474_v40 = vld [vmem:[%s4772_s27 + $0x670] sm:$0xff] }
  0x18   : > { %3843 = vmatprep.subr.bf16.mxu0 %v4717_v1  ;;  %3881 = vmatprep.subr.bf16.mxu1 %v4717_v1  ;;  %v281_v41 = vld [vmem:[%s4772_s27 + $0x68] sm:$0xff]  ;;  %v280_v43 = vld [vmem:[%s4772_s27 + $0x60] sm:$0xff]  ;;  %v283_v45 = vld [vmem:[%s4772_s27 + $0x78] sm:$0xff] }
  0x19   : > { %v477_v42 = vld [vmem:[%s4772_s27 + $0x688] sm:$0xff]  ;;  %v476_v44 = vld [vmem:[%s4772_s27 + $0x680] sm:$0xff]  ;;  %v479_v46 = vld [vmem:[%s4772_s27 + $0x698] sm:$0xff] }
  0x1a   : > { %v282_v47 = vld [vmem:[%s4772_s27 + $0x70] sm:$0xff]  ;;  %v285_v49 = vld [vmem:[%s4772_s27 + $0x88] sm:$0xff]  ;;  %v284_v51 = vld [vmem:[%s4772_s27 + $0x80] sm:$0xff] }
  0x1b   : > { %3845 = vmatpush1.bf16.msra.mxu0 %v3817_v8  ;;  %3897 = vmatpush1.bf16.msra.mxu1 %v3817_v8  ;;  %v478_v48 = vld [vmem:[%s4772_s27 + $0x690] sm:$0xff]  ;;  %v481_v50 = vld [vmem:[%s4772_s27 + $0x6a8] sm:$0xff]  ;;  %v480_v52 = vld [vmem:[%s4772_s27 + $0x6a0] sm:$0xff] }
  0x1c   : > { %3846 = vmatprep.subr.bf16.mxu0 %v4717_v1  ;;  %3882 = vmatprep.subr.bf16.mxu1 %v4717_v1  ;;  %v287_v53 = vld [vmem:[%s4772_s27 + $0x98] sm:$0xff]  ;;  %v286_v55 = vld [vmem:[%s4772_s27 + $0x90] sm:$0xff]  ;;  %v289_v57 = vld [vmem:[%s4772_s27 + $0xa8] sm:$0xff] }
  0x1d   : > { %v483_v54 = vld [vmem:[%s4772_s27 + $0x6b8] sm:$0xff]  ;;  %v482_v56 = vld [vmem:[%s4772_s27 + $0x6b0] sm:$0xff]  ;;  %v485_v58 = vld [vmem:[%s4772_s27 + $0x6c8] sm:$0xff] }
  0x1e   : > { %v288_v59 = vld [vmem:[%s4772_s27 + $0xa0] sm:$0xff]  ;;  %v291_v61 = vld [vmem:[%s4772_s27 + $0xb8] sm:$0xff]  ;;  %v290_v63 = vld [vmem:[%s4772_s27 + $0xb0] sm:$0xff] }
  0x1f   : > { %3848 = vmatpush1.bf16.msra.mxu0 %v3818_v9  ;;  %3898 = vmatpush1.bf16.msra.mxu1 %v3818_v9  ;;  %v484_v60 = vld [vmem:[%s4772_s27 + $0x6c0] sm:$0xff]  ;;  %v487_v62 = vld [vmem:[%s4772_s27 + $0x6d8] sm:$0xff]  ;;  %v486_v0 = vld [vmem:[%s4772_s27 + $0x6d0] sm:$0xff] }
  0x20   : > { %3849 = vmatprep.subr.bf16.mxu0 %v4717_v1  ;;  %3883 = vmatprep.subr.bf16.mxu1 %v4717_v1  ;;  %v489_v2 = vld [vmem:[%s4772_s27 + $0x6e8] sm:$0xff]  ;;  %v292_v3 = vld [vmem:[%s4772_s27 + $0xc0] sm:$0xff]  ;;  %v295_v5 = vld [vmem:[%s4772_s27 + $0xd8] sm:$0xff] }
  0x21   : > { %v488_v4 = vld [vmem:[%s4772_s27 + $0x6e0] sm:$0xff]  ;;  %v491_v6 = vld [vmem:[%s4772_s27 + $0x6f8] sm:$0xff]  ;;  %v294_v7 = vld [vmem:[%s4772_s27 + $0xd0] sm:$0xff] }
  0x22   : > { %v490_v8 = vld [vmem:[%s4772_s27 + $0x6f0] sm:$0xff]  ;;  %v297_v9 = vld [vmem:[%s4772_s27 + $0xe8] sm:$0xff] }
  0x23   : > { %3851 = vmatpush1.bf16.msra.mxu0 %v3819_v10  ;;  %3899 = vmatpush1.bf16.msra.mxu1 %v3819_v10  ;;  %v493_v10 = vld [vmem:[%s4772_s27 + $0x708] sm:$0xff] }
  0x24   : > { %3852 = vmatprep.subr.bf16.mxu0 %v4717_v1  ;;  %3884 = vmatprep.subr.bf16.mxu1 %v4717_v1 }
  0x27   : > { %3854 = vmatpush1.bf16.msra.mxu0 %v3820_v11  ;;  %3900 = vmatpush1.bf16.msra.mxu1 %v3820_v11  ;;  %v296_v11 = vld [vmem:[%s4772_s27 + $0xe0] sm:$0xff] }
  0x28   : > { %3855 = vmatprep.subr.bf16.mxu0 %v4717_v1  ;;  %3885 = vmatprep.subr.bf16.mxu1 %v4717_v1 }
  0x2b   : > { %3857 = vmatpush1.bf16.msra.mxu0 %v3821_v12  ;;  %3901 = vmatpush1.bf16.msra.mxu1 %v3821_v12  ;;  %v492_v12 = vld [vmem:[%s4772_s27 + $0x700] sm:$0xff] }
  0x2c   : > { %3858 = vmatprep.subr.bf16.mxu0 %v4717_v1  ;;  %3886 = vmatprep.subr.bf16.mxu1 %v4717_v1 }
  0x2f   : > { %3860 = vmatpush1.bf16.msra.mxu0 %v3822_v13  ;;  %3902 = vmatpush1.bf16.msra.mxu1 %v3822_v13  ;;  %v299_v13 = vld [vmem:[%s4772_s27 + $0xf8] sm:$0xff] }
  0x30   : > { %3861 = vmatprep.subr.bf16.mxu0 %v4717_v1  ;;  %3887 = vmatprep.subr.bf16.mxu1 %v4717_v1 }
  0x33   : > { %3863 = vmatpush1.bf16.msra.mxu0 %v3823_v14  ;;  %3903 = vmatpush1.bf16.msra.mxu1 %v3823_v14  ;;  %v495_v14 = vld [vmem:[%s4772_s27 + $0x718] sm:$0xff] }
  0x34   : > { %3864 = vmatprep.subr.bf16.mxu0 %v4717_v1  ;;  %3888 = vmatprep.subr.bf16.mxu1 %v4717_v1 }
  0x37   : > { %3866 = vmatpush1.bf16.msra.mxu0 %v3824_v15  ;;  %3904 = vmatpush1.bf16.msra.mxu1 %v3824_v15  ;;  %v298_v15 = vld [vmem:[%s4772_s27 + $0xf0] sm:$0xff] }
  0x38   : > { %3867 = vmatprep.subr.bf16.mxu0 %v4717_v1  ;;  %3889 = vmatprep.subr.bf16.mxu1 %v4717_v1 }
  0x3b   : > { %3869 = vmatpush1.bf16.msra.mxu0 %v3825_v16  ;;  %3905 = vmatpush1.bf16.msra.mxu1 %v3825_v16  ;;  %v494_v16 = vld [vmem:[%s4772_s27 + $0x710] sm:$0xff] }
  0x3c   : > { %3870 = vmatprep.subr.bf16.mxu0 %v4717_v1  ;;  %3890 = vmatprep.subr.bf16.mxu1 %v4717_v1 }
  0x3f   : > { %3872 = vmatpush1.bf16.msra.mxu0 %v3826_v17  ;;  %3906 = vmatpush1.bf16.msra.mxu1 %v3826_v17  ;;  %v301_v17 = vld [vmem:[%s4772_s27 + $0x108] sm:$0xff] }
  0x40   : > { %3873 = vmatprep.subr.bf16.mxu0 %v4717_v1  ;;  %3891 = vmatprep.subr.bf16.mxu1 %v4717_v1  ;;  %v293_v1 = vld [vmem:[%s4772_s27 + $0xc8] sm:$0xff] }
  0x43   : > { %3875 = vmatpush1.bf16.msra.mxu0 %v3827_v18  ;;  %3907 = vmatpush1.bf16.msra.mxu1 %v3827_v18  ;;  %v497_v18 = vld [vmem:[%s4772_s27 + $0x728] sm:$0xff] }
  0x46   : > { %725 = vmatmul.mubr.f32.vlgmr.msra.gmra.mrb[0].mxu0 %v268_v19  ;;  %1215 = vmatmul.mubr.f32.vlgmr.msra.gmra.mrb[0].mxu1 %v464_v20  ;;  %v300_v19 = vld [vmem:[%s4772_s27 + $0x100] sm:$0xff] }
  0x47   : > { %729 = vmatprep.mubr.f32.mxu0 %v271_v21  ;;  %1219 = vmatprep.mubr.f32.mxu1 %v467_v22  ;;  %v496_v20 = vld [vmem:[%s4772_s27 + $0x720] sm:$0xff]  ;;  %v303_v21 = vld [vmem:[%s4772_s27 + $0x118] sm:$0xff] }
  0x48   : > { %v499_v22 = vld [vmem:[%s4772_s27 + $0x738] sm:$0xff] }
  0x4a   : > { %730 = vmatmul.mubr.f32.gmra.mrb[2].mxu0 %v270_v23  ;;  %1220 = vmatmul.mubr.f32.gmra.mrb[2].mxu1 %v466_v24  ;;  %v302_v23 = vld [vmem:[%s4772_s27 + $0x110] sm:$0xff] }
  0x4b   : > { %734 = vmatprep.mubr.f32.mxu0 %v273_v25  ;;  %1224 = vmatprep.mubr.f32.mxu1 %v469_v26  ;;  %v498_v24 = vld [vmem:[%s4772_s27 + $0x730] sm:$0xff]  ;;  %v305_v25 = vld [vmem:[%s4772_s27 + $0x128] sm:$0xff] }
  0x4c   : > { %v501_v26 = vld [vmem:[%s4772_s27 + $0x748] sm:$0xff] }
  0x4e   : > { %735 = vmatmul.mubr.f32.gmra.mrb[4].mxu0 %v272_v27  ;;  %1225 = vmatmul.mubr.f32.gmra.mrb[4].mxu1 %v468_v28  ;;  %v304_v27 = vld [vmem:[%s4772_s27 + $0x120] sm:$0xff] }
  0x4f   : > { %739 = vmatprep.mubr.f32.mxu0 %v275_v29  ;;  %1229 = vmatprep.mubr.f32.mxu1 %v471_v30  ;;  %v500_v28 = vld [vmem:[%s4772_s27 + $0x740] sm:$0xff]  ;;  %v307_v29 = vld [vmem:[%s4772_s27 + $0x138] sm:$0xff] }
  0x50   : > { %v503_v30 = vld [vmem:[%s4772_s27 + $0x758] sm:$0xff] }
  0x52   : > { %740 = vmatmul.mubr.f32.gmra.mrb[6].mxu0 %v274_v31  ;;  %1230 = vmatmul.mubr.f32.gmra.mrb[6].mxu1 %v470_v32  ;;  %v306_v31 = vld [vmem:[%s4772_s27 + $0x130] sm:$0xff] }
  0x53   : > { %744 = vmatprep.mubr.f32.mxu0 %v277_v33  ;;  %1234 = vmatprep.mubr.f32.mxu1 %v473_v34  ;;  %v502_v32 = vld [vmem:[%s4772_s27 + $0x750] sm:$0xff]  ;;  %v309_v33 = vld [vmem:[%s4772_s27 + $0x148] sm:$0xff] }
  0x54   : > { %v505_v34 = vld [vmem:[%s4772_s27 + $0x768] sm:$0xff] }
  0x56   : > { %745 = vmatmul.mubr.f32.gmra.mrb[8].mxu0 %v276_v35  ;;  %1235 = vmatmul.mubr.f32.gmra.mrb[8].mxu1 %v472_v36  ;;  %v308_v35 = vld [vmem:[%s4772_s27 + $0x140] sm:$0xff] }
  0x57   : > { %749 = vmatprep.mubr.f32.mxu0 %v279_v37  ;;  %1239 = vmatprep.mubr.f32.mxu1 %v475_v38  ;;  %v504_v36 = vld [vmem:[%s4772_s27 + $0x760] sm:$0xff]  ;;  %v311_v37 = vld [vmem:[%s4772_s27 + $0x158] sm:$0xff] }
  0x58   : > { %v507_v38 = vld [vmem:[%s4772_s27 + $0x778] sm:$0xff] }
  0x5a   : > { %750 = vmatmul.mubr.f32.gmra.mrb[10].mxu0 %v278_v39  ;;  %1240 = vmatmul.mubr.f32.gmra.mrb[10].mxu1 %v474_v40  ;;  %v310_v39 = vld [vmem:[%s4772_s27 + $0x150] sm:$0xff] }
  0x5b   : > { %754 = vmatprep.mubr.f32.mxu0 %v281_v41  ;;  %1244 = vmatprep.mubr.f32.mxu1 %v477_v42  ;;  %v506_v40 = vld [vmem:[%s4772_s27 + $0x770] sm:$0xff]  ;;  %v313_v41 = vld [vmem:[%s4772_s27 + $0x168] sm:$0xff] }
  0x5c   : > { %v509_v42 = vld [vmem:[%s4772_s27 + $0x788] sm:$0xff] }
  0x5e   : > { %755 = vmatmul.mubr.f32.gmra.mrb[12].mxu0 %v280_v43  ;;  %1245 = vmatmul.mubr.f32.gmra.mrb[12].mxu1 %v476_v44  ;;  %v312_v43 = vld [vmem:[%s4772_s27 + $0x160] sm:$0xff] }
  0x5f   : > { %759 = vmatprep.mubr.f32.mxu0 %v283_v45  ;;  %1249 = vmatprep.mubr.f32.mxu1 %v479_v46  ;;  %v508_v44 = vld [vmem:[%s4772_s27 + $0x780] sm:$0xff]  ;;  %v315_v45 = vld [vmem:[%s4772_s27 + $0x178] sm:$0xff] }
  0x60   : > { %v511_v46 = vld [vmem:[%s4772_s27 + $0x798] sm:$0xff] }
  0x62   : > { %760 = vmatmul.mubr.f32.gmra.mrb[14].mxu0 %v282_v47  ;;  %1250 = vmatmul.mubr.f32.gmra.mrb[14].mxu1 %v478_v48  ;;  %v314_v47 = vld [vmem:[%s4772_s27 + $0x170] sm:$0xff] }
  0x63   : > { %764 = vmatprep.mubr.f32.mxu0 %v285_v49  ;;  %1254 = vmatprep.mubr.f32.mxu1 %v481_v50  ;;  %v510_v48 = vld [vmem:[%s4772_s27 + $0x790] sm:$0xff]  ;;  %v317_v49 = vld [vmem:[%s4772_s27 + $0x188] sm:$0xff] }
  0x64   : > { %v513_v50 = vld [vmem:[%s4772_s27 + $0x7a8] sm:$0xff] }
  0x66   : > { %765 = vmatmul.mubr.f32.gmra.mrb[16].mxu0 %v284_v51  ;;  %1255 = vmatmul.mubr.f32.gmra.mrb[16].mxu1 %v480_v52  ;;  %v316_v51 = vld [vmem:[%s4772_s27 + $0x180] sm:$0xff] }
  0x67   : > { %769 = vmatprep.mubr.f32.mxu0 %v287_v53  ;;  %1259 = vmatprep.mubr.f32.mxu1 %v483_v54  ;;  %v512_v52 = vld [vmem:[%s4772_s27 + $0x7a0] sm:$0xff]  ;;  %v319_v53 = vld [vmem:[%s4772_s27 + $0x198] sm:$0xff] }
  0x68   : > { %v515_v54 = vld [vmem:[%s4772_s27 + $0x7b8] sm:$0xff] }
  0x6a   : > { %770 = vmatmul.mubr.f32.gmra.mrb[18].mxu0 %v286_v55  ;;  %1260 = vmatmul.mubr.f32.gmra.mrb[18].mxu1 %v482_v56  ;;  %v318_v55 = vld [vmem:[%s4772_s27 + $0x190] sm:$0xff] }
  0x6b   : > { %774 = vmatprep.mubr.f32.mxu0 %v289_v57  ;;  %1264 = vmatprep.mubr.f32.mxu1 %v485_v58  ;;  %v514_v56 = vld [vmem:[%s4772_s27 + $0x7b0] sm:$0xff]  ;;  %v321_v57 = vld [vmem:[%s4772_s27 + $0x1a8] sm:$0xff] }
  0x6c   : > { %v517_v58 = vld [vmem:[%s4772_s27 + $0x7c8] sm:$0xff] }
  0x6e   : > { %775 = vmatmul.mubr.f32.gmra.mrb[20].mxu0 %v288_v59  ;;  %1265 = vmatmul.mubr.f32.gmra.mrb[20].mxu1 %v484_v60  ;;  %v320_v59 = vld [vmem:[%s4772_s27 + $0x1a0] sm:$0xff] }
  0x6f   : > { %779 = vmatprep.mubr.f32.mxu0 %v291_v61  ;;  %1269 = vmatprep.mubr.f32.mxu1 %v487_v62  ;;  %v516_v60 = vld [vmem:[%s4772_s27 + $0x7c0] sm:$0xff]  ;;  %v323_v61 = vld [vmem:[%s4772_s27 + $0x1b8] sm:$0xff] }
  0x70   : > { %v519_v62 = vld [vmem:[%s4772_s27 + $0x7d8] sm:$0xff] }
  0x72   : > { %780 = vmatmul.mubr.f32.gmra.mrb[22].mxu0 %v290_v63  ;;  %1270 = vmatmul.mubr.f32.gmra.mrb[22].mxu1 %v486_v0  ;;  %v322_v63 = vld [vmem:[%s4772_s27 + $0x1b0] sm:$0xff] }
  0x73   : > { %784 = vmatprep.mubr.f32.mxu0 %v293_v1  ;;  %1274 = vmatprep.mubr.f32.mxu1 %v489_v2  ;;  %v518_v0 = vld [vmem:[%s4772_s27 + $0x7d0] sm:$0xff]  ;;  %v325_v1 = vld [vmem:[%s4772_s27 + $0x1c8] sm:$0xff] }
  0x74   : > { %v521_v2 = vld [vmem:[%s4772_s27 + $0x7e8] sm:$0xff] }
  0x76   : > { %785 = vmatmul.mubr.f32.gmra.mrb[24].mxu0 %v292_v3  ;;  %1275 = vmatmul.mubr.f32.gmra.mrb[24].mxu1 %v488_v4  ;;  %v324_v3 = vld [vmem:[%s4772_s27 + $0x1c0] sm:$0xff] }
  0x77   : > { %789 = vmatprep.mubr.f32.mxu0 %v295_v5  ;;  %1279 = vmatprep.mubr.f32.mxu1 %v491_v6  ;;  %v520_v4 = vld [vmem:[%s4772_s27 + $0x7e0] sm:$0xff]  ;;  %v327_v5 = vld [vmem:[%s4772_s27 + $0x1d8] sm:$0xff] }
  0x78   : > { %v523_v6 = vld [vmem:[%s4772_s27 + $0x7f8] sm:$0xff] }
  0x7a   : > { %790 = vmatmul.mubr.f32.gmra.mrb[26].mxu0 %v294_v7  ;;  %1280 = vmatmul.mubr.f32.gmra.mrb[26].mxu1 %v490_v8  ;;  %v326_v7 = vld [vmem:[%s4772_s27 + $0x1d0] sm:$0xff] }
  0x7b   : > { %794 = vmatprep.mubr.f32.mxu0 %v297_v9  ;;  %1284 = vmatprep.mubr.f32.mxu1 %v493_v10  ;;  %v522_v8 = vld [vmem:[%s4772_s27 + $0x7f0] sm:$0xff]  ;;  %v329_v9 = vld [vmem:[%s4772_s27 + $0x1e8] sm:$0xff] }
  0x7c   : > { %v525_v10 = vld [vmem:[%s4772_s27 + $0x808] sm:$0xff] }
  0x7e   : > { %795 = vmatmul.mubr.f32.gmra.mrb[28].mxu0 %v296_v11  ;;  %1285 = vmatmul.mubr.f32.gmra.mrb[28].mxu1 %v492_v12  ;;  %v328_v11 = vld [vmem:[%s4772_s27 + $0x1e0] sm:$0xff] }
  0x7f   : > { %799 = vmatprep.mubr.f32.mxu0 %v299_v13  ;;  %1289 = vmatprep.mubr.f32.mxu1 %v495_v14  ;;  %v524_v12 = vld [vmem:[%s4772_s27 + $0x800] sm:$0xff]  ;;  %v331_v13 = vld [vmem:[%s4772_s27 + $0x1f8] sm:$0xff] }
  0x80   : > { %v527_v14 = vld [vmem:[%s4772_s27 + $0x818] sm:$0xff] }
  0x82   : > { %800 = vmatmul.mubr.f32.gmra.mrb[30].mxu0 %v298_v15  ;;  %1290 = vmatmul.mubr.f32.gmra.mrb[30].mxu1 %v494_v16  ;;  %v330_v15 = vld [vmem:[%s4772_s27 + $0x1f0] sm:$0xff] }
  0x83   : > { %804 = vmatprep.mubr.f32.mxu0 %v301_v17  ;;  %1294 = vmatprep.mubr.f32.mxu1 %v497_v18  ;;  %v526_v16 = vld [vmem:[%s4772_s27 + $0x810] sm:$0xff]  ;;  %v333_v17 = vld [vmem:[%s4772_s27 + $0x208] sm:$0xff] }
  0x84   : > { %v529_v18 = vld [vmem:[%s4772_s27 + $0x828] sm:$0xff] }
  0x86   : > { %805 = vmatmul.mubr.f32.gmra.mrb[32].mxu0 %v300_v19  ;;  %1295 = vmatmul.mubr.f32.gmra.mrb[32].mxu1 %v496_v20  ;;  %v332_v19 = vld [vmem:[%s4772_s27 + $0x200] sm:$0xff] }
  0x87   : > { %809 = vmatprep.mubr.f32.mxu0 %v303_v21  ;;  %1299 = vmatprep.mubr.f32.mxu1 %v499_v22  ;;  %v528_v20 = vld [vmem:[%s4772_s27 + $0x820] sm:$0xff]  ;;  %v335_v21 = vld [vmem:[%s4772_s27 + $0x218] sm:$0xff] }
  0x88   : > { %v531_v22 = vld [vmem:[%s4772_s27 + $0x838] sm:$0xff] }
  0x8a   : > { %810 = vmatmul.mubr.f32.gmra.mrb[34].mxu0 %v302_v23  ;;  %1300 = vmatmul.mubr.f32.gmra.mrb[34].mxu1 %v498_v24  ;;  %v334_v23 = vld [vmem:[%s4772_s27 + $0x210] sm:$0xff] }
  0x8b   : > { %814 = vmatprep.mubr.f32.mxu0 %v305_v25  ;;  %1304 = vmatprep.mubr.f32.mxu1 %v501_v26  ;;  %v530_v24 = vld [vmem:[%s4772_s27 + $0x830] sm:$0xff]  ;;  %v337_v25 = vld [vmem:[%s4772_s27 + $0x228] sm:$0xff] }
  0x8c   : > { %v533_v26 = vld [vmem:[%s4772_s27 + $0x848] sm:$0xff] }
  0x8e   : > { %815 = vmatmul.mubr.f32.gmra.mrb[36].mxu0 %v304_v27  ;;  %1305 = vmatmul.mubr.f32.gmra.mrb[36].mxu1 %v500_v28  ;;  %v336_v27 = vld [vmem:[%s4772_s27 + $0x220] sm:$0xff] }
  0x8f   : > { %819 = vmatprep.mubr.f32.mxu0 %v307_v29  ;;  %1309 = vmatprep.mubr.f32.mxu1 %v503_v30  ;;  %v532_v28 = vld [vmem:[%s4772_s27 + $0x840] sm:$0xff]  ;;  %v339_v29 = vld [vmem:[%s4772_s27 + $0x238] sm:$0xff] }
  0x90   : > { %v535_v30 = vld [vmem:[%s4772_s27 + $0x858] sm:$0xff] }
  0x92   : > { %820 = vmatmul.mubr.f32.gmra.mrb[38].mxu0 %v306_v31  ;;  %1310 = vmatmul.mubr.f32.gmra.mrb[38].mxu1 %v502_v32  ;;  %v338_v31 = vld [vmem:[%s4772_s27 + $0x230] sm:$0xff] }
  0x93   : > { %824 = vmatprep.mubr.f32.mxu0 %v309_v33  ;;  %1314 = vmatprep.mubr.f32.mxu1 %v505_v34  ;;  %v534_v32 = vld [vmem:[%s4772_s27 + $0x850] sm:$0xff]  ;;  %v341_v33 = vld [vmem:[%s4772_s27 + $0x248] sm:$0xff] }
  0x94   : > { %v537_v34 = vld [vmem:[%s4772_s27 + $0x868] sm:$0xff] }
  0x96   : > { %825 = vmatmul.mubr.f32.gmra.mrb[40].mxu0 %v308_v35  ;;  %1315 = vmatmul.mubr.f32.gmra.mrb[40].mxu1 %v504_v36  ;;  %v340_v35 = vld [vmem:[%s4772_s27 + $0x240] sm:$0xff] }
  0x97   : > { %829 = vmatprep.mubr.f32.mxu0 %v311_v37  ;;  %1319 = vmatprep.mubr.f32.mxu1 %v507_v38  ;;  %v536_v36 = vld [vmem:[%s4772_s27 + $0x860] sm:$0xff]  ;;  %v343_v37 = vld [vmem:[%s4772_s27 + $0x258] sm:$0xff] }
  0x98   : > { %v539_v38 = vld [vmem:[%s4772_s27 + $0x878] sm:$0xff] }
  0x9a   : > { %830 = vmatmul.mubr.f32.gmra.mrb[42].mxu0 %v310_v39  ;;  %1320 = vmatmul.mubr.f32.gmra.mrb[42].mxu1 %v506_v40  ;;  %v342_v39 = vld [vmem:[%s4772_s27 + $0x250] sm:$0xff] }
  0x9b   : > { %834 = vmatprep.mubr.f32.mxu0 %v313_v41  ;;  %1324 = vmatprep.mubr.f32.mxu1 %v509_v42  ;;  %v538_v40 = vld [vmem:[%s4772_s27 + $0x870] sm:$0xff]  ;;  %v345_v41 = vld [vmem:[%s4772_s27 + $0x268] sm:$0xff] }
  0x9c   : > { %v541_v42 = vld [vmem:[%s4772_s27 + $0x888] sm:$0xff] }
  0x9e   : > { %835 = vmatmul.mubr.f32.gmra.mrb[44].mxu0 %v312_v43  ;;  %1325 = vmatmul.mubr.f32.gmra.mrb[44].mxu1 %v508_v44  ;;  %v344_v43 = vld [vmem:[%s4772_s27 + $0x260] sm:$0xff] }
  0x9f   : > { %839 = vmatprep.mubr.f32.mxu0 %v315_v45  ;;  %1329 = vmatprep.mubr.f32.mxu1 %v511_v46  ;;  %v540_v44 = vld [vmem:[%s4772_s27 + $0x880] sm:$0xff]  ;;  %v347_v45 = vld [vmem:[%s4772_s27 + $0x278] sm:$0xff] }
  0xa0   : > { %v543_v46 = vld [vmem:[%s4772_s27 + $0x898] sm:$0xff] }
  0xa2   : > { %840 = vmatmul.mubr.f32.gmra.mrb[46].mxu0 %v314_v47  ;;  %1330 = vmatmul.mubr.f32.gmra.mrb[46].mxu1 %v510_v48  ;;  %v346_v47 = vld [vmem:[%s4772_s27 + $0x270] sm:$0xff] }
  0xa3   : > { %844 = vmatprep.mubr.f32.mxu0 %v317_v49  ;;  %1334 = vmatprep.mubr.f32.mxu1 %v513_v50  ;;  %v542_v48 = vld [vmem:[%s4772_s27 + $0x890] sm:$0xff]  ;;  %v349_v49 = vld [vmem:[%s4772_s27 + $0x288] sm:$0xff] }
  0xa4   : > { %v545_v50 = vld [vmem:[%s4772_s27 + $0x8a8] sm:$0xff] }
  0xa6   : > { %845 = vmatmul.mubr.f32.gmra.mrb[48].mxu0 %v316_v51  ;;  %1335 = vmatmul.mubr.f32.gmra.mrb[48].mxu1 %v512_v52  ;;  %v348_v51 = vld [vmem:[%s4772_s27 + $0x280] sm:$0xff] }
  0xa7   : > { %849 = vmatprep.mubr.f32.mxu0 %v319_v53  ;;  %1339 = vmatprep.mubr.f32.mxu1 %v515_v54  ;;  %v544_v52 = vld [vmem:[%s4772_s27 + $0x8a0] sm:$0xff]  ;;  %v351_v53 = vld [vmem:[%s4772_s27 + $0x298] sm:$0xff] }
  0xa8   : > { %v547_v54 = vld [vmem:[%s4772_s27 + $0x8b8] sm:$0xff] }
  0xaa   : > { %850 = vmatmul.mubr.f32.gmra.mrb[50].mxu0 %v318_v55  ;;  %1340 = vmatmul.mubr.f32.gmra.mrb[50].mxu1 %v514_v56  ;;  %v350_v55 = vld [vmem:[%s4772_s27 + $0x290] sm:$0xff] }
  0xab   : > { %854 = vmatprep.mubr.f32.mxu0 %v321_v57  ;;  %1344 = vmatprep.mubr.f32.mxu1 %v517_v58  ;;  %v546_v56 = vld [vmem:[%s4772_s27 + $0x8b0] sm:$0xff]  ;;  %v353_v57 = vld [vmem:[%s4772_s27 + $0x2a8] sm:$0xff] }
  0xac   : > { %v549_v58 = vld [vmem:[%s4772_s27 + $0x8c8] sm:$0xff] }
  0xae   : > { %855 = vmatmul.mubr.f32.gmra.mrb[52].mxu0 %v320_v59  ;;  %1345 = vmatmul.mubr.f32.gmra.mrb[52].mxu1 %v516_v60  ;;  %v352_v59 = vld [vmem:[%s4772_s27 + $0x2a0] sm:$0xff] }
  0xaf   : > { %859 = vmatprep.mubr.f32.mxu0 %v323_v61  ;;  %1349 = vmatprep.mubr.f32.mxu1 %v519_v62  ;;  %v548_v60 = vld [vmem:[%s4772_s27 + $0x8c0] sm:$0xff]  ;;  %v355_v61 = vld [vmem:[%s4772_s27 + $0x2b8] sm:$0xff] }
  0xb0   : > { %v551_v62 = vld [vmem:[%s4772_s27 + $0x8d8] sm:$0xff] }
  0xb2   : > { %860 = vmatmul.mubr.f32.gmra.mrb[54].mxu0 %v322_v63  ;;  %1350 = vmatmul.mubr.f32.gmra.mrb[54].mxu1 %v518_v0  ;;  %v354_v63 = vld [vmem:[%s4772_s27 + $0x2b0] sm:$0xff] }
  0xb3   : > { %864 = vmatprep.mubr.f32.mxu0 %v325_v1  ;;  %1354 = vmatprep.mubr.f32.mxu1 %v521_v2  ;;  %v550_v0 = vld [vmem:[%s4772_s27 + $0x8d0] sm:$0xff]  ;;  %v357_v1 = vld [vmem:[%s4772_s27 + $0x2c8] sm:$0xff] }
  0xb4   : > { %v553_v2 = vld [vmem:[%s4772_s27 + $0x8e8] sm:$0xff] }
  0xb6   : > { %865 = vmatmul.mubr.f32.gmra.mrb[56].mxu0 %v324_v3  ;;  %1355 = vmatmul.mubr.f32.gmra.mrb[56].mxu1 %v520_v4  ;;  %v356_v3 = vld [vmem:[%s4772_s27 + $0x2c0] sm:$0xff] }
  0xb7   : > { %869 = vmatprep.mubr.f32.mxu0 %v327_v5  ;;  %1359 = vmatprep.mubr.f32.mxu1 %v523_v6  ;;  %v552_v4 = vld [vmem:[%s4772_s27 + $0x8e0] sm:$0xff]  ;;  %v359_v5 = vld [vmem:[%s4772_s27 + $0x2d8] sm:$0xff] }
  0xb8   : > { %v555_v6 = vld [vmem:[%s4772_s27 + $0x8f8] sm:$0xff] }
  0xba   : > { %870 = vmatmul.mubr.f32.gmra.mrb[58].mxu0 %v326_v7  ;;  %1360 = vmatmul.mubr.f32.gmra.mrb[58].mxu1 %v522_v8  ;;  %v358_v7 = vld [vmem:[%s4772_s27 + $0x2d0] sm:$0xff] }
  0xbb   : > { %874 = vmatprep.mubr.f32.mxu0 %v329_v9  ;;  %1364 = vmatprep.mubr.f32.mxu1 %v525_v10  ;;  %v554_v8 = vld [vmem:[%s4772_s27 + $0x8f0] sm:$0xff]  ;;  %v361_v9 = vld [vmem:[%s4772_s27 + $0x2e8] sm:$0xff] }
  0xbc   : > { %v557_v10 = vld [vmem:[%s4772_s27 + $0x908] sm:$0xff] }
  0xbe   : > { %875 = vmatmul.mubr.f32.gmra.mrb[60].mxu0 %v328_v11  ;;  %1365 = vmatmul.mubr.f32.gmra.mrb[60].mxu1 %v524_v12  ;;  %v360_v11 = vld [vmem:[%s4772_s27 + $0x2e0] sm:$0xff] }
  0xbf   : > { %879 = vmatprep.mubr.f32.mxu0 %v331_v13  ;;  %1369 = vmatprep.mubr.f32.mxu1 %v527_v14  ;;  %v556_v12 = vld [vmem:[%s4772_s27 + $0x900] sm:$0xff]  ;;  %v363_v13 = vld [vmem:[%s4772_s27 + $0x2f8] sm:$0xff] }
  0xc0   : > { %v559_v14 = vld [vmem:[%s4772_s27 + $0x918] sm:$0xff] }
  0xc2   : > { %880 = vmatmul.mubr.f32.gmra.mrb[62].mxu0 %v330_v15  ;;  %1370 = vmatmul.mubr.f32.gmra.mrb[62].mxu1 %v526_v16  ;;  %v362_v15 = vld [vmem:[%s4772_s27 + $0x2f0] sm:$0xff] }
  0xc3   : > { %884 = vmatprep.mubr.f32.mxu0 %v333_v17  ;;  %1374 = vmatprep.mubr.f32.mxu1 %v529_v18  ;;  %v558_v16 = vld [vmem:[%s4772_s27 + $0x910] sm:$0xff]  ;;  %v365_v17 = vld [vmem:[%s4772_s27 + $0x308] sm:$0xff] }
  0xc4   : > { %v561_v18 = vld [vmem:[%s4772_s27 + $0x928] sm:$0xff] }
  0xc6   : > { %885 = vmatmul.mubr.f32.gmra.mrb[64].mxu0 %v332_v19  ;;  %1375 = vmatmul.mubr.f32.gmra.mrb[64].mxu1 %v528_v20  ;;  %v364_v19 = vld [vmem:[%s4772_s27 + $0x300] sm:$0xff] }
  0xc7   : > { %889 = vmatprep.mubr.f32.mxu0 %v335_v21  ;;  %1379 = vmatprep.mubr.f32.mxu1 %v531_v22  ;;  %v560_v20 = vld [vmem:[%s4772_s27 + $0x920] sm:$0xff]  ;;  %v367_v21 = vld [vmem:[%s4772_s27 + $0x318] sm:$0xff] }
  0xc8   : > { %v563_v22 = vld [vmem:[%s4772_s27 + $0x938] sm:$0xff] }
  0xca   : > { %890 = vmatmul.mubr.f32.gmra.mrb[66].mxu0 %v334_v23  ;;  %1380 = vmatmul.mubr.f32.gmra.mrb[66].mxu1 %v530_v24  ;;  %v366_v23 = vld [vmem:[%s4772_s27 + $0x310] sm:$0xff] }
  0xcb   : > { %894 = vmatprep.mubr.f32.mxu0 %v337_v25  ;;  %1384 = vmatprep.mubr.f32.mxu1 %v533_v26  ;;  %v562_v24 = vld [vmem:[%s4772_s27 + $0x930] sm:$0xff]  ;;  %v369_v25 = vld [vmem:[%s4772_s27 + $0x328] sm:$0xff] }
  0xcc   : > { %v565_v26 = vld [vmem:[%s4772_s27 + $0x948] sm:$0xff] }
  0xce   : > { %895 = vmatmul.mubr.f32.gmra.mrb[68].mxu0 %v336_v27  ;;  %1385 = vmatmul.mubr.f32.gmra.mrb[68].mxu1 %v532_v28  ;;  %v368_v27 = vld [vmem:[%s4772_s27 + $0x320] sm:$0xff] }
  0xcf   : > { %899 = vmatprep.mubr.f32.mxu0 %v339_v29  ;;  %1389 = vmatprep.mubr.f32.mxu1 %v535_v30  ;;  %v564_v28 = vld [vmem:[%s4772_s27 + $0x940] sm:$0xff]  ;;  %v371_v29 = vld [vmem:[%s4772_s27 + $0x338] sm:$0xff] }
  0xd0   : > { %v567_v30 = vld [vmem:[%s4772_s27 + $0x958] sm:$0xff] }
  0xd2   : > { %900 = vmatmul.mubr.f32.gmra.mrb[70].mxu0 %v338_v31  ;;  %1390 = vmatmul.mubr.f32.gmra.mrb[70].mxu1 %v534_v32  ;;  %v370_v31 = vld [vmem:[%s4772_s27 + $0x330] sm:$0xff] }
  0xd3   : > { %904 = vmatprep.mubr.f32.mxu0 %v341_v33  ;;  %1394 = vmatprep.mubr.f32.mxu1 %v537_v34  ;;  %v566_v32 = vld [vmem:[%s4772_s27 + $0x950] sm:$0xff]  ;;  %v373_v33 = vld [vmem:[%s4772_s27 + $0x348] sm:$0xff] }
  0xd4   : > { %v569_v34 = vld [vmem:[%s4772_s27 + $0x968] sm:$0xff] }
  0xd6   : > { %905 = vmatmul.mubr.f32.gmra.mrb[72].mxu0 %v340_v35  ;;  %1395 = vmatmul.mubr.f32.gmra.mrb[72].mxu1 %v536_v36  ;;  %v372_v35 = vld [vmem:[%s4772_s27 + $0x340] sm:$0xff] }
  0xd7   : > { %909 = vmatprep.mubr.f32.mxu0 %v343_v37  ;;  %1399 = vmatprep.mubr.f32.mxu1 %v539_v38  ;;  %v568_v36 = vld [vmem:[%s4772_s27 + $0x960] sm:$0xff]  ;;  %v375_v37 = vld [vmem:[%s4772_s27 + $0x358] sm:$0xff] }
  0xd8   : > { %v571_v38 = vld [vmem:[%s4772_s27 + $0x978] sm:$0xff] }
  0xda   : > { %910 = vmatmul.mubr.f32.gmra.mrb[74].mxu0 %v342_v39  ;;  %1400 = vmatmul.mubr.f32.gmra.mrb[74].mxu1 %v538_v40  ;;  %v5056_v39 = vld [vmem:[%s6076_s2] ss:$0 sm:$0xff]  ;;  %v374_v40 = vld [vmem:[%s4772_s27 + $0x350] sm:$0xff] }
  0xdb   : > { %914 = vmatprep.mubr.f32.mxu0 %v345_v41  ;;  %1404 = vmatprep.mubr.f32.mxu1 %v541_v42  ;;  %v570_v41 = vld [vmem:[%s4772_s27 + $0x970] sm:$0xff]  ;;  %v377_v42 = vld [vmem:[%s4772_s27 + $0x368] sm:$0xff] }
  0xde   : > { %915 = vmatmul.mubr.f32.gmra.mrb[76].mxu0 %v344_v43  ;;  %1405 = vmatmul.mubr.f32.gmra.mrb[76].mxu1 %v540_v44  ;;  %v573_v43 = vld [vmem:[%s4772_s27 + $0x988] sm:$0xff] }
  0xdf   : > { %919 = vmatprep.mubr.f32.mxu0 %v347_v45  ;;  %1409 = vmatprep.mubr.f32.mxu1 %v543_v46  ;;  %v5065_v45 = vld [vmem:[%s6077_s3] ss:$0 sm:$0xff] }
  0xe2   : > { %920 = vmatmul.mubr.f32.gmra.mrb[78].mxu0 %v346_v47  ;;  %1410 = vmatmul.mubr.f32.gmra.mrb[78].mxu1 %v542_v48 }
  0xe3   : > { %924 = vmatprep.mubr.f32.mxu0 %v349_v49  ;;  %1414 = vmatprep.mubr.f32.mxu1 %v545_v50 }
  0xe6   : > { %925 = vmatmul.mubr.f32.gmra.mrb[80].mxu0 %v348_v51  ;;  %1415 = vmatmul.mubr.f32.gmra.mrb[80].mxu1 %v544_v52  ;;  %v376_v51 = vld [vmem:[%s4772_s27 + $0x360] sm:$0xff] }
  0xe7   : > { %929 = vmatprep.mubr.f32.mxu0 %v351_v53  ;;  %1419 = vmatprep.mubr.f32.mxu1 %v547_v54  ;;  %v572_v52 = vld [vmem:[%s4772_s27 + $0x980] sm:$0xff] }
  0xea   : > { %930 = vmatmul.mubr.f32.gmra.mrb[82].mxu0 %v350_v55  ;;  %1420 = vmatmul.mubr.f32.gmra.mrb[82].mxu1 %v546_v56  ;;  %v379_v55 = vld [vmem:[%s4772_s27 + $0x378] sm:$0xff] }
  0xeb   : > { %934 = vmatprep.mubr.f32.mxu0 %v353_v57  ;;  %1424 = vmatprep.mubr.f32.mxu1 %v549_v58  ;;  %v575_v56 = vld [vmem:[%s4772_s27 + $0x998] sm:$0xff] }
  0xee   : > { %935 = vmatmul.mubr.f32.gmra.mrb[84].mxu0 %v352_v59  ;;  %1425 = vmatmul.mubr.f32.gmra.mrb[84].mxu1 %v548_v60 }
  0xef   : > { %939 = vmatprep.mubr.f32.mxu0 %v355_v61  ;;  %1429 = vmatprep.mubr.f32.mxu1 %v551_v62 }
  0xf2   : > { %940 = vmatmul.mubr.f32.gmra.mrb[86].mxu0 %v354_v63  ;;  %1430 = vmatmul.mubr.f32.gmra.mrb[86].mxu1 %v550_v0 }
  0xf3   : > { %944 = vmatprep.mubr.f32.mxu0 %v357_v1  ;;  %1434 = vmatprep.mubr.f32.mxu1 %v553_v2  ;;  %v378_v1 = vld [vmem:[%s4772_s27 + $0x370] sm:$0xff] }
  0xf4   : > { %v574_v2 = vld [vmem:[%s4772_s27 + $0x990] sm:$0xff] }
  0xf6   : > { %945 = vmatmul.mubr.f32.gmra.mrb[88].mxu0 %v356_v3  ;;  %1435 = vmatmul.mubr.f32.gmra.mrb[88].mxu1 %v552_v4 }
  0xf7   : > { %949 = vmatprep.mubr.f32.mxu0 %v359_v5  ;;  %1439 = vmatprep.mubr.f32.mxu1 %v555_v6  ;;  %v381_v5 = vld [vmem:[%s4772_s27 + $0x388] sm:$0xff] }
  0xf8   : > { %v577_v6 = vld [vmem:[%s4772_s27 + $0x9a8] sm:$0xff] }
  0xfa   : > { %950 = vmatmul.mubr.f32.gmra.mrb[90].mxu0 %v358_v7  ;;  %1440 = vmatmul.mubr.f32.gmra.mrb[90].mxu1 %v554_v8 }
  0xfb   : > { %954 = vmatprep.mubr.f32.mxu0 %v361_v9  ;;  %1444 = vmatprep.mubr.f32.mxu1 %v557_v10 }
  0xfe   : > { %955 = vmatmul.mubr.f32.gmra.mrb[92].mxu0 %v360_v11  ;;  %1445 = vmatmul.mubr.f32.gmra.mrb[92].mxu1 %v556_v12 }
  0xff   : > { %959 = vmatprep.mubr.f32.mxu0 %v363_v13  ;;  %1449 = vmatprep.mubr.f32.mxu1 %v559_v14 }
 0x102   : > { %960 = vmatmul.mubr.f32.gmra.mrb[94].mxu0 %v362_v15  ;;  %1450 = vmatmul.mubr.f32.gmra.mrb[94].mxu1 %v558_v16  ;;  %v380_v15 = vld [vmem:[%s4772_s27 + $0x380] sm:$0xff] }
 0x103   : > { %964 = vmatprep.mubr.f32.mxu0 %v365_v17  ;;  %1454 = vmatprep.mubr.f32.mxu1 %v561_v18  ;;  %v576_v16 = vld [vmem:[%s4772_s27 + $0x9a0] sm:$0xff] }
 0x106   : > { %965 = vmatmul.mubr.f32.gmra.mrb[96].mxu0 %v364_v19  ;;  %1455 = vmatmul.mubr.f32.gmra.mrb[96].mxu1 %v560_v20  ;;  %v383_v19 = vld [vmem:[%s4772_s27 + $0x398] sm:$0xff] }
 0x107   : > { %969 = vmatprep.mubr.f32.mxu0 %v367_v21  ;;  %1459 = vmatprep.mubr.f32.mxu1 %v563_v22  ;;  %v579_v20 = vld [vmem:[%s4772_s27 + $0x9b8] sm:$0xff] }
 0x10a   : > { %970 = vmatmul.mubr.f32.gmra.mrb[98].mxu0 %v366_v23  ;;  %1460 = vmatmul.mubr.f32.gmra.mrb[98].mxu1 %v562_v24 }
 0x10b   : > { %974 = vmatprep.mubr.f32.mxu0 %v369_v25  ;;  %1464 = vmatprep.mubr.f32.mxu1 %v565_v26 }
 0x10e   : > { %975 = vmatmul.mubr.f32.gmra.mrb[100].mxu0 %v368_v27  ;;  %1465 = vmatmul.mubr.f32.gmra.mrb[100].mxu1 %v564_v28 }
 0x10f   : > { %979 = vmatprep.mubr.f32.mxu0 %v371_v29  ;;  %1469 = vmatprep.mubr.f32.mxu1 %v567_v30  ;;  %v382_v29 = vld [vmem:[%s4772_s27 + $0x390] sm:$0xff] }
 0x110   : > { %v578_v30 = vld [vmem:[%s4772_s27 + $0x9b0] sm:$0xff] }
 0x112   : > { %980 = vmatmul.mubr.f32.gmra.mrb[102].mxu0 %v370_v31  ;;  %1470 = vmatmul.mubr.f32.gmra.mrb[102].mxu1 %v566_v32 }
 0x113   : > { %984 = vmatprep.mubr.f32.mxu0 %v373_v33  ;;  %1474 = vmatprep.mubr.f32.mxu1 %v569_v34  ;;  %v385_v33 = vld [vmem:[%s4772_s27 + $0x3a8] sm:$0xff] }
 0x114   : > { %v581_v34 = vld [vmem:[%s4772_s27 + $0x9c8] sm:$0xff] }
 0x116   : > { %985 = vmatmul.mubr.f32.gmra.mrb[104].mxu0 %v372_v35  ;;  %1475 = vmatmul.mubr.f32.gmra.mrb[104].mxu1 %v568_v36 }
 0x117   : > { %989 = vmatprep.mubr.f32.mxu0 %v375_v37  ;;  %1479 = vmatprep.mubr.f32.mxu1 %v571_v38 }
 0x119   : > { %v726_v44 = vpop.f32.mrb[0].mxu0  ;;  %v1216_v46 = vpop.f32.mrb[0].mxu1 }
 0x11a   : > { %v1712_v47 = vmul.f32 %v5056_v39, %v726_v44  ;;  %v1810_v48 = vmul.f32 %v5056_v39, %v1216_v46  ;;  %v728_v49 = vpop.f32.mrb[1].mxu0  ;;  %990 = vmatmul.mubr.f32.gmra.mrb[106].mxu0 %v374_v40  ;;  %v1218_v50 = vpop.f32.mrb[1].mxu1  ;;  %1480 = vmatmul.mubr.f32.gmra.mrb[106].mxu1 %v570_v41 }
 0x11b   : > { %994 = vmatprep.mubr.f32.mxu0 %v377_v42  ;;  %1484 = vmatprep.mubr.f32.mxu1 %v573_v43  ;;  %v580_v49 = vld [vmem:[%s4772_s27 + $0x9c0] sm:$0xff] }
 0x11c   : > { %v1915_v53 = vadd.f32 %v5065_v45, %v1712_v47  ;;  %v2013_v54 = vadd.f32 %v5065_v45, %v1810_v48  ;;  %v384_v48 = vld [vmem:[%s4772_s27 + $0x3a0] sm:$0xff] }
 0x11d   : > { %v731_v57 = vpop.f32.mrb[2].mxu0  ;;  %v1221_v58 = vpop.f32.mrb[2].mxu1 }
 0x11e   : > { %v3550_v59 = vmul.f32 -1.442695, %v1915_v53  ;;  %v3648_v60 = vmul.f32 -1.442695, %v2013_v54  ;;  %v1713_v61 = vmul.f32 %v5056_v39, %v731_v57  ;;  %v1811_v62 = vmul.f32 %v5056_v39, %v1221_v58  ;;  %v733_v63 = vpop.f32.mrb[3].mxu0  ;;  %995 = vmatmul.mubr.f32.gmra.mrb[108].mxu0 %v376_v51  ;;  %v1223_v0 = vpop.f32.mrb[3].mxu1  ;;  %1485 = vmatmul.mubr.f32.gmra.mrb[108].mxu1 %v572_v52 }
 0x11f   : > { %999 = vmatprep.mubr.f32.mxu0 %v379_v55  ;;  %1489 = vmatprep.mubr.f32.mxu1 %v575_v56  ;;  %v387_v53 = vld [vmem:[%s4772_s27 + $0x3b8] sm:$0xff] }
 0x120   : > { %3917 = vpow2.f32 %v3550_v59  ;;  %v1916_v3 = vadd.f32 %v5065_v45, %v1713_v61  ;;  %v2014_v4 = vadd.f32 %v5065_v45, %v1811_v62  ;;  %v583_v54 = vld [vmem:[%s4772_s27 + $0x9d8] sm:$0xff] }
 0x121   : > { %3919 = vpow2.f32 %v3648_v60  ;;  %v736_v7 = vpop.f32.mrb[4].mxu0  ;;  %v1226_v8 = vpop.f32.mrb[4].mxu1 }
 0x122   : > { %v3551_v9 = vmul.f32 -1.442695, %v1916_v3  ;;  %v3649_v10 = vmul.f32 -1.442695, %v2014_v4  ;;  %v1714_v11 = vmul.f32 %v5056_v39, %v736_v7  ;;  %v1812_v12 = vmul.f32 %v5056_v39, %v1226_v8  ;;  %v738_v13 = vpop.f32.mrb[5].mxu0  ;;  %1000 = vmatmul.mubr.f32.gmra.mrb[110].mxu0 %v378_v1  ;;  %v1228_v14 = vpop.f32.mrb[5].mxu1  ;;  %1490 = vmatmul.mubr.f32.gmra.mrb[110].mxu1 %v574_v2 }
 0x123   : > { %1004 = vmatprep.mubr.f32.mxu0 %v381_v5  ;;  %1494 = vmatprep.mubr.f32.mxu1 %v577_v6  ;;  %v386_v2 = vld [vmem:[%s4772_s27 + $0x3b0] sm:$0xff]  ;;  %v389_v6 = vld [vmem:[%s4772_s27 + $0x3c8] sm:$0xff] }
 0x124   : > { %3921 = vpow2.f32 %v3551_v9  ;;  %v1917_v17 = vadd.f32 %v5065_v45, %v1714_v11  ;;  %v2015_v18 = vadd.f32 %v5065_v45, %v1812_v12  ;;  %v582_v3 = vld [vmem:[%s4772_s27 + $0x9d0] sm:$0xff]  ;;  %v585_v7 = vld [vmem:[%s4772_s27 + $0x9e8] sm:$0xff] }
 0x125   : > { %3923 = vpow2.f32 %v3649_v10  ;;  %v741_v21 = vpop.f32.mrb[6].mxu0  ;;  %v1231_v22 = vpop.f32.mrb[6].mxu1 }
 0x126   : > { %v3552_v23 = vmul.f32 -1.442695, %v1917_v17  ;;  %v3650_v24 = vmul.f32 -1.442695, %v2015_v18  ;;  %v1715_v25 = vmul.f32 %v5056_v39, %v741_v21  ;;  %v1813_v26 = vmul.f32 %v5056_v39, %v1231_v22  ;;  %v743_v27 = vpop.f32.mrb[7].mxu0  ;;  %1005 = vmatmul.mubr.f32.gmra.mrb[112].mxu0 %v380_v15  ;;  %v1233_v28 = vpop.f32.mrb[7].mxu1  ;;  %1495 = vmatmul.mubr.f32.gmra.mrb[112].mxu1 %v576_v16 }
 0x127   : > { %1009 = vmatprep.mubr.f32.mxu0 %v383_v19  ;;  %1499 = vmatprep.mubr.f32.mxu1 %v579_v20  ;;  %v388_v20 = vld [vmem:[%s4772_s27 + $0x3c0] sm:$0xff] }
 0x128   : > { %3925 = vpow2.f32 %v3552_v23  ;;  %v1918_v31 = vadd.f32 %v5065_v45, %v1715_v25  ;;  %v2016_v32 = vadd.f32 %v5065_v45, %v1813_v26  ;;  %v584_v21 = vld [vmem:[%s4772_s27 + $0x9e0] sm:$0xff]  ;;  %v391_v25 = vld [vmem:[%s4772_s27 + $0x3d8] sm:$0xff] }
 0x129   : > { %3927 = vpow2.f32 %v3650_v24  ;;  %v746_v35 = vpop.f32.mrb[8].mxu0  ;;  %v1236_v36 = vpop.f32.mrb[8].mxu1  ;;  %v587_v26 = vld [vmem:[%s4772_s27 + $0x9f8] sm:$0xff] }
 0x12a   : > { %v3918_v37 = vpop.eup %3917  ;;  %v3553_v38 = vmul.f32 -1.442695, %v1918_v31  ;;  %v1716_v40 = vmul.f32 %v5056_v39, %v746_v35  ;;  %v1814_v41 = vmul.f32 %v5056_v39, %v1236_v36  ;;  %v748_v42 = vpop.f32.mrb[9].mxu0  ;;  %1010 = vmatmul.mubr.f32.gmra.mrb[114].mxu0 %v382_v29  ;;  %1500 = vmatmul.mubr.f32.gmra.mrb[114].mxu1 %v578_v30  ;;  %v3651_v47 = vmul.f32 -1.442695, %v2016_v32 }
 0x12b   : > { %v1238_v43 = vpop.f32.mrb[9].mxu1  ;;  %v3920_v44 = vpop.eup %3919  ;;  %v2699_v46 = vadd.f32 1.0, %v3918_v37  ;;  %1014 = vmatprep.mubr.f32.mxu0 %v385_v33  ;;  %1504 = vmatprep.mubr.f32.mxu1 %v581_v34 }
 0x12c   : > { %v2797_v50 = vadd.f32 1.0, %v3920_v44  ;;  %3929 = vpow2.f32 %v3553_v38  ;;  %v1919_v51 = vadd.f32 %v5065_v45, %v1716_v40  ;;  %v2017_v52 = vadd.f32 %v5065_v45, %v1814_v41  ;;  %v390_v38 = vld [vmem:[%s4772_s27 + $0x3d0] sm:$0xff]  ;;  %v393_v43 = vld [vmem:[%s4772_s27 + $0x3e8] sm:$0xff] }
 0x12d   : > { %3931 = vrcp.f32 %v2699_v46  ;;  %v751_v55 = vpop.f32.mrb[10].mxu0  ;;  %v1241_v56 = vpop.f32.mrb[10].mxu1  ;;  %v586_v40 = vld [vmem:[%s4772_s27 + $0x9f0] sm:$0xff]  ;;  %v589_v44 = vld [vmem:[%s4772_s27 + $0xa08] sm:$0xff] }
 0x12e   : > { %v3922_v57 = vpop.eup %3921  ;;  %3933 = vrcp.f32 %v2797_v50  ;;  %v3554_v58 = vmul.f32 -1.442695, %v1919_v51  ;;  %v1717_v59 = vmul.f32 %v5056_v39, %v751_v55  ;;  %v753_v60 = vpop.f32.mrb[11].mxu0  ;;  %1015 = vmatmul.mubr.f32.gmra.mrb[116].mxu0 %v384_v48  ;;  %1505 = vmatmul.mubr.f32.gmra.mrb[116].mxu1 %v580_v49  ;;  %v3652_v0 = vmul.f32 -1.442695, %v2017_v52 }
 0x12f   : > { %v1243_v61 = vpop.f32.mrb[11].mxu1  ;;  %v3924_v62 = vpop.eup %3923  ;;  %v2700_v63 = vadd.f32 1.0, %v3922_v57  ;;  %3935 = vpow2.f32 %v3651_v47  ;;  %v1815_v1 = vmul.f32 %v5056_v39, %v1241_v56  ;;  %1019 = vmatprep.mubr.f32.mxu0 %v387_v53  ;;  %1509 = vmatprep.mubr.f32.mxu1 %v583_v54  ;;  %v392_v60 = vld [vmem:[%s4772_s27 + $0x3e0] sm:$0xff] }
 0x130   : > { %v2798_v4 = vadd.f32 1.0, %v3924_v62  ;;  %3937 = vpow2.f32 %v3554_v58  ;;  %v1920_v5 = vadd.f32 %v5065_v45, %v1717_v59  ;;  %v588_v61 = vld [vmem:[%s4772_s27 + $0xa00] sm:$0xff] }
 0x131   : > { %3939 = vrcp.f32 %v2700_v63  ;;  %v2018_v8 = vadd.f32 %v5065_v45, %v1815_v1  ;;  %v756_v9 = vpop.f32.mrb[12].mxu0  ;;  %v1246_v10 = vpop.f32.mrb[12].mxu1  ;;  %v591_v1 = vld [vmem:[%s4772_s27 + $0xa18] sm:$0xff] }
 0x132   : > { %v3926_v11 = vpop.eup %3925  ;;  %3941 = vrcp.f32 %v2798_v4  ;;  %v3555_v12 = vmul.f32 -1.442695, %v1920_v5  ;;  %v1718_v13 = vmul.f32 %v5056_v39, %v756_v9  ;;  %v1816_v14 = vmul.f32 %v5056_v39, %v1246_v10  ;;  %v758_v15 = vpop.f32.mrb[13].mxu0  ;;  %1020 = vmatmul.mubr.f32.gmra.mrb[118].mxu0 %v386_v2  ;;  %1510 = vmatmul.mubr.f32.gmra.mrb[118].mxu1 %v582_v3 }
 0x133   : > { %v1248_v16 = vpop.f32.mrb[13].mxu1  ;;  %v3928_v17 = vpop.eup %3927  ;;  %v2701_v18 = vadd.f32 1.0, %v3926_v11  ;;  %3943 = vpow2.f32 %v3652_v0  ;;  %v3653_v19 = vmul.f32 -1.442695, %v2018_v8  ;;  %1024 = vmatprep.mubr.f32.mxu0 %v389_v6  ;;  %1514 = vmatprep.mubr.f32.mxu1 %v585_v7  ;;  %v395_v0 = vld [vmem:[%s4772_s27 + $0x3f8] sm:$0xff] }
 0x134   : > { %v2799_v22 = vadd.f32 1.0, %v3928_v17  ;;  %3945 = vpow2.f32 %v3555_v12  ;;  %v1921_v23 = vadd.f32 %v5065_v45, %v1718_v13  ;;  %v2019_v24 = vadd.f32 %v5065_v45, %v1816_v14  ;;  %v394_v16 = vld [vmem:[%s4772_s27 + $0x3f0] sm:$0xff] }
 0x135   : > { %3947 = vrcp.f32 %v2701_v18  ;;  %v761_v27 = vpop.f32.mrb[14].mxu0  ;;  %v1251_v28 = vpop.f32.mrb[14].mxu1  ;;  %v590_v17 = vld [vmem:[%s4772_s27 + $0xa10] sm:$0xff] }
 0x136   : > { %v3930_v29 = vpop.eup %3929  ;;  %3949 = vrcp.f32 %v2799_v22  ;;  %v3556_v30 = vmul.f32 -1.442695, %v1921_v23  ;;  %v3654_v31 = vmul.f32 -1.442695, %v2019_v24  ;;  %v1719_v32 = vmul.f32 %v5056_v39, %v761_v27  ;;  %v763_v33 = vpop.f32.mrb[15].mxu0  ;;  %1025 = vmatmul.mubr.f32.gmra.mrb[120].mxu0 %v388_v20  ;;  %1515 = vmatmul.mubr.f32.gmra.mrb[120].mxu1 %v584_v21  ;;  %v397_v20 = vld [vmem:[%s4772_s27 + $0x408] sm:$0xff] }
 0x137   : > { %v1253_v34 = vpop.f32.mrb[15].mxu1  ;;  %v3932_v35 = vpop.eup %3931  ;;  %v2702_v36 = vadd.f32 1.0, %v3930_v29  ;;  %3951 = vpow2.f32 %v3653_v19  ;;  %v1817_v37 = vmul.f32 %v5056_v39, %v1251_v28  ;;  %1029 = vmatprep.mubr.f32.mxu0 %v391_v25  ;;  %1519 = vmatprep.mubr.f32.mxu1 %v587_v26  ;;  %v593_v21 = vld [vmem:[%s4772_s27 + $0xa28] sm:$0xff] }
 0x138   : > { %v3934_v41 = vpop.eup %3933  ;;  %3288 = vst.msk [vmem:[%s5127_s11] sm:$0xff] %vm3287_vm0, %v3932_v35  ;;  %3953 = vpow2.f32 %v3556_v30  ;;  %v1922_v42 = vadd.f32 %v5065_v45, %v1719_v32  ;;  %v396_v35 = vld [vmem:[%s4772_s27 + $0x400] sm:$0xff] }
 0x139   : > { %v3936_v46 = vpop.eup %3935  ;;  %3386 = vst.msk [vmem:[%s5127_s11 + $0x310] sm:$0xff] %vm3287_vm0, %v3934_v41  ;;  %3955 = vrcp.f32 %v2702_v36  ;;  %v2020_v47 = vadd.f32 %v5065_v45, %v1817_v37  ;;  %v766_v48 = vpop.f32.mrb[16].mxu0  ;;  %v592_v36 = vld [vmem:[%s4772_s27 + $0xa20] sm:$0xff]  ;;  %v399_v41 = vld [vmem:[%s4772_s27 + $0x418] sm:$0xff] }
 0x13a   : > { %v1256_v49 = vpop.f32.mrb[16].mxu1  ;;  %v3938_v50 = vpop.eup %3937  ;;  %v2800_v51 = vadd.f32 1.0, %v3936_v46  ;;  %3957 = vpow2.f32 %v3654_v31  ;;  %v3557_v52 = vmul.f32 -1.442695, %v1922_v42  ;;  %v1720_v53 = vmul.f32 %v5056_v39, %v766_v48  ;;  %1030 = vmatmul.mubr.f32.gmra.mrb[122].mxu0 %v390_v38  ;;  %1520 = vmatmul.mubr.f32.gmra.mrb[122].mxu1 %v586_v40  ;;  %v595_v42 = vld [vmem:[%s4772_s27 + $0xa38] sm:$0xff] }
 0x13b   : > { %v768_v54 = vpop.f32.mrb[17].mxu0  ;;  %v1258_v55 = vpop.f32.mrb[17].mxu1  ;;  %v2703_v57 = vadd.f32 1.0, %v3938_v50  ;;  %v3655_v58 = vmul.f32 -1.442695, %v2020_v47  ;;  %v1818_v59 = vmul.f32 %v5056_v39, %v1256_v49  ;;  %1034 = vmatprep.mubr.f32.mxu0 %v393_v43  ;;  %1524 = vmatprep.mubr.f32.mxu1 %v589_v44 }
 0x13c   : > { %v3940_v56 = vpop.eup %3939  ;;  %3959 = vrcp.f32 %v2800_v51  ;;  %v1923_v63 = vadd.f32 %v5065_v45, %v1720_v53 }
 0x13d   : > { %v3942_v62 = vpop.eup %3941  ;;  %3289 = vst.msk [vmem:[%s5127_s11 + $0x8] sm:$0xff] %vm3287_vm0, %v3940_v56  ;;  %3961 = vrcp.f32 %v2703_v57  ;;  %v2021_v3 = vadd.f32 %v5065_v45, %v1818_v59  ;;  %v771_v4 = vpop.f32.mrb[18].mxu0  ;;  %v398_v56 = vld [vmem:[%s4772_s27 + $0x410] sm:$0xff] }
 0x13e   : > { %v3944_v2 = vpop.eup %3943  ;;  %3387 = vst.msk [vmem:[%s5127_s11 + $0x318] sm:$0xff] %vm3287_vm0, %v3942_v62  ;;  %v1261_v5 = vpop.f32.mrb[18].mxu1  ;;  %3963 = vpow2.f32 %v3557_v52  ;;  %v3558_v8 = vmul.f32 -1.442695, %v1923_v63  ;;  %v1721_v9 = vmul.f32 %v5056_v39, %v771_v4  ;;  %1035 = vmatmul.mubr.f32.gmra.mrb[124].mxu0 %v392_v60  ;;  %1525 = vmatmul.mubr.f32.gmra.mrb[124].mxu1 %v588_v61  ;;  %v594_v57 = vld [vmem:[%s4772_s27 + $0xa30] sm:$0xff]  ;;  %v401_v61 = vld [vmem:[%s4772_s27 + $0x428] sm:$0xff] }
 0x13f   : > { %v3946_v6 = vpop.eup %3945  ;;  %v2801_v7 = vadd.f32 1.0, %v3944_v2  ;;  %v773_v10 = vpop.f32.mrb[19].mxu0  ;;  %3965 = vpow2.f32 %v3655_v58  ;;  %v3656_v14 = vmul.f32 -1.442695, %v2021_v3  ;;  %v1819_v15 = vmul.f32 %v5056_v39, %v1261_v5  ;;  %1039 = vmatprep.mubr.f32.mxu0 %v395_v0  ;;  %1529 = vmatprep.mubr.f32.mxu1 %v591_v1  ;;  %v597_v62 = vld [vmem:[%s4772_s27 + $0xa48] sm:$0xff] }
 0x140   : > { %v1263_v11 = vpop.f32.mrb[19].mxu1  ;;  %v3948_v12 = vpop.eup %3947  ;;  %v2704_v13 = vadd.f32 1.0, %v3946_v6  ;;  %v1924_v19 = vadd.f32 %v5065_v45, %v1721_v9 }
 0x141   : > { %v3950_v18 = vpop.eup %3949  ;;  %3290 = vst.msk [vmem:[%s5127_s11 + $0x10] sm:$0xff] %vm3287_vm0, %v3948_v12  ;;  %3967 = vrcp.f32 %v2801_v7  ;;  %v2022_v23 = vadd.f32 %v5065_v45, %v1819_v15  ;;  %v776_v24 = vpop.f32.mrb[20].mxu0  ;;  %v400_v12 = vld [vmem:[%s4772_s27 + $0x420] sm:$0xff]  ;;  %v403_v15 = vld [vmem:[%s4772_s27 + $0x438] sm:$0xff] }
 0x142   : > { %v3952_v22 = vpop.eup %3951  ;;  %3388 = vst.msk [vmem:[%s5127_s11 + $0x320] sm:$0xff] %vm3287_vm0, %v3950_v18  ;;  %3969 = vrcp.f32 %v2704_v13  ;;  %v1266_v25 = vpop.f32.mrb[20].mxu1  ;;  %v3559_v28 = vmul.f32 -1.442695, %v1924_v19  ;;  %v1722_v29 = vmul.f32 %v5056_v39, %v776_v24  ;;  %1040 = vmatmul.mubr.f32.gmra.mrb[126].mxu0 %v394_v16  ;;  %1530 = vmatmul.mubr.f32.gmra.mrb[126].mxu1 %v590_v17  ;;  %v596_v13 = vld [vmem:[%s4772_s27 + $0xa40] sm:$0xff]  ;;  %v599_v16 = vld [vmem:[%s4772_s27 + $0xa58] sm:$0xff] }
 0x143   : > { %v3954_v26 = vpop.eup %3953  ;;  %v2802_v27 = vadd.f32 1.0, %v3952_v22  ;;  %3971 = vpow2.f32 %v3558_v8  ;;  %v778_v30 = vpop.f32.mrb[21].mxu0  ;;  %v1820_v34 = vmul.f32 %v5056_v39, %v1266_v25  ;;  %1044 = vmatprep.mubr.f32.mxu0 %v397_v20  ;;  %1534 = vmatprep.mubr.f32.mxu1 %v593_v21  ;;  %v3657_v38 = vmul.f32 -1.442695, %v2022_v23 }
 0x144   : > { %v1268_v31 = vpop.f32.mrb[21].mxu1  ;;  %v3956_v32 = vpop.eup %3955  ;;  %v2705_v33 = vadd.f32 1.0, %v3954_v26  ;;  %3973 = vpow2.f32 %v3656_v14  ;;  %v1925_v40 = vadd.f32 %v5065_v45, %v1722_v29 }
 0x145   : > { %v3958_v37 = vpop.eup %3957  ;;  %3291 = vst.msk [vmem:[%s5127_s11 + $0x18] sm:$0xff] %vm3287_vm0, %v3956_v32  ;;  %3975 = vrcp.f32 %v2802_v27  ;;  %v2023_v44 = vadd.f32 %v5065_v45, %v1820_v34  ;;  %v781_v46 = vpop.f32.mrb[22].mxu0  ;;  %v402_v32 = vld [vmem:[%s4772_s27 + $0x430] sm:$0xff] }
 0x146   : > { %3977 = vrcp.f32 %v2705_v33  ;;  %v2803_v43 = vadd.f32 1.0, %v3958_v37  ;;  %v1271_v47 = vpop.f32.mrb[22].mxu1  ;;  %v3960_v48 = vpop.eup %3959  ;;  %v3560_v49 = vmul.f32 -1.442695, %v1925_v40  ;;  %v1723_v50 = vmul.f32 %v5056_v39, %v781_v46  ;;  %1045 = vmatmul.mubr.f32.gmra.mrb[128].mxu0 %v396_v35  ;;  %1535 = vmatmul.mubr.f32.gmra.mrb[128].mxu1 %v592_v36  ;;  %v598_v33 = vld [vmem:[%s4772_s27 + $0xa50] sm:$0xff]  ;;  %v405_v37 = vld [vmem:[%s4772_s27 + $0x448] sm:$0xff] }
 0x147   : > { %3979 = vpow2.f32 %v3559_v28  ;;  %v1821_v51 = vmul.f32 %v5056_v39, %v1271_v47  ;;  %v783_v52 = vpop.f32.mrb[23].mxu0  ;;  %v1273_v53 = vpop.f32.mrb[23].mxu1  ;;  %3389 = vst.msk [vmem:[%s5127_s11 + $0x328] sm:$0xff] %vm3287_vm0, %v3960_v48  ;;  %v3658_v55 = vmul.f32 -1.442695, %v2023_v44  ;;  %1049 = vmatprep.mubr.f32.mxu0 %v399_v41  ;;  %1539 = vmatprep.mubr.f32.mxu1 %v595_v42 }
 0x148   : > { %v3962_v54 = vpop.eup %3961  ;;  %3981 = vrcp.f32 %v2803_v43  ;;  %v1926_v59 = vadd.f32 %v5065_v45, %v1723_v50  ;;  %v404_v53 = vld [vmem:[%s4772_s27 + $0x440] sm:$0xff] }
 0x149   : > { %v3964_v58 = vpop.eup %3963  ;;  %3292 = vst.msk [vmem:[%s5127_s11 + $0x20] sm:$0xff] %vm3287_vm0, %v3962_v54  ;;  %3983 = vpow2.f32 %v3657_v38  ;;  %v2024_v60 = vadd.f32 %v5065_v45, %v1821_v51  ;;  %v786_v1 = vpop.f32.mrb[24].mxu0  ;;  %v601_v38 = vld [vmem:[%s4772_s27 + $0xa68] sm:$0xff]  ;;  %v600_v54 = vld [vmem:[%s4772_s27 + $0xa60] sm:$0xff] }
 0x14a   : > { %v3966_v63 = vpop.eup %3965  ;;  %v2706_v0 = vadd.f32 1.0, %v3964_v58  ;;  %3985 = vpow2.f32 %v3560_v49  ;;  %v1276_v2 = vpop.f32.mrb[24].mxu1  ;;  %v3561_v5 = vmul.f32 -1.442695, %v1926_v59  ;;  %1050 = vmatmul.mubr.f32.gmra.mrb[130].mxu0 %v398_v56  ;;  %1540 = vmatmul.mubr.f32.gmra.mrb[130].mxu1 %v594_v57  ;;  %v1724_v9 = vmul.f32 %v5056_v39, %v786_v1  ;;  %v407_v59 = vld [vmem:[%s4772_s27 + $0x458] sm:$0xff] }
 0x14b   : > { %v3968_v3 = vpop.eup %3967  ;;  %v2804_v4 = vadd.f32 1.0, %v3966_v63  ;;  %3987 = vpow2.f32 %v3658_v55  ;;  %v3659_v6 = vmul.f32 -1.442695, %v2024_v60  ;;  %v788_v7 = vpop.f32.mrb[25].mxu0  ;;  %v1822_v10 = vmul.f32 %v5056_v39, %v1276_v2  ;;  %1054 = vmatprep.mubr.f32.mxu0 %v401_v61  ;;  %1544 = vmatprep.mubr.f32.mxu1 %v597_v62  ;;  %v603_v60 = vld [vmem:[%s4772_s27 + $0xa78] sm:$0xff] }
 0x14c   : > { %v3970_v8 = vpop.eup %3969  ;;  %3390 = vst.msk [vmem:[%s5127_s11 + $0x330] sm:$0xff] %vm3287_vm0, %v3968_v3  ;;  %3989 = vrcp.f32 %v2706_v0  ;;  %v1278_v11 = vpop.f32.mrb[25].mxu1  ;;  %v1927_v19 = vadd.f32 %v5065_v45, %v1724_v9 }
 0x14d   : > { %v3972_v14 = vpop.eup %3971  ;;  %3293 = vst.msk [vmem:[%s5127_s11 + $0x28] sm:$0xff] %vm3287_vm0, %v3970_v8  ;;  %3991 = vrcp.f32 %v2804_v4  ;;  %v2025_v20 = vadd.f32 %v5065_v45, %v1822_v10  ;;  %v791_v21 = vpop.f32.mrb[26].mxu0  ;;  %v406_v10 = vld [vmem:[%s4772_s27 + $0x450] sm:$0xff] }
 0x14e   : > { %v3974_v17 = vpop.eup %3973  ;;  %v2707_v18 = vadd.f32 1.0, %v3972_v14  ;;  %3993 = vpow2.f32 %v3561_v5  ;;  %v1281_v22 = vpop.f32.mrb[26].mxu1  ;;  %v1725_v25 = vmul.f32 %v5056_v39, %v791_v21  ;;  %1055 = vmatmul.mubr.f32.gmra.mrb[132].mxu0 %v400_v12  ;;  %1545 = vmatmul.mubr.f32.gmra.mrb[132].mxu1 %v596_v13  ;;  %v3562_v30 = vmul.f32 -1.442695, %v1927_v19  ;;  %v602_v11 = vld [vmem:[%s4772_s27 + $0xa70] sm:$0xff] }
 0x14f   : > { %v3976_v23 = vpop.eup %3975  ;;  %v2805_v24 = vadd.f32 1.0, %v3974_v17  ;;  %3995 = vpow2.f32 %v3659_v6  ;;  %v1823_v26 = vmul.f32 %v5056_v39, %v1281_v22  ;;  %v793_v27 = vpop.f32.mrb[27].mxu0  ;;  %v3660_v31 = vmul.f32 -1.442695, %v2025_v20  ;;  %1059 = vmatprep.mubr.f32.mxu0 %v403_v15  ;;  %1549 = vmatprep.mubr.f32.mxu1 %v599_v16  ;;  %v409_v16 = vld [vmem:[%s4772_s27 + $0x468] sm:$0xff] }
 0x150   : > { %v1283_v28 = vpop.f32.mrb[27].mxu1  ;;  %v3978_v29 = vpop.eup %3977  ;;  %3391 = vst.msk [vmem:[%s5127_s11 + $0x338] sm:$0xff] %vm3287_vm0, %v3976_v23  ;;  %3997 = vrcp.f32 %v2707_v18  ;;  %v1928_v35 = vadd.f32 %v5065_v45, %v1725_v25  ;;  %v605_v17 = vld [vmem:[%s4772_s27 + $0xa88] sm:$0xff] }
 0x151   : > { %v3980_v34 = vpop.eup %3979  ;;  %3294 = vst.msk [vmem:[%s5127_s11 + $0x30] sm:$0xff] %vm3287_vm0, %v3978_v29  ;;  %3999 = vrcp.f32 %v2805_v24  ;;  %v2026_v36 = vadd.f32 %v5065_v45, %v1823_v26  ;;  %v796_v42 = vpop.f32.mrb[28].mxu0  ;;  %v408_v29 = vld [vmem:[%s4772_s27 + $0x460] sm:$0xff] }
 0x152   : > { %v3982_v40 = vpop.eup %3981  ;;  %v2708_v41 = vadd.f32 1.0, %v3980_v34  ;;  %4001 = vpow2.f32 %v3562_v30  ;;  %v1286_v43 = vpop.f32.mrb[28].mxu1  ;;  %v3563_v46 = vmul.f32 -1.442695, %v1928_v35  ;;  %v1726_v47 = vmul.f32 %v5056_v39, %v796_v42  ;;  %1060 = vmatmul.mubr.f32.gmra.mrb[134].mxu0 %v402_v32  ;;  %1550 = vmatmul.mubr.f32.gmra.mrb[134].mxu1 %v598_v33  ;;  %v604_v30 = vld [vmem:[%s4772_s27 + $0xa80] sm:$0xff]  ;;  %v411_v35 = vld [vmem:[%s4772_s27 + $0x478] sm:$0xff] }
 0x153   : > { %v3984_v44 = vpop.eup %3983  ;;  %3392 = vst.msk [vmem:[%s5127_s11 + $0x340] sm:$0xff] %vm3287_vm0, %v3982_v40  ;;  %4003 = vpow2.f32 %v3660_v31  ;;  %v798_v48 = vpop.f32.mrb[29].mxu0  ;;  %v1824_v52 = vmul.f32 %v5056_v39, %v1286_v43  ;;  %1064 = vmatprep.mubr.f32.mxu0 %v405_v37  ;;  %1554 = vmatprep.mubr.f32.mxu1 %v601_v38  ;;  %v3661_v57 = vmul.f32 -1.442695, %v2026_v36  ;;  %v607_v36 = vld [vmem:[%s4772_s27 + $0xa98] sm:$0xff] }
 0x154   : > { %v1288_v49 = vpop.f32.mrb[29].mxu1  ;;  %v3986_v50 = vpop.eup %3985  ;;  %4005 = vrcp.f32 %v2708_v41  ;;  %v2806_v51 = vadd.f32 1.0, %v3984_v44  ;;  %v1929_v58 = vadd.f32 %v5065_v45, %v1726_v47 }
 0x155   : > { %v3988_v55 = vpop.eup %3987  ;;  %v2709_v56 = vadd.f32 1.0, %v3986_v50  ;;  %4007 = vpow2.f32 %v3563_v46  ;;  %v2027_v63 = vadd.f32 %v5065_v45, %v1824_v52  ;;  %v801_v0 = vpop.f32.mrb[30].mxu0 }
 0x156   : > { %v3990_v61 = vpop.eup %3989  ;;  %4009 = vrcp.f32 %v2806_v51  ;;  %v2807_v62 = vadd.f32 1.0, %v3988_v55  ;;  %v1291_v1 = vpop.f32.mrb[30].mxu1  ;;  %v3564_v3 = vmul.f32 -1.442695, %v1929_v58  ;;  %v1727_v4 = vmul.f32 %v5056_v39, %v801_v0  ;;  %1065 = vmatmul.mubr.f32.gmra.mrb[136].mxu0 %v404_v53  ;;  %1555 = vmatmul.mubr.f32.gmra.mrb[136].mxu1 %v600_v54  ;;  %v410_v53 = vld [vmem:[%s4772_s27 + $0x470] sm:$0xff]  ;;  %v413_v58 = vld [vmem:[%s4772_s27 + $0x488] sm:$0xff] }
 0x157   : > { %v3992_v2 = vpop.eup %3991  ;;  %3295 = vst.msk [vmem:[%s5127_s11 + $0x38] sm:$0xff] %vm3287_vm0, %v3990_v61  ;;  %4011 = vrcp.f32 %v2709_v56  ;;  %v1825_v5 = vmul.f32 %v5056_v39, %v1291_v1  ;;  %v803_v6 = vpop.f32.mrb[31].mxu0  ;;  %v3662_v9 = vmul.f32 -1.442695, %v2027_v63  ;;  %1069 = vmatprep.mubr.f32.mxu0 %v407_v59  ;;  %1559 = vmatprep.mubr.f32.mxu1 %v603_v60  ;;  %v606_v54 = vld [vmem:[%s4772_s27 + $0xa90] sm:$0xff]  ;;  %v609_v59 = vld [vmem:[%s4772_s27 + $0xaa8] sm:$0xff] }
 0x158   : > { %v1293_v7 = vpop.f32.mrb[31].mxu1  ;;  %v3994_v8 = vpop.eup %3993  ;;  %3393 = vst.msk [vmem:[%s5127_s11 + $0x348] sm:$0xff] %vm3287_vm0, %v3992_v2  ;;  %4013 = vrcp.f32 %v2807_v62  ;;  %v1930_v14 = vadd.f32 %v5065_v45, %v1727_v4 }
 0x159   : > { %v3996_v12 = vpop.eup %3995  ;;  %v2710_v13 = vadd.f32 1.0, %v3994_v8  ;;  %4015 = vpow2.f32 %v3661_v57  ;;  %v2028_v15 = vadd.f32 %v5065_v45, %v1825_v5  ;;  %v806_v20 = vpop.f32.mrb[32].mxu0  ;;  %v412_v8 = vld [vmem:[%s4772_s27 + $0x480] sm:$0xff] }
 0x15a   : > { %v3998_v18 = vpop.eup %3997  ;;  %v2808_v19 = vadd.f32 1.0, %v3996_v12  ;;  %4017 = vpow2.f32 %v3564_v3  ;;  %v1296_v21 = vpop.f32.mrb[32].mxu1  ;;  %v3565_v23 = vmul.f32 -1.442695, %v1930_v14  ;;  %v1728_v24 = vmul.f32 %v5056_v39, %v806_v20  ;;  %1070 = vmatmul.mubr.f32.gmra.mrb[138].mxu0 %v406_v10  ;;  %1560 = vmatmul.mubr.f32.gmra.mrb[138].mxu1 %v602_v11  ;;  %v611_v14 = vld [vmem:[%s4772_s27 + $0xab8] sm:$0xff] }
 0x15b   : > { %v4000_v22 = vpop.eup %3999  ;;  %3296 = vst.msk [vmem:[%s5127_s11 + $0x40] sm:$0xff] %vm3287_vm0, %v3998_v18  ;;  %4019 = vrcp.f32 %v2710_v13  ;;  %v808_v25 = vpop.f32.mrb[33].mxu0  ;;  %v1826_v28 = vmul.f32 %v5056_v39, %v1296_v21  ;;  %1074 = vmatprep.mubr.f32.mxu0 %v409_v16  ;;  %1564 = vmatprep.mubr.f32.mxu1 %v605_v17  ;;  %v3663_v33 = vmul.f32 -1.442695, %v2028_v15  ;;  %v415_v13 = vld [vmem:[%s4772_s27 + $0x498] sm:$0xff] }
 0x15c   : > { %v1298_v26 = vpop.f32.mrb[33].mxu1  ;;  %v4002_v27 = vpop.eup %4001  ;;  %3394 = vst.msk [vmem:[%s5127_s11 + $0x350] sm:$0xff] %vm3287_vm0, %v4000_v22  ;;  %4021 = vrcp.f32 %v2808_v19  ;;  %v1931_v34 = vadd.f32 %v5065_v45, %v1728_v24  ;;  %v5276_v20 = vld [vmem:[%s6076_s2] ss:$0 sm:$0xff] }
 0x15d   : > { %v4004_v31 = vpop.eup %4003  ;;  %v2711_v32 = vadd.f32 1.0, %v4002_v27  ;;  %4023 = vpow2.f32 %v3662_v9  ;;  %v2029_v40 = vadd.f32 %v5065_v45, %v1826_v28  ;;  %v811_v41 = vpop.f32.mrb[34].mxu0  ;;  %v608_v9 = vld [vmem:[%s4772_s27 + $0xaa0] sm:$0xff]  ;;  %v414_v27 = vld [vmem:[%s4772_s27 + $0x490] sm:$0xff] }
 0x15e   : > { %v4006_v37 = vpop.eup %4005  ;;  %v2809_v38 = vadd.f32 1.0, %v4004_v31  ;;  %4025 = vpow2.f32 %v3565_v23  ;;  %v1301_v42 = vpop.f32.mrb[34].mxu1  ;;  %v3566_v44 = vmul.f32 -1.442695, %v1931_v34  ;;  %v1729_v46 = vmul.f32 %v5056_v39, %v811_v41  ;;  %1075 = vmatmul.mubr.f32.gmra.mrb[140].mxu0 %v408_v29  ;;  %1565 = vmatmul.mubr.f32.gmra.mrb[140].mxu1 %v604_v30  ;;  %v610_v28 = vld [vmem:[%s4772_s27 + $0xab0] sm:$0xff]  ;;  %v417_v34 = vld [vmem:[%s4772_s27 + $0x4a8] sm:$0xff] }
 0x15f   : > { %v4008_v43 = vpop.eup %4007  ;;  %3297 = vst.msk [vmem:[%s5127_s11 + $0x48] sm:$0xff] %vm3287_vm0, %v4006_v37  ;;  %4027 = vrcp.f32 %v2711_v32  ;;  %v1827_v47 = vmul.f32 %v5056_v39, %v1301_v42  ;;  %v813_v48 = vpop.f32.mrb[35].mxu0  ;;  %v3664_v52 = vmul.f32 -1.442695, %v2029_v40  ;;  %1079 = vmatprep.mubr.f32.mxu0 %v411_v35  ;;  %1569 = vmatprep.mubr.f32.mxu1 %v607_v36  ;;  %v5285_v31 = vld [vmem:[%s6077_s3] ss:$0 sm:$0xff] }
 0x160   : > { %v1303_v49 = vpop.f32.mrb[35].mxu1  ;;  %v4010_v50 = vpop.eup %4009  ;;  %4029 = vrcp.f32 %v2809_v38  ;;  %v2712_v51 = vadd.f32 1.0, %v4008_v43  ;;  %v1932_v56 = vadd.f32 %v5065_v45, %v1729_v46  ;;  %v613_v35 = vld [vmem:[%s4772_s27 + $0xac8] sm:$0xff] }
 0x161   : > { %v4012_v55 = vpop.eup %4011  ;;  %3395 = vst.msk [vmem:[%s5127_s11 + $0x358] sm:$0xff] %vm3287_vm0, %v4010_v50  ;;  %4031 = vpow2.f32 %v3663_v33  ;;  %v2030_v57 = vadd.f32 %v5065_v45, %v1827_v47  ;;  %v816_v61 = vpop.f32.mrb[36].mxu0  ;;  %v416_v50 = vld [vmem:[%s4772_s27 + $0x4a0] sm:$0xff] }
 0x162   : > { %v4014_v60 = vpop.eup %4013  ;;  %3298 = vst.msk [vmem:[%s5127_s11 + $0x50] sm:$0xff] %vm3287_vm0, %v4012_v55  ;;  %4033 = vrcp.f32 %v2712_v51  ;;  %v1306_v62 = vpop.f32.mrb[36].mxu1  ;;  %v3567_v0 = vmul.f32 -1.442695, %v1932_v56  ;;  %v1730_v1 = vmul.f32 %v5056_v39, %v816_v61  ;;  %1080 = vmatmul.mubr.f32.gmra.mrb[142].mxu0 %v410_v53  ;;  %1570 = vmatmul.mubr.f32.gmra.mrb[142].mxu1 %v606_v54  ;;  %v612_v51 = vld [vmem:[%s4772_s27 + $0xac0] sm:$0xff]  ;;  %v419_v54 = vld [vmem:[%s4772_s27 + $0x4b8] sm:$0xff] }
 0x163   : > { %v4016_v63 = vpop.eup %4015  ;;  %3396 = vst.msk [vmem:[%s5127_s11 + $0x360] sm:$0xff] %vm3287_vm0, %v4014_v60  ;;  %4035 = vpow2.f32 %v3566_v44  ;;  %v818_v2 = vpop.f32.mrb[37].mxu0  ;;  %v3665_v6 = vmul.f32 -1.442695, %v2030_v57  ;;  %v1828_v7 = vmul.f32 %v5056_v39, %v1306_v62  ;;  %1084 = vmatprep.mubr.f32.mxu0 %v413_v58  ;;  %1574 = vmatprep.mubr.f32.mxu1 %v609_v59  ;;  %v615_v55 = vld [vmem:[%s4772_s27 + $0xad8] sm:$0xff] }
 0x164   : > { %v1308_v3 = vpop.f32.mrb[37].mxu1  ;;  %v4018_v4 = vpop.eup %4017  ;;  %v2810_v5 = vadd.f32 1.0, %v4016_v63  ;;  %4037 = vpow2.f32 %v3664_v52  ;;  %v1933_v12 = vadd.f32 %v5065_v45, %v1730_v1 }
 0x165   : > { %v4020_v10 = vpop.eup %4019  ;;  %v2713_v11 = vadd.f32 1.0, %v4018_v4  ;;  %4039 = vpow2.f32 %v3567_v0  ;;  %v2031_v16 = vadd.f32 %v5065_v45, %v1828_v7  ;;  %v821_v17 = vpop.f32.mrb[38].mxu0  ;;  %v418_v7 = vld [vmem:[%s4772_s27 + $0x4b0] sm:$0xff] }
 0x166   : > { %v4022_v15 = vpop.eup %4021  ;;  %3299 = vst.msk [vmem:[%s5127_s11 + $0x58] sm:$0xff] %vm3287_vm0, %v4020_v10  ;;  %4041 = vrcp.f32 %v2810_v5  ;;  %v1311_v39 = vpop.f32.mrb[38].mxu1  ;;  %v3568_v19 = vmul.f32 -1.442695, %v1933_v12  ;;  %v1731_v21 = vmul.f32 %v5276_v20, %v821_v17  ;;  %1085 = vmatmul.mubr.f32.gmra.mrb[144].mxu0 %v412_v8  ;;  %1575 = vmatmul.mubr.f32.gmra.mrb[144].mxu1 %v608_v9  ;;  %v614_v8 = vld [vmem:[%s4772_s27 + $0xad0] sm:$0xff]  ;;  %v617_v12 = vld [vmem:[%s4772_s27 + $0xae8] sm:$0xff] }
 0x167   : > { %v4024_v18 = vpop.eup %4023  ;;  %3397 = vst.msk [vmem:[%s5127_s11 + $0x368] sm:$0xff] %vm3287_vm0, %v4022_v15  ;;  %4043 = vrcp.f32 %v2713_v11  ;;  %v1829_v22 = vmul.f32 %v5276_v20, %v1311_v39  ;;  %v823_v23 = vpop.f32.mrb[39].mxu0  ;;  %v3666_v26 = vmul.f32 -1.442695, %v2031_v16  ;;  %1089 = vmatprep.mubr.f32.mxu0 %v415_v13  ;;  %1579 = vmatprep.mubr.f32.mxu1 %v611_v14  ;;  %v421_v11 = vld [vmem:[%s4772_s27 + $0x4c8] sm:$0xff] }
 0x168   : > { %v1313_v45 = vpop.f32.mrb[39].mxu1  ;;  %v4026_v24 = vpop.eup %4025  ;;  %v2811_v25 = vadd.f32 1.0, %v4024_v18  ;;  %4045 = vpow2.f32 %v3665_v6  ;;  %v1934_v32 = vadd.f32 %v5285_v31, %v1731_v21 }
 0x169   : > { %v4028_v29 = vpop.eup %4027  ;;  %v2714_v30 = vadd.f32 1.0, %v4026_v24  ;;  %4047 = vpow2.f32 %v3568_v19  ;;  %v2032_v33 = vadd.f32 %v5285_v31, %v1829_v22  ;;  %v826_v37 = vpop.f32.mrb[40].mxu0 }
 0x16a   : > { %v4030_v36 = vpop.eup %4029  ;;  %3300 = vst.msk [vmem:[%s5127_s11 + $0x60] sm:$0xff] %vm3287_vm0, %v4028_v29  ;;  %4049 = vrcp.f32 %v2811_v25  ;;  %v1316_v38 = vpop.f32.mrb[40].mxu1  ;;  %v3569_v41 = vmul.f32 -1.442695, %v1934_v32  ;;  %v1732_v43 = vmul.f32 %v5276_v20, %v826_v37  ;;  %1090 = vmatmul.mubr.f32.gmra.mrb[146].mxu0 %v414_v27  ;;  %1580 = vmatmul.mubr.f32.gmra.mrb[146].mxu1 %v610_v28  ;;  %v616_v27 = vld [vmem:[%s4772_s27 + $0xae0] sm:$0xff]  ;;  %v619_v32 = vld [vmem:[%s4772_s27 + $0xaf8] sm:$0xff] }
 0x16b   : > { %v4032_v40 = vpop.eup %4031  ;;  %3398 = vst.msk [vmem:[%s5127_s11 + $0x370] sm:$0xff] %vm3287_vm0, %v4030_v36  ;;  %4051 = vrcp.f32 %v2714_v30  ;;  %v3667_v42 = vmul.f32 -1.442695, %v2032_v33  ;;  %v828_v44 = vpop.f32.mrb[41].mxu0  ;;  %v1830_v49 = vmul.f32 %v5276_v20, %v1316_v38  ;;  %1094 = vmatprep.mubr.f32.mxu0 %v417_v34  ;;  %1584 = vmatprep.mubr.f32.mxu1 %v613_v35  ;;  %v423_v30 = vld [vmem:[%s4772_s27 + $0x4d8] sm:$0xff] }
 0x16c   : > { %v1318_v46 = vpop.f32.mrb[41].mxu1  ;;  %v4034_v47 = vpop.eup %4033  ;;  %v2812_v48 = vadd.f32 1.0, %v4032_v40  ;;  %4053 = vpow2.f32 %v3666_v26  ;;  %v1935_v53 = vadd.f32 %v5285_v31, %v1732_v43  ;;  %v420_v26 = vld [vmem:[%s4772_s27 + $0x4c0] sm:$0xff] }
 0x16d   : > { %v4036_v52 = vpop.eup %4035  ;;  %3301 = vst.msk [vmem:[%s5127_s11 + $0x68] sm:$0xff] %vm3287_vm0, %v4034_v47  ;;  %4055 = vpow2.f32 %v3569_v41  ;;  %v2033_v58 = vadd.f32 %v5285_v31, %v1830_v49  ;;  %v831_v59 = vpop.f32.mrb[42].mxu0  ;;  %v618_v49 = vld [vmem:[%s4772_s27 + $0xaf0] sm:$0xff] }
 0x16e   : > { %v4038_v56 = vpop.eup %4037  ;;  %4057 = vrcp.f32 %v2812_v48  ;;  %v2715_v57 = vadd.f32 1.0, %v4036_v52  ;;  %v1321_v60 = vpop.f32.mrb[42].mxu1  ;;  %v3570_v63 = vmul.f32 -1.442695, %v1935_v53  ;;  %v1733_v0 = vmul.f32 %v5276_v20, %v831_v59  ;;  %1095 = vmatmul.mubr.f32.gmra.mrb[148].mxu0 %v416_v50  ;;  %1585 = vmatmul.mubr.f32.gmra.mrb[148].mxu1 %v612_v51  ;;  %v422_v48 = vld [vmem:[%s4772_s27 + $0x4d0] sm:$0xff]  ;;  %v425_v53 = vld [vmem:[%s4772_s27 + $0x4e8] sm:$0xff] }
 0x16f   : > { %v4040_v61 = vpop.eup %4039  ;;  %v2813_v62 = vadd.f32 1.0, %v4038_v56  ;;  %4059 = vpow2.f32 %v3667_v42  ;;  %v833_v1 = vpop.f32.mrb[43].mxu0  ;;  %v3668_v5 = vmul.f32 -1.442695, %v2033_v58  ;;  %v1831_v6 = vmul.f32 %v5276_v20, %v1321_v60  ;;  %1099 = vmatprep.mubr.f32.mxu0 %v419_v54  ;;  %1589 = vmatprep.mubr.f32.mxu1 %v615_v55  ;;  %v621_v54 = vld [vmem:[%s4772_s27 + $0xb08] sm:$0xff] }
 0x170   : > { %v1323_v2 = vpop.f32.mrb[43].mxu1  ;;  %v4042_v3 = vpop.eup %4041  ;;  %4061 = vrcp.f32 %v2715_v57  ;;  %v2716_v4 = vadd.f32 1.0, %v4040_v61  ;;  %v1936_v10 = vadd.f32 %v5285_v31, %v1733_v0 }
 0x171   : > { %v4044_v9 = vpop.eup %4043  ;;  %3399 = vst.msk [vmem:[%s5127_s11 + $0x378] sm:$0xff] %vm3287_vm0, %v4042_v3  ;;  %4063 = vrcp.f32 %v2813_v62  ;;  %v2034_v14 = vadd.f32 %v5285_v31, %v1831_v6  ;;  %v836_v15 = vpop.f32.mrb[44].mxu0 }
 0x172   : > { %v4046_v13 = vpop.eup %4045  ;;  %3302 = vst.msk [vmem:[%s5127_s11 + $0x70] sm:$0xff] %vm3287_vm0, %v4044_v9  ;;  %4065 = vrcp.f32 %v2716_v4  ;;  %v1326_v16 = vpop.f32.mrb[44].mxu1  ;;  %v3571_v18 = vmul.f32 -1.442695, %v1936_v10  ;;  %v1734_v19 = vmul.f32 %v5276_v20, %v836_v15  ;;  %1100 = vmatmul.mubr.f32.gmra.mrb[150].mxu0 %v418_v7  ;;  %1590 = vmatmul.mubr.f32.gmra.mrb[150].mxu1 %v614_v8  ;;  %v424_v4 = vld [vmem:[%s4772_s27 + $0x4e0] sm:$0xff]  ;;  %v427_v9 = vld [vmem:[%s4772_s27 + $0x4f8] sm:$0xff] }
 0x173   : > { %v4048_v17 = vpop.eup %4047  ;;  %v2814_v39 = vadd.f32 1.0, %v4046_v13  ;;  %4067 = vpow2.f32 %v3570_v63  ;;  %v838_v21 = vpop.f32.mrb[45].mxu0  ;;  %v3669_v24 = vmul.f32 -1.442695, %v2034_v14  ;;  %v1832_v25 = vmul.f32 %v5276_v20, %v1326_v16  ;;  %1104 = vmatprep.mubr.f32.mxu0 %v421_v11  ;;  %1594 = vmatprep.mubr.f32.mxu1 %v617_v12  ;;  %v623_v10 = vld [vmem:[%s4772_s27 + $0xb18] sm:$0xff] }
 0x174   : > { %v1328_v22 = vpop.f32.mrb[45].mxu1  ;;  %v4050_v23 = vpop.eup %4049  ;;  %v2717_v45 = vadd.f32 1.0, %v4048_v17  ;;  %4069 = vpow2.f32 %v3668_v5  ;;  %v1937_v29 = vadd.f32 %v5285_v31, %v1734_v19  ;;  %v620_v5 = vld [vmem:[%s4772_s27 + $0xb00] sm:$0xff] }
 0x175   : > { %v4052_v28 = vpop.eup %4051  ;;  %3400 = vst.msk [vmem:[%s5127_s11 + $0x380] sm:$0xff] %vm3287_vm0, %v4050_v23  ;;  %4071 = vrcp.f32 %v2814_v39  ;;  %v2035_v34 = vadd.f32 %v5285_v31, %v1832_v25  ;;  %v841_v35 = vpop.f32.mrb[46].mxu0 }
 0x176   : > { %v4054_v33 = vpop.eup %4053  ;;  %3303 = vst.msk [vmem:[%s5127_s11 + $0x78] sm:$0xff] %vm3287_vm0, %v4052_v28  ;;  %4073 = vrcp.f32 %v2717_v45  ;;  %v1331_v36 = vpop.f32.mrb[46].mxu1  ;;  %v3572_v40 = vmul.f32 -1.442695, %v1937_v29  ;;  %v1735_v41 = vmul.f32 %v5276_v20, %v841_v35  ;;  %1105 = vmatmul.mubr.f32.gmra.mrb[152].mxu0 %v420_v26  ;;  %1595 = vmatmul.mubr.f32.gmra.mrb[152].mxu1 %v616_v27  ;;  %v426_v45 = vld [vmem:[%s4772_s27 + $0x4f0] sm:$0xff]  ;;  %v429_v26 = vld [vmem:[%s4772_s27 + $0x508] sm:$0xff] }
 0x177   : > { %v4056_v37 = vpop.eup %4055  ;;  %v2815_v38 = vadd.f32 1.0, %v4054_v33  ;;  %4075 = vpow2.f32 %v3571_v18  ;;  %v843_v42 = vpop.f32.mrb[47].mxu0  ;;  %v1833_v47 = vmul.f32 %v5276_v20, %v1331_v36  ;;  %1109 = vmatprep.mubr.f32.mxu0 %v423_v30  ;;  %1599 = vmatprep.mubr.f32.mxu1 %v619_v32  ;;  %v3670_v51 = vmul.f32 -1.442695, %v2035_v34  ;;  %v625_v27 = vld [vmem:[%s4772_s27 + $0xb28] sm:$0xff] }
 0x178   : > { %v1333_v43 = vpop.f32.mrb[47].mxu1  ;;  %v4058_v44 = vpop.eup %4057  ;;  %v2718_v46 = vadd.f32 1.0, %v4056_v37  ;;  %4077 = vpow2.f32 %v3669_v24  ;;  %v1938_v52 = vadd.f32 %v5285_v31, %v1735_v41  ;;  %v622_v24 = vld [vmem:[%s4772_s27 + $0xb10] sm:$0xff] }
 0x179   : > { %v4060_v50 = vpop.eup %4059  ;;  %3401 = vst.msk [vmem:[%s5127_s11 + $0x388] sm:$0xff] %vm3287_vm0, %v4058_v44  ;;  %4079 = vrcp.f32 %v2815_v38  ;;  %v2036_v57 = vadd.f32 %v5285_v31, %v1833_v47  ;;  %v846_v58 = vpop.f32.mrb[48].mxu0  ;;  %v624_v47 = vld [vmem:[%s4772_s27 + $0xb20] sm:$0xff] }
 0x17a   : > { %v4062_v55 = vpop.eup %4061  ;;  %4081 = vrcp.f32 %v2718_v46  ;;  %v2816_v56 = vadd.f32 1.0, %v4060_v50  ;;  %v1336_v59 = vpop.f32.mrb[48].mxu1  ;;  %v3573_v61 = vmul.f32 -1.442695, %v1938_v52  ;;  %v1736_v62 = vmul.f32 %v5276_v20, %v846_v58  ;;  %1110 = vmatmul.mubr.f32.gmra.mrb[154].mxu0 %v422_v48  ;;  %1600 = vmatmul.mubr.f32.gmra.mrb[154].mxu1 %v618_v49  ;;  %v428_v46 = vld [vmem:[%s4772_s27 + $0x500] sm:$0xff]  ;;  %v627_v52 = vld [vmem:[%s4772_s27 + $0xb38] sm:$0xff] }
 0x17b   : > { %v4064_v60 = vpop.eup %4063  ;;  %3304 = vst.msk [vmem:[%s5127_s11 + $0x80] sm:$0xff] %vm3287_vm0, %v4062_v55  ;;  %4083 = vpow2.f32 %v3572_v40  ;;  %v1834_v63 = vmul.f32 %v5276_v20, %v1336_v59  ;;  %v848_v0 = vpop.f32.mrb[49].mxu0  ;;  %v3671_v3 = vmul.f32 -1.442695, %v2036_v57  ;;  %1114 = vmatprep.mubr.f32.mxu0 %v425_v53  ;;  %1604 = vmatprep.mubr.f32.mxu1 %v621_v54 }
 0x17c   : > { %v1338_v1 = vpop.f32.mrb[49].mxu1  ;;  %v4066_v2 = vpop.eup %4065  ;;  %3402 = vst.msk [vmem:[%s5127_s11 + $0x390] sm:$0xff] %vm3287_vm0, %v4064_v60  ;;  %4085 = vrcp.f32 %v2816_v56  ;;  %v1939_v7 = vadd.f32 %v5285_v31, %v1736_v62 }
 0x17d   : > { %v4068_v6 = vpop.eup %4067  ;;  %3305 = vst.msk [vmem:[%s5127_s11 + $0x88] sm:$0xff] %vm3287_vm0, %v4066_v2  ;;  %4087 = vpow2.f32 %v3670_v51  ;;  %v2037_v8 = vadd.f32 %v5285_v31, %v1834_v63  ;;  %v851_v13 = vpop.f32.mrb[50].mxu0  ;;  %v431_v51 = vld [vmem:[%s4772_s27 + $0x518] sm:$0xff]  ;;  %v430_v1 = vld [vmem:[%s4772_s27 + $0x510] sm:$0xff] }
 0x17e   : > { %v4070_v11 = vpop.eup %4069  ;;  %v2719_v12 = vadd.f32 1.0, %v4068_v6  ;;  %4089 = vpow2.f32 %v3573_v61  ;;  %v1341_v14 = vpop.f32.mrb[50].mxu1  ;;  %v3574_v17 = vmul.f32 -1.442695, %v1939_v7  ;;  %1115 = vmatmul.mubr.f32.gmra.mrb[156].mxu0 %v424_v4  ;;  %1605 = vmatmul.mubr.f32.gmra.mrb[156].mxu1 %v620_v5  ;;  %v1737_v21 = vmul.f32 %v5276_v20, %v851_v13  ;;  %v626_v2 = vld [vmem:[%s4772_s27 + $0xb30] sm:$0xff]  ;;  %v433_v7 = vld [vmem:[%s4772_s27 + $0x528] sm:$0xff] }
 0x17f   : > { %v4072_v15 = vpop.eup %4071  ;;  %v2817_v16 = vadd.f32 1.0, %v4070_v11  ;;  %4091 = vpow2.f32 %v3671_v3  ;;  %v3672_v39 = vmul.f32 -1.442695, %v2037_v8  ;;  %v853_v18 = vpop.f32.mrb[51].mxu0  ;;  %v1835_v22 = vmul.f32 %v5276_v20, %v1341_v14  ;;  %1119 = vmatprep.mubr.f32.mxu0 %v427_v9  ;;  %1609 = vmatprep.mubr.f32.mxu1 %v623_v10  ;;  %v629_v8 = vld [vmem:[%s4772_s27 + $0xb48] sm:$0xff] }
 0x180   : > { %v4074_v19 = vpop.eup %4073  ;;  %3403 = vst.msk [vmem:[%s5127_s11 + $0x398] sm:$0xff] %vm3287_vm0, %v4072_v15  ;;  %4093 = vrcp.f32 %v2719_v12  ;;  %v1343_v23 = vpop.f32.mrb[51].mxu1  ;;  %v1940_v30 = vadd.f32 %v5285_v31, %v1737_v21 }
 0x181   : > { %v4076_v25 = vpop.eup %4075  ;;  %3306 = vst.msk [vmem:[%s5127_s11 + $0x90] sm:$0xff] %vm3287_vm0, %v4074_v19  ;;  %4095 = vrcp.f32 %v2817_v16  ;;  %v2038_v32 = vadd.f32 %v5285_v31, %v1835_v22  ;;  %v856_v33 = vpop.f32.mrb[52].mxu0  ;;  %v432_v22 = vld [vmem:[%s4772_s27 + $0x520] sm:$0xff] }
 0x182   : > { %v4078_v28 = vpop.eup %4077  ;;  %v2720_v29 = vadd.f32 1.0, %v4076_v25  ;;  %4097 = vpow2.f32 %v3574_v17  ;;  %v1346_v34 = vpop.f32.mrb[52].mxu1  ;;  %v1738_v37 = vmul.f32 %v5276_v20, %v856_v33  ;;  %1120 = vmatmul.mubr.f32.gmra.mrb[158].mxu0 %v426_v45  ;;  %1610 = vmatmul.mubr.f32.gmra.mrb[158].mxu1 %v622_v24  ;;  %v3575_v43 = vmul.f32 -1.442695, %v1940_v30  ;;  %v628_v23 = vld [vmem:[%s4772_s27 + $0xb40] sm:$0xff] }
 0x183   : > { %v4080_v35 = vpop.eup %4079  ;;  %v2818_v36 = vadd.f32 1.0, %v4078_v28  ;;  %4099 = vpow2.f32 %v3672_v39  ;;  %v1836_v38 = vmul.f32 %v5276_v20, %v1346_v34  ;;  %v858_v40 = vpop.f32.mrb[53].mxu0  ;;  %v3673_v44 = vmul.f32 -1.442695, %v2038_v32  ;;  %1124 = vmatprep.mubr.f32.mxu0 %v429_v26  ;;  %1614 = vmatprep.mubr.f32.mxu1 %v625_v27  ;;  %v435_v27 = vld [vmem:[%s4772_s27 + $0x538] sm:$0xff] }
 0x184   : > { %v1348_v41 = vpop.f32.mrb[53].mxu1  ;;  %v4082_v42 = vpop.eup %4081  ;;  %3404 = vst.msk [vmem:[%s5127_s11 + $0x3a0] sm:$0xff] %vm3287_vm0, %v4080_v35  ;;  %4101 = vrcp.f32 %v2720_v29  ;;  %v1941_v49 = vadd.f32 %v5285_v31, %v1738_v37  ;;  %v631_v28 = vld [vmem:[%s4772_s27 + $0xb58] sm:$0xff] }
 0x185   : > { %v4084_v48 = vpop.eup %4083  ;;  %3307 = vst.msk [vmem:[%s5127_s11 + $0x98] sm:$0xff] %vm3287_vm0, %v4082_v42  ;;  %4103 = vrcp.f32 %v2818_v36  ;;  %v2039_v50 = vadd.f32 %v5285_v31, %v1836_v38  ;;  %v861_v55 = vpop.f32.mrb[54].mxu0  ;;  %v434_v42 = vld [vmem:[%s4772_s27 + $0x530] sm:$0xff] }
 0x186   : > { %v4086_v53 = vpop.eup %4085  ;;  %v2721_v54 = vadd.f32 1.0, %v4084_v48  ;;  %4105 = vpow2.f32 %v3575_v43  ;;  %v1351_v56 = vpop.f32.mrb[54].mxu1  ;;  %v3576_v58 = vmul.f32 -1.442695, %v1941_v49  ;;  %v1739_v59 = vmul.f32 %v5276_v20, %v861_v55  ;;  %1125 = vmatmul.mubr.f32.gmra.mrb[160].mxu0 %v428_v46  ;;  %1615 = vmatmul.mubr.f32.gmra.mrb[160].mxu1 %v624_v47  ;;  %v630_v43 = vld [vmem:[%s4772_s27 + $0xb50] sm:$0xff]  ;;  %v437_v49 = vld [vmem:[%s4772_s27 + $0x548] sm:$0xff] }
 0x187   : > { %v4088_v57 = vpop.eup %4087  ;;  %3405 = vst.msk [vmem:[%s5127_s11 + $0x3a8] sm:$0xff] %vm3287_vm0, %v4086_v53  ;;  %4107 = vpow2.f32 %v3673_v44  ;;  %v863_v60 = vpop.f32.mrb[55].mxu0  ;;  %v1837_v0 = vmul.f32 %v5276_v20, %v1351_v56  ;;  %1129 = vmatprep.mubr.f32.mxu0 %v431_v51  ;;  %1619 = vmatprep.mubr.f32.mxu1 %v627_v52  ;;  %v3674_v5 = vmul.f32 -1.442695, %v2039_v50  ;;  %v633_v50 = vld [vmem:[%s4772_s27 + $0xb68] sm:$0xff] }
 0x188   : > { %v1353_v61 = vpop.f32.mrb[55].mxu1  ;;  %v4090_v62 = vpop.eup %4089  ;;  %4109 = vrcp.f32 %v2721_v54  ;;  %v2819_v63 = vadd.f32 1.0, %v4088_v57  ;;  %v1942_v6 = vadd.f32 %v5285_v31, %v1739_v59 }
 0x189   : > { %v4092_v3 = vpop.eup %4091  ;;  %v2722_v4 = vadd.f32 1.0, %v4090_v62  ;;  %4111 = vpow2.f32 %v3576_v58  ;;  %v2040_v11 = vadd.f32 %v5285_v31, %v1837_v0  ;;  %v866_v12 = vpop.f32.mrb[56].mxu0 }
 0x18a   : > { %v4094_v9 = vpop.eup %4093  ;;  %4113 = vrcp.f32 %v2819_v63  ;;  %v2820_v10 = vadd.f32 1.0, %v4092_v3  ;;  %v1356_v13 = vpop.f32.mrb[56].mxu1  ;;  %v3577_v15 = vmul.f32 -1.442695, %v1942_v6  ;;  %v1740_v16 = vmul.f32 %v5276_v20, %v866_v12  ;;  %1130 = vmatmul.mubr.f32.gmra.mrb[162].mxu0 %v430_v1  ;;  %1620 = vmatmul.mubr.f32.gmra.mrb[162].mxu1 %v626_v2  ;;  %v436_v1 = vld [vmem:[%s4772_s27 + $0x540] sm:$0xff]  ;;  %v439_v6 = vld [vmem:[%s4772_s27 + $0x558] sm:$0xff] }
 0x18b   : > { %v4096_v14 = vpop.eup %4095  ;;  %3308 = vst.msk [vmem:[%s5127_s11 + $0xa0] sm:$0xff] %vm3287_vm0, %v4094_v9  ;;  %4115 = vrcp.f32 %v2722_v4  ;;  %v1838_v17 = vmul.f32 %v5276_v20, %v1356_v13  ;;  %v868_v39 = vpop.f32.mrb[57].mxu0  ;;  %v3675_v21 = vmul.f32 -1.442695, %v2040_v11  ;;  %1134 = vmatprep.mubr.f32.mxu0 %v433_v7  ;;  %1624 = vmatprep.mubr.f32.mxu1 %v629_v8  ;;  %v632_v2 = vld [vmem:[%s4772_s27 + $0xb60] sm:$0xff]  ;;  %v635_v7 = vld [vmem:[%s4772_s27 + $0xb78] sm:$0xff] }
 0x18c   : > { %v1358_v18 = vpop.f32.mrb[57].mxu1  ;;  %v4098_v19 = vpop.eup %4097  ;;  %3406 = vst.msk [vmem:[%s5127_s11 + $0x3b0] sm:$0xff] %vm3287_vm0, %v4096_v14  ;;  %4117 = vrcp.f32 %v2820_v10  ;;  %v1943_v25 = vadd.f32 %v5285_v31, %v1740_v16 }
 0x18d   : > { %v4100_v45 = vpop.eup %4099  ;;  %v2723_v24 = vadd.f32 1.0, %v4098_v19  ;;  %4119 = vpow2.f32 %v3674_v5  ;;  %v2041_v26 = vadd.f32 %v5285_v31, %v1838_v17  ;;  %v871_v32 = vpop.f32.mrb[58].mxu0  ;;  %v438_v19 = vld [vmem:[%s4772_s27 + $0x550] sm:$0xff] }
 0x18e   : > { %v4102_v29 = vpop.eup %4101  ;;  %v2821_v30 = vadd.f32 1.0, %v4100_v45  ;;  %4121 = vpow2.f32 %v3577_v15  ;;  %v1361_v33 = vpop.f32.mrb[58].mxu1  ;;  %v3578_v35 = vmul.f32 -1.442695, %v1943_v25  ;;  %v1741_v36 = vmul.f32 %v5276_v20, %v871_v32  ;;  %1135 = vmatmul.mubr.f32.gmra.mrb[164].mxu0 %v432_v22  ;;  %1625 = vmatmul.mubr.f32.gmra.mrb[164].mxu1 %v628_v23  ;;  %v637_v25 = vld [vmem:[%s4772_s27 + $0xb88] sm:$0xff] }
 0x18f   : > { %v4104_v34 = vpop.eup %4103  ;;  %3309 = vst.msk [vmem:[%s5127_s11 + $0xa8] sm:$0xff] %vm3287_vm0, %v4102_v29  ;;  %4123 = vrcp.f32 %v2723_v24  ;;  %v873_v37 = vpop.f32.mrb[59].mxu0  ;;  %v1839_v41 = vmul.f32 %v5276_v20, %v1361_v33  ;;  %1139 = vmatprep.mubr.f32.mxu0 %v435_v27  ;;  %1629 = vmatprep.mubr.f32.mxu1 %v631_v28  ;;  %v3676_v47 = vmul.f32 -1.442695, %v2041_v26  ;;  %v441_v24 = vld [vmem:[%s4772_s27 + $0x568] sm:$0xff] }
 0x190   : > { %v1363_v38 = vpop.f32.mrb[59].mxu1  ;;  %v4106_v40 = vpop.eup %4105  ;;  %3407 = vst.msk [vmem:[%s5127_s11 + $0x3b8] sm:$0xff] %vm3287_vm0, %v4104_v34  ;;  %4125 = vrcp.f32 %v2821_v30  ;;  %v1944_v48 = vadd.f32 %v5285_v31, %v1741_v36 }
 0x191   : > { %v4108_v44 = vpop.eup %4107  ;;  %v2724_v46 = vadd.f32 1.0, %v4106_v40  ;;  %4127 = vpow2.f32 %v3675_v21  ;;  %v2042_v53 = vadd.f32 %v5285_v31, %v1839_v41  ;;  %v876_v54 = vpop.f32.mrb[60].mxu0  ;;  %v634_v21 = vld [vmem:[%s4772_s27 + $0xb70] sm:$0xff]  ;;  %v440_v41 = vld [vmem:[%s4772_s27 + $0x560] sm:$0xff] }
 0x192   : > { %v4110_v51 = vpop.eup %4109  ;;  %v2822_v52 = vadd.f32 1.0, %v4108_v44  ;;  %4129 = vpow2.f32 %v3578_v35  ;;  %v1366_v55 = vpop.f32.mrb[60].mxu1  ;;  %v3579_v57 = vmul.f32 -1.442695, %v1944_v48  ;;  %v1742_v58 = vmul.f32 %v5276_v20, %v876_v54  ;;  %1140 = vmatmul.mubr.f32.gmra.mrb[166].mxu0 %v434_v42  ;;  %1630 = vmatmul.mubr.f32.gmra.mrb[166].mxu1 %v630_v43  ;;  %v636_v42 = vld [vmem:[%s4772_s27 + $0xb80] sm:$0xff]  ;;  %v443_v48 = vld [vmem:[%s4772_s27 + $0x578] sm:$0xff] }
 0x193   : > { %v4112_v56 = vpop.eup %4111  ;;  %3310 = vst.msk [vmem:[%s5127_s11 + $0xb0] sm:$0xff] %vm3287_vm0, %v4110_v51  ;;  %4131 = vrcp.f32 %v2724_v46  ;;  %v1840_v59 = vmul.f32 %v5276_v20, %v1366_v55  ;;  %v878_v60 = vpop.f32.mrb[61].mxu0  ;;  %v3677_v0 = vmul.f32 -1.442695, %v2042_v53  ;;  %1144 = vmatprep.mubr.f32.mxu0 %v437_v49  ;;  %1634 = vmatprep.mubr.f32.mxu1 %v633_v50  ;;  %v639_v49 = vld [vmem:[%s4772_s27 + $0xb98] sm:$0xff] }
 0x194   : > { %v1368_v61 = vpop.f32.mrb[61].mxu1  ;;  %v4114_v62 = vpop.eup %4113  ;;  %4133 = vrcp.f32 %v2822_v52  ;;  %v2725_v63 = vadd.f32 1.0, %v4112_v56  ;;  %v1945_v4 = vadd.f32 %v5285_v31, %v1742_v58 }
 0x195   : > { %v4116_v3 = vpop.eup %4115  ;;  %3408 = vst.msk [vmem:[%s5127_s11 + $0x3c0] sm:$0xff] %vm3287_vm0, %v4114_v62  ;;  %4135 = vpow2.f32 %v3676_v47  ;;  %v2043_v5 = vadd.f32 %v5285_v31, %v1840_v59  ;;  %v881_v9 = vpop.f32.mrb[62].mxu0  ;;  %v442_v62 = vld [vmem:[%s4772_s27 + $0x570] sm:$0xff] }
 0x196   : > { %v4118_v8 = vpop.eup %4117  ;;  %3311 = vst.msk [vmem:[%s5127_s11 + $0xb8] sm:$0xff] %vm3287_vm0, %v4116_v3  ;;  %4137 = vrcp.f32 %v2725_v63  ;;  %v1371_v10 = vpop.f32.mrb[62].mxu1  ;;  %v3580_v12 = vmul.f32 -1.442695, %v1945_v4  ;;  %v1743_v13 = vmul.f32 %v5276_v20, %v881_v9  ;;  %1145 = vmatmul.mubr.f32.gmra.mrb[168].mxu0 %v436_v1  ;;  %1635 = vmatmul.mubr.f32.gmra.mrb[168].mxu1 %v632_v2  ;;  %v638_v63 = vld [vmem:[%s4772_s27 + $0xb90] sm:$0xff]  ;;  %v445_v2 = vld [vmem:[%s4772_s27 + $0x588] sm:$0xff] }
 0x197   : > { %v4120_v11 = vpop.eup %4119  ;;  %3409 = vst.msk [vmem:[%s5127_s11 + $0x3c8] sm:$0xff] %vm3287_vm0, %v4118_v8  ;;  %4139 = vpow2.f32 %v3579_v57  ;;  %v883_v14 = vpop.f32.mrb[63].mxu0  ;;  %v3678_v39 = vmul.f32 -1.442695, %v2043_v5  ;;  %v1841_v18 = vmul.f32 %v5276_v20, %v1371_v10  ;;  %1149 = vmatprep.mubr.f32.mxu0 %v439_v6  ;;  %1639 = vmatprep.mubr.f32.mxu1 %v635_v7  ;;  %v641_v3 = vld [vmem:[%s4772_s27 + $0xba8] sm:$0xff] }
 0x198   : > { %v1373_v15 = vpop.f32.mrb[63].mxu1  ;;  %v4122_v16 = vpop.eup %4121  ;;  %v2823_v17 = vadd.f32 1.0, %v4120_v11  ;;  %4141 = vpow2.f32 %v3677_v0  ;;  %v1946_v45 = vadd.f32 %v5285_v31, %v1743_v13 }
 0x199   : > { %v4124_v22 = vpop.eup %4123  ;;  %v2726_v23 = vadd.f32 1.0, %v4122_v16  ;;  %4143 = vpow2.f32 %v3580_v12  ;;  %v2044_v27 = vadd.f32 %v5285_v31, %v1841_v18  ;;  %v886_v28 = vpop.f32.mrb[64].mxu0  ;;  %v444_v18 = vld [vmem:[%s4772_s27 + $0x580] sm:$0xff] }
 0x19a   : > { %v4126_v26 = vpop.eup %4125  ;;  %3312 = vst.msk [vmem:[%s5127_s11 + $0xc0] sm:$0xff] %vm3287_vm0, %v4124_v22  ;;  %4145 = vrcp.f32 %v2823_v17  ;;  %v1376_v29 = vpop.f32.mrb[64].mxu1  ;;  %v3581_v32 = vmul.f32 -1.442695, %v1946_v45  ;;  %v1744_v33 = vmul.f32 %v5276_v20, %v886_v28  ;;  %1150 = vmatmul.mubr.f32.gmra.mrb[170].mxu0 %v438_v19  ;;  %1640 = vmatmul.mubr.f32.gmra.mrb[170].mxu1 %v634_v21  ;;  %v640_v19 = vld [vmem:[%s4772_s27 + $0xba0] sm:$0xff]  ;;  %v643_v45 = vld [vmem:[%s4772_s27 + $0xbb8] sm:$0xff] }
 0x19b   : > { %v4128_v30 = vpop.eup %4127  ;;  %3410 = vst.msk [vmem:[%s5127_s11 + $0x3d0] sm:$0xff] %vm3287_vm0, %v4126_v26  ;;  %4147 = vrcp.f32 %v2726_v23  ;;  %v1842_v34 = vmul.f32 %v5276_v20, %v1376_v29  ;;  %v888_v35 = vpop.f32.mrb[65].mxu0  ;;  %v3679_v40 = vmul.f32 -1.442695, %v2044_v27  ;;  %1154 = vmatprep.mubr.f32.mxu0 %v441_v24  ;;  %1644 = vmatprep.mubr.f32.mxu1 %v637_v25  ;;  %v447_v23 = vld [vmem:[%s4772_s27 + $0x598] sm:$0xff] }
 0x19c   : > { %v1378_v36 = vpop.f32.mrb[65].mxu1  ;;  %v4130_v37 = vpop.eup %4129  ;;  %v2824_v38 = vadd.f32 1.0, %v4128_v30  ;;  %4149 = vpow2.f32 %v3678_v39  ;;  %v1947_v46 = vadd.f32 %v5285_v31, %v1744_v33 }
 0x19d   : > { %v4132_v43 = vpop.eup %4131  ;;  %v2727_v44 = vadd.f32 1.0, %v4130_v37  ;;  %4151 = vpow2.f32 %v3581_v32  ;;  %v2045_v47 = vadd.f32 %v5285_v31, %v1842_v34  ;;  %v891_v51 = vpop.f32.mrb[66].mxu0 }
 0x19e   : > { %v4134_v50 = vpop.eup %4133  ;;  %3313 = vst.msk [vmem:[%s5127_s11 + $0xc8] sm:$0xff] %vm3287_vm0, %v4132_v43  ;;  %4153 = vrcp.f32 %v2824_v38  ;;  %v1381_v52 = vpop.f32.mrb[66].mxu1  ;;  %v3582_v54 = vmul.f32 -1.442695, %v1947_v46  ;;  %v1745_v56 = vmul.f32 %v5276_v20, %v891_v51  ;;  %1155 = vmatmul.mubr.f32.gmra.mrb[172].mxu0 %v440_v41  ;;  %1645 = vmatmul.mubr.f32.gmra.mrb[172].mxu1 %v636_v42  ;;  %v642_v41 = vld [vmem:[%s4772_s27 + $0xbb0] sm:$0xff]  ;;  %v645_v46 = vld [vmem:[%s4772_s27 + $0xbc8] sm:$0xff] }
 0x19f   : > { %v4136_v53 = vpop.eup %4135  ;;  %3411 = vst.msk [vmem:[%s5127_s11 + $0x3d8] sm:$0xff] %vm3287_vm0, %v4134_v50  ;;  %4155 = vrcp.f32 %v2727_v44  ;;  %v3680_v55 = vmul.f32 -1.442695, %v2045_v47  ;;  %v893_v57 = vpop.f32.mrb[67].mxu0  ;;  %v1843_v61 = vmul.f32 %v5276_v20, %v1381_v52  ;;  %1159 = vmatprep.mubr.f32.mxu0 %v443_v48  ;;  %1649 = vmatprep.mubr.f32.mxu1 %v639_v49  ;;  %v449_v44 = vld [vmem:[%s4772_s27 + $0x5a8] sm:$0xff] }
 0x1a0   : > { %v1383_v58 = vpop.f32.mrb[67].mxu1  ;;  %v4138_v59 = vpop.eup %4137  ;;  %v2825_v60 = vadd.f32 1.0, %v4136_v53  ;;  %4157 = vpow2.f32 %v3679_v40  ;;  %v1948_v1 = vadd.f32 %v5285_v31, %v1745_v56  ;;  %v446_v40 = vld [vmem:[%s4772_s27 + $0x590] sm:$0xff] }
 0x1a1   : > { %v4140_v0 = vpop.eup %4139  ;;  %3314 = vst.msk [vmem:[%s5127_s11 + $0xd0] sm:$0xff] %vm3287_vm0, %v4138_v59  ;;  %4159 = vpow2.f32 %v3582_v54  ;;  %v2046_v6 = vadd.f32 %v5285_v31, %v1843_v61  ;;  %v896_v7 = vpop.f32.mrb[68].mxu0  ;;  %v5489_v59 = vld [vmem:[%s6076_s2] ss:$0 sm:$0xff] }
 0x1a2   : > { %v4142_v4 = vpop.eup %4141  ;;  %4161 = vrcp.f32 %v2825_v60  ;;  %v2728_v5 = vadd.f32 1.0, %v4140_v0  ;;  %v1386_v8 = vpop.f32.mrb[68].mxu1  ;;  %v3583_v11 = vmul.f32 -1.442695, %v1948_v1  ;;  %v1746_v12 = vmul.f32 %v5276_v20, %v896_v7  ;;  %1160 = vmatmul.mubr.f32.gmra.mrb[174].mxu0 %v442_v62  ;;  %1650 = vmatmul.mubr.f32.gmra.mrb[174].mxu1 %v638_v63  ;;  %v448_v61 = vld [vmem:[%s4772_s27 + $0x5a0] sm:$0xff]  ;;  %v451_v1 = vld [vmem:[%s4772_s27 + $0x5b8] sm:$0xff] }
 0x1a3   : > { %v4144_v9 = vpop.eup %4143  ;;  %v2826_v10 = vadd.f32 1.0, %v4142_v4  ;;  %4163 = vpow2.f32 %v3680_v55  ;;  %v898_v13 = vpop.f32.mrb[69].mxu0  ;;  %v3681_v17 = vmul.f32 -1.442695, %v2046_v6  ;;  %v1844_v39 = vmul.f32 %v5276_v20, %v1386_v8  ;;  %1164 = vmatprep.mubr.f32.mxu0 %v445_v2  ;;  %1654 = vmatprep.mubr.f32.mxu1 %v641_v3  ;;  %v647_v2 = vld [vmem:[%s4772_s27 + $0xbd8] sm:$0xff] }
 0x1a4   : > { %v1388_v14 = vpop.f32.mrb[69].mxu1  ;;  %v4146_v15 = vpop.eup %4145  ;;  %4165 = vrcp.f32 %v2728_v5  ;;  %v2729_v16 = vadd.f32 1.0, %v4144_v9  ;;  %v1949_v22 = vadd.f32 %v5285_v31, %v1746_v12  ;;  %v5502_v5 = vld [vmem:[%s6077_s3] ss:$0 sm:$0xff] }
 0x1a5   : > { %v4148_v21 = vpop.eup %4147  ;;  %3412 = vst.msk [vmem:[%s5127_s11 + $0x3e0] sm:$0xff] %vm3287_vm0, %v4146_v15  ;;  %4167 = vrcp.f32 %v2826_v10  ;;  %v2047_v25 = vadd.f32 %v5285_v31, %v1844_v39  ;;  %v901_v26 = vpop.f32.mrb[70].mxu0 }
 0x1a6   : > { %v4150_v24 = vpop.eup %4149  ;;  %3315 = vst.msk [vmem:[%s5127_s11 + $0xd8] sm:$0xff] %vm3287_vm0, %v4148_v21  ;;  %4169 = vrcp.f32 %v2729_v16  ;;  %v1391_v27 = vpop.f32.mrb[70].mxu1  ;;  %v3584_v30 = vmul.f32 -1.442695, %v1949_v22  ;;  %v1747_v32 = vmul.f32 %v5276_v20, %v901_v26  ;;  %1165 = vmatmul.mubr.f32.gmra.mrb[176].mxu0 %v444_v18  ;;  %1655 = vmatmul.mubr.f32.gmra.mrb[176].mxu1 %v640_v19  ;;  %v450_v16 = vld [vmem:[%s4772_s27 + $0x5b0] sm:$0xff]  ;;  %v453_v21 = vld [vmem:[%s4772_s27 + $0x5c8] sm:$0xff] }
 0x1a7   : > { %v4152_v28 = vpop.eup %4151  ;;  %v2827_v29 = vadd.f32 1.0, %v4150_v24  ;;  %4171 = vpow2.f32 %v3583_v11  ;;  %v903_v33 = vpop.f32.mrb[71].mxu0  ;;  %v3682_v37 = vmul.f32 -1.442695, %v2047_v25  ;;  %v1845_v38 = vmul.f32 %v5276_v20, %v1391_v27  ;;  %1169 = vmatprep.mubr.f32.mxu0 %v447_v23  ;;  %1659 = vmatprep.mubr.f32.mxu1 %v643_v45  ;;  %v649_v22 = vld [vmem:[%s4772_s27 + $0xbe8] sm:$0xff] }
 0x1a8   : > { %v1393_v34 = vpop.f32.mrb[71].mxu1  ;;  %v4154_v35 = vpop.eup %4153  ;;  %v2730_v36 = vadd.f32 1.0, %v4152_v28  ;;  %4173 = vpow2.f32 %v3681_v17  ;;  %v1950_v43 = vadd.f32 %v5285_v31, %v1747_v32  ;;  %v646_v17 = vld [vmem:[%s4772_s27 + $0xbd0] sm:$0xff] }
 0x1a9   : > { %v4156_v42 = vpop.eup %4155  ;;  %3413 = vst.msk [vmem:[%s5127_s11 + $0x3e8] sm:$0xff] %vm3287_vm0, %v4154_v35  ;;  %4175 = vrcp.f32 %v2827_v29  ;;  %v2048_v48 = vadd.f32 %v5285_v31, %v1845_v38  ;;  %v906_v49 = vpop.f32.mrb[72].mxu0 }
 0x1aa   : > { %v4158_v47 = vpop.eup %4157  ;;  %3316 = vst.msk [vmem:[%s5127_s11 + $0xe0] sm:$0xff] %vm3287_vm0, %v4156_v42  ;;  %4177 = vrcp.f32 %v2730_v36  ;;  %v1396_v50 = vpop.f32.mrb[72].mxu1  ;;  %v3585_v53 = vmul.f32 -1.442695, %v1950_v43  ;;  %v1748_v54 = vmul.f32 %v5276_v20, %v906_v49  ;;  %1170 = vmatmul.mubr.f32.gmra.mrb[178].mxu0 %v446_v40  ;;  %1660 = vmatmul.mubr.f32.gmra.mrb[178].mxu1 %v642_v41  ;;  %v644_v20 = vld [vmem:[%s4772_s27 + $0xbc0] sm:$0xff]  ;;  %v455_v40 = vld [vmem:[%s4772_s27 + $0x5d8] sm:$0xff] }
 0x1ab   : > { %v4160_v51 = vpop.eup %4159  ;;  %v2828_v52 = vadd.f32 1.0, %v4158_v47  ;;  %4179 = vpow2.f32 %v3584_v30  ;;  %v908_v55 = vpop.f32.mrb[73].mxu0  ;;  %v1846_v60 = vmul.f32 %v5489_v59, %v1396_v50  ;;  %1174 = vmatprep.mubr.f32.mxu0 %v449_v44  ;;  %1664 = vmatprep.mubr.f32.mxu1 %v645_v46  ;;  %v3683_v63 = vmul.f32 -1.442695, %v2048_v48  ;;  %v452_v36 = vld [vmem:[%s4772_s27 + $0x5c0] sm:$0xff]  ;;  %v651_v41 = vld [vmem:[%s4772_s27 + $0xbf8] sm:$0xff] }
 0x1ac   : > { %v1398_v56 = vpop.f32.mrb[73].mxu1  ;;  %v4162_v57 = vpop.eup %4161  ;;  %v2731_v58 = vadd.f32 1.0, %v4160_v51  ;;  %4181 = vpow2.f32 %v3682_v37  ;;  %v1951_v0 = vadd.f32 %v5285_v31, %v1748_v54  ;;  %v648_v37 = vld [vmem:[%s4772_s27 + $0xbe0] sm:$0xff] }
 0x1ad   : > { %v4164_v62 = vpop.eup %4163  ;;  %3414 = vst.msk [vmem:[%s5127_s11 + $0x3f0] sm:$0xff] %vm3287_vm0, %v4162_v57  ;;  %4183 = vrcp.f32 %v2828_v52  ;;  %v2049_v6 = vadd.f32 %v5502_v5, %v1846_v60  ;;  %v911_v7 = vpop.f32.mrb[74].mxu0  ;;  %v650_v60 = vld [vmem:[%s4772_s27 + $0xbf0] sm:$0xff] }
 0x1ae   : > { %v4166_v3 = vpop.eup %4165  ;;  %4185 = vrcp.f32 %v2731_v58  ;;  %v2829_v4 = vadd.f32 1.0, %v4164_v62  ;;  %v1401_v8 = vpop.f32.mrb[74].mxu1  ;;  %v3586_v31 = vmul.f32 -1.442695, %v1951_v0  ;;  %v1749_v10 = vmul.f32 %v5489_v59, %v911_v7  ;;  %1175 = vmatmul.mubr.f32.gmra.mrb[180].mxu0 %v448_v61  ;;  %1665 = vmatmul.mubr.f32.gmra.mrb[180].mxu1 %v644_v20  ;;  %v454_v58 = vld [vmem:[%s4772_s27 + $0x5d0] sm:$0xff]  ;;  %v653_v0 = vld [vmem:[%s4772_s27 + $0xc08] sm:$0xff] }
 0x1af   : > { %v4168_v9 = vpop.eup %4167  ;;  %3317 = vst.msk [vmem:[%s5127_s11 + $0xe8] sm:$0xff] %vm3287_vm0, %v4166_v3  ;;  %4187 = vpow2.f32 %v3585_v53  ;;  %v1847_v11 = vmul.f32 %v5489_v59, %v1401_v8  ;;  %v913_v12 = vpop.f32.mrb[75].mxu0  ;;  %v3684_v15 = vmul.f32 -1.442695, %v2049_v6  ;;  %1179 = vmatprep.mubr.f32.mxu0 %v451_v1  ;;  %1669 = vmatprep.mubr.f32.mxu1 %v647_v2 }
 0x1b0   : > { %v1403_v13 = vpop.f32.mrb[75].mxu1  ;;  %v4170_v14 = vpop.eup %4169  ;;  %3415 = vst.msk [vmem:[%s5127_s11 + $0x3f8] sm:$0xff] %vm3287_vm0, %v4168_v9  ;;  %4189 = vrcp.f32 %v2829_v4  ;;  %v1952_v18 = vadd.f32 %v5502_v5, %v1749_v10 }
 0x1b1   : > { %v4172_v39 = vpop.eup %4171  ;;  %3318 = vst.msk [vmem:[%s5127_s11 + $0xf0] sm:$0xff] %vm3287_vm0, %v4170_v14  ;;  %4191 = vpow2.f32 %v3683_v63  ;;  %v2050_v19 = vadd.f32 %v5502_v5, %v1847_v11  ;;  %v916_v24 = vpop.f32.mrb[76].mxu0  ;;  %v457_v63 = vld [vmem:[%s4772_s27 + $0x5e8] sm:$0xff]  ;;  %v456_v13 = vld [vmem:[%s4772_s27 + $0x5e0] sm:$0xff] }
 0x1b2   : > { %v4174_v23 = vpop.eup %4173  ;;  %v2732_v45 = vadd.f32 1.0, %v4172_v39  ;;  %4193 = vpow2.f32 %v3586_v31  ;;  %v1406_v25 = vpop.f32.mrb[76].mxu1  ;;  %v3587_v28 = vmul.f32 -1.442695, %v1952_v18  ;;  %1180 = vmatmul.mubr.f32.gmra.mrb[182].mxu0 %v450_v16  ;;  %1670 = vmatmul.mubr.f32.gmra.mrb[182].mxu1 %v646_v17  ;;  %v1750_v33 = vmul.f32 %v5489_v59, %v916_v24  ;;  %v652_v14 = vld [vmem:[%s4772_s27 + $0xc00] sm:$0xff]  ;;  %v459_v18 = vld [vmem:[%s4772_s27 + $0x5f8] sm:$0xff] }
 0x1b3   : > { %v4176_v26 = vpop.eup %4175  ;;  %v2830_v27 = vadd.f32 1.0, %v4174_v23  ;;  %4195 = vpow2.f32 %v3684_v15  ;;  %v3685_v29 = vmul.f32 -1.442695, %v2050_v19  ;;  %v918_v30 = vpop.f32.mrb[77].mxu0  ;;  %v1848_v34 = vmul.f32 %v5489_v59, %v1406_v25  ;;  %1184 = vmatprep.mubr.f32.mxu0 %v453_v21  ;;  %1674 = vmatprep.mubr.f32.mxu1 %v649_v22  ;;  %v655_v19 = vld [vmem:[%s4772_s27 + $0xc18] sm:$0xff] }
 0x1b4   : > { %v4178_v32 = vpop.eup %4177  ;;  %3416 = vst.msk [vmem:[%s5127_s11 + $0x400] sm:$0xff] %vm3287_vm0, %v4176_v26  ;;  %4197 = vrcp.f32 %v2732_v45  ;;  %v1408_v35 = vpop.f32.mrb[77].mxu1  ;;  %v1953_v44 = vadd.f32 %v5502_v5, %v1750_v33 }
 0x1b5   : > { %v4180_v38 = vpop.eup %4179  ;;  %3319 = vst.msk [vmem:[%s5127_s11 + $0xf8] sm:$0xff] %vm3287_vm0, %v4178_v32  ;;  %4199 = vrcp.f32 %v2830_v27  ;;  %v2051_v46 = vadd.f32 %v5502_v5, %v1848_v34  ;;  %v921_v47 = vpop.f32.mrb[78].mxu0  ;;  %v458_v34 = vld [vmem:[%s4772_s27 + $0x5f0] sm:$0xff] }
 0x1b6   : > { %v4182_v42 = vpop.eup %4181  ;;  %v2733_v43 = vadd.f32 1.0, %v4180_v38  ;;  %4201 = vpow2.f32 %v3587_v28  ;;  %v1411_v48 = vpop.f32.mrb[78].mxu1  ;;  %v1751_v51 = vmul.f32 %v5489_v59, %v921_v47  ;;  %1185 = vmatmul.mubr.f32.gmra.mrb[184].mxu0 %v452_v36  ;;  %1675 = vmatmul.mubr.f32.gmra.mrb[184].mxu1 %v648_v37  ;;  %v3588_v56 = vmul.f32 -1.442695, %v1953_v44  ;;  %v654_v35 = vld [vmem:[%s4772_s27 + $0xc10] sm:$0xff] }
 0x1b7   : > { %v4184_v49 = vpop.eup %4183  ;;  %v2831_v50 = vadd.f32 1.0, %v4182_v42  ;;  %4203 = vpow2.f32 %v3685_v29  ;;  %v1849_v52 = vmul.f32 %v5489_v59, %v1411_v48  ;;  %v923_v53 = vpop.f32.mrb[79].mxu0  ;;  %v3686_v57 = vmul.f32 -1.442695, %v2051_v46  ;;  %1189 = vmatprep.mubr.f32.mxu0 %v455_v40  ;;  %1679 = vmatprep.mubr.f32.mxu1 %v651_v41  ;;  %v461_v41 = vld [vmem:[%s4772_s27 + $0x608] sm:$0xff] }
 0x1b8   : > { %v1413_v54 = vpop.f32.mrb[79].mxu1  ;;  %v4186_v55 = vpop.eup %4185  ;;  %3417 = vst.msk [vmem:[%s5127_s11 + $0x408] sm:$0xff] %vm3287_vm0, %v4184_v49  ;;  %4205 = vrcp.f32 %v2733_v43  ;;  %v1954_v20 = vadd.f32 %v5502_v5, %v1751_v51  ;;  %v657_v42 = vld [vmem:[%s4772_s27 + $0xc28] sm:$0xff] }
 0x1b9   : > { %v4188_v61 = vpop.eup %4187  ;;  %3320 = vst.msk [vmem:[%s5127_s11 + $0x100] sm:$0xff] %vm3287_vm0, %v4186_v55  ;;  %4207 = vrcp.f32 %v2831_v50  ;;  %v2052_v62 = vadd.f32 %v5502_v5, %v1849_v52  ;;  %v926_v3 = vpop.f32.mrb[80].mxu0  ;;  %v460_v55 = vld [vmem:[%s4772_s27 + $0x600] sm:$0xff] }
 0x1ba   : > { %v4190_v1 = vpop.eup %4189  ;;  %v2734_v2 = vadd.f32 1.0, %v4188_v61  ;;  %4209 = vpow2.f32 %v3588_v56  ;;  %v1416_v4 = vpop.f32.mrb[80].mxu1  ;;  %v3589_v7 = vmul.f32 -1.442695, %v1954_v20  ;;  %v1752_v8 = vmul.f32 %v5489_v59, %v926_v3  ;;  %1190 = vmatmul.mubr.f32.gmra.mrb[186].mxu0 %v454_v58  ;;  %1680 = vmatmul.mubr.f32.gmra.mrb[186].mxu1 %v650_v60  ;;  %v656_v56 = vld [vmem:[%s4772_s27 + $0xc20] sm:$0xff]  ;;  %v463_v20 = vld [vmem:[%s4772_s27 + $0x618] sm:$0xff] }
 0x1bb   : > { %v4192_v6 = vpop.eup %4191  ;;  %3418 = vst.msk [vmem:[%s5127_s11 + $0x410] sm:$0xff] %vm3287_vm0, %v4190_v1  ;;  %4211 = vpow2.f32 %v3686_v57  ;;  %v928_v9 = vpop.f32.mrb[81].mxu0  ;;  %v1850_v12 = vmul.f32 %v5489_v59, %v1416_v4  ;;  %1194 = vmatprep.mubr.f32.mxu0 %v457_v63  ;;  %1684 = vmatprep.mubr.f32.mxu1 %v653_v0  ;;  %v3687_v17 = vmul.f32 -1.442695, %v2052_v62  ;;  %v659_v62 = vld [vmem:[%s4772_s27 + $0xc38] sm:$0xff] }
 0x1bc   : > { %v1418_v31 = vpop.f32.mrb[81].mxu1  ;;  %v4194_v10 = vpop.eup %4193  ;;  %4213 = vrcp.f32 %v2734_v2  ;;  %v2832_v11 = vadd.f32 1.0, %v4192_v6  ;;  %v1955_v39 = vadd.f32 %v5502_v5, %v1752_v8 }
 0x1bd   : > { %v4196_v15 = vpop.eup %4195  ;;  %v2735_v16 = vadd.f32 1.0, %v4194_v10  ;;  %4215 = vpow2.f32 %v3589_v7  ;;  %v2053_v23 = vadd.f32 %v5502_v5, %v1850_v12  ;;  %v931_v45 = vpop.f32.mrb[82].mxu0 }
 0x1be   : > { %v4198_v21 = vpop.eup %4197  ;;  %4217 = vrcp.f32 %v2832_v11  ;;  %v2833_v22 = vadd.f32 1.0, %v4196_v15  ;;  %v1421_v24 = vpop.f32.mrb[82].mxu1  ;;  %v3590_v26 = vmul.f32 -1.442695, %v1955_v39  ;;  %v1753_v27 = vmul.f32 %v5489_v59, %v931_v45  ;;  %1195 = vmatmul.mubr.f32.gmra.mrb[188].mxu0 %v456_v13  ;;  %1685 = vmatmul.mubr.f32.gmra.mrb[188].mxu1 %v652_v14  ;;  %v462_v13 = vld [vmem:[%s4772_s27 + $0x610] sm:$0xff] }
 0x1bf   : > { %v4200_v25 = vpop.eup %4199  ;;  %3321 = vst.msk [vmem:[%s5127_s11 + $0x108] sm:$0xff] %vm3287_vm0, %v4198_v21  ;;  %4219 = vrcp.f32 %v2735_v16  ;;  %v1851_v28 = vmul.f32 %v5489_v59, %v1421_v24  ;;  %v933_v29 = vpop.f32.mrb[83].mxu0  ;;  %v3688_v33 = vmul.f32 -1.442695, %v2053_v23  ;;  %1199 = vmatprep.mubr.f32.mxu0 %v459_v18  ;;  %1689 = vmatprep.mubr.f32.mxu1 %v655_v19  ;;  %v658_v14 = vld [vmem:[%s4772_s27 + $0xc30] sm:$0xff] }
 0x1c0   : > { %v1423_v30 = vpop.f32.mrb[83].mxu1  ;;  %v4202_v32 = vpop.eup %4201  ;;  %3419 = vst.msk [vmem:[%s5127_s11 + $0x418] sm:$0xff] %vm3287_vm0, %v4200_v25  ;;  %4221 = vrcp.f32 %v2833_v22  ;;  %v1956_v38 = vadd.f32 %v5502_v5, %v1753_v27 }
 0x1c1   : > { %v4204_v36 = vpop.eup %4203  ;;  %v2736_v37 = vadd.f32 1.0, %v4202_v32  ;;  %4223 = vpow2.f32 %v3687_v17  ;;  %v2054_v40 = vadd.f32 %v5502_v5, %v1851_v28  ;;  %v936_v46 = vpop.f32.mrb[84].mxu0 }
 0x1c2   : > { %v4206_v43 = vpop.eup %4205  ;;  %v2834_v44 = vadd.f32 1.0, %v4204_v36  ;;  %4225 = vpow2.f32 %v3590_v26  ;;  %v1426_v47 = vpop.f32.mrb[84].mxu1  ;;  %v3591_v49 = vmul.f32 -1.442695, %v1956_v38  ;;  %v1754_v50 = vmul.f32 %v5489_v59, %v936_v46  ;;  %1200 = vmatmul.mubr.f32.gmra.mrb[190].mxu0 %v458_v34  ;;  %1690 = vmatmul.mubr.f32.gmra.mrb[190].mxu1 %v654_v35 }
 0x1c3   : > { %v4208_v48 = vpop.eup %4207  ;;  %3322 = vst.msk [vmem:[%s5127_s11 + $0x110] sm:$0xff] %vm3287_vm0, %v4206_v43  ;;  %4227 = vrcp.f32 %v2736_v37  ;;  %v938_v51 = vpop.f32.mrb[85].mxu0  ;;  %v1852_v54 = vmul.f32 %v5489_v59, %v1426_v47  ;;  %1204 = vmatprep.mubr.f32.mxu0 %v461_v41  ;;  %1694 = vmatprep.mubr.f32.mxu1 %v657_v42  ;;  %v3689_v60 = vmul.f32 -1.442695, %v2054_v40 }
 0x1c4   : > { %v1428_v52 = vpop.f32.mrb[85].mxu1  ;;  %v4210_v53 = vpop.eup %4209  ;;  %3420 = vst.msk [vmem:[%s5127_s11 + $0x420] sm:$0xff] %vm3287_vm0, %v4208_v48  ;;  %4229 = vrcp.f32 %v2834_v44  ;;  %v1957_v61 = vadd.f32 %v5502_v5, %v1754_v50 }
 0x1c5   : > { %v4212_v57 = vpop.eup %4211  ;;  %v2737_v58 = vadd.f32 1.0, %v4210_v53  ;;  %4231 = vpow2.f32 %v3688_v33  ;;  %v2055_v1 = vadd.f32 %v5502_v5, %v1852_v54  ;;  %v941_v2 = vpop.f32.mrb[86].mxu0 }
 0x1c6   : > { %v4214_v63 = vpop.eup %4213  ;;  %v2835_v0 = vadd.f32 1.0, %v4212_v57  ;;  %4233 = vpow2.f32 %v3591_v49  ;;  %v1431_v3 = vpop.f32.mrb[86].mxu1  ;;  %v3592_v6 = vmul.f32 -1.442695, %v1957_v61  ;;  %v1755_v7 = vmul.f32 %v5489_v59, %v941_v2  ;;  %1205 = vmatmul.mubr.f32.gmra.mrb[192].mxu0 %v460_v55  ;;  %1695 = vmatmul.mubr.f32.gmra.mrb[192].mxu1 %v656_v56 }
 0x1c7   : > { %v4216_v4 = vpop.eup %4215  ;;  %3323 = vst.msk [vmem:[%s5127_s11 + $0x118] sm:$0xff] %vm3287_vm0, %v4214_v63  ;;  %4235 = vrcp.f32 %v2737_v58  ;;  %v1853_v8 = vmul.f32 %v5489_v59, %v1431_v3  ;;  %v943_v9 = vpop.f32.mrb[87].mxu0  ;;  %v3690_v12 = vmul.f32 -1.442695, %v2055_v1  ;;  %1209 = vmatprep.mubr.f32.mxu0 %v463_v20  ;;  %1699 = vmatprep.mubr.f32.mxu1 %v659_v62 }
 0x1c8   : > { %v1433_v31 = vpop.f32.mrb[87].mxu1  ;;  %v4218_v10 = vpop.eup %4217  ;;  %4237 = vrcp.f32 %v2835_v0  ;;  %v2738_v11 = vadd.f32 1.0, %v4216_v4  ;;  %v1958_v16 = vadd.f32 %v5502_v5, %v1755_v7 }
 0x1c9   : > { %v4220_v15 = vpop.eup %4219  ;;  %3421 = vst.msk [vmem:[%s5127_s11 + $0x428] sm:$0xff] %vm3287_vm0, %v4218_v10  ;;  %4239 = vpow2.f32 %v3689_v60  ;;  %v2056_v17 = vadd.f32 %v5502_v5, %v1853_v8  ;;  %v946_v18 = vpop.f32.mrb[88].mxu0 }
 0x1ca   : > { %v4222_v39 = vpop.eup %4221  ;;  %3324 = vst.msk [vmem:[%s5127_s11 + $0x120] sm:$0xff] %vm3287_vm0, %v4220_v15  ;;  %4241 = vrcp.f32 %v2738_v11  ;;  %v1436_v19 = vpop.f32.mrb[88].mxu1  ;;  %v3593_v22 = vmul.f32 -1.442695, %v1958_v16  ;;  %v1756_v23 = vmul.f32 %v5489_v59, %v946_v18  ;;  %1210 = vmatmul.mubr.f32.gmra.mrb[194].mxu0 %v462_v13  ;;  %1700 = vmatmul.mubr.f32.gmra.mrb[194].mxu1 %v658_v14 }
 0x1cb   : > { %v4224_v21 = vpop.eup %4223  ;;  %3422 = vst.msk [vmem:[%s5127_s11 + $0x430] sm:$0xff] %vm3287_vm0, %v4222_v39  ;;  %4243 = vpow2.f32 %v3592_v6  ;;  %v948_v45 = vpop.f32.mrb[89].mxu0  ;;  %v3691_v27 = vmul.f32 -1.442695, %v2056_v17  ;;  %v1854_v28 = vmul.f32 %v5489_v59, %v1436_v19 }
 0x1cc   : > { %v1438_v24 = vpop.f32.mrb[89].mxu1  ;;  %v4226_v25 = vpop.eup %4225  ;;  %v2836_v26 = vadd.f32 1.0, %v4224_v21  ;;  %4245 = vpow2.f32 %v3690_v12  ;;  %v1959_v32 = vadd.f32 %v5502_v5, %v1756_v23 }
 0x1cd   : > { %v4228_v29 = vpop.eup %4227  ;;  %v2739_v30 = vadd.f32 1.0, %v4226_v25  ;;  %4247 = vpow2.f32 %v3593_v22  ;;  %v2057_v34 = vadd.f32 %v5502_v5, %v1854_v28  ;;  %v951_v35 = vpop.f32.mrb[90].mxu0 }
 0x1ce   : > { %v4230_v33 = vpop.eup %4229  ;;  %3325 = vst.msk [vmem:[%s5127_s11 + $0x128] sm:$0xff] %vm3287_vm0, %v4228_v29  ;;  %4249 = vrcp.f32 %v2836_v26  ;;  %v1441_v36 = vpop.f32.mrb[90].mxu1  ;;  %v3594_v38 = vmul.f32 -1.442695, %v1959_v32  ;;  %v1757_v40 = vmul.f32 %v5489_v59, %v951_v35 }
 0x1cf   : > { %v4232_v37 = vpop.eup %4231  ;;  %3423 = vst.msk [vmem:[%s5127_s11 + $0x438] sm:$0xff] %vm3287_vm0, %v4230_v33  ;;  %4251 = vrcp.f32 %v2739_v30  ;;  %v1855_v41 = vmul.f32 %v5489_v59, %v1441_v36  ;;  %v953_v42 = vpop.f32.mrb[91].mxu0  ;;  %v3692_v47 = vmul.f32 -1.442695, %v2057_v34 }
 0x1d0   : > { %v1443_v43 = vpop.f32.mrb[91].mxu1  ;;  %v4234_v44 = vpop.eup %4233  ;;  %v2837_v46 = vadd.f32 1.0, %v4232_v37  ;;  %4253 = vpow2.f32 %v3691_v27  ;;  %v1960_v50 = vadd.f32 %v5502_v5, %v1757_v40 }
 0x1d1   : > { %v4236_v48 = vpop.eup %4235  ;;  %v2740_v49 = vadd.f32 1.0, %v4234_v44  ;;  %4255 = vpow2.f32 %v3594_v38  ;;  %v2058_v51 = vadd.f32 %v5502_v5, %v1855_v41  ;;  %v956_v53 = vpop.f32.mrb[92].mxu0 }
 0x1d2   : > { %v4238_v52 = vpop.eup %4237  ;;  %3326 = vst.msk [vmem:[%s5127_s11 + $0x130] sm:$0xff] %vm3287_vm0, %v4236_v48  ;;  %4257 = vrcp.f32 %v2837_v46  ;;  %v1446_v54 = vpop.f32.mrb[92].mxu1  ;;  %v3595_v56 = vmul.f32 -1.442695, %v1960_v50  ;;  %v1758_v58 = vmul.f32 %v5489_v59, %v956_v53 }
 0x1d3   : > { %v4240_v55 = vpop.eup %4239  ;;  %3424 = vst.msk [vmem:[%s5127_s11 + $0x440] sm:$0xff] %vm3287_vm0, %v4238_v52  ;;  %4259 = vrcp.f32 %v2740_v49  ;;  %v3693_v57 = vmul.f32 -1.442695, %v2058_v51  ;;  %v958_v60 = vpop.f32.mrb[93].mxu0  ;;  %v1856_v63 = vmul.f32 %v5489_v59, %v1446_v54 }
 0x1d4   : > { %v1448_v61 = vpop.f32.mrb[93].mxu1  ;;  %v4242_v20 = vpop.eup %4241  ;;  %v2838_v62 = vadd.f32 1.0, %v4240_v55  ;;  %4261 = vpow2.f32 %v3692_v47  ;;  %v1961_v1 = vadd.f32 %v5502_v5, %v1758_v58 }
 0x1d5   : > { %v4244_v0 = vpop.eup %4243  ;;  %3327 = vst.msk [vmem:[%s5127_s11 + $0x138] sm:$0xff] %vm3287_vm0, %v4242_v20  ;;  %4263 = vpow2.f32 %v3595_v56  ;;  %v2059_v4 = vadd.f32 %v5502_v5, %v1856_v63  ;;  %v961_v6 = vpop.f32.mrb[94].mxu0 }
 0x1d6   : > { %v4246_v2 = vpop.eup %4245  ;;  %4265 = vrcp.f32 %v2838_v62  ;;  %v2741_v3 = vadd.f32 1.0, %v4244_v0  ;;  %v1451_v7 = vpop.f32.mrb[94].mxu1  ;;  %v3596_v31 = vmul.f32 -1.442695, %v1961_v1  ;;  %v1759_v10 = vmul.f32 %v5489_v59, %v961_v6 }
 0x1d7   : > { %v4248_v8 = vpop.eup %4247  ;;  %v2839_v9 = vadd.f32 1.0, %v4246_v2  ;;  %4267 = vpow2.f32 %v3693_v57  ;;  %v963_v11 = vpop.f32.mrb[95].mxu0  ;;  %v3694_v15 = vmul.f32 -1.442695, %v2059_v4  ;;  %v1857_v16 = vmul.f32 %v5489_v59, %v1451_v7 }
 0x1d8   : > { %v1453_v12 = vpop.f32.mrb[95].mxu1  ;;  %v4250_v13 = vpop.eup %4249  ;;  %4269 = vrcp.f32 %v2741_v3  ;;  %v2742_v14 = vadd.f32 1.0, %v4248_v8  ;;  %v1962_v39 = vadd.f32 %v5502_v5, %v1759_v10 }
 0x1d9   : > { %v4252_v17 = vpop.eup %4251  ;;  %3425 = vst.msk [vmem:[%s5127_s11 + $0x448] sm:$0xff] %vm3287_vm0, %v4250_v13  ;;  %4271 = vrcp.f32 %v2839_v9  ;;  %v2060_v19 = vadd.f32 %v5502_v5, %v1857_v16  ;;  %v966_v21 = vpop.f32.mrb[96].mxu0 }
 0x1da   : > { %v4254_v18 = vpop.eup %4253  ;;  %3328 = vst.msk [vmem:[%s5127_s11 + $0x140] sm:$0xff] %vm3287_vm0, %v4252_v17  ;;  %4273 = vrcp.f32 %v2742_v14  ;;  %v1456_v22 = vpop.f32.mrb[96].mxu1  ;;  %v3597_v24 = vmul.f32 -1.442695, %v1962_v39  ;;  %v1760_v25 = vmul.f32 %v5489_v59, %v966_v21 }
 0x1db   : > { %v4256_v23 = vpop.eup %4255  ;;  %v2840_v45 = vadd.f32 1.0, %v4254_v18  ;;  %4275 = vpow2.f32 %v3596_v31  ;;  %v968_v26 = vpop.f32.mrb[97].mxu0  ;;  %v3695_v30 = vmul.f32 -1.442695, %v2060_v19  ;;  %v1858_v32 = vmul.f32 %v5489_v59, %v1456_v22 }
 0x1dc   : > { %v1458_v27 = vpop.f32.mrb[97].mxu1  ;;  %v4258_v28 = vpop.eup %4257  ;;  %v2743_v29 = vadd.f32 1.0, %v4256_v23  ;;  %4277 = vpow2.f32 %v3694_v15  ;;  %v1963_v34 = vadd.f32 %v5502_v5, %v1760_v25 }
 0x1dd   : > { %v4260_v33 = vpop.eup %4259  ;;  %3426 = vst.msk [vmem:[%s5127_s11 + $0x450] sm:$0xff] %vm3287_vm0, %v4258_v28  ;;  %4279 = vrcp.f32 %v2840_v45  ;;  %v2061_v36 = vadd.f32 %v5502_v5, %v1858_v32  ;;  %v971_v37 = vpop.f32.mrb[98].mxu0 }
 0x1de   : > { %v4262_v35 = vpop.eup %4261  ;;  %3329 = vst.msk [vmem:[%s5127_s11 + $0x148] sm:$0xff] %vm3287_vm0, %v4260_v33  ;;  %4281 = vrcp.f32 %v2743_v29  ;;  %v1461_v38 = vpop.f32.mrb[98].mxu1  ;;  %v3598_v42 = vmul.f32 -1.442695, %v1963_v34  ;;  %v1761_v43 = vmul.f32 %v5489_v59, %v971_v37 }
 0x1df   : > { %v4264_v40 = vpop.eup %4263  ;;  %v2841_v41 = vadd.f32 1.0, %v4262_v35  ;;  %4283 = vpow2.f32 %v3597_v24  ;;  %v973_v44 = vpop.f32.mrb[99].mxu0  ;;  %v1859_v49 = vmul.f32 %v5489_v59, %v1461_v38  ;;  %v3696_v51 = vmul.f32 -1.442695, %v2061_v36 }
 0x1e0   : > { %v1463_v46 = vpop.f32.mrb[99].mxu1  ;;  %v4266_v47 = vpop.eup %4265  ;;  %v2744_v48 = vadd.f32 1.0, %v4264_v40  ;;  %4285 = vpow2.f32 %v3695_v30  ;;  %v1964_v52 = vadd.f32 %v5502_v5, %v1761_v43 }
 0x1e1   : > { %v4268_v50 = vpop.eup %4267  ;;  %3427 = vst.msk [vmem:[%s5127_s11 + $0x458] sm:$0xff] %vm3287_vm0, %v4266_v47  ;;  %4287 = vrcp.f32 %v2841_v41  ;;  %v2062_v55 = vadd.f32 %v5502_v5, %v1859_v49  ;;  %v976_v56 = vpop.f32.mrb[100].mxu0 }
 0x1e2   : > { %v4270_v53 = vpop.eup %4269  ;;  %4289 = vrcp.f32 %v2744_v48  ;;  %v2842_v54 = vadd.f32 1.0, %v4268_v50  ;;  %v1466_v57 = vpop.f32.mrb[100].mxu1  ;;  %v3599_v60 = vmul.f32 -1.442695, %v1964_v52  ;;  %v1762_v61 = vmul.f32 %v5489_v59, %v976_v56 }
 0x1e3   : > { %v4272_v58 = vpop.eup %4271  ;;  %3330 = vst.msk [vmem:[%s5127_s11 + $0x150] sm:$0xff] %vm3287_vm0, %v4270_v53  ;;  %4291 = vpow2.f32 %v3598_v42  ;;  %v1860_v20 = vmul.f32 %v5489_v59, %v1466_v57  ;;  %v978_v62 = vpop.f32.mrb[101].mxu0  ;;  %v3697_v1 = vmul.f32 -1.442695, %v2062_v55 }
 0x1e4   : > { %v1468_v63 = vpop.f32.mrb[101].mxu1  ;;  %v4274_v0 = vpop.eup %4273  ;;  %3428 = vst.msk [vmem:[%s5127_s11 + $0x460] sm:$0xff] %vm3287_vm0, %v4272_v58  ;;  %4293 = vrcp.f32 %v2842_v54  ;;  %v1965_v3 = vadd.f32 %v5502_v5, %v1762_v61 }
 0x1e5   : > { %v4276_v2 = vpop.eup %4275  ;;  %3331 = vst.msk [vmem:[%s5127_s11 + $0x158] sm:$0xff] %vm3287_vm0, %v4274_v0  ;;  %4295 = vpow2.f32 %v3696_v51  ;;  %v2063_v4 = vadd.f32 %v5502_v5, %v1860_v20  ;;  %v981_v8 = vpop.f32.mrb[102].mxu0 }
 0x1e6   : > { %v4278_v6 = vpop.eup %4277  ;;  %v2745_v7 = vadd.f32 1.0, %v4276_v2  ;;  %4297 = vpow2.f32 %v3599_v60  ;;  %v1471_v9 = vpop.f32.mrb[102].mxu1  ;;  %v3600_v11 = vmul.f32 -1.442695, %v1965_v3  ;;  %v1763_v15 = vmul.f32 %v5489_v59, %v981_v8 }
 0x1e7   : > { %v4280_v31 = vpop.eup %4279  ;;  %v2843_v10 = vadd.f32 1.0, %v4278_v6  ;;  %4299 = vpow2.f32 %v3697_v1  ;;  %v3698_v12 = vmul.f32 -1.442695, %v2063_v4  ;;  %v983_v13 = vpop.f32.mrb[103].mxu0  ;;  %v1861_v16 = vmul.f32 %v5489_v59, %v1471_v9 }
 0x1e8   : > { %v4282_v14 = vpop.eup %4281  ;;  %3429 = vst.msk [vmem:[%s5127_s11 + $0x468] sm:$0xff] %vm3287_vm0, %v4280_v31  ;;  %4301 = vrcp.f32 %v2745_v7  ;;  %v1473_v17 = vpop.f32.mrb[103].mxu1  ;;  %v1966_v21 = vadd.f32 %v5502_v5, %v1763_v15 }
 0x1e9   : > { %v4284_v39 = vpop.eup %4283  ;;  %3332 = vst.msk [vmem:[%s5127_s11 + $0x160] sm:$0xff] %vm3287_vm0, %v4282_v14  ;;  %4303 = vrcp.f32 %v2843_v10  ;;  %v2064_v22 = vadd.f32 %v5502_v5, %v1861_v16  ;;  %v986_v23 = vpop.f32.mrb[104].mxu0 }
 0x1ea   : > { %v4286_v18 = vpop.eup %4285  ;;  %v2746_v19 = vadd.f32 1.0, %v4284_v39  ;;  %4305 = vpow2.f32 %v3600_v11  ;;  %v1476_v45 = vpop.f32.mrb[104].mxu1  ;;  %v1764_v26 = vmul.f32 %v5489_v59, %v986_v23  ;;  %v3601_v32 = vmul.f32 -1.442695, %v1966_v21 }
 0x1eb   : > { %v4288_v24 = vpop.eup %4287  ;;  %v2844_v25 = vadd.f32 1.0, %v4286_v18  ;;  %4307 = vpow2.f32 %v3698_v12  ;;  %v1862_v27 = vmul.f32 %v5489_v59, %v1476_v45  ;;  %v988_v28 = vpop.f32.mrb[105].mxu0  ;;  %v3699_v33 = vmul.f32 -1.442695, %v2064_v22 }
 0x1ec   : > { %v1478_v29 = vpop.f32.mrb[105].mxu1  ;;  %v4290_v30 = vpop.eup %4289  ;;  %3430 = vst.msk [vmem:[%s5127_s11 + $0x470] sm:$0xff] %vm3287_vm0, %v4288_v24  ;;  %4309 = vrcp.f32 %v2746_v19  ;;  %v1967_v35 = vadd.f32 %v5502_v5, %v1764_v26 }
 0x1ed   : > { %v4292_v34 = vpop.eup %4291  ;;  %3333 = vst.msk [vmem:[%s5127_s11 + $0x168] sm:$0xff] %vm3287_vm0, %v4290_v30  ;;  %4311 = vrcp.f32 %v2844_v25  ;;  %v2065_v36 = vadd.f32 %v5502_v5, %v1862_v27  ;;  %v991_v40 = vpop.f32.mrb[106].mxu0 }
 0x1ee   : > { %v4294_v37 = vpop.eup %4293  ;;  %v2747_v38 = vadd.f32 1.0, %v4292_v34  ;;  %4313 = vpow2.f32 %v3601_v32  ;;  %v1481_v41 = vpop.f32.mrb[106].mxu1  ;;  %v3602_v43 = vmul.f32 -1.442695, %v1967_v35  ;;  %v1765_v44 = vmul.f32 %v5489_v59, %v991_v40 }
 0x1ef   : > { %v4296_v42 = vpop.eup %4295  ;;  %3431 = vst.msk [vmem:[%s5127_s11 + $0x478] sm:$0xff] %vm3287_vm0, %v4294_v37  ;;  %4315 = vpow2.f32 %v3699_v33  ;;  %v993_v46 = vpop.f32.mrb[107].mxu0  ;;  %v1863_v50 = vmul.f32 %v5489_v59, %v1481_v41  ;;  %v3700_v53 = vmul.f32 -1.442695, %v2065_v36 }
 0x1f0   : > { %v1483_v47 = vpop.f32.mrb[107].mxu1  ;;  %v4298_v48 = vpop.eup %4297  ;;  %4317 = vrcp.f32 %v2747_v38  ;;  %v2845_v49 = vadd.f32 1.0, %v4296_v42  ;;  %v1968_v54 = vadd.f32 %v5502_v5, %v1765_v44  ;;  %v5698_v46 = vld [vmem:[%s6076_s2] ss:$0 sm:$0xff] }
 0x1f1   : > { %v4300_v51 = vpop.eup %4299  ;;  %v2748_v52 = vadd.f32 1.0, %v4298_v48  ;;  %4319 = vpow2.f32 %v3602_v43  ;;  %v2066_v57 = vadd.f32 %v5502_v5, %v1863_v50  ;;  %v996_v58 = vpop.f32.mrb[108].mxu0 }
 0x1f2   : > { %v4302_v55 = vpop.eup %4301  ;;  %4321 = vrcp.f32 %v2845_v49  ;;  %v2846_v56 = vadd.f32 1.0, %v4300_v51  ;;  %v1486_v60 = vpop.f32.mrb[108].mxu1  ;;  %v3603_v20 = vmul.f32 -1.442695, %v1968_v54  ;;  %v1766_v62 = vmul.f32 %v5489_v59, %v996_v58 }
 0x1f3   : > { %v4304_v61 = vpop.eup %4303  ;;  %3334 = vst.msk [vmem:[%s5127_s11 + $0x170] sm:$0xff] %vm3287_vm0, %v4302_v55  ;;  %4323 = vrcp.f32 %v2748_v52  ;;  %v1864_v63 = vmul.f32 %v5489_v59, %v1486_v60  ;;  %v998_v0 = vpop.f32.mrb[109].mxu0  ;;  %v3701_v3 = vmul.f32 -1.442695, %v2066_v57  ;;  %v5705_v55 = vld [vmem:[%s6077_s3] ss:$0 sm:$0xff] }
 0x1f4   : > { %v1488_v1 = vpop.f32.mrb[109].mxu1  ;;  %v4306_v2 = vpop.eup %4305  ;;  %3432 = vst.msk [vmem:[%s5127_s11 + $0x480] sm:$0xff] %vm3287_vm0, %v4304_v61  ;;  %4325 = vrcp.f32 %v2846_v56  ;;  %v1969_v7 = vadd.f32 %v5502_v5, %v1766_v62 }
 0x1f5   : > { %v4308_v4 = vpop.eup %4307  ;;  %v2749_v6 = vadd.f32 1.0, %v4306_v2  ;;  %4327 = vpow2.f32 %v3700_v53  ;;  %v2067_v8 = vadd.f32 %v5502_v5, %v1864_v63  ;;  %v1001_v10 = vpop.f32.mrb[110].mxu0 }
 0x1f6   : > { %v4310_v9 = vpop.eup %4309  ;;  %v2847_v31 = vadd.f32 1.0, %v4308_v4  ;;  %4329 = vpow2.f32 %v3603_v20  ;;  %v1491_v11 = vpop.f32.mrb[110].mxu1  ;;  %v3604_v13 = vmul.f32 -1.442695, %v1969_v7  ;;  %v1767_v14 = vmul.f32 %v5489_v59, %v1001_v10 }
 0x1f7   : > { %v4312_v12 = vpop.eup %4311  ;;  %3335 = vst.msk [vmem:[%s5127_s11 + $0x178] sm:$0xff] %vm3287_vm0, %v4310_v9  ;;  %4331 = vrcp.f32 %v2749_v6  ;;  %v1003_v15 = vpop.f32.mrb[111].mxu0  ;;  %v1865_v39 = vmul.f32 %v5489_v59, %v1491_v11  ;;  %v3702_v21 = vmul.f32 -1.442695, %v2067_v8 }
 0x1f8   : > { %v1493_v16 = vpop.f32.mrb[111].mxu1  ;;  %v4314_v17 = vpop.eup %4313  ;;  %3433 = vst.msk [vmem:[%s5127_s11 + $0x488] sm:$0xff] %vm3287_vm0, %v4312_v12  ;;  %4333 = vrcp.f32 %v2847_v31  ;;  %v1970_v22 = vadd.f32 %v5502_v5, %v1767_v14 }
 0x1f9   : > { %v4316_v18 = vpop.eup %4315  ;;  %v2750_v19 = vadd.f32 1.0, %v4314_v17  ;;  %4335 = vpow2.f32 %v3701_v3  ;;  %v2068_v24 = vadd.f32 %v5502_v5, %v1865_v39  ;;  %v1006_v25 = vpop.f32.mrb[112].mxu0 }
 0x1fa   : > { %v4318_v23 = vpop.eup %4317  ;;  %v2848_v45 = vadd.f32 1.0, %v4316_v18  ;;  %4337 = vpow2.f32 %v3604_v13  ;;  %v1496_v26 = vpop.f32.mrb[112].mxu1  ;;  %v3605_v28 = vmul.f32 -1.442695, %v1970_v22  ;;  %v1768_v29 = vmul.f32 %v5489_v59, %v1006_v25 }
 0x1fb   : > { %v4320_v27 = vpop.eup %4319  ;;  %3336 = vst.msk [vmem:[%s5127_s11 + $0x180] sm:$0xff] %vm3287_vm0, %v4318_v23  ;;  %4339 = vrcp.f32 %v2750_v19  ;;  %v1866_v30 = vmul.f32 %v5489_v59, %v1496_v26  ;;  %v1008_v32 = vpop.f32.mrb[113].mxu0  ;;  %v3703_v36 = vmul.f32 -1.442695, %v2068_v24 }
 0x1fc   : > { %v1498_v33 = vpop.f32.mrb[113].mxu1  ;;  %v4322_v34 = vpop.eup %4321  ;;  %4341 = vrcp.f32 %v2848_v45  ;;  %v2751_v35 = vadd.f32 1.0, %v4320_v27  ;;  %v1971_v38 = vadd.f32 %v5502_v5, %v1768_v29 }
 0x1fd   : > { %v4324_v37 = vpop.eup %4323  ;;  %3434 = vst.msk [vmem:[%s5127_s11 + $0x490] sm:$0xff] %vm3287_vm0, %v4322_v34  ;;  %4343 = vpow2.f32 %v3702_v21  ;;  %v2069_v40 = vadd.f32 %v5502_v5, %v1866_v30  ;;  %v1011_v59 = vpop.f32.mrb[114].mxu0 }
 0x1fe   : > { %v4326_v41 = vpop.eup %4325  ;;  %3337 = vst.msk [vmem:[%s5127_s11 + $0x188] sm:$0xff] %vm3287_vm0, %v4324_v37  ;;  %4345 = vrcp.f32 %v2751_v35  ;;  %v1501_v42 = vpop.f32.mrb[114].mxu1  ;;  %v3606_v44 = vmul.f32 -1.442695, %v1971_v38  ;;  %v1769_v47 = vmul.f32 %v5698_v46, %v1011_v59 }
 0x1ff   : > { %v4328_v43 = vpop.eup %4327  ;;  %3435 = vst.msk [vmem:[%s5127_s11 + $0x498] sm:$0xff] %vm3287_vm0, %v4326_v41  ;;  %4347 = vpow2.f32 %v3605_v28  ;;  %v1013_v5 = vpop.f32.mrb[115].mxu0  ;;  %v3704_v51 = vmul.f32 -1.442695, %v2069_v40  ;;  %v1867_v52 = vmul.f32 %v5698_v46, %v1501_v42 }
 0x200   : > { %v1503_v48 = vpop.f32.mrb[115].mxu1  ;;  %v4330_v49 = vpop.eup %4329  ;;  %v2849_v50 = vadd.f32 1.0, %v4328_v43  ;;  %4349 = vpow2.f32 %v3703_v36  ;;  %v1972_v56 = vadd.f32 %v5705_v55, %v1769_v47 }
 0x201   : > { %v4332_v53 = vpop.eup %4331  ;;  %v2752_v54 = vadd.f32 1.0, %v4330_v49  ;;  %4351 = vpow2.f32 %v3606_v44  ;;  %v2070_v58 = vadd.f32 %v5705_v55, %v1867_v52  ;;  %v1016_v60 = vpop.f32.mrb[116].mxu0 }
 0x202   : > { %v4334_v57 = vpop.eup %4333  ;;  %3338 = vst.msk [vmem:[%s5127_s11 + $0x190] sm:$0xff] %vm3287_vm0, %v4332_v53  ;;  %4353 = vrcp.f32 %v2849_v50  ;;  %v1506_v61 = vpop.f32.mrb[116].mxu1  ;;  %v3607_v62 = vmul.f32 -1.442695, %v1972_v56  ;;  %v1770_v63 = vmul.f32 %v5698_v46, %v1016_v60 }
 0x203   : > { %v4336_v20 = vpop.eup %4335  ;;  %3436 = vst.msk [vmem:[%s5127_s11 + $0x4a0] sm:$0xff] %vm3287_vm0, %v4334_v57  ;;  %4355 = vrcp.f32 %v2752_v54  ;;  %v1868_v0 = vmul.f32 %v5698_v46, %v1506_v61  ;;  %v1018_v1 = vpop.f32.mrb[117].mxu0  ;;  %v3705_v6 = vmul.f32 -1.442695, %v2070_v58 }
 0x204   : > { %v1508_v2 = vpop.f32.mrb[117].mxu1  ;;  %v4338_v3 = vpop.eup %4337  ;;  %v2850_v4 = vadd.f32 1.0, %v4336_v20  ;;  %4357 = vpow2.f32 %v3704_v51  ;;  %v1973_v9 = vadd.f32 %v5705_v55, %v1770_v63 }
 0x205   : > { %v4340_v7 = vpop.eup %4339  ;;  %v2753_v8 = vadd.f32 1.0, %v4338_v3  ;;  %4359 = vpow2.f32 %v3607_v62  ;;  %v2071_v31 = vadd.f32 %v5705_v55, %v1868_v0  ;;  %v1021_v11 = vpop.f32.mrb[118].mxu0 }
 0x206   : > { %v4342_v10 = vpop.eup %4341  ;;  %3339 = vst.msk [vmem:[%s5127_s11 + $0x198] sm:$0xff] %vm3287_vm0, %v4340_v7  ;;  %4361 = vrcp.f32 %v2850_v4  ;;  %v1511_v12 = vpop.f32.mrb[118].mxu1  ;;  %v3608_v14 = vmul.f32 -1.442695, %v1973_v9  ;;  %v1771_v16 = vmul.f32 %v5698_v46, %v1021_v11 }
 0x207   : > { %v4344_v13 = vpop.eup %4343  ;;  %3437 = vst.msk [vmem:[%s5127_s11 + $0x4a8] sm:$0xff] %vm3287_vm0, %v4342_v10  ;;  %4363 = vrcp.f32 %v2753_v8  ;;  %v3706_v15 = vmul.f32 -1.442695, %v2071_v31  ;;  %v1023_v17 = vpop.f32.mrb[119].mxu0  ;;  %v1869_v21 = vmul.f32 %v5698_v46, %v1511_v12 }
 0x208   : > { %v1513_v39 = vpop.f32.mrb[119].mxu1  ;;  %v4346_v18 = vpop.eup %4345  ;;  %v2851_v19 = vadd.f32 1.0, %v4344_v13  ;;  %4365 = vpow2.f32 %v3705_v6  ;;  %v1974_v23 = vadd.f32 %v5705_v55, %v1771_v16 }
 0x209   : > { %v4348_v22 = vpop.eup %4347  ;;  %3340 = vst.msk [vmem:[%s5127_s11 + $0x1a0] sm:$0xff] %vm3287_vm0, %v4346_v18  ;;  %4367 = vpow2.f32 %v3608_v14  ;;  %v2072_v25 = vadd.f32 %v5705_v55, %v1869_v21  ;;  %v1026_v26 = vpop.f32.mrb[120].mxu0 }
 0x20a   : > { %v4350_v45 = vpop.eup %4349  ;;  %4369 = vrcp.f32 %v2851_v19  ;;  %v2754_v24 = vadd.f32 1.0, %v4348_v22  ;;  %v1516_v27 = vpop.f32.mrb[120].mxu1  ;;  %v3609_v30 = vmul.f32 -1.442695, %v1974_v23  ;;  %v1772_v32 = vmul.f32 %v5698_v46, %v1026_v26 }
 0x20b   : > { %v4352_v28 = vpop.eup %4351  ;;  %v2852_v29 = vadd.f32 1.0, %v4350_v45  ;;  %4371 = vpow2.f32 %v3706_v15  ;;  %v1028_v33 = vpop.f32.mrb[121].mxu0  ;;  %v3707_v37 = vmul.f32 -1.442695, %v2072_v25  ;;  %v1870_v38 = vmul.f32 %v5698_v46, %v1516_v27 }
 0x20c   : > { %v1518_v34 = vpop.f32.mrb[121].mxu1  ;;  %v4354_v35 = vpop.eup %4353  ;;  %4373 = vrcp.f32 %v2754_v24  ;;  %v2755_v36 = vadd.f32 1.0, %v4352_v28  ;;  %v1975_v41 = vadd.f32 %v5705_v55, %v1772_v32 }
 0x20d   : > { %v4356_v40 = vpop.eup %4355  ;;  %3438 = vst.msk [vmem:[%s5127_s11 + $0x4b0] sm:$0xff] %vm3287_vm0, %v4354_v35  ;;  %4375 = vrcp.f32 %v2852_v29  ;;  %v2073_v42 = vadd.f32 %v5705_v55, %v1870_v38  ;;  %v1031_v43 = vpop.f32.mrb[122].mxu0 }
 0x20e   : > { %v4358_v59 = vpop.eup %4357  ;;  %3341 = vst.msk [vmem:[%s5127_s11 + $0x1a8] sm:$0xff] %vm3287_vm0, %v4356_v40  ;;  %4377 = vrcp.f32 %v2755_v36  ;;  %v1521_v44 = vpop.f32.mrb[122].mxu1  ;;  %v3610_v48 = vmul.f32 -1.442695, %v1975_v41  ;;  %v1773_v49 = vmul.f32 %v5698_v46, %v1031_v43 }
 0x20f   : > { %v4360_v47 = vpop.eup %4359  ;;  %v2853_v5 = vadd.f32 1.0, %v4358_v59  ;;  %4379 = vpow2.f32 %v3609_v30  ;;  %v1033_v50 = vpop.f32.mrb[123].mxu0  ;;  %v3708_v54 = vmul.f32 -1.442695, %v2073_v42  ;;  %v1871_v56 = vmul.f32 %v5698_v46, %v1521_v44 }
 0x210   : > { %v1523_v51 = vpop.f32.mrb[123].mxu1  ;;  %v4362_v52 = vpop.eup %4361  ;;  %v2756_v53 = vadd.f32 1.0, %v4360_v47  ;;  %4381 = vpow2.f32 %v3707_v37  ;;  %v1976_v58 = vadd.f32 %v5705_v55, %v1773_v49 }
 0x211   : > { %v4364_v57 = vpop.eup %4363  ;;  %3439 = vst.msk [vmem:[%s5127_s11 + $0x4b8] sm:$0xff] %vm3287_vm0, %v4362_v52  ;;  %4383 = vrcp.f32 %v2853_v5  ;;  %v2074_v61 = vadd.f32 %v5705_v55, %v1871_v56  ;;  %v1036_v20 = vpop.f32.mrb[124].mxu0 }
 0x212   : > { %v4366_v60 = vpop.eup %4365  ;;  %3342 = vst.msk [vmem:[%s5127_s11 + $0x1b0] sm:$0xff] %vm3287_vm0, %v4364_v57  ;;  %4385 = vrcp.f32 %v2756_v53  ;;  %v1526_v62 = vpop.f32.mrb[124].mxu1  ;;  %v3611_v1 = vmul.f32 -1.442695, %v1976_v58  ;;  %v1774_v2 = vmul.f32 %v5698_v46, %v1036_v20 }
 0x213   : > { %v4368_v63 = vpop.eup %4367  ;;  %v2854_v0 = vadd.f32 1.0, %v4366_v60  ;;  %4387 = vpow2.f32 %v3610_v48  ;;  %v1038_v3 = vpop.f32.mrb[125].mxu0  ;;  %v1872_v8 = vmul.f32 %v5698_v46, %v1526_v62  ;;  %v3709_v31 = vmul.f32 -1.442695, %v2074_v61 }
 0x214   : > { %v1528_v4 = vpop.f32.mrb[125].mxu1  ;;  %v4370_v6 = vpop.eup %4369  ;;  %v2757_v7 = vadd.f32 1.0, %v4368_v63  ;;  %4389 = vpow2.f32 %v3708_v54  ;;  %v1977_v10 = vadd.f32 %v5705_v55, %v1774_v2 }
 0x215   : > { %v4372_v9 = vpop.eup %4371  ;;  %3440 = vst.msk [vmem:[%s5127_s11 + $0x4c0] sm:$0xff] %vm3287_vm0, %v4370_v6  ;;  %4391 = vrcp.f32 %v2854_v0  ;;  %v2075_v13 = vadd.f32 %v5705_v55, %v1872_v8  ;;  %v1041_v14 = vpop.f32.mrb[126].mxu0 }
 0x216   : > { %v4374_v11 = vpop.eup %4373  ;;  %4393 = vrcp.f32 %v2757_v7  ;;  %v2855_v12 = vadd.f32 1.0, %v4372_v9  ;;  %v1531_v15 = vpop.f32.mrb[126].mxu1  ;;  %v3612_v17 = vmul.f32 -1.442695, %v1977_v10  ;;  %v1775_v39 = vmul.f32 %v5698_v46, %v1041_v14 }
 0x217   : > { %v4376_v16 = vpop.eup %4375  ;;  %3343 = vst.msk [vmem:[%s5127_s11 + $0x1b8] sm:$0xff] %vm3287_vm0, %v4374_v11  ;;  %4395 = vpow2.f32 %v3611_v1  ;;  %v1873_v18 = vmul.f32 %v5698_v46, %v1531_v15  ;;  %v1043_v19 = vpop.f32.mrb[127].mxu0  ;;  %v3710_v23 = vmul.f32 -1.442695, %v2075_v13 }
 0x218   : > { %v1533_v21 = vpop.f32.mrb[127].mxu1  ;;  %v4378_v22 = vpop.eup %4377  ;;  %3441 = vst.msk [vmem:[%s5127_s11 + $0x4c8] sm:$0xff] %vm3287_vm0, %v4376_v16  ;;  %4397 = vrcp.f32 %v2855_v12  ;;  %v1978_v24 = vadd.f32 %v5705_v55, %v1775_v39 }
 0x219   : > { %v4380_v45 = vpop.eup %4379  ;;  %3344 = vst.msk [vmem:[%s5127_s11 + $0x1c0] sm:$0xff] %vm3287_vm0, %v4378_v22  ;;  %4399 = vpow2.f32 %v3709_v31  ;;  %v2076_v25 = vadd.f32 %v5705_v55, %v1873_v18  ;;  %v1046_v28 = vpop.f32.mrb[128].mxu0 }
 0x21a   : > { %v4382_v26 = vpop.eup %4381  ;;  %v2758_v27 = vadd.f32 1.0, %v4380_v45  ;;  %4401 = vpow2.f32 %v3612_v17  ;;  %v1536_v29 = vpop.f32.mrb[128].mxu1  ;;  %v3613_v33 = vmul.f32 -1.442695, %v1978_v24  ;;  %v1776_v37 = vmul.f32 %v5698_v46, %v1046_v28 }
 0x21b   : > { %v4384_v30 = vpop.eup %4383  ;;  %v2856_v32 = vadd.f32 1.0, %v4382_v26  ;;  %4403 = vpow2.f32 %v3710_v23  ;;  %v3711_v34 = vmul.f32 -1.442695, %v2076_v25  ;;  %v1048_v35 = vpop.f32.mrb[129].mxu0  ;;  %v1874_v38 = vmul.f32 %v5698_v46, %v1536_v29 }
 0x21c   : > { %v4386_v36 = vpop.eup %4385  ;;  %3442 = vst.msk [vmem:[%s5127_s11 + $0x4d0] sm:$0xff] %vm3287_vm0, %v4384_v30  ;;  %4405 = vrcp.f32 %v2758_v27  ;;  %v1538_v40 = vpop.f32.mrb[129].mxu1  ;;  %v1979_v43 = vadd.f32 %v5705_v55, %v1776_v37 }
 0x21d   : > { %v4388_v41 = vpop.eup %4387  ;;  %3345 = vst.msk [vmem:[%s5127_s11 + $0x1c8] sm:$0xff] %vm3287_vm0, %v4386_v36  ;;  %4407 = vrcp.f32 %v2856_v32  ;;  %v2077_v44 = vadd.f32 %v5705_v55, %v1874_v38  ;;  %v1051_v47 = vpop.f32.mrb[130].mxu0 }
 0x21e   : > { %v4390_v59 = vpop.eup %4389  ;;  %v2759_v42 = vadd.f32 1.0, %v4388_v41  ;;  %4409 = vpow2.f32 %v3613_v33  ;;  %v1541_v5 = vpop.f32.mrb[130].mxu1  ;;  %v1777_v50 = vmul.f32 %v5698_v46, %v1051_v47  ;;  %v3614_v56 = vmul.f32 -1.442695, %v1979_v43 }
 0x21f   : > { %v4392_v48 = vpop.eup %4391  ;;  %v2857_v49 = vadd.f32 1.0, %v4390_v59  ;;  %4411 = vpow2.f32 %v3711_v34  ;;  %v1875_v51 = vmul.f32 %v5698_v46, %v1541_v5  ;;  %v1053_v52 = vpop.f32.mrb[131].mxu0  ;;  %v3712_v57 = vmul.f32 -1.442695, %v2077_v44 }
 0x220   : > { %v1543_v53 = vpop.f32.mrb[131].mxu1  ;;  %v4394_v54 = vpop.eup %4393  ;;  %3443 = vst.msk [vmem:[%s5127_s11 + $0x4d8] sm:$0xff] %vm3287_vm0, %v4392_v48  ;;  %4413 = vrcp.f32 %v2759_v42  ;;  %v1980_v60 = vadd.f32 %v5705_v55, %v1777_v50 }
 0x221   : > { %v4396_v58 = vpop.eup %4395  ;;  %3346 = vst.msk [vmem:[%s5127_s11 + $0x1d0] sm:$0xff] %vm3287_vm0, %v4394_v54  ;;  %4415 = vrcp.f32 %v2857_v49  ;;  %v2078_v61 = vadd.f32 %v5705_v55, %v1875_v51  ;;  %v1056_v63 = vpop.f32.mrb[132].mxu0 }
 0x222   : > { %v4398_v20 = vpop.eup %4397  ;;  %v2760_v62 = vadd.f32 1.0, %v4396_v58  ;;  %4417 = vpow2.f32 %v3614_v56  ;;  %v1546_v0 = vpop.f32.mrb[132].mxu1  ;;  %v3615_v2 = vmul.f32 -1.442695, %v1980_v60  ;;  %v1778_v3 = vmul.f32 %v5698_v46, %v1056_v63 }
 0x223   : > { %v4400_v1 = vpop.eup %4399  ;;  %3444 = vst.msk [vmem:[%s5127_s11 + $0x4e0] sm:$0xff] %vm3287_vm0, %v4398_v20  ;;  %4419 = vpow2.f32 %v3712_v57  ;;  %v1058_v4 = vpop.f32.mrb[133].mxu0  ;;  %v1876_v9 = vmul.f32 %v5698_v46, %v1546_v0  ;;  %v3713_v11 = vmul.f32 -1.442695, %v2078_v61 }
 0x224   : > { %v1548_v6 = vpop.f32.mrb[133].mxu1  ;;  %v4402_v7 = vpop.eup %4401  ;;  %4421 = vrcp.f32 %v2760_v62  ;;  %v2858_v8 = vadd.f32 1.0, %v4400_v1  ;;  %v1981_v12 = vadd.f32 %v5705_v55, %v1778_v3 }
 0x225   : > { %v4404_v31 = vpop.eup %4403  ;;  %v2761_v10 = vadd.f32 1.0, %v4402_v7  ;;  %4423 = vpow2.f32 %v3615_v2  ;;  %v2079_v15 = vadd.f32 %v5705_v55, %v1876_v9  ;;  %v1061_v16 = vpop.f32.mrb[134].mxu0 }
 0x226   : > { %v4406_v13 = vpop.eup %4405  ;;  %4425 = vrcp.f32 %v2858_v8  ;;  %v2859_v14 = vadd.f32 1.0, %v4404_v31  ;;  %v1551_v17 = vpop.f32.mrb[134].mxu1  ;;  %v3616_v18 = vmul.f32 -1.442695, %v1981_v12  ;;  %v1779_v19 = vmul.f32 %v5698_v46, %v1061_v16 }
 0x227   : > { %v4408_v39 = vpop.eup %4407  ;;  %3347 = vst.msk [vmem:[%s5127_s11 + $0x1d8] sm:$0xff] %vm3287_vm0, %v4406_v13  ;;  %4427 = vrcp.f32 %v2761_v10  ;;  %v1877_v21 = vmul.f32 %v5698_v46, %v1551_v17  ;;  %v1063_v22 = vpop.f32.mrb[135].mxu0  ;;  %v3714_v24 = vmul.f32 -1.442695, %v2079_v15 }
 0x228   : > { %v1553_v23 = vpop.f32.mrb[135].mxu1  ;;  %v4410_v45 = vpop.eup %4409  ;;  %3445 = vst.msk [vmem:[%s5127_s11 + $0x4e8] sm:$0xff] %vm3287_vm0, %v4408_v39  ;;  %4429 = vrcp.f32 %v2859_v14  ;;  %v1982_v27 = vadd.f32 %v5705_v55, %v1779_v19 }
 0x229   : > { %v4412_v25 = vpop.eup %4411  ;;  %v2762_v26 = vadd.f32 1.0, %v4410_v45  ;;  %4431 = vpow2.f32 %v3713_v11  ;;  %v2080_v28 = vadd.f32 %v5705_v55, %v1877_v21  ;;  %v1066_v32 = vpop.f32.mrb[136].mxu0 }
 0x22a   : > { %v4414_v29 = vpop.eup %4413  ;;  %v2860_v30 = vadd.f32 1.0, %v4412_v25  ;;  %4433 = vpow2.f32 %v3616_v18  ;;  %v1556_v33 = vpop.f32.mrb[136].mxu1  ;;  %v3617_v35 = vmul.f32 -1.442695, %v1982_v27  ;;  %v1780_v36 = vmul.f32 %v5698_v46, %v1066_v32 }
 0x22b   : > { %v4416_v34 = vpop.eup %4415  ;;  %3348 = vst.msk [vmem:[%s5127_s11 + $0x1e0] sm:$0xff] %vm3287_vm0, %v4414_v29  ;;  %4435 = vrcp.f32 %v2762_v26  ;;  %v1068_v37 = vpop.f32.mrb[137].mxu0  ;;  %v1878_v41 = vmul.f32 %v5698_v46, %v1556_v33  ;;  %v3715_v43 = vmul.f32 -1.442695, %v2080_v28 }
 0x22c   : > { %v1558_v38 = vpop.f32.mrb[137].mxu1  ;;  %v4418_v40 = vpop.eup %4417  ;;  %3446 = vst.msk [vmem:[%s5127_s11 + $0x4f0] sm:$0xff] %vm3287_vm0, %v4416_v34  ;;  %4437 = vrcp.f32 %v2860_v30  ;;  %v1983_v44 = vadd.f32 %v5705_v55, %v1780_v36 }
 0x22d   : > { %v4420_v59 = vpop.eup %4419  ;;  %v2763_v42 = vadd.f32 1.0, %v4418_v40  ;;  %4439 = vpow2.f32 %v3714_v24  ;;  %v2081_v48 = vadd.f32 %v5705_v55, %v1878_v41  ;;  %v1071_v49 = vpop.f32.mrb[138].mxu0 }
 0x22e   : > { %v4422_v47 = vpop.eup %4421  ;;  %v2861_v5 = vadd.f32 1.0, %v4420_v59  ;;  %4441 = vpow2.f32 %v3617_v35  ;;  %v1561_v50 = vpop.f32.mrb[138].mxu1  ;;  %v3618_v52 = vmul.f32 -1.442695, %v1983_v44  ;;  %v1781_v53 = vmul.f32 %v5698_v46, %v1071_v49 }
 0x22f   : > { %v4424_v51 = vpop.eup %4423  ;;  %3349 = vst.msk [vmem:[%s5127_s11 + $0x1e8] sm:$0xff] %vm3287_vm0, %v4422_v47  ;;  %4443 = vrcp.f32 %v2763_v42  ;;  %v1879_v54 = vmul.f32 %v5698_v46, %v1561_v50  ;;  %v1073_v56 = vpop.f32.mrb[139].mxu0  ;;  %v3716_v61 = vmul.f32 -1.442695, %v2081_v48 }
 0x230   : > { %v1563_v57 = vpop.f32.mrb[139].mxu1  ;;  %v4426_v58 = vpop.eup %4425  ;;  %4445 = vrcp.f32 %v2861_v5  ;;  %v2764_v60 = vadd.f32 1.0, %v4424_v51  ;;  %v1984_v62 = vadd.f32 %v5705_v55, %v1781_v53 }
 0x231   : > { %v4428_v20 = vpop.eup %4427  ;;  %3447 = vst.msk [vmem:[%s5127_s11 + $0x4f8] sm:$0xff] %vm3287_vm0, %v4426_v58  ;;  %4447 = vpow2.f32 %v3715_v43  ;;  %v2082_v63 = vadd.f32 %v5705_v55, %v1879_v54  ;;  %v1076_v1 = vpop.f32.mrb[140].mxu0 }
 0x232   : > { %v4430_v0 = vpop.eup %4429  ;;  %3350 = vst.msk [vmem:[%s5127_s11 + $0x1f0] sm:$0xff] %vm3287_vm0, %v4428_v20  ;;  %4449 = vrcp.f32 %v2764_v60  ;;  %v1566_v2 = vpop.f32.mrb[140].mxu1  ;;  %v3619_v4 = vmul.f32 -1.442695, %v1984_v62  ;;  %v1782_v6 = vmul.f32 %v5698_v46, %v1076_v1 }
 0x233   : > { %v4432_v3 = vpop.eup %4431  ;;  %3448 = vst.msk [vmem:[%s5127_s11 + $0x500] sm:$0xff] %vm3287_vm0, %v4430_v0  ;;  %4451 = vpow2.f32 %v3618_v52  ;;  %v1078_v7 = vpop.f32.mrb[141].mxu0  ;;  %v3717_v10 = vmul.f32 -1.442695, %v2082_v63  ;;  %v1880_v11 = vmul.f32 %v5698_v46, %v1566_v2 }
 0x234   : > { %v1568_v8 = vpop.f32.mrb[141].mxu1  ;;  %v4434_v9 = vpop.eup %4433  ;;  %v2862_v31 = vadd.f32 1.0, %v4432_v3  ;;  %4453 = vpow2.f32 %v3716_v61  ;;  %v1985_v14 = vadd.f32 %v5705_v55, %v1782_v6 }
 0x235   : > { %v4436_v12 = vpop.eup %4435  ;;  %v2765_v13 = vadd.f32 1.0, %v4434_v9  ;;  %4455 = vpow2.f32 %v3619_v4  ;;  %v2083_v16 = vadd.f32 %v5705_v55, %v1880_v11  ;;  %v1081_v17 = vpop.f32.mrb[142].mxu0 }
 0x236   : > { %v4438_v15 = vpop.eup %4437  ;;  %3351 = vst.msk [vmem:[%s5127_s11 + $0x1f8] sm:$0xff] %vm3287_vm0, %v4436_v12  ;;  %4457 = vrcp.f32 %v2862_v31  ;;  %v1571_v39 = vpop.f32.mrb[142].mxu1  ;;  %v3620_v19 = vmul.f32 -1.442695, %v1985_v14  ;;  %v1783_v21 = vmul.f32 %v5698_v46, %v1081_v17 }
 0x237   : > { %v4440_v18 = vpop.eup %4439  ;;  %3449 = vst.msk [vmem:[%s5127_s11 + $0x508] sm:$0xff] %vm3287_vm0, %v4438_v15  ;;  %4459 = vrcp.f32 %v2765_v13  ;;  %v1881_v22 = vmul.f32 %v5698_v46, %v1571_v39  ;;  %v1083_v23 = vpop.f32.mrb[143].mxu0  ;;  %v3718_v26 = vmul.f32 -1.442695, %v2083_v16 }
 0x238   : > { %v1573_v45 = vpop.f32.mrb[143].mxu1  ;;  %v4442_v24 = vpop.eup %4441  ;;  %v2863_v25 = vadd.f32 1.0, %v4440_v18  ;;  %4461 = vpow2.f32 %v3717_v10  ;;  %v1986_v29 = vadd.f32 %v5705_v55, %v1783_v21 }
 0x239   : > { %v4444_v27 = vpop.eup %4443  ;;  %v2766_v28 = vadd.f32 1.0, %v4442_v24  ;;  %4463 = vpow2.f32 %v3620_v19  ;;  %v2084_v30 = vadd.f32 %v5705_v55, %v1881_v22  ;;  %v1086_v33 = vpop.f32.mrb[144].mxu0 }
 0x23a   : > { %v4446_v32 = vpop.eup %4445  ;;  %3352 = vst.msk [vmem:[%s5127_s11 + $0x200] sm:$0xff] %vm3287_vm0, %v4444_v27  ;;  %4465 = vrcp.f32 %v2863_v25  ;;  %v1576_v34 = vpop.f32.mrb[144].mxu1  ;;  %v3621_v36 = vmul.f32 -1.442695, %v1986_v29  ;;  %v1784_v38 = vmul.f32 %v5698_v46, %v1086_v33 }
 0x23b   : > { %v4448_v35 = vpop.eup %4447  ;;  %3450 = vst.msk [vmem:[%s5127_s11 + $0x510] sm:$0xff] %vm3287_vm0, %v4446_v32  ;;  %4467 = vrcp.f32 %v2766_v28  ;;  %v3719_v37 = vmul.f32 -1.442695, %v2084_v30  ;;  %v1088_v40 = vpop.f32.mrb[145].mxu0  ;;  %v1882_v43 = vmul.f32 %v5698_v46, %v1576_v34 }
 0x23c   : > { %v1578_v41 = vpop.f32.mrb[145].mxu1  ;;  %v4450_v59 = vpop.eup %4449  ;;  %v2864_v42 = vadd.f32 1.0, %v4448_v35  ;;  %4469 = vpow2.f32 %v3718_v26  ;;  %v1987_v47 = vadd.f32 %v5705_v55, %v1784_v38 }
 0x23d   : > { %v4452_v44 = vpop.eup %4451  ;;  %3353 = vst.msk [vmem:[%s5127_s11 + $0x208] sm:$0xff] %vm3287_vm0, %v4450_v59  ;;  %4471 = vpow2.f32 %v3621_v36  ;;  %v2085_v49 = vadd.f32 %v5705_v55, %v1882_v43  ;;  %v1091_v50 = vpop.f32.mrb[146].mxu0 }
 0x23e   : > { %v4454_v5 = vpop.eup %4453  ;;  %4473 = vrcp.f32 %v2864_v42  ;;  %v2767_v48 = vadd.f32 1.0, %v4452_v44  ;;  %v1581_v51 = vpop.f32.mrb[146].mxu1  ;;  %v3622_v54 = vmul.f32 -1.442695, %v1987_v47  ;;  %v1785_v56 = vmul.f32 %v5698_v46, %v1091_v50 }
 0x23f   : > { %v4456_v52 = vpop.eup %4455  ;;  %v2865_v53 = vadd.f32 1.0, %v4454_v5  ;;  %4475 = vpow2.f32 %v3719_v37  ;;  %v1093_v57 = vpop.f32.mrb[147].mxu0  ;;  %v3720_v20 = vmul.f32 -1.442695, %v2085_v49  ;;  %v1883_v62 = vmul.f32 %v5698_v46, %v1581_v51 }
 0x240   : > { %v1583_v58 = vpop.f32.mrb[147].mxu1  ;;  %v4458_v60 = vpop.eup %4457  ;;  %4477 = vrcp.f32 %v2767_v48  ;;  %v2768_v61 = vadd.f32 1.0, %v4456_v52  ;;  %v1988_v0 = vadd.f32 %v5705_v55, %v1785_v56 }
 0x241   : > { %v4460_v63 = vpop.eup %4459  ;;  %3451 = vst.msk [vmem:[%s5127_s11 + $0x518] sm:$0xff] %vm3287_vm0, %v4458_v60  ;;  %4479 = vrcp.f32 %v2865_v53  ;;  %v2086_v2 = vadd.f32 %v5705_v55, %v1883_v62  ;;  %v1096_v3 = vpop.f32.mrb[148].mxu0 }
 0x242   : > { %v4462_v1 = vpop.eup %4461  ;;  %3354 = vst.msk [vmem:[%s5127_s11 + $0x210] sm:$0xff] %vm3287_vm0, %v4460_v63  ;;  %4481 = vrcp.f32 %v2768_v61  ;;  %v1586_v4 = vpop.f32.mrb[148].mxu1  ;;  %v3623_v8 = vmul.f32 -1.442695, %v1988_v0  ;;  %v1786_v9 = vmul.f32 %v5698_v46, %v1096_v3 }
 0x243   : > { %v4464_v6 = vpop.eup %4463  ;;  %v2866_v7 = vadd.f32 1.0, %v4462_v1  ;;  %4483 = vpow2.f32 %v3622_v54  ;;  %v1098_v31 = vpop.f32.mrb[149].mxu0  ;;  %v3721_v13 = vmul.f32 -1.442695, %v2086_v2  ;;  %v1884_v14 = vmul.f32 %v5698_v46, %v1586_v4 }
 0x244   : > { %v1588_v10 = vpop.f32.mrb[149].mxu1  ;;  %v4466_v11 = vpop.eup %4465  ;;  %v2769_v12 = vadd.f32 1.0, %v4464_v6  ;;  %4485 = vpow2.f32 %v3720_v20  ;;  %v1989_v16 = vadd.f32 %v5705_v55, %v1786_v9 }
 0x245   : > { %v4468_v15 = vpop.eup %4467  ;;  %3452 = vst.msk [vmem:[%s5127_s11 + $0x520] sm:$0xff] %vm3287_vm0, %v4466_v11  ;;  %4487 = vrcp.f32 %v2866_v7  ;;  %v2087_v39 = vadd.f32 %v5705_v55, %v1884_v14  ;;  %v1101_v18 = vpop.f32.mrb[150].mxu0 }
 0x246   : > { %v4470_v17 = vpop.eup %4469  ;;  %3355 = vst.msk [vmem:[%s5127_s11 + $0x218] sm:$0xff] %vm3287_vm0, %v4468_v15  ;;  %4489 = vrcp.f32 %v2769_v12  ;;  %v1591_v19 = vpop.f32.mrb[150].mxu1  ;;  %v3624_v23 = vmul.f32 -1.442695, %v1989_v16  ;;  %v1787_v45 = vmul.f32 %v5698_v46, %v1101_v18 }
 0x247   : > { %v4472_v21 = vpop.eup %4471  ;;  %v2867_v22 = vadd.f32 1.0, %v4470_v17  ;;  %4491 = vpow2.f32 %v3623_v8  ;;  %v1103_v24 = vpop.f32.mrb[151].mxu0  ;;  %v1885_v28 = vmul.f32 %v5698_v46, %v1591_v19  ;;  %v3722_v30 = vmul.f32 -1.442695, %v2087_v39 }
 0x248   : > { %v1593_v25 = vpop.f32.mrb[151].mxu1  ;;  %v4474_v26 = vpop.eup %4473  ;;  %v2770_v27 = vadd.f32 1.0, %v4472_v21  ;;  %4493 = vpow2.f32 %v3721_v13  ;;  %v1990_v32 = vadd.f32 %v5705_v55, %v1787_v45 }
 0x249   : > { %v4476_v29 = vpop.eup %4475  ;;  %3453 = vst.msk [vmem:[%s5127_s11 + $0x528] sm:$0xff] %vm3287_vm0, %v4474_v26  ;;  %4495 = vrcp.f32 %v2867_v22  ;;  %v2088_v35 = vadd.f32 %v5705_v55, %v1885_v28  ;;  %v1106_v36 = vpop.f32.mrb[152].mxu0 }
 0x24a   : > { %v4478_v33 = vpop.eup %4477  ;;  %4497 = vrcp.f32 %v2770_v27  ;;  %v2868_v34 = vadd.f32 1.0, %v4476_v29  ;;  %v1596_v37 = vpop.f32.mrb[152].mxu1  ;;  %v3625_v40 = vmul.f32 -1.442695, %v1990_v32  ;;  %v1788_v41 = vmul.f32 %v5698_v46, %v1106_v36 }
 0x24b   : > { %v4480_v38 = vpop.eup %4479  ;;  %3356 = vst.msk [vmem:[%s5127_s11 + $0x220] sm:$0xff] %vm3287_vm0, %v4478_v33  ;;  %4499 = vpow2.f32 %v3624_v23  ;;  %v1886_v59 = vmul.f32 %v5698_v46, %v1596_v37  ;;  %v1108_v42 = vpop.f32.mrb[153].mxu0  ;;  %v3723_v47 = vmul.f32 -1.442695, %v2088_v35 }
 0x24c   : > { %v1598_v43 = vpop.f32.mrb[153].mxu1  ;;  %v4482_v44 = vpop.eup %4481  ;;  %3454 = vst.msk [vmem:[%s5127_s11 + $0x530] sm:$0xff] %vm3287_vm0, %v4480_v38  ;;  %4501 = vrcp.f32 %v2868_v34  ;;  %v1991_v48 = vadd.f32 %v5705_v55, %v1788_v41 }
 0x24d   : > { %v4484_v5 = vpop.eup %4483  ;;  %3357 = vst.msk [vmem:[%s5127_s11 + $0x228] sm:$0xff] %vm3287_vm0, %v4482_v44  ;;  %4503 = vpow2.f32 %v3722_v30  ;;  %v2089_v49 = vadd.f32 %v5705_v55, %v1886_v59  ;;  %v1111_v52 = vpop.f32.mrb[154].mxu0 }
 0x24e   : > { %v4486_v50 = vpop.eup %4485  ;;  %v2771_v51 = vadd.f32 1.0, %v4484_v5  ;;  %4505 = vpow2.f32 %v3625_v40  ;;  %v1601_v53 = vpop.f32.mrb[154].mxu1  ;;  %v3626_v57 = vmul.f32 -1.442695, %v1991_v48  ;;  %v1789_v20 = vmul.f32 %v5698_v46, %v1111_v52 }
 0x24f   : > { %v4488_v54 = vpop.eup %4487  ;;  %v2869_v56 = vadd.f32 1.0, %v4486_v50  ;;  %4507 = vpow2.f32 %v3723_v47  ;;  %v3724_v58 = vmul.f32 -1.442695, %v2089_v49  ;;  %v1113_v60 = vpop.f32.mrb[155].mxu0  ;;  %v1887_v62 = vmul.f32 %v5698_v46, %v1601_v53 }
 0x250   : > { %v4490_v61 = vpop.eup %4489  ;;  %3455 = vst.msk [vmem:[%s5127_s11 + $0x538] sm:$0xff] %vm3287_vm0, %v4488_v54  ;;  %4509 = vrcp.f32 %v2771_v51  ;;  %v1603_v63 = vpop.f32.mrb[155].mxu1  ;;  %v1992_v3 = vadd.f32 %v5705_v55, %v1789_v20  ;;  %v5898_v60 = vld [vmem:[%s6076_s2] ss:$0 sm:$0xff] }
 0x251   : > { %v4492_v0 = vpop.eup %4491  ;;  %3358 = vst.msk [vmem:[%s5127_s11 + $0x230] sm:$0xff] %vm3287_vm0, %v4490_v61  ;;  %4511 = vrcp.f32 %v2869_v56  ;;  %v2090_v4 = vadd.f32 %v5705_v55, %v1887_v62  ;;  %v1116_v6 = vpop.f32.mrb[156].mxu0 }
 0x252   : > { %v4494_v1 = vpop.eup %4493  ;;  %v2772_v2 = vadd.f32 1.0, %v4492_v0  ;;  %4513 = vpow2.f32 %v3626_v57  ;;  %v1606_v7 = vpop.f32.mrb[156].mxu1  ;;  %v1790_v31 = vmul.f32 %v5698_v46, %v1116_v6  ;;  %v3627_v14 = vmul.f32 -1.442695, %v1992_v3  ;;  %v5907_v3 = vld [vmem:[%s6077_s3] ss:$0 sm:$0xff] }
 0x253   : > { %v4496_v8 = vpop.eup %4495  ;;  %v2870_v9 = vadd.f32 1.0, %v4494_v1  ;;  %4515 = vpow2.f32 %v3724_v58  ;;  %v1888_v10 = vmul.f32 %v5698_v46, %v1606_v7  ;;  %v1118_v11 = vpop.f32.mrb[157].mxu0  ;;  %v3725_v15 = vmul.f32 -1.442695, %v2090_v4 }
 0x254   : > { %v1608_v12 = vpop.f32.mrb[157].mxu1  ;;  %v4498_v13 = vpop.eup %4497  ;;  %3456 = vst.msk [vmem:[%s5127_s11 + $0x540] sm:$0xff] %vm3287_vm0, %v4496_v8  ;;  %4517 = vrcp.f32 %v2772_v2  ;;  %v1993_v17 = vadd.f32 %v5705_v55, %v1790_v31 }
 0x255   : > { %v4500_v16 = vpop.eup %4499  ;;  %3359 = vst.msk [vmem:[%s5127_s11 + $0x238] sm:$0xff] %vm3287_vm0, %v4498_v13  ;;  %4519 = vrcp.f32 %v2870_v9  ;;  %v2091_v39 = vadd.f32 %v5705_v55, %v1888_v10  ;;  %v1121_v21 = vpop.f32.mrb[158].mxu0 }
 0x256   : > { %v4502_v18 = vpop.eup %4501  ;;  %v2773_v19 = vadd.f32 1.0, %v4500_v16  ;;  %4521 = vpow2.f32 %v3627_v14  ;;  %v1611_v22 = vpop.f32.mrb[158].mxu1  ;;  %v3628_v45 = vmul.f32 -1.442695, %v1993_v17  ;;  %v1791_v24 = vmul.f32 %v5698_v46, %v1121_v21 }
 0x257   : > { %v4504_v23 = vpop.eup %4503  ;;  %3457 = vst.msk [vmem:[%s5127_s11 + $0x548] sm:$0xff] %vm3287_vm0, %v4502_v18  ;;  %4523 = vpow2.f32 %v3725_v15  ;;  %v1123_v25 = vpop.f32.mrb[159].mxu0  ;;  %v1889_v29 = vmul.f32 %v5698_v46, %v1611_v22  ;;  %v3726_v33 = vmul.f32 -1.442695, %v2091_v39 }
 0x258   : > { %v1613_v26 = vpop.f32.mrb[159].mxu1  ;;  %v4506_v27 = vpop.eup %4505  ;;  %4525 = vrcp.f32 %v2773_v19  ;;  %v2871_v28 = vadd.f32 1.0, %v4504_v23  ;;  %v1994_v34 = vadd.f32 %v5705_v55, %v1791_v24 }
 0x259   : > { %v4508_v30 = vpop.eup %4507  ;;  %v2774_v32 = vadd.f32 1.0, %v4506_v27  ;;  %4527 = vpow2.f32 %v3628_v45  ;;  %v2092_v37 = vadd.f32 %v5705_v55, %v1889_v29  ;;  %v1126_v38 = vpop.f32.mrb[160].mxu0 }
 0x25a   : > { %v4510_v35 = vpop.eup %4509  ;;  %4529 = vrcp.f32 %v2871_v28  ;;  %v2872_v36 = vadd.f32 1.0, %v4508_v30  ;;  %v1616_v40 = vpop.f32.mrb[160].mxu1  ;;  %v3629_v59 = vmul.f32 -1.442695, %v1994_v34  ;;  %v1792_v42 = vmul.f32 %v5698_v46, %v1126_v38 }
 0x25b   : > { %v4512_v41 = vpop.eup %4511  ;;  %3360 = vst.msk [vmem:[%s5127_s11 + $0x240] sm:$0xff] %vm3287_vm0, %v4510_v35  ;;  %4531 = vrcp.f32 %v2774_v32  ;;  %v1890_v43 = vmul.f32 %v5698_v46, %v1616_v40  ;;  %v1128_v44 = vpop.f32.mrb[161].mxu0  ;;  %v3727_v48 = vmul.f32 -1.442695, %v2092_v37 }
 0x25c   : > { %v1618_v47 = vpop.f32.mrb[161].mxu1  ;;  %v4514_v5 = vpop.eup %4513  ;;  %3458 = vst.msk [vmem:[%s5127_s11 + $0x550] sm:$0xff] %vm3287_vm0, %v4512_v41  ;;  %4533 = vrcp.f32 %v2872_v36  ;;  %v1995_v51 = vadd.f32 %v5705_v55, %v1792_v42 }
 0x25d   : > { %v4516_v49 = vpop.eup %4515  ;;  %v2775_v50 = vadd.f32 1.0, %v4514_v5  ;;  %4535 = vpow2.f32 %v3726_v33  ;;  %v2093_v52 = vadd.f32 %v5705_v55, %v1890_v43  ;;  %v1131_v46 = vpop.f32.mrb[162].mxu0 }
 0x25e   : > { %v4518_v53 = vpop.eup %4517  ;;  %v2873_v54 = vadd.f32 1.0, %v4516_v49  ;;  %4537 = vpow2.f32 %v3629_v59  ;;  %v1621_v56 = vpop.f32.mrb[162].mxu1  ;;  %v3630_v58 = vmul.f32 -1.442695, %v1995_v51  ;;  %v1793_v61 = vmul.f32 %v5898_v60, %v1131_v46 }
 0x25f   : > { %v4520_v57 = vpop.eup %4519  ;;  %3361 = vst.msk [vmem:[%s5127_s11 + $0x248] sm:$0xff] %vm3287_vm0, %v4518_v53  ;;  %4539 = vrcp.f32 %v2775_v50  ;;  %v1133_v20 = vpop.f32.mrb[163].mxu0  ;;  %v1891_v63 = vmul.f32 %v5898_v60, %v1621_v56  ;;  %v3728_v2 = vmul.f32 -1.442695, %v2093_v52 }
 0x260   : > { %v1623_v62 = vpop.f32.mrb[163].mxu1  ;;  %v4522_v55 = vpop.eup %4521  ;;  %3459 = vst.msk [vmem:[%s5127_s11 + $0x558] sm:$0xff] %vm3287_vm0, %v4520_v57  ;;  %4541 = vrcp.f32 %v2873_v54  ;;  %v1996_v4 = vadd.f32 %v5907_v3, %v1793_v61 }
 0x261   : > { %v4524_v0 = vpop.eup %4523  ;;  %v2776_v1 = vadd.f32 1.0, %v4522_v55  ;;  %4543 = vpow2.f32 %v3727_v48  ;;  %v2094_v8 = vadd.f32 %v5907_v3, %v1891_v63  ;;  %v1136_v9 = vpop.f32.mrb[164].mxu0 }
 0x262   : > { %v4526_v6 = vpop.eup %4525  ;;  %v2874_v7 = vadd.f32 1.0, %v4524_v0  ;;  %4545 = vpow2.f32 %v3630_v58  ;;  %v1626_v31 = vpop.f32.mrb[164].mxu1  ;;  %v3631_v11 = vmul.f32 -1.442695, %v1996_v4  ;;  %v1794_v12 = vmul.f32 %v5898_v60, %v1136_v9 }
 0x263   : > { %v4528_v10 = vpop.eup %4527  ;;  %3362 = vst.msk [vmem:[%s5127_s11 + $0x250] sm:$0xff] %vm3287_vm0, %v4526_v6  ;;  %4547 = vrcp.f32 %v2776_v1  ;;  %v1892_v13 = vmul.f32 %v5898_v60, %v1626_v31  ;;  %v1138_v14 = vpop.f32.mrb[165].mxu0  ;;  %v3729_v39 = vmul.f32 -1.442695, %v2094_v8 }
 0x264   : > { %v1628_v15 = vpop.f32.mrb[165].mxu1  ;;  %v4530_v16 = vpop.eup %4529  ;;  %4549 = vrcp.f32 %v2874_v7  ;;  %v2777_v17 = vadd.f32 1.0, %v4528_v10  ;;  %v1997_v19 = vadd.f32 %v5907_v3, %v1794_v12 }
 0x265   : > { %v4532_v18 = vpop.eup %4531  ;;  %3460 = vst.msk [vmem:[%s5127_s11 + $0x560] sm:$0xff] %vm3287_vm0, %v4530_v16  ;;  %4551 = vpow2.f32 %v3728_v2  ;;  %v2095_v21 = vadd.f32 %v5907_v3, %v1892_v13  ;;  %v1141_v23 = vpop.f32.mrb[166].mxu0 }
 0x266   : > { %v4534_v22 = vpop.eup %4533  ;;  %3363 = vst.msk [vmem:[%s5127_s11 + $0x258] sm:$0xff] %vm3287_vm0, %v4532_v18  ;;  %4553 = vrcp.f32 %v2777_v17  ;;  %v1631_v45 = vpop.f32.mrb[166].mxu1  ;;  %v3632_v25 = vmul.f32 -1.442695, %v1997_v19  ;;  %v1795_v26 = vmul.f32 %v5898_v60, %v1141_v23 }
 0x267   : > { %v4536_v24 = vpop.eup %4535  ;;  %3461 = vst.msk [vmem:[%s5127_s11 + $0x568] sm:$0xff] %vm3287_vm0, %v4534_v22  ;;  %4555 = vpow2.f32 %v3631_v11  ;;  %v1143_v27 = vpop.f32.mrb[167].mxu0  ;;  %v3730_v32 = vmul.f32 -1.442695, %v2095_v21  ;;  %v1893_v33 = vmul.f32 %v5898_v60, %v1631_v45 }
 0x268   : > { %v1633_v28 = vpop.f32.mrb[167].mxu1  ;;  %v4538_v29 = vpop.eup %4537  ;;  %v2875_v30 = vadd.f32 1.0, %v4536_v24  ;;  %4557 = vpow2.f32 %v3729_v39  ;;  %v1998_v36 = vadd.f32 %v5907_v3, %v1795_v26 }
 0x269   : > { %v4540_v34 = vpop.eup %4539  ;;  %v2778_v35 = vadd.f32 1.0, %v4538_v29  ;;  %4559 = vpow2.f32 %v3632_v25  ;;  %v2096_v38 = vadd.f32 %v5907_v3, %v1893_v33  ;;  %v1146_v40 = vpop.f32.mrb[168].mxu0 }
 0x26a   : > { %v4542_v37 = vpop.eup %4541  ;;  %3364 = vst.msk [vmem:[%s5127_s11 + $0x260] sm:$0xff] %vm3287_vm0, %v4540_v34  ;;  %4561 = vrcp.f32 %v2875_v30  ;;  %v1636_v41 = vpop.f32.mrb[168].mxu1  ;;  %v3633_v42 = vmul.f32 -1.442695, %v1998_v36  ;;  %v1796_v43 = vmul.f32 %v5898_v60, %v1146_v40 }
 0x26b   : > { %v4544_v59 = vpop.eup %4543  ;;  %3462 = vst.msk [vmem:[%s5127_s11 + $0x570] sm:$0xff] %vm3287_vm0, %v4542_v37  ;;  %4563 = vrcp.f32 %v2778_v35  ;;  %v1894_v44 = vmul.f32 %v5898_v60, %v1636_v41  ;;  %v1148_v47 = vpop.f32.mrb[169].mxu0  ;;  %v3731_v50 = vmul.f32 -1.442695, %v2096_v38 }
 0x26c   : > { %v1638_v5 = vpop.f32.mrb[169].mxu1  ;;  %v4546_v48 = vpop.eup %4545  ;;  %v2876_v49 = vadd.f32 1.0, %v4544_v59  ;;  %4565 = vpow2.f32 %v3730_v32  ;;  %v1999_v53 = vadd.f32 %v5907_v3, %v1796_v43 }
 0x26d   : > { %v4548_v51 = vpop.eup %4547  ;;  %v2779_v52 = vadd.f32 1.0, %v4546_v48  ;;  %4567 = vpow2.f32 %v3633_v42  ;;  %v2097_v54 = vadd.f32 %v5907_v3, %v1894_v44  ;;  %v1151_v56 = vpop.f32.mrb[170].mxu0 }
 0x26e   : > { %v4550_v46 = vpop.eup %4549  ;;  %3365 = vst.msk [vmem:[%s5127_s11 + $0x268] sm:$0xff] %vm3287_vm0, %v4548_v51  ;;  %4569 = vrcp.f32 %v2876_v49  ;;  %v1641_v57 = vpop.f32.mrb[170].mxu1  ;;  %v3634_v61 = vmul.f32 -1.442695, %v1999_v53  ;;  %v1797_v62 = vmul.f32 %v5898_v60, %v1151_v56 }
 0x26f   : > { %v4552_v58 = vpop.eup %4551  ;;  %3463 = vst.msk [vmem:[%s5127_s11 + $0x578] sm:$0xff] %vm3287_vm0, %v4550_v46  ;;  %4571 = vrcp.f32 %v2779_v52  ;;  %v3732_v20 = vmul.f32 -1.442695, %v2097_v54  ;;  %v1153_v55 = vpop.f32.mrb[171].mxu0  ;;  %v1895_v2 = vmul.f32 %v5898_v60, %v1641_v57 }
 0x270   : > { %v1643_v63 = vpop.f32.mrb[171].mxu1  ;;  %v4554_v0 = vpop.eup %4553  ;;  %v2877_v1 = vadd.f32 1.0, %v4552_v58  ;;  %4573 = vpow2.f32 %v3731_v50  ;;  %v2000_v6 = vadd.f32 %v5907_v3, %v1797_v62 }
 0x271   : > { %v4556_v4 = vpop.eup %4555  ;;  %3366 = vst.msk [vmem:[%s5127_s11 + $0x270] sm:$0xff] %vm3287_vm0, %v4554_v0  ;;  %4575 = vpow2.f32 %v3634_v61  ;;  %v2098_v9 = vadd.f32 %v5907_v3, %v1895_v2  ;;  %v1156_v31 = vpop.f32.mrb[172].mxu0 }
 0x272   : > { %v4558_v7 = vpop.eup %4557  ;;  %4577 = vrcp.f32 %v2877_v1  ;;  %v2780_v8 = vadd.f32 1.0, %v4556_v4  ;;  %v1646_v10 = vpop.f32.mrb[172].mxu1  ;;  %v3635_v13 = vmul.f32 -1.442695, %v2000_v6  ;;  %v1798_v14 = vmul.f32 %v5898_v60, %v1156_v31 }
 0x273   : > { %v4560_v11 = vpop.eup %4559  ;;  %v2878_v12 = vadd.f32 1.0, %v4558_v7  ;;  %4579 = vpow2.f32 %v3732_v20  ;;  %v1158_v15 = vpop.f32.mrb[173].mxu0  ;;  %v3733_v18 = vmul.f32 -1.442695, %v2098_v9  ;;  %v1896_v19 = vmul.f32 %v5898_v60, %v1646_v10 }
 0x274   : > { %v1648_v16 = vpop.f32.mrb[173].mxu1  ;;  %v4562_v17 = vpop.eup %4561  ;;  %4581 = vrcp.f32 %v2780_v8  ;;  %v2781_v39 = vadd.f32 1.0, %v4560_v11  ;;  %v2001_v22 = vadd.f32 %v5907_v3, %v1798_v14 }
 0x275   : > { %v4564_v21 = vpop.eup %4563  ;;  %3464 = vst.msk [vmem:[%s5127_s11 + $0x580] sm:$0xff] %vm3287_vm0, %v4562_v17  ;;  %4583 = vrcp.f32 %v2878_v12  ;;  %v2099_v45 = vadd.f32 %v5907_v3, %v1896_v19  ;;  %v1161_v24 = vpop.f32.mrb[174].mxu0 }
 0x276   : > { %v4566_v23 = vpop.eup %4565  ;;  %3367 = vst.msk [vmem:[%s5127_s11 + $0x278] sm:$0xff] %vm3287_vm0, %v4564_v21  ;;  %4585 = vrcp.f32 %v2781_v39  ;;  %v1651_v25 = vpop.f32.mrb[174].mxu1  ;;  %v3636_v28 = vmul.f32 -1.442695, %v2001_v22  ;;  %v1799_v29 = vmul.f32 %v5898_v60, %v1161_v24 }
 0x277   : > { %v4568_v26 = vpop.eup %4567  ;;  %v2879_v27 = vadd.f32 1.0, %v4566_v23  ;;  %4587 = vpow2.f32 %v3635_v13  ;;  %v1163_v30 = vpop.f32.mrb[175].mxu0  ;;  %v3734_v35 = vmul.f32 -1.442695, %v2099_v45  ;;  %v1897_v36 = vmul.f32 %v5898_v60, %v1651_v25 }
 0x278   : > { %v1653_v32 = vpop.f32.mrb[175].mxu1  ;;  %v4570_v33 = vpop.eup %4569  ;;  %v2782_v34 = vadd.f32 1.0, %v4568_v26  ;;  %4589 = vpow2.f32 %v3733_v18  ;;  %v2002_v38 = vadd.f32 %v5907_v3, %v1799_v29 }
 0x279   : > { %v4572_v37 = vpop.eup %4571  ;;  %3465 = vst.msk [vmem:[%s5127_s11 + $0x588] sm:$0xff] %vm3287_vm0, %v4570_v33  ;;  %4591 = vrcp.f32 %v2879_v27  ;;  %v2100_v41 = vadd.f32 %v5907_v3, %v1897_v36  ;;  %v1166_v59 = vpop.f32.mrb[176].mxu0 }
 0x27a   : > { %v4574_v40 = vpop.eup %4573  ;;  %3368 = vst.msk [vmem:[%s5127_s11 + $0x280] sm:$0xff] %vm3287_vm0, %v4572_v37  ;;  %4593 = vrcp.f32 %v2782_v34  ;;  %v1656_v42 = vpop.f32.mrb[176].mxu1  ;;  %v3637_v47 = vmul.f32 -1.442695, %v2002_v38  ;;  %v1800_v5 = vmul.f32 %v5898_v60, %v1166_v59 }
 0x27b   : > { %v4576_v43 = vpop.eup %4575  ;;  %v2880_v44 = vadd.f32 1.0, %v4574_v40  ;;  %4595 = vpow2.f32 %v3636_v28  ;;  %v1168_v48 = vpop.f32.mrb[177].mxu0  ;;  %v1898_v52 = vmul.f32 %v5898_v60, %v1656_v42  ;;  %v3735_v54 = vmul.f32 -1.442695, %v2100_v41 }
 0x27c   : > { %v1658_v49 = vpop.f32.mrb[177].mxu1  ;;  %v4578_v50 = vpop.eup %4577  ;;  %v2783_v51 = vadd.f32 1.0, %v4576_v43  ;;  %4597 = vpow2.f32 %v3734_v35  ;;  %v2003_v46 = vadd.f32 %v5907_v3, %v1800_v5 }
 0x27d   : > { %v4580_v53 = vpop.eup %4579  ;;  %3466 = vst.msk [vmem:[%s5127_s11 + $0x590] sm:$0xff] %vm3287_vm0, %v4578_v50  ;;  %4599 = vrcp.f32 %v2880_v44  ;;  %v2101_v58 = vadd.f32 %v5907_v3, %v1898_v52  ;;  %v1171_v61 = vpop.f32.mrb[178].mxu0 }
 0x27e   : > { %v4582_v56 = vpop.eup %4581  ;;  %4601 = vrcp.f32 %v2783_v51  ;;  %v2881_v57 = vadd.f32 1.0, %v4580_v53  ;;  %v1661_v20 = vpop.f32.mrb[178].mxu1  ;;  %v3638_v55 = vmul.f32 -1.442695, %v2003_v46  ;;  %v1801_v63 = vmul.f32 %v5898_v60, %v1171_v61 }
 0x27f   : > { %v4584_v62 = vpop.eup %4583  ;;  %3369 = vst.msk [vmem:[%s5127_s11 + $0x288] sm:$0xff] %vm3287_vm0, %v4582_v56  ;;  %4603 = vpow2.f32 %v3637_v47  ;;  %v1899_v0 = vmul.f32 %v5898_v60, %v1661_v20  ;;  %v1173_v1 = vpop.f32.mrb[179].mxu0  ;;  %v3736_v6 = vmul.f32 -1.442695, %v2101_v58 }
 0x280   : > { %v1663_v2 = vpop.f32.mrb[179].mxu1  ;;  %v4586_v4 = vpop.eup %4585  ;;  %3467 = vst.msk [vmem:[%s5127_s11 + $0x598] sm:$0xff] %vm3287_vm0, %v4584_v62  ;;  %4605 = vrcp.f32 %v2881_v57  ;;  %v2004_v8 = vadd.f32 %v5907_v3, %v1801_v63 }
 0x281   : > { %v4588_v7 = vpop.eup %4587  ;;  %3370 = vst.msk [vmem:[%s5127_s11 + $0x290] sm:$0xff] %vm3287_vm0, %v4586_v4  ;;  %4607 = vpow2.f32 %v3735_v54  ;;  %v2102_v9 = vadd.f32 %v5907_v3, %v1899_v0  ;;  %v1176_v11 = vpop.f32.mrb[180].mxu0 }
 0x282   : > { %v4590_v31 = vpop.eup %4589  ;;  %v2784_v10 = vadd.f32 1.0, %v4588_v7  ;;  %4609 = vpow2.f32 %v3638_v55  ;;  %v1666_v12 = vpop.f32.mrb[180].mxu1  ;;  %v3639_v15 = vmul.f32 -1.442695, %v2004_v8  ;;  %v1802_v18 = vmul.f32 %v5898_v60, %v1176_v11 }
 0x283   : > { %v4592_v13 = vpop.eup %4591  ;;  %v2882_v14 = vadd.f32 1.0, %v4590_v31  ;;  %4611 = vpow2.f32 %v3736_v6  ;;  %v3737_v16 = vmul.f32 -1.442695, %v2102_v9  ;;  %v1178_v17 = vpop.f32.mrb[181].mxu0  ;;  %v1900_v19 = vmul.f32 %v5898_v60, %v1666_v12 }
 0x284   : > { %v4594_v39 = vpop.eup %4593  ;;  %3468 = vst.msk [vmem:[%s5127_s11 + $0x5a0] sm:$0xff] %vm3287_vm0, %v4592_v13  ;;  %4613 = vrcp.f32 %v2784_v10  ;;  %v1668_v21 = vpop.f32.mrb[181].mxu1  ;;  %v2005_v24 = vadd.f32 %v5907_v3, %v1802_v18 }
 0x285   : > { %v4596_v22 = vpop.eup %4595  ;;  %3371 = vst.msk [vmem:[%s5127_s11 + $0x298] sm:$0xff] %vm3287_vm0, %v4594_v39  ;;  %4615 = vrcp.f32 %v2882_v14  ;;  %v2103_v25 = vadd.f32 %v5907_v3, %v1900_v19  ;;  %v1181_v26 = vpop.f32.mrb[182].mxu0 }
 0x286   : > { %v4598_v23 = vpop.eup %4597  ;;  %v2785_v45 = vadd.f32 1.0, %v4596_v22  ;;  %4617 = vpow2.f32 %v3639_v15  ;;  %v1671_v27 = vpop.f32.mrb[182].mxu1  ;;  %v1803_v30 = vmul.f32 %v5898_v60, %v1181_v26  ;;  %v3640_v36 = vmul.f32 -1.442695, %v2005_v24 }
 0x287   : > { %v4600_v28 = vpop.eup %4599  ;;  %v2883_v29 = vadd.f32 1.0, %v4598_v23  ;;  %4619 = vpow2.f32 %v3737_v16  ;;  %v1901_v32 = vmul.f32 %v5898_v60, %v1671_v27  ;;  %v1183_v33 = vpop.f32.mrb[183].mxu0  ;;  %v3738_v37 = vmul.f32 -1.442695, %v2103_v25 }
 0x288   : > { %v1673_v34 = vpop.f32.mrb[183].mxu1  ;;  %v4602_v35 = vpop.eup %4601  ;;  %3469 = vst.msk [vmem:[%s5127_s11 + $0x5a8] sm:$0xff] %vm3287_vm0, %v4600_v28  ;;  %4621 = vrcp.f32 %v2785_v45  ;;  %v2006_v40 = vadd.f32 %v5907_v3, %v1803_v30 }
 0x289   : > { %v4604_v38 = vpop.eup %4603  ;;  %3372 = vst.msk [vmem:[%s5127_s11 + $0x2a0] sm:$0xff] %vm3287_vm0, %v4602_v35  ;;  %4623 = vrcp.f32 %v2883_v29  ;;  %v2104_v41 = vadd.f32 %v5907_v3, %v1901_v32  ;;  %v1186_v43 = vpop.f32.mrb[184].mxu0 }
 0x28a   : > { %v4606_v59 = vpop.eup %4605  ;;  %v2786_v42 = vadd.f32 1.0, %v4604_v38  ;;  %4625 = vpow2.f32 %v3640_v36  ;;  %v1676_v44 = vpop.f32.mrb[184].mxu1  ;;  %v3641_v5 = vmul.f32 -1.442695, %v2006_v40  ;;  %v1804_v48 = vmul.f32 %v5898_v60, %v1186_v43 }
 0x28b   : > { %v4608_v47 = vpop.eup %4607  ;;  %3470 = vst.msk [vmem:[%s5127_s11 + $0x5b0] sm:$0xff] %vm3287_vm0, %v4606_v59  ;;  %4627 = vpow2.f32 %v3738_v37  ;;  %v1188_v49 = vpop.f32.mrb[185].mxu0  ;;  %v1902_v53 = vmul.f32 %v5898_v60, %v1676_v44  ;;  %v3739_v56 = vmul.f32 -1.442695, %v2104_v41 }
 0x28c   : > { %v1678_v50 = vpop.f32.mrb[185].mxu1  ;;  %v4610_v51 = vpop.eup %4609  ;;  %4629 = vrcp.f32 %v2786_v42  ;;  %v2884_v52 = vadd.f32 1.0, %v4608_v47  ;;  %v2007_v57 = vadd.f32 %v5907_v3, %v1804_v48 }
 0x28d   : > { %v4612_v54 = vpop.eup %4611  ;;  %v2787_v46 = vadd.f32 1.0, %v4610_v51  ;;  %4631 = vpow2.f32 %v3641_v5  ;;  %v2105_v20 = vadd.f32 %v5907_v3, %v1902_v53  ;;  %v1191_v62 = vpop.f32.mrb[186].mxu0 }
 0x28e   : > { %v4614_v58 = vpop.eup %4613  ;;  %4633 = vrcp.f32 %v2884_v52  ;;  %v2885_v61 = vadd.f32 1.0, %v4612_v54  ;;  %v1681_v55 = vpop.f32.mrb[186].mxu1  ;;  %v3642_v0 = vmul.f32 -1.442695, %v2007_v57  ;;  %v1805_v1 = vmul.f32 %v5898_v60, %v1191_v62 }
 0x28f   : > { %v4616_v63 = vpop.eup %4615  ;;  %3373 = vst.msk [vmem:[%s5127_s11 + $0x2a8] sm:$0xff] %vm3287_vm0, %v4614_v58  ;;  %4635 = vrcp.f32 %v2787_v46  ;;  %v1903_v2 = vmul.f32 %v5898_v60, %v1681_v55  ;;  %v1193_v4 = vpop.f32.mrb[187].mxu0  ;;  %v3740_v8 = vmul.f32 -1.442695, %v2105_v20 }
 0x290   : > { %v1683_v6 = vpop.f32.mrb[187].mxu1  ;;  %v4618_v7 = vpop.eup %4617  ;;  %3471 = vst.msk [vmem:[%s5127_s11 + $0x5b8] sm:$0xff] %vm3287_vm0, %v4616_v63  ;;  %4637 = vrcp.f32 %v2885_v61  ;;  %v2008_v10 = vadd.f32 %v5907_v3, %v1805_v1 }
 0x291   : > { %v4620_v9 = vpop.eup %4619  ;;  %v2788_v31 = vadd.f32 1.0, %v4618_v7  ;;  %4639 = vpow2.f32 %v3739_v56  ;;  %v2106_v11 = vadd.f32 %v5907_v3, %v1903_v2  ;;  %v1196_v14 = vpop.f32.mrb[188].mxu0 }
 0x292   : > { %v4622_v12 = vpop.eup %4621  ;;  %v2886_v13 = vadd.f32 1.0, %v4620_v9  ;;  %4641 = vpow2.f32 %v3642_v0  ;;  %v1686_v15 = vpop.f32.mrb[188].mxu1  ;;  %v3643_v17 = vmul.f32 -1.442695, %v2008_v10  ;;  %v1806_v39 = vmul.f32 %v5898_v60, %v1196_v14 }
 0x293   : > { %v4624_v16 = vpop.eup %4623  ;;  %3374 = vst.msk [vmem:[%s5127_s11 + $0x2b0] sm:$0xff] %vm3287_vm0, %v4622_v12  ;;  %4643 = vrcp.f32 %v2788_v31  ;;  %v1198_v18 = vpop.f32.mrb[189].mxu0  ;;  %v1904_v22 = vmul.f32 %v5898_v60, %v1686_v15  ;;  %v3741_v24 = vmul.f32 -1.442695, %v2106_v11 }
 0x294   : > { %v1688_v19 = vpop.f32.mrb[189].mxu1  ;;  %v4626_v21 = vpop.eup %4625  ;;  %3472 = vst.msk [vmem:[%s5127_s11 + $0x5c0] sm:$0xff] %vm3287_vm0, %v4624_v16  ;;  %4645 = vrcp.f32 %v2886_v13  ;;  %v2009_v25 = vadd.f32 %v5907_v3, %v1806_v39 }
 0x295   : > { %v4628_v23 = vpop.eup %4627  ;;  %v2789_v45 = vadd.f32 1.0, %v4626_v21  ;;  %4647 = vpow2.f32 %v3740_v8  ;;  %v2107_v28 = vadd.f32 %v5907_v3, %v1904_v22  ;;  %v1201_v29 = vpop.f32.mrb[190].mxu0 }
 0x296   : > { %v4630_v26 = vpop.eup %4629  ;;  %v2887_v27 = vadd.f32 1.0, %v4628_v23  ;;  %4649 = vpow2.f32 %v3643_v17  ;;  %v1691_v30 = vpop.f32.mrb[190].mxu1  ;;  %v3644_v33 = vmul.f32 -1.442695, %v2009_v25  ;;  %v1807_v34 = vmul.f32 %v5898_v60, %v1201_v29 }
 0x297   : > { %v4632_v32 = vpop.eup %4631  ;;  %3375 = vst.msk [vmem:[%s5127_s11 + $0x2b8] sm:$0xff] %vm3287_vm0, %v4630_v26  ;;  %4651 = vrcp.f32 %v2789_v45  ;;  %v1905_v35 = vmul.f32 %v5898_v60, %v1691_v30  ;;  %v1203_v36 = vpop.f32.mrb[191].mxu0  ;;  %v3742_v41 = vmul.f32 -1.442695, %v2107_v28 }
 0x298   : > { %v1693_v37 = vpop.f32.mrb[191].mxu1  ;;  %v4634_v38 = vpop.eup %4633  ;;  %4653 = vrcp.f32 %v2887_v27  ;;  %v2790_v40 = vadd.f32 1.0, %v4632_v32  ;;  %v2010_v42 = vadd.f32 %v5907_v3, %v1807_v34 }
 0x299   : > { %v4636_v59 = vpop.eup %4635  ;;  %3473 = vst.msk [vmem:[%s5127_s11 + $0x5c8] sm:$0xff] %vm3287_vm0, %v4634_v38  ;;  %4655 = vpow2.f32 %v3741_v24  ;;  %v2108_v43 = vadd.f32 %v5907_v3, %v1905_v35  ;;  %v1206_v47 = vpop.f32.mrb[192].mxu0 }
 0x29a   : > { %v4638_v44 = vpop.eup %4637  ;;  %3376 = vst.msk [vmem:[%s5127_s11 + $0x2c0] sm:$0xff] %vm3287_vm0, %v4636_v59  ;;  %4657 = vrcp.f32 %v2790_v40  ;;  %v1696_v5 = vpop.f32.mrb[192].mxu1  ;;  %v3645_v49 = vmul.f32 -1.442695, %v2010_v42  ;;  %v1808_v50 = vmul.f32 %v5898_v60, %v1206_v47 }
 0x29b   : > { %v4640_v48 = vpop.eup %4639  ;;  %3474 = vst.msk [vmem:[%s5127_s11 + $0x5d0] sm:$0xff] %vm3287_vm0, %v4638_v44  ;;  %4659 = vpow2.f32 %v3644_v33  ;;  %v1208_v51 = vpop.f32.mrb[193].mxu0  ;;  %v3743_v46 = vmul.f32 -1.442695, %v2108_v43  ;;  %v1906_v56 = vmul.f32 %v5898_v60, %v1696_v5 }
 0x29c   : > { %v1698_v52 = vpop.f32.mrb[193].mxu1  ;;  %v4642_v53 = vpop.eup %4641  ;;  %v2888_v54 = vadd.f32 1.0, %v4640_v48  ;;  %4661 = vpow2.f32 %v3742_v41  ;;  %v2011_v61 = vadd.f32 %v5907_v3, %v1808_v50 }
 0x29d   : > { %v4644_v57 = vpop.eup %4643  ;;  %v2791_v58 = vadd.f32 1.0, %v4642_v53  ;;  %4663 = vpow2.f32 %v3645_v49  ;;  %v2109_v62 = vadd.f32 %v5907_v3, %v1906_v56  ;;  %v1211_v55 = vpop.f32.mrb[194].mxu0 }
 0x29e   : > { %v4646_v20 = vpop.eup %4645  ;;  %3377 = vst.msk [vmem:[%s5127_s11 + $0x2c8] sm:$0xff] %vm3287_vm0, %v4644_v57  ;;  %4665 = vrcp.f32 %v2888_v54  ;;  %v1701_v63 = vpop.f32.mrb[194].mxu1  ;;  %v3646_v1 = vmul.f32 -1.442695, %v2011_v61  ;;  %v1809_v2 = vmul.f32 %v5898_v60, %v1211_v55 }
 0x29f   : > { %v4648_v0 = vpop.eup %4647  ;;  %3475 = vst.msk [vmem:[%s5127_s11 + $0x5d8] sm:$0xff] %vm3287_vm0, %v4646_v20  ;;  %4667 = vrcp.f32 %v2791_v58  ;;  %v1907_v4 = vmul.f32 %v5898_v60, %v1701_v63  ;;  %v1213_v6 = vpop.f32.mrb[195].mxu0  ;;  %v3744_v31 = vmul.f32 -1.442695, %v2109_v62 }
 0x2a0   : > { %v1703_v7 = vpop.f32.mrb[195].mxu1  ;;  %v4650_v8 = vpop.eup %4649  ;;  %v2889_v9 = vadd.f32 1.0, %v4648_v0  ;;  %4669 = vpow2.f32 %v3743_v46  ;;  %v2012_v12 = vadd.f32 %v5907_v3, %v1809_v2 }
 0x2a1   : > { %v4652_v10 = vpop.eup %4651  ;;  %v2792_v11 = vadd.f32 1.0, %v4650_v8  ;;  %4671 = vpow2.f32 %v3646_v1  ;;  %v2110_v13 = vadd.f32 %v5907_v3, %v1907_v4 }
 0x2a2   : > { %v4654_v14 = vpop.eup %4653  ;;  %3378 = vst.msk [vmem:[%s5127_s11 + $0x2d0] sm:$0xff] %vm3287_vm0, %v4652_v10  ;;  %4673 = vrcp.f32 %v2889_v9  ;;  %v3647_v15 = vmul.f32 -1.442695, %v2012_v12 }
 0x2a3   : > { %v4656_v60 = vpop.eup %4655  ;;  %3476 = vst.msk [vmem:[%s5127_s11 + $0x5e0] sm:$0xff] %vm3287_vm0, %v4654_v14  ;;  %4675 = vrcp.f32 %v2792_v11  ;;  %v3745_v16 = vmul.f32 -1.442695, %v2110_v13 }
 0x2a4   : > { %v4658_v17 = vpop.eup %4657  ;;  %v2890_v39 = vadd.f32 1.0, %v4656_v60  ;;  %4677 = vpow2.f32 %v3744_v31 }
 0x2a5   : > { %v4660_v18 = vpop.eup %4659  ;;  %3379 = vst.msk [vmem:[%s5127_s11 + $0x2d8] sm:$0xff] %vm3287_vm0, %v4658_v17  ;;  %4679 = vpow2.f32 %v3647_v15 }
 0x2a6   : > { %v4662_v3 = vpop.eup %4661  ;;  %4681 = vrcp.f32 %v2890_v39  ;;  %v2793_v19 = vadd.f32 1.0, %v4660_v18 }
 0x2a7   : > { %v4664_v21 = vpop.eup %4663  ;;  %v2891_v22 = vadd.f32 1.0, %v4662_v3  ;;  %4683 = vpow2.f32 %v3745_v16 }
 0x2a8   : > { %v4666_v23 = vpop.eup %4665  ;;  %4685 = vrcp.f32 %v2793_v19  ;;  %v2794_v45 = vadd.f32 1.0, %v4664_v21 }
 0x2a9   : > { %v4668_v24 = vpop.eup %4667  ;;  %3477 = vst.msk [vmem:[%s5127_s11 + $0x5e8] sm:$0xff] %vm3287_vm0, %v4666_v23  ;;  %4687 = vrcp.f32 %v2891_v22 }
 0x2aa   : > { %v4670_v25 = vpop.eup %4669  ;;  %3380 = vst.msk [vmem:[%s5127_s11 + $0x2e0] sm:$0xff] %vm3287_vm0, %v4668_v24  ;;  %4689 = vrcp.f32 %v2794_v45 }
 0x2ab   : > { %v4672_v26 = vpop.eup %4671  ;;  %v2892_v27 = vadd.f32 1.0, %v4670_v25 }
 0x2ac   : > { %v4674_v28 = vpop.eup %4673  ;;  %v2795_v29 = vadd.f32 1.0, %v4672_v26 }
 0x2ad   : > { %v4676_v30 = vpop.eup %4675  ;;  %3478 = vst.msk [vmem:[%s5127_s11 + $0x5f0] sm:$0xff] %vm3287_vm0, %v4674_v28  ;;  %4691 = vrcp.f32 %v2892_v27 }
 0x2ae   : > { %v4678_v32 = vpop.eup %4677  ;;  %3381 = vst.msk [vmem:[%s5127_s11 + $0x2e8] sm:$0xff] %vm3287_vm0, %v4676_v30  ;;  %4693 = vrcp.f32 %v2795_v29 }
 0x2af   : > { %v4680_v33 = vpop.eup %4679  ;;  %v2893_v34 = vadd.f32 1.0, %v4678_v32 }
 0x2b0   : > { %v4682_v35 = vpop.eup %4681  ;;  %v2796_v36 = vadd.f32 1.0, %v4680_v33 }
 0x2b1   : > { %v4684_v37 = vpop.eup %4683  ;;  %3479 = vst.msk [vmem:[%s5127_s11 + $0x5f8] sm:$0xff] %vm3287_vm0, %v4682_v35  ;;  %4695 = vrcp.f32 %v2893_v34 }
 0x2b2   : > { %v4686_v38 = vpop.eup %4685  ;;  %4697 = vrcp.f32 %v2796_v36  ;;  %v2894_v40 = vadd.f32 1.0, %v4684_v37 }
 0x2b3   : > { %v4688_v41 = vpop.eup %4687  ;;  %3382 = vst.msk [vmem:[%s5127_s11 + $0x2f0] sm:$0xff] %vm3287_vm0, %v4686_v38 }
 0x2b4   : > { %v4690_v59 = vpop.eup %4689  ;;  %3480 = vst.msk [vmem:[%s5127_s11 + $0x600] sm:$0xff] %vm3287_vm0, %v4688_v41  ;;  %4699 = vrcp.f32 %v2894_v40 }
 0x2b5   : > { %3383 = vst.msk [vmem:[%s5127_s11 + $0x2f8] sm:$0xff] %vm3287_vm0, %v4690_v59 }
 0x2b7   : > { %v4692_v42 = vpop.eup %4691 }
 0x2b8   : > { %v4694_v43 = vpop.eup %4693  ;;  %3481 = vst.msk [vmem:[%s5127_s11 + $0x608] sm:$0xff] %vm3287_vm0, %v4692_v42 }
 0x2b9   : > { %3384 = vst.msk [vmem:[%s5127_s11 + $0x300] sm:$0xff] %vm3287_vm0, %v4694_v43 }
 0x2bb   : > { %v4696_v44 = vpop.eup %4695 }
 0x2bc   : > { %v4698_v47 = vpop.eup %4697  ;;  %3482 = vst.msk [vmem:[%s5127_s11 + $0x610] sm:$0xff] %vm3287_vm0, %v4696_v44 }
 0x2bd   : > { %3385 = vst.msk [vmem:[%s5127_s11 + $0x308] sm:$0xff] %vm3287_vm0, %v4698_v47 }
 0x2be   : > { %v4700_v5 = vpop.eup %4699 }
 0x2bf   : > { %3483 = vst.msk [vmem:[%s5127_s11 + $0x618] sm:$0xff] %vm3287_vm0, %v4700_v5 }
 0x2c0 PF: > { %s14_s15 = sadd.s32 1, %s4715_s15  }
 0x2c1   : > { %p11_p4 = scmp.ge.s32.totalorder %s14_s15, 6  }
 0x2c3   :  { %13 = sbr.rel (!%p11_p4) target bundleno = 1 (0x1), region = 66 }

</bundles_post_ra>
